<compile_context>
chip_gen: v6e
topology: v6e:2x2x1
jax: 0.10.0
libtpu: 0.0.40
codegen_flags: <defaults>
</compile_context>

<pallas_src>
import functools

import numpy as np
import jax
import jax.numpy as jnp
from jax.experimental import pallas as pl
from jax.experimental.pallas import tpu as pltpu

BN_EPS = 1e-5
PAD = 128          # lane-aligned left pad of the shifted-conv scratch
BN_SIZE = 5        # bottleneck channels of every InceptionPiece
BN_PAD = 8         # bottleneck channels padded to a full sublane group
KTAPS = 25         # 5x5 taps of the fused branch conv


def _full_spec(shape):
    nd = len(shape)
    return pl.BlockSpec(shape, lambda *_: (0,) * nd)


# ---------------------------------------------------------------------------
# The single fused kernel
# ---------------------------------------------------------------------------
def fused_kernel(x_ref, w1_ref, b1_ref,
                 bw1_ref, bb1_ref, wim1_ref, bf1_ref, gm1_ref, bt1_ref, m1_ref,
                 sel1_ref,
                 bw2_ref, bb2_ref, wim2_ref, bf2_ref, gm2_ref, bt2_ref, m2_ref,
                 bw3_ref, bb3_ref, wim3_ref, bf3_ref, gm3_ref, bt3_ref,
                 vt_ref, selnt_ref, fb1_ref, w2t_ref, fb2_ref,
                 o_ref,
                 spool_ref, hpad_ref, gim_ref, *, dims):
    N, H, W = dims
    H1, W1 = H // 2, W // 2              # 14x14 after the stem pool
    H2, W2 = H1 // 2, W1 // 2            # 7x7 after the inter-block pool
    M1, M2 = N * H1 * W1, N * H2 * W2

    def incept(x_slab, bw_ref, bb_ref, wim_ref, bf_ref, gm_ref, bt_ref,
               mask_ref, w_img, m):
        """Fused InceptionPiece on a [cin, m] slab -> [3*out, m] slab."""
        # bottleneck 1x1 conv + ReLU (weights pre-padded to 8 output rows)
        h = jnp.dot(bw_ref[...], x_slab, preferred_element_type=jnp.float32)
        h = jnp.maximum(h + bb_ref[...], 0.0)                        # [8, m]
        # Zero-padded copy so the 25 shifted tap windows are static slices.
        # Only the two pad regions are zeroed; the centre write is lane-aligned.
        hpad_ref[:, :PAD] = jnp.zeros((BN_PAD, PAD), jnp.float32)
        hpad_ref[:, PAD:PAD + m] = h
        tail = hpad_ref.shape[1] - (PAD + m)
        hpad_ref[:, PAD + m:] = jnp.zeros((BN_PAD, tail), jnp.float32)
        # im2col: 25 masked shifted copies -> [25*8, m] scratch ...
        for t in range(KTAPS):
            dy, dx = t // 5 - 2, t % 5 - 2
            off = dy * w_img + dx
            gim_ref[t * BN_PAD:(t + 1) * BN_PAD, :m] = (
                hpad_ref[:, PAD + off:PAD + off + m] * mask_ref[t])
        # ... then ONE K=200 matmul computes all three branches at once.
        y = jnp.dot(wim_ref[...], gim_ref[:, :m],
                    preferred_element_type=jnp.float32)
        y = jnp.maximum(y + bf_ref[...], 0.0)                        # branch ReLU
        # training-mode BatchNorm over N*H*W (one-pass, biased variance)
        mean = jnp.mean(y, axis=1, keepdims=True)
        var = jnp.maximum(
            jnp.mean(y * y, axis=1, keepdims=True) - mean * mean, 0.0)
        inv = jax.lax.rsqrt(var + BN_EPS)
        return (y - mean) * inv * gm_ref[...] + bt_ref[...]

    # ---- stem: relu(max_pool2d(conv1(x), 2)) -------------------------------
    # x_ref holds the four 2x2-pooling taps of the input (a pure permutation
    # of x built once in the wrapper); conv1 is 1x1 so pool(conv) equals the
    # max of the conv applied to each tap.
    w1 = w1_ref[...]
    y = jnp.dot(w1, x_ref[0], preferred_element_type=jnp.float32)
    for j in range(1, 4):
        y = jnp.maximum(
            y, jnp.dot(w1, x_ref[j], preferred_element_type=jnp.float32))
    s = jnp.maximum(y + b1_ref[...], 0.0)                            # [15, M1]

    # ---- inception block 1 (14x14) -----------------------------------------
    s = incept(s, bw1_ref, bb1_ref, wim1_ref, bf1_ref, gm1_ref, bt1_ref,
               m1_ref, W1, M1)                                       # [21, M1]

    # ---- in-kernel 2x2 max-pool (14x14 -> 7x7) ------------------------------
    # Shift+max over the pool scratch, then a 0/1 selection matmul keeps only
    # the even-row/even-col window anchors (gather-as-matmul on the MXU).
    cch = s.shape[0]
    spool_ref[:cch, :M1] = s
    spool_ref[:cch, M1:] = jnp.zeros(
        (cch, spool_ref.shape[1] - M1), jnp.float32)
    pf = s
    for off in (1, W1, W1 + 1):
        pf = jnp.maximum(pf, spool_ref[:cch, off:off + M1])
    s = jnp.dot(pf, sel1_ref[...], preferred_element_type=jnp.float32)  # [21, M2]

    # ---- inception blocks 2 & 3 (7x7) ---------------------------------------
    s = incept(s, bw2_ref, bb2_ref, wim2_ref, bf2_ref, gm2_ref, bt2_ref,
               m2_ref, W2, M2)                                       # [21, M2]
    s = incept(s, bw3_ref, bb3_ref, wim3_ref, bf3_ref, gm3_ref, bt3_ref,
               m2_ref, W2, M2)                                       # [15, M2]

    # ---- tail: NCHW flatten (folded into vt) + fc1 + ReLU + fc2 + lsm -------
    # vt[c, j, n*49 + p] = fc1_w[j, c*49 + p]; per-lane contraction over c,
    # then a per-batch lane-segment sum via the selnt 0/1 matmul.
    nch = s.shape[0]
    acc = vt_ref[0] * s[0:1, :]
    for ci in range(1, nch):
        acc = acc + vt_ref[ci] * s[ci:ci + 1, :]                     # [50, M2]
    h1 = jax.lax.dot_general(selnt_ref[...], acc,
                             dimension_numbers=(((1,), (1,)), ((), ())),
                             preferred_element_type=jnp.float32)     # [N, 50]
    h1 = jnp.maximum(h1 + fb1_ref[...], 0.0)
    z = jnp.dot(h1, w2t_ref[...], preferred_element_type=jnp.float32)
    z = z + fb2_ref[...]                                             # [N, 10]
    mx = jnp.max(z, axis=1, keepdims=True)
    sh = z - mx
    o_ref[...] = sh - jnp.log(jnp.sum(jnp.exp(sh), axis=1, keepdims=True))


# ---------------------------------------------------------------------------
# One-time parameter / constant preparation (hoisted out of the forward)
# ---------------------------------------------------------------------------
def _tap_masks_np(N, H, W):
    """[25, 1, N*H*W] validity masks for the 5x5 taps on a flattened slab."""
    M = N * H * W
    m = np.arange(M)
    xc, yc = m % W, (m // W) % H
    masks = np.zeros((KTAPS, 1, M), np.float32)
    for t in range(KTAPS):
        dy, dx = t // 5 - 2, t % 5 - 2
        ok = ((xc + dx >= 0) & (xc + dx < W) & (yc + dy >= 0) & (yc + dy < H))
        masks[t, 0, :] = ok.astype(np.float32)
    return masks


def _pool_sel_np(N, H, W):
    """0/1 matrix selecting the even-row/even-col 2x2-window anchors."""
    Ho, Wo = H // 2, W // 2
    m_in, m_out = N * H * W, N * Ho * Wo
    sel = np.zeros((m_in, m_out), np.float32)
    mo = np.arange(m_out)
    n = mo // (Ho * Wo)
    yo = (mo // Wo) % Ho
    xo = mo % Wo
    sel[n * H * W + (2 * yo) * W + (2 * xo), mo] = 1.0
    return sel


def _batch_sel_np(N, pix):
    """0/1 matrix summing each batch element's lane segment."""
    sel = np.zeros((N, N * pix), np.float32)
    for n in range(N):
        sel[n, n * pix:(n + 1) * pix] = 1.0
    return sel


def _prep_incept(p):
    """Fuse the three branch convs into one 5x5 'im2col' weight [3o, 25*8]."""
    cin = p["bot_w"].shape[1]
    out = p["c1_w"].shape[0]
    cout3 = 3 * out
    bw = jnp.pad(p["bot_w"].reshape(BN_SIZE, cin),
                 ((0, BN_PAD - BN_SIZE), (0, 0)))
    bb = jnp.pad(p["bot_b"].reshape(BN_SIZE, 1),
                 ((0, BN_PAD - BN_SIZE), (0, 0)))
    w1p = jnp.pad(p["c1_w"], ((0, 0), (0, 0), (2, 2), (2, 2)))
    w2p = jnp.pad(p["c2_w"], ((0, 0), (0, 0), (1, 1), (1, 1)))
    wf = jnp.concatenate([w1p, w2p, p["c3_w"]], axis=0)            # [3o,5,5,5]
    wt = wf.transpose(2, 3, 0, 1).reshape(KTAPS, cout3, BN_SIZE)   # [25,3o,5]
    wt = jnp.pad(wt, ((0, 0), (0, 0), (0, BN_PAD - BN_SIZE)))      # [25,3o,8]
    wim = wt.transpose(1, 0, 2).reshape(cout3, KTAPS * BN_PAD)     # [3o, 200]
    bf = jnp.concatenate([p["c1_b"], p["c2_b"], p["c3_b"]]).reshape(cout3, 1)
    return bw, bb, wim, bf, p["gamma"].reshape(cout3, 1), p["beta"].reshape(cout3, 1)


ARG_NAMES = ("w1", "b1",
             "bw1", "bb1", "wim1", "bf1", "gm1", "bt1", "m1",
             "sel1",
             "bw2", "bb2", "wim2", "bf2", "gm2", "bt2", "m2",
             "bw3", "bb3", "wim3", "bf3", "gm3", "bt3",
             "vt", "selnt", "fb1", "w2t", "fb2")


def prepare_params(params, input_shape):
    """One-time prep: fold/pad/reorder all weights, build constant matrices."""
    N, cin, H, W = input_shape
    H1, W1, H2, W2 = H // 2, W // 2, H // 4, W // 4
    pix = H2 * W2
    prep = {
        "w1": params["conv1_w"].reshape(15, cin),
        "b1": params["conv1_b"].reshape(15, 1),
        "m1": jnp.asarray(_tap_masks_np(N, H1, W1)),
        "m2": jnp.asarray(_tap_masks_np(N, H2, W2)),
        "sel1": jnp.asarray(_pool_sel_np(N, H1, W1)),
        "selnt": jnp.asarray(_batch_sel_np(N, pix)),
        "fb1": params["fc1_b"].reshape(1, 50),
        "w2t": params["fc2_w"].T,
        "fb2": params["fc2_b"].reshape(1, 10),
    }
    for i, name in ((1, "inc1"), (2, "inc2"), (3, "inc3")):
        bw, bb, wim, bf, gm, bt = _prep_incept(params[name])
        prep[f"bw{i}"], prep[f"bb{i}"], prep[f"wim{i}"] = bw, bb, wim
        prep[f"bf{i}"], prep[f"gm{i}"], prep[f"bt{i}"] = bf, gm, bt
    # fc1 weights rearranged so the NCHW flatten happens inside the kernel:
    # vt[c, j, n*pix + p] = fc1_w[j, c*pix + p]
    v = params["fc1_w"].reshape(50, 15, pix).transpose(1, 0, 2)    # [15,50,pix]
    prep["vt"] = jnp.tile(v, (1, 1, N))                            # [15,50,N*pix]
    return prep


# ---------------------------------------------------------------------------
# Forward pass: one fused pallas_call
# ---------------------------------------------------------------------------
def inception_like_net(x, prep):
    N, cin, H, W = x.shape
    H1, W1 = H // 2, W // 2
    M1 = N * H1 * W1
    # The four 2x2-pooling taps of the input (a pure permutation of x; the
    # only XLA op outside the kernel).
    taps = x.reshape(N, cin, H1, 2, W1, 2).transpose(3, 5, 1, 0, 2, 4)
    taps = taps.reshape(4, cin, M1)
    args = [taps] + [prep[k] for k in ARG_NAMES]
    kern = functools.partial(fused_kernel, dims=(N, H, W))
    return pl.pallas_call(
        kern,
        out_shape=jax.ShapeDtypeStruct((N, 10), jnp.float32),
        in_specs=[_full_spec(a.shape) for a in args],
        out_specs=_full_spec((N, 10)),
        scratch_shapes=[
            pltpu.VMEM((24, M1 + 16), jnp.float32),            # pool scratch
            pltpu.VMEM((BN_PAD, PAD + M1 + 32), jnp.float32),  # shifted-h pad
            pltpu.VMEM((KTAPS * BN_PAD, M1), jnp.float32),     # im2col scratch
        ],
    )(*args)


# ---------------------------------------------------------------------------
# Parameters (torch layout) and a pure-JAX reference for validation
# ---------------------------------------------------------------------------
def _conv_params(key, cin, cout, k):
    k1, k2 = jax.random.split(key)
    w = jax.random.normal(k1, (cout, cin, k, k), jnp.float32) * 0.1
    b = jax.random.normal(k2, (cout,), jnp.float32) * 0.1
    return w, b


def _incept_params(key, cin, cout):
    ks = jax.random.split(key, 4)
    p = {}
    p["bot_w"], p["bot_b"] = _conv_params(ks[0], cin, BN_SIZE, 1)
    p["c1_w"], p["c1_b"] = _conv_params(ks[1], BN_SIZE, cout, 1)
    p["c2_w"], p["c2_b"] = _conv_params(ks[2], BN_SIZE, cout, 3)
    p["c3_w"], p["c3_b"] = _conv_params(ks[3], BN_SIZE, cout, 5)
    p["gamma"] = jnp.ones((cout * 3,), jnp.float32)
    p["beta"] = jnp.zeros((cout * 3,), jnp.float32)
    return p


def init_params(key, ch):
    ks = jax.random.split(key, 6)
    params = {}
    params["conv1_w"], params["conv1_b"] = _conv_params(ks[0], ch, 15, 1)
    params["inc1"] = _incept_params(ks[1], 15, 7)
    params["inc2"] = _incept_params(ks[2], 21, 7)
    params["inc3"] = _incept_params(ks[3], 21, 5)
    k4a, k4b = jax.random.split(ks[4])
    params["fc1_w"] = jax.random.normal(k4a, (50, 735), jnp.float32) * 0.05
    params["fc1_b"] = jax.random.normal(k4b, (50,), jnp.float32) * 0.05
    k5a, k5b = jax.random.split(ks[5])
    params["fc2_w"] = jax.random.normal(k5a, (10, 50), jnp.float32) * 0.05
    params["fc2_b"] = jax.random.normal(k5b, (10,), jnp.float32) * 0.05
    return params


_HI = jax.lax.Precision.HIGHEST


def _conv2d_ref(x, w, b, pad):
    y = jax.lax.conv_general_dilated(
        x, w, window_strides=(1, 1), padding=((pad, pad), (pad, pad)),
        dimension_numbers=("NCHW", "OIHW", "NCHW"), precision=_HI)
    return y + b.reshape(1, -1, 1, 1)


def _maxpool2_ref(x):
    return jax.lax.reduce_window(x, -jnp.inf, jax.lax.max,
                                 (1, 1, 2, 2), (1, 1, 2, 2), "VALID")


def _bn_ref(x, gamma, beta):
    mean = x.mean(axis=(0, 2, 3), keepdims=True)
    var = ((x - mean) ** 2).mean(axis=(0, 2, 3), keepdims=True)
    return ((x - mean) * jax.lax.rsqrt(var + BN_EPS)
            * gamma.reshape(1, -1, 1, 1) + beta.reshape(1, -1, 1, 1))


def _incept_ref(x, p):
    h = jax.nn.relu(_conv2d_ref(x, p["bot_w"], p["bot_b"], 0))
    x1 = jax.nn.relu(_conv2d_ref(h, p["c1_w"], p["c1_b"], 0))
    x2 = jax.nn.relu(_conv2d_ref(h, p["c2_w"], p["c2_b"], 1))
    x3 = jax.nn.relu(_conv2d_ref(h, p["c3_w"], p["c3_b"], 2))
    return _bn_ref(jnp.concatenate([x1, x2, x3], axis=1), p["gamma"], p["beta"])


def reference_forward(x, params):
    s = jax.nn.relu(_maxpool2_ref(
        _conv2d_ref(x, params["conv1_w"], params["conv1_b"], 0)))
    s = _incept_ref(s, params["inc1"])
    s = _maxpool2_ref(s)
    s = _incept_ref(s, params["inc2"])
    s = _incept_ref(s, params["inc3"])
    s = s.reshape(s.shape[0], -1)
    h = jax.nn.relu(jnp.dot(s, params["fc1_w"].T, precision=_HI)
                    + params["fc1_b"])
    z = jnp.dot(h, params["fc2_w"].T, precision=_HI) + params["fc2_b"]
    return jax.nn.log_softmax(z, axis=1)


# ---------------------------------------------------------------------------
if __name__ == "__main__":
    key = jax.random.PRNGKey(0)
    k_param, k_data = jax.random.split(key)

    ch = 4
    # spatial must be 28x28 so that x.view(-1, 735) (= 15*7*7) holds.
    x = jax.random.normal(k_data, (2, ch, 28, 28), jnp.float32)
    params = init_params(k_param, ch)
    prep = prepare_params(params, x.shape)     # one-time weight/constant prep
    # TODO(synk): BatchNorm running_mean/var buffers (momentum update / eval
    # mode) are not modeled; this matches a fresh torch module in train mode.

    fwd = jax.jit(inception_like_net)
    out = jax.block_until_ready(fwd(x, prep))

    assert out.shape == (2, 10)
    assert bool(jnp.all(jnp.isfinite(out)))

    # validate against a pure-JAX/XLA reference of the torch module
    ref = jax.block_until_ready(reference_forward(x, params))
    np.testing.assert_allclose(np.asarray(out), np.asarray(ref),
                               rtol=2e-2, atol=2e-2)
    print("KERNEL_OK")
</pallas_src>

<mosaic_0001>
module attributes {stable_mosaic.version = 11 : i64} {
  func.func @fused_kernel(%arg0: memref<4x4x392xf32, #tpu.memory_space<vmem>>, %arg1: memref<15x4xf32, #tpu.memory_space<vmem>>, %arg2: memref<15x1xf32, #tpu.memory_space<vmem>>, %arg3: memref<8x15xf32, #tpu.memory_space<vmem>>, %arg4: memref<8x1xf32, #tpu.memory_space<vmem>>, %arg5: memref<21x200xf32, #tpu.memory_space<vmem>>, %arg6: memref<21x1xf32, #tpu.memory_space<vmem>>, %arg7: memref<21x1xf32, #tpu.memory_space<vmem>>, %arg8: memref<21x1xf32, #tpu.memory_space<vmem>>, %arg9: memref<25x1x392xf32, #tpu.memory_space<vmem>>, %arg10: memref<392x98xf32, #tpu.memory_space<vmem>>, %arg11: memref<8x21xf32, #tpu.memory_space<vmem>>, %arg12: memref<8x1xf32, #tpu.memory_space<vmem>>, %arg13: memref<21x200xf32, #tpu.memory_space<vmem>>, %arg14: memref<21x1xf32, #tpu.memory_space<vmem>>, %arg15: memref<21x1xf32, #tpu.memory_space<vmem>>, %arg16: memref<21x1xf32, #tpu.memory_space<vmem>>, %arg17: memref<25x1x98xf32, #tpu.memory_space<vmem>>, %arg18: memref<8x21xf32, #tpu.memory_space<vmem>>, %arg19: memref<8x1xf32, #tpu.memory_space<vmem>>, %arg20: memref<15x200xf32, #tpu.memory_space<vmem>>, %arg21: memref<15x1xf32, #tpu.memory_space<vmem>>, %arg22: memref<15x1xf32, #tpu.memory_space<vmem>>, %arg23: memref<15x1xf32, #tpu.memory_space<vmem>>, %arg24: memref<15x50x98xf32, #tpu.memory_space<vmem>>, %arg25: memref<2x98xf32, #tpu.memory_space<vmem>>, %arg26: memref<1x50xf32, #tpu.memory_space<vmem>>, %arg27: memref<50x10xf32, #tpu.memory_space<vmem>>, %arg28: memref<1x10xf32, #tpu.memory_space<vmem>>, %arg29: memref<2x10xf32, #tpu.memory_space<vmem>>, %arg30: memref<24x408xf32, #tpu.memory_space<vmem>>, %arg31: memref<8x552xf32, #tpu.memory_space<vmem>>, %arg32: memref<200x392xf32, #tpu.memory_space<vmem>>) attributes {dimension_semantics = [], scalar_prefetch = 0 : i64, scratch_operands = 3 : i64, tpu.core_type = #tpu.core_type<tc>} {
    %c0 = arith.constant 0 : index
    %c0_0 = arith.constant 0 : index
    %0 = vector.load %arg1[%c0, %c0_0] : memref<15x4xf32, #tpu.memory_space<vmem>>, vector<15x4xf32>
    %c0_1 = arith.constant 0 : index
    %c0_2 = arith.constant 0 : index
    %c0_3 = arith.constant 0 : index
    %1 = vector.load %arg0[%c0_1, %c0_2, %c0_3] : memref<4x4x392xf32, #tpu.memory_space<vmem>>, vector<1x4x392xf32>
    %2 = vector.shape_cast %1 : vector<1x4x392xf32> to vector<4x392xf32>
    %cst = arith.constant dense<0.000000e+00> : vector<15x392xf32>
    %3 = tpu.matmul %0, %2, %cst {dimension_numbers = #tpu.dot_dimension_numbers<[1], [0], [0], [1], [0, 0, 1, 1], [], []>} : vector<15x4xf32>, vector<4x392xf32>, vector<15x392xf32> -> vector<15x392xf32>
    %c1 = arith.constant 1 : index
    %c0_4 = arith.constant 0 : index
    %c0_5 = arith.constant 0 : index
    %4 = vector.load %arg0[%c1, %c0_4, %c0_5] : memref<4x4x392xf32, #tpu.memory_space<vmem>>, vector<1x4x392xf32>
    %5 = vector.shape_cast %4 : vector<1x4x392xf32> to vector<4x392xf32>
    %cst_6 = arith.constant dense<0.000000e+00> : vector<15x392xf32>
    %6 = tpu.matmul %0, %5, %cst_6 {dimension_numbers = #tpu.dot_dimension_numbers<[1], [0], [0], [1], [0, 0, 1, 1], [], []>} : vector<15x4xf32>, vector<4x392xf32>, vector<15x392xf32> -> vector<15x392xf32>
    %7 = arith.maximumf %3, %6 : vector<15x392xf32>
    %c2 = arith.constant 2 : index
    %c0_7 = arith.constant 0 : index
    %c0_8 = arith.constant 0 : index
    %8 = vector.load %arg0[%c2, %c0_7, %c0_8] : memref<4x4x392xf32, #tpu.memory_space<vmem>>, vector<1x4x392xf32>
    %9 = vector.shape_cast %8 : vector<1x4x392xf32> to vector<4x392xf32>
    %cst_9 = arith.constant dense<0.000000e+00> : vector<15x392xf32>
    %10 = tpu.matmul %0, %9, %cst_9 {dimension_numbers = #tpu.dot_dimension_numbers<[1], [0], [0], [1], [0, 0, 1, 1], [], []>} : vector<15x4xf32>, vector<4x392xf32>, vector<15x392xf32> -> vector<15x392xf32>
    %11 = arith.maximumf %7, %10 : vector<15x392xf32>
    %c3 = arith.constant 3 : index
    %c0_10 = arith.constant 0 : index
    %c0_11 = arith.constant 0 : index
    %12 = vector.load %arg0[%c3, %c0_10, %c0_11] : memref<4x4x392xf32, #tpu.memory_space<vmem>>, vector<1x4x392xf32>
    %13 = vector.shape_cast %12 : vector<1x4x392xf32> to vector<4x392xf32>
    %cst_12 = arith.constant dense<0.000000e+00> : vector<15x392xf32>
    %14 = tpu.matmul %0, %13, %cst_12 {dimension_numbers = #tpu.dot_dimension_numbers<[1], [0], [0], [1], [0, 0, 1, 1], [], []>} : vector<15x4xf32>, vector<4x392xf32>, vector<15x392xf32> -> vector<15x392xf32>
    %15 = arith.maximumf %11, %14 : vector<15x392xf32>
    %c0_13 = arith.constant 0 : index
    %c0_14 = arith.constant 0 : index
    %16 = vector.load %arg2[%c0_13, %c0_14] : memref<15x1xf32, #tpu.memory_space<vmem>>, vector<15x1xf32>
    %17 = vector.broadcast %16 : vector<15x1xf32> to vector<15x392xf32>
    %18 = arith.addf %15, %17 : vector<15x392xf32>
    %cst_15 = arith.constant 0.000000e+00 : f32
    %19 = vector.broadcast %cst_15 : f32 to vector<15x392xf32>
    %20 = arith.maximumf %18, %19 : vector<15x392xf32>
    %c0_16 = arith.constant 0 : index
    %c0_17 = arith.constant 0 : index
    %21 = vector.load %arg3[%c0_16, %c0_17] : memref<8x15xf32, #tpu.memory_space<vmem>>, vector<8x15xf32>
    %cst_18 = arith.constant dense<0.000000e+00> : vector<8x392xf32>
    %22 = tpu.matmul %21, %20, %cst_18 {dimension_numbers = #tpu.dot_dimension_numbers<[1], [0], [0], [1], [0, 0, 1, 1], [], []>} : vector<8x15xf32>, vector<15x392xf32>, vector<8x392xf32> -> vector<8x392xf32>
    %c0_19 = arith.constant 0 : index
    %c0_20 = arith.constant 0 : index
    %23 = vector.load %arg4[%c0_19, %c0_20] : memref<8x1xf32, #tpu.memory_space<vmem>>, vector<8x1xf32>
    %24 = vector.broadcast %23 : vector<8x1xf32> to vector<8x392xf32>
    %25 = arith.addf %22, %24 : vector<8x392xf32>
    %cst_21 = arith.constant 0.000000e+00 : f32
    %26 = vector.broadcast %cst_21 : f32 to vector<8x392xf32>
    %27 = arith.maximumf %25, %26 : vector<8x392xf32>
    %cst_22 = arith.constant 0.000000e+00 : f32
    %28 = vector.broadcast %cst_22 : f32 to vector<8x128xf32>
    %c0_23 = arith.constant 0 : index
    %c0_24 = arith.constant 0 : index
    %29 = vector.load %arg31[%c0_23, %c0_24] : memref<8x552xf32, #tpu.memory_space<vmem>>, vector<8x128xf32>
    tpu.vector_store %arg31[%c0_23, %c0_24], %28 {strides = array<i32>} : memref<8x552xf32, #tpu.memory_space<vmem>>, vector<8x128xf32>,
    %c0_25 = arith.constant 0 : index
    %c128 = arith.constant 128 : index
    %30 = vector.load %arg31[%c0_25, %c128] : memref<8x552xf32, #tpu.memory_space<vmem>>, vector<8x392xf32>
    tpu.vector_store %arg31[%c0_25, %c128], %27 {strides = array<i32>} : memref<8x552xf32, #tpu.memory_space<vmem>>, vector<8x392xf32>,
    %cst_26 = arith.constant 0.000000e+00 : f32
    %31 = vector.broadcast %cst_26 : f32 to vector<8x32xf32>
    %c0_27 = arith.constant 0 : index
    %c520 = arith.constant 520 : index
    %32 = vector.load %arg31[%c0_27, %c520] : memref<8x552xf32, #tpu.memory_space<vmem>>, vector<8x32xf32>
    tpu.vector_store %arg31[%c0_27, %c520], %31 {strides = array<i32>} : memref<8x552xf32, #tpu.memory_space<vmem>>, vector<8x32xf32>,
    %c0_28 = arith.constant 0 : index
    %c98 = arith.constant 98 : index
    %33 = vector.load %arg31[%c0_28, %c98] : memref<8x552xf32, #tpu.memory_space<vmem>>, vector<8x392xf32>
    %c0_29 = arith.constant 0 : index
    %c0_30 = arith.constant 0 : index
    %c0_31 = arith.constant 0 : index
    %34 = vector.load %arg9[%c0_29, %c0_30, %c0_31] : memref<25x1x392xf32, #tpu.memory_space<vmem>>, vector<1x1x392xf32>
    %35 = vector.shape_cast %34 : vector<1x1x392xf32> to vector<1x392xf32>
    %36 = vector.broadcast %35 : vector<1x392xf32> to vector<8x392xf32>
    %37 = arith.mulf %33, %36 : vector<8x392xf32>
    %c0_32 = arith.constant 0 : index
    %c0_33 = arith.constant 0 : index
    %38 = vector.load %arg32[%c0_32, %c0_33] : memref<200x392xf32, #tpu.memory_space<vmem>>, vector<8x392xf32>
    tpu.vector_store %arg32[%c0_32, %c0_33], %37 {strides = array<i32>} : memref<200x392xf32, #tpu.memory_space<vmem>>, vector<8x392xf32>,
    %c0_34 = arith.constant 0 : index
    %c99 = arith.constant 99 : index
    %39 = vector.load %arg31[%c0_34, %c99] : memref<8x552xf32, #tpu.memory_space<vmem>>, vector<8x392xf32>
    %c1_35 = arith.constant 1 : index
    %c0_36 = arith.constant 0 : index
    %c0_37 = arith.constant 0 : index
    %40 = vector.load %arg9[%c1_35, %c0_36, %c0_37] : memref<25x1x392xf32, #tpu.memory_space<vmem>>, vector<1x1x392xf32>
    %41 = vector.shape_cast %40 : vector<1x1x392xf32> to vector<1x392xf32>
    %42 = vector.broadcast %41 : vector<1x392xf32> to vector<8x392xf32>
    %43 = arith.mulf %39, %42 : vector<8x392xf32>
    %c8 = arith.constant 8 : index
    %c0_38 = arith.constant 0 : index
    %44 = vector.load %arg32[%c8, %c0_38] : memref<200x392xf32, #tpu.memory_space<vmem>>, vector<8x392xf32>
    tpu.vector_store %arg32[%c8, %c0_38], %43 {strides = array<i32>} : memref<200x392xf32, #tpu.memory_space<vmem>>, vector<8x392xf32>,
    %c0_39 = arith.constant 0 : index
    %c100 = arith.constant 100 : index
    %45 = vector.load %arg31[%c0_39, %c100] : memref<8x552xf32, #tpu.memory_space<vmem>>, vector<8x392xf32>
    %c2_40 = arith.constant 2 : index
    %c0_41 = arith.constant 0 : index
    %c0_42 = arith.constant 0 : index
    %46 = vector.load %arg9[%c2_40, %c0_41, %c0_42] : memref<25x1x392xf32, #tpu.memory_space<vmem>>, vector<1x1x392xf32>
    %47 = vector.shape_cast %46 : vector<1x1x392xf32> to vector<1x392xf32>
    %48 = vector.broadcast %47 : vector<1x392xf32> to vector<8x392xf32>
    %49 = arith.mulf %45, %48 : vector<8x392xf32>
    %c16 = arith.constant 16 : index
    %c0_43 = arith.constant 0 : index
    %50 = vector.load %arg32[%c16, %c0_43] : memref<200x392xf32, #tpu.memory_space<vmem>>, vector<8x392xf32>
    tpu.vector_store %arg32[%c16, %c0_43], %49 {strides = array<i32>} : memref<200x392xf32, #tpu.memory_space<vmem>>, vector<8x392xf32>,
    %c0_44 = arith.constant 0 : index
    %c101 = arith.constant 101 : index
    %51 = vector.load %arg31[%c0_44, %c101] : memref<8x552xf32, #tpu.memory_space<vmem>>, vector<8x392xf32>
    %c3_45 = arith.constant 3 : index
    %c0_46 = arith.constant 0 : index
    %c0_47 = arith.constant 0 : index
    %52 = vector.load %arg9[%c3_45, %c0_46, %c0_47] : memref<25x1x392xf32, #tpu.memory_space<vmem>>, vector<1x1x392xf32>
    %53 = vector.shape_cast %52 : vector<1x1x392xf32> to vector<1x392xf32>
    %54 = vector.broadcast %53 : vector<1x392xf32> to vector<8x392xf32>
    %55 = arith.mulf %51, %54 : vector<8x392xf32>
    %c24 = arith.constant 24 : index
    %c0_48 = arith.constant 0 : index
    %56 = vector.load %arg32[%c24, %c0_48] : memref<200x392xf32, #tpu.memory_space<vmem>>, vector<8x392xf32>
    tpu.vector_store %arg32[%c24, %c0_48], %55 {strides = array<i32>} : memref<200x392xf32, #tpu.memory_space<vmem>>, vector<8x392xf32>,
    %c0_49 = arith.constant 0 : index
    %c102 = arith.constant 102 : index
    %57 = vector.load %arg31[%c0_49, %c102] : memref<8x552xf32, #tpu.memory_space<vmem>>, vector<8x392xf32>
    %c4 = arith.constant 4 : index
    %c0_50 = arith.constant 0 : index
    %c0_51 = arith.constant 0 : index
    %58 = vector.load %arg9[%c4, %c0_50, %c0_51] : memref<25x1x392xf32, #tpu.memory_space<vmem>>, vector<1x1x392xf32>
    %59 = vector.shape_cast %58 : vector<1x1x392xf32> to vector<1x392xf32>
    %60 = vector.broadcast %59 : vector<1x392xf32> to vector<8x392xf32>
    %61 = arith.mulf %57, %60 : vector<8x392xf32>
    %c32 = arith.constant 32 : index
    %c0_52 = arith.constant 0 : index
    %62 = vector.load %arg32[%c32, %c0_52] : memref<200x392xf32, #tpu.memory_space<vmem>>, vector<8x392xf32>
    tpu.vector_store %arg32[%c32, %c0_52], %61 {strides = array<i32>} : memref<200x392xf32, #tpu.memory_space<vmem>>, vector<8x392xf32>,
    %c0_53 = arith.constant 0 : index
    %c112 = arith.constant 112 : index
    %63 = vector.load %arg31[%c0_53, %c112] : memref<8x552xf32, #tpu.memory_space<vmem>>, vector<8x392xf32>
    %c5 = arith.constant 5 : index
    %c0_54 = arith.constant 0 : index
    %c0_55 = arith.constant 0 : index
    %64 = vector.load %arg9[%c5, %c0_54, %c0_55] : memref<25x1x392xf32, #tpu.memory_space<vmem>>, vector<1x1x392xf32>
    %65 = vector.shape_cast %64 : vector<1x1x392xf32> to vector<1x392xf32>
    %66 = vector.broadcast %65 : vector<1x392xf32> to vector<8x392xf32>
    %67 = arith.mulf %63, %66 : vector<8x392xf32>
    %c40 = arith.constant 40 : index
    %c0_56 = arith.constant 0 : index
    %68 = vector.load %arg32[%c40, %c0_56] : memref<200x392xf32, #tpu.memory_space<vmem>>, vector<8x392xf32>
    tpu.vector_store %arg32[%c40, %c0_56], %67 {strides = array<i32>} : memref<200x392xf32, #tpu.memory_space<vmem>>, vector<8x392xf32>,
    %c0_57 = arith.constant 0 : index
    %c113 = arith.constant 113 : index
    %69 = vector.load %arg31[%c0_57, %c113] : memref<8x552xf32, #tpu.memory_space<vmem>>, vector<8x392xf32>
    %c6 = arith.constant 6 : index
    %c0_58 = arith.constant 0 : index
    %c0_59 = arith.constant 0 : index
    %70 = vector.load %arg9[%c6, %c0_58, %c0_59] : memref<25x1x392xf32, #tpu.memory_space<vmem>>, vector<1x1x392xf32>
    %71 = vector.shape_cast %70 : vector<1x1x392xf32> to vector<1x392xf32>
    %72 = vector.broadcast %71 : vector<1x392xf32> to vector<8x392xf32>
    %73 = arith.mulf %69, %72 : vector<8x392xf32>
    %c48 = arith.constant 48 : index
    %c0_60 = arith.constant 0 : index
    %74 = vector.load %arg32[%c48, %c0_60] : memref<200x392xf32, #tpu.memory_space<vmem>>, vector<8x392xf32>
    tpu.vector_store %arg32[%c48, %c0_60], %73 {strides = array<i32>} : memref<200x392xf32, #tpu.memory_space<vmem>>, vector<8x392xf32>,
    %c0_61 = arith.constant 0 : index
    %c114 = arith.constant 114 : index
    %75 = vector.load %arg31[%c0_61, %c114] : memref<8x552xf32, #tpu.memory_space<vmem>>, vector<8x392xf32>
    %c7 = arith.constant 7 : index
    %c0_62 = arith.constant 0 : index
    %c0_63 = arith.constant 0 : index
    %76 = vector.load %arg9[%c7, %c0_62, %c0_63] : memref<25x1x392xf32, #tpu.memory_space<vmem>>, vector<1x1x392xf32>
    %77 = vector.shape_cast %76 : vector<1x1x392xf32> to vector<1x392xf32>
    %78 = vector.broadcast %77 : vector<1x392xf32> to vector<8x392xf32>
    %79 = arith.mulf %75, %78 : vector<8x392xf32>
    %c56 = arith.constant 56 : index
    %c0_64 = arith.constant 0 : index
    %80 = vector.load %arg32[%c56, %c0_64] : memref<200x392xf32, #tpu.memory_space<vmem>>, vector<8x392xf32>
    tpu.vector_store %arg32[%c56, %c0_64], %79 {strides = array<i32>} : memref<200x392xf32, #tpu.memory_space<vmem>>, vector<8x392xf32>,
    %c0_65 = arith.constant 0 : index
    %c115 = arith.constant 115 : index
    %81 = vector.load %arg31[%c0_65, %c115] : memref<8x552xf32, #tpu.memory_space<vmem>>, vector<8x392xf32>
    %c8_66 = arith.constant 8 : index
    %c0_67 = arith.constant 0 : index
    %c0_68 = arith.constant 0 : index
    %82 = vector.load %arg9[%c8_66, %c0_67, %c0_68] : memref<25x1x392xf32, #tpu.memory_space<vmem>>, vector<1x1x392xf32>
    %83 = vector.shape_cast %82 : vector<1x1x392xf32> to vector<1x392xf32>
    %84 = vector.broadcast %83 : vector<1x392xf32> to vector<8x392xf32>
    %85 = arith.mulf %81, %84 : vector<8x392xf32>
    %c64 = arith.constant 64 : index
    %c0_69 = arith.constant 0 : index
    %86 = vector.load %arg32[%c64, %c0_69] : memref<200x392xf32, #tpu.memory_space<vmem>>, vector<8x392xf32>
    tpu.vector_store %arg32[%c64, %c0_69], %85 {strides = array<i32>} : memref<200x392xf32, #tpu.memory_space<vmem>>, vector<8x392xf32>,
    %c0_70 = arith.constant 0 : index
    %c116 = arith.constant 116 : index
    %87 = vector.load %arg31[%c0_70, %c116] : memref<8x552xf32, #tpu.memory_space<vmem>>, vector<8x392xf32>
    %c9 = arith.constant 9 : index
    %c0_71 = arith.constant 0 : index
    %c0_72 = arith.constant 0 : index
    %88 = vector.load %arg9[%c9, %c0_71, %c0_72] : memref<25x1x392xf32, #tpu.memory_space<vmem>>, vector<1x1x392xf32>
    %89 = vector.shape_cast %88 : vector<1x1x392xf32> to vector<1x392xf32>
    %90 = vector.broadcast %89 : vector<1x392xf32> to vector<8x392xf32>
    %91 = arith.mulf %87, %90 : vector<8x392xf32>
    %c72 = arith.constant 72 : index
    %c0_73 = arith.constant 0 : index
    %92 = vector.load %arg32[%c72, %c0_73] : memref<200x392xf32, #tpu.memory_space<vmem>>, vector<8x392xf32>
    tpu.vector_store %arg32[%c72, %c0_73], %91 {strides = array<i32>} : memref<200x392xf32, #tpu.memory_space<vmem>>, vector<8x392xf32>,
    %c0_74 = arith.constant 0 : index
    %c126 = arith.constant 126 : index
    %93 = vector.load %arg31[%c0_74, %c126] : memref<8x552xf32, #tpu.memory_space<vmem>>, vector<8x392xf32>
    %c10 = arith.constant 10 : index
    %c0_75 = arith.constant 0 : index
    %c0_76 = arith.constant 0 : index
    %94 = vector.load %arg9[%c10, %c0_75, %c0_76] : memref<25x1x392xf32, #tpu.memory_space<vmem>>, vector<1x1x392xf32>
    %95 = vector.shape_cast %94 : vector<1x1x392xf32> to vector<1x392xf32>
    %96 = vector.broadcast %95 : vector<1x392xf32> to vector<8x392xf32>
    %97 = arith.mulf %93, %96 : vector<8x392xf32>
    %c80 = arith.constant 80 : index
    %c0_77 = arith.constant 0 : index
    %98 = vector.load %arg32[%c80, %c0_77] : memref<200x392xf32, #tpu.memory_space<vmem>>, vector<8x392xf32>
    tpu.vector_store %arg32[%c80, %c0_77], %97 {strides = array<i32>} : memref<200x392xf32, #tpu.memory_space<vmem>>, vector<8x392xf32>,
    %c0_78 = arith.constant 0 : index
    %c127 = arith.constant 127 : index
    %99 = vector.load %arg31[%c0_78, %c127] : memref<8x552xf32, #tpu.memory_space<vmem>>, vector<8x392xf32>
    %c11 = arith.constant 11 : index
    %c0_79 = arith.constant 0 : index
    %c0_80 = arith.constant 0 : index
    %100 = vector.load %arg9[%c11, %c0_79, %c0_80] : memref<25x1x392xf32, #tpu.memory_space<vmem>>, vector<1x1x392xf32>
    %101 = vector.shape_cast %100 : vector<1x1x392xf32> to vector<1x392xf32>
    %102 = vector.broadcast %101 : vector<1x392xf32> to vector<8x392xf32>
    %103 = arith.mulf %99, %102 : vector<8x392xf32>
    %c88 = arith.constant 88 : index
    %c0_81 = arith.constant 0 : index
    %104 = vector.load %arg32[%c88, %c0_81] : memref<200x392xf32, #tpu.memory_space<vmem>>, vector<8x392xf32>
    tpu.vector_store %arg32[%c88, %c0_81], %103 {strides = array<i32>} : memref<200x392xf32, #tpu.memory_space<vmem>>, vector<8x392xf32>,
    %c0_82 = arith.constant 0 : index
    %c128_83 = arith.constant 128 : index
    %105 = vector.load %arg31[%c0_82, %c128_83] : memref<8x552xf32, #tpu.memory_space<vmem>>, vector<8x392xf32>
    %c12 = arith.constant 12 : index
    %c0_84 = arith.constant 0 : index
    %c0_85 = arith.constant 0 : index
    %106 = vector.load %arg9[%c12, %c0_84, %c0_85] : memref<25x1x392xf32, #tpu.memory_space<vmem>>, vector<1x1x392xf32>
    %107 = vector.shape_cast %106 : vector<1x1x392xf32> to vector<1x392xf32>
    %108 = vector.broadcast %107 : vector<1x392xf32> to vector<8x392xf32>
    %109 = arith.mulf %105, %108 : vector<8x392xf32>
    %c96 = arith.constant 96 : index
    %c0_86 = arith.constant 0 : index
    %110 = vector.load %arg32[%c96, %c0_86] : memref<200x392xf32, #tpu.memory_space<vmem>>, vector<8x392xf32>
    tpu.vector_store %arg32[%c96, %c0_86], %109 {strides = array<i32>} : memref<200x392xf32, #tpu.memory_space<vmem>>, vector<8x392xf32>,
    %c0_87 = arith.constant 0 : index
    %c129 = arith.constant 129 : index
    %111 = vector.load %arg31[%c0_87, %c129] : memref<8x552xf32, #tpu.memory_space<vmem>>, vector<8x392xf32>
    %c13 = arith.constant 13 : index
    %c0_88 = arith.constant 0 : index
    %c0_89 = arith.constant 0 : index
    %112 = vector.load %arg9[%c13, %c0_88, %c0_89] : memref<25x1x392xf32, #tpu.memory_space<vmem>>, vector<1x1x392xf32>
    %113 = vector.shape_cast %112 : vector<1x1x392xf32> to vector<1x392xf32>
    %114 = vector.broadcast %113 : vector<1x392xf32> to vector<8x392xf32>
    %115 = arith.mulf %111, %114 : vector<8x392xf32>
    %c104 = arith.constant 104 : index
    %c0_90 = arith.constant 0 : index
    %116 = vector.load %arg32[%c104, %c0_90] : memref<200x392xf32, #tpu.memory_space<vmem>>, vector<8x392xf32>
    tpu.vector_store %arg32[%c104, %c0_90], %115 {strides = array<i32>} : memref<200x392xf32, #tpu.memory_space<vmem>>, vector<8x392xf32>,
    %c0_91 = arith.constant 0 : index
    %c130 = arith.constant 130 : index
    %117 = vector.load %arg31[%c0_91, %c130] : memref<8x552xf32, #tpu.memory_space<vmem>>, vector<8x392xf32>
    %c14 = arith.constant 14 : index
    %c0_92 = arith.constant 0 : index
    %c0_93 = arith.constant 0 : index
    %118 = vector.load %arg9[%c14, %c0_92, %c0_93] : memref<25x1x392xf32, #tpu.memory_space<vmem>>, vector<1x1x392xf32>
    %119 = vector.shape_cast %118 : vector<1x1x392xf32> to vector<1x392xf32>
    %120 = vector.broadcast %119 : vector<1x392xf32> to vector<8x392xf32>
    %121 = arith.mulf %117, %120 : vector<8x392xf32>
    %c112_94 = arith.constant 112 : index
    %c0_95 = arith.constant 0 : index
    %122 = vector.load %arg32[%c112_94, %c0_95] : memref<200x392xf32, #tpu.memory_space<vmem>>, vector<8x392xf32>
    tpu.vector_store %arg32[%c112_94, %c0_95], %121 {strides = array<i32>} : memref<200x392xf32, #tpu.memory_space<vmem>>, vector<8x392xf32>,
    %c0_96 = arith.constant 0 : index
    %c140 = arith.constant 140 : index
    %123 = vector.load %arg31[%c0_96, %c140] : memref<8x552xf32, #tpu.memory_space<vmem>>, vector<8x392xf32>
    %c15 = arith.constant 15 : index
    %c0_97 = arith.constant 0 : index
    %c0_98 = arith.constant 0 : index
    %124 = vector.load %arg9[%c15, %c0_97, %c0_98] : memref<25x1x392xf32, #tpu.memory_space<vmem>>, vector<1x1x392xf32>
    %125 = vector.shape_cast %124 : vector<1x1x392xf32> to vector<1x392xf32>
    %126 = vector.broadcast %125 : vector<1x392xf32> to vector<8x392xf32>
    %127 = arith.mulf %123, %126 : vector<8x392xf32>
    %c120 = arith.constant 120 : index
    %c0_99 = arith.constant 0 : index
    %128 = vector.load %arg32[%c120, %c0_99] : memref<200x392xf32, #tpu.memory_space<vmem>>, vector<8x392xf32>
    tpu.vector_store %arg32[%c120, %c0_99], %127 {strides = array<i32>} : memref<200x392xf32, #tpu.memory_space<vmem>>, vector<8x392xf32>,
    %c0_100 = arith.constant 0 : index
    %c141 = arith.constant 141 : index
    %129 = vector.load %arg31[%c0_100, %c141] : memref<8x552xf32, #tpu.memory_space<vmem>>, vector<8x392xf32>
    %c16_101 = arith.constant 16 : index
    %c0_102 = arith.constant 0 : index
    %c0_103 = arith.constant 0 : index
    %130 = vector.load %arg9[%c16_101, %c0_102, %c0_103] : memref<25x1x392xf32, #tpu.memory_space<vmem>>, vector<1x1x392xf32>
    %131 = vector.shape_cast %130 : vector<1x1x392xf32> to vector<1x392xf32>
    %132 = vector.broadcast %131 : vector<1x392xf32> to vector<8x392xf32>
    %133 = arith.mulf %129, %132 : vector<8x392xf32>
    %c128_104 = arith.constant 128 : index
    %c0_105 = arith.constant 0 : index
    %134 = vector.load %arg32[%c128_104, %c0_105] : memref<200x392xf32, #tpu.memory_space<vmem>>, vector<8x392xf32>
    tpu.vector_store %arg32[%c128_104, %c0_105], %133 {strides = array<i32>} : memref<200x392xf32, #tpu.memory_space<vmem>>, vector<8x392xf32>,
    %c0_106 = arith.constant 0 : index
    %c142 = arith.constant 142 : index
    %135 = vector.load %arg31[%c0_106, %c142] : memref<8x552xf32, #tpu.memory_space<vmem>>, vector<8x392xf32>
    %c17 = arith.constant 17 : index
    %c0_107 = arith.constant 0 : index
    %c0_108 = arith.constant 0 : index
    %136 = vector.load %arg9[%c17, %c0_107, %c0_108] : memref<25x1x392xf32, #tpu.memory_space<vmem>>, vector<1x1x392xf32>
    %137 = vector.shape_cast %136 : vector<1x1x392xf32> to vector<1x392xf32>
    %138 = vector.broadcast %137 : vector<1x392xf32> to vector<8x392xf32>
    %139 = arith.mulf %135, %138 : vector<8x392xf32>
    %c136 = arith.constant 136 : index
    %c0_109 = arith.constant 0 : index
    %140 = vector.load %arg32[%c136, %c0_109] : memref<200x392xf32, #tpu.memory_space<vmem>>, vector<8x392xf32>
    tpu.vector_store %arg32[%c136, %c0_109], %139 {strides = array<i32>} : memref<200x392xf32, #tpu.memory_space<vmem>>, vector<8x392xf32>,
    %c0_110 = arith.constant 0 : index
    %c143 = arith.constant 143 : index
    %141 = vector.load %arg31[%c0_110, %c143] : memref<8x552xf32, #tpu.memory_space<vmem>>, vector<8x392xf32>
    %c18 = arith.constant 18 : index
    %c0_111 = arith.constant 0 : index
    %c0_112 = arith.constant 0 : index
    %142 = vector.load %arg9[%c18, %c0_111, %c0_112] : memref<25x1x392xf32, #tpu.memory_space<vmem>>, vector<1x1x392xf32>
    %143 = vector.shape_cast %142 : vector<1x1x392xf32> to vector<1x392xf32>
    %144 = vector.broadcast %143 : vector<1x392xf32> to vector<8x392xf32>
    %145 = arith.mulf %141, %144 : vector<8x392xf32>
    %c144 = arith.constant 144 : index
    %c0_113 = arith.constant 0 : index
    %146 = vector.load %arg32[%c144, %c0_113] : memref<200x392xf32, #tpu.memory_space<vmem>>, vector<8x392xf32>
    tpu.vector_store %arg32[%c144, %c0_113], %145 {strides = array<i32>} : memref<200x392xf32, #tpu.memory_space<vmem>>, vector<8x392xf32>,
    %c0_114 = arith.constant 0 : index
    %c144_115 = arith.constant 144 : index
    %147 = vector.load %arg31[%c0_114, %c144_115] : memref<8x552xf32, #tpu.memory_space<vmem>>, vector<8x392xf32>
    %c19 = arith.constant 19 : index
    %c0_116 = arith.constant 0 : index
    %c0_117 = arith.constant 0 : index
    %148 = vector.load %arg9[%c19, %c0_116, %c0_117] : memref<25x1x392xf32, #tpu.memory_space<vmem>>, vector<1x1x392xf32>
    %149 = vector.shape_cast %148 : vector<1x1x392xf32> to vector<1x392xf32>
    %150 = vector.broadcast %149 : vector<1x392xf32> to vector<8x392xf32>
    %151 = arith.mulf %147, %150 : vector<8x392xf32>
    %c152 = arith.constant 152 : index
    %c0_118 = arith.constant 0 : index
    %152 = vector.load %arg32[%c152, %c0_118] : memref<200x392xf32, #tpu.memory_space<vmem>>, vector<8x392xf32>
    tpu.vector_store %arg32[%c152, %c0_118], %151 {strides = array<i32>} : memref<200x392xf32, #tpu.memory_space<vmem>>, vector<8x392xf32>,
    %c0_119 = arith.constant 0 : index
    %c154 = arith.constant 154 : index
    %153 = vector.load %arg31[%c0_119, %c154] : memref<8x552xf32, #tpu.memory_space<vmem>>, vector<8x392xf32>
    %c20 = arith.constant 20 : index
    %c0_120 = arith.constant 0 : index
    %c0_121 = arith.constant 0 : index
    %154 = vector.load %arg9[%c20, %c0_120, %c0_121] : memref<25x1x392xf32, #tpu.memory_space<vmem>>, vector<1x1x392xf32>
    %155 = vector.shape_cast %154 : vector<1x1x392xf32> to vector<1x392xf32>
    %156 = vector.broadcast %155 : vector<1x392xf32> to vector<8x392xf32>
    %157 = arith.mulf %153, %156 : vector<8x392xf32>
    %c160 = arith.constant 160 : index
    %c0_122 = arith.constant 0 : index
    %158 = vector.load %arg32[%c160, %c0_122] : memref<200x392xf32, #tpu.memory_space<vmem>>, vector<8x392xf32>
    tpu.vector_store %arg32[%c160, %c0_122], %157 {strides = array<i32>} : memref<200x392xf32, #tpu.memory_space<vmem>>, vector<8x392xf32>,
    %c0_123 = arith.constant 0 : index
    %c155 = arith.constant 155 : index
    %159 = vector.load %arg31[%c0_123, %c155] : memref<8x552xf32, #tpu.memory_space<vmem>>, vector<8x392xf32>
    %c21 = arith.constant 21 : index
    %c0_124 = arith.constant 0 : index
    %c0_125 = arith.constant 0 : index
    %160 = vector.load %arg9[%c21, %c0_124, %c0_125] : memref<25x1x392xf32, #tpu.memory_space<vmem>>, vector<1x1x392xf32>
    %161 = vector.shape_cast %160 : vector<1x1x392xf32> to vector<1x392xf32>
    %162 = vector.broadcast %161 : vector<1x392xf32> to vector<8x392xf32>
    %163 = arith.mulf %159, %162 : vector<8x392xf32>
    %c168 = arith.constant 168 : index
    %c0_126 = arith.constant 0 : index
    %164 = vector.load %arg32[%c168, %c0_126] : memref<200x392xf32, #tpu.memory_space<vmem>>, vector<8x392xf32>
    tpu.vector_store %arg32[%c168, %c0_126], %163 {strides = array<i32>} : memref<200x392xf32, #tpu.memory_space<vmem>>, vector<8x392xf32>,
    %c0_127 = arith.constant 0 : index
    %c156 = arith.constant 156 : index
    %165 = vector.load %arg31[%c0_127, %c156] : memref<8x552xf32, #tpu.memory_space<vmem>>, vector<8x392xf32>
    %c22 = arith.constant 22 : index
    %c0_128 = arith.constant 0 : index
    %c0_129 = arith.constant 0 : index
    %166 = vector.load %arg9[%c22, %c0_128, %c0_129] : memref<25x1x392xf32, #tpu.memory_space<vmem>>, vector<1x1x392xf32>
    %167 = vector.shape_cast %166 : vector<1x1x392xf32> to vector<1x392xf32>
    %168 = vector.broadcast %167 : vector<1x392xf32> to vector<8x392xf32>
    %169 = arith.mulf %165, %168 : vector<8x392xf32>
    %c176 = arith.constant 176 : index
    %c0_130 = arith.constant 0 : index
    %170 = vector.load %arg32[%c176, %c0_130] : memref<200x392xf32, #tpu.memory_space<vmem>>, vector<8x392xf32>
    tpu.vector_store %arg32[%c176, %c0_130], %169 {strides = array<i32>} : memref<200x392xf32, #tpu.memory_space<vmem>>, vector<8x392xf32>,
    %c0_131 = arith.constant 0 : index
    %c157 = arith.constant 157 : index
    %171 = vector.load %arg31[%c0_131, %c157] : memref<8x552xf32, #tpu.memory_space<vmem>>, vector<8x392xf32>
    %c23 = arith.constant 23 : index
    %c0_132 = arith.constant 0 : index
    %c0_133 = arith.constant 0 : index
    %172 = vector.load %arg9[%c23, %c0_132, %c0_133] : memref<25x1x392xf32, #tpu.memory_space<vmem>>, vector<1x1x392xf32>
    %173 = vector.shape_cast %172 : vector<1x1x392xf32> to vector<1x392xf32>
    %174 = vector.broadcast %173 : vector<1x392xf32> to vector<8x392xf32>
    %175 = arith.mulf %171, %174 : vector<8x392xf32>
    %c184 = arith.constant 184 : index
    %c0_134 = arith.constant 0 : index
    %176 = vector.load %arg32[%c184, %c0_134] : memref<200x392xf32, #tpu.memory_space<vmem>>, vector<8x392xf32>
    tpu.vector_store %arg32[%c184, %c0_134], %175 {strides = array<i32>} : memref<200x392xf32, #tpu.memory_space<vmem>>, vector<8x392xf32>,
    %c0_135 = arith.constant 0 : index
    %c158 = arith.constant 158 : index
    %177 = vector.load %arg31[%c0_135, %c158] : memref<8x552xf32, #tpu.memory_space<vmem>>, vector<8x392xf32>
    %c24_136 = arith.constant 24 : index
    %c0_137 = arith.constant 0 : index
    %c0_138 = arith.constant 0 : index
    %178 = vector.load %arg9[%c24_136, %c0_137, %c0_138] : memref<25x1x392xf32, #tpu.memory_space<vmem>>, vector<1x1x392xf32>
    %179 = vector.shape_cast %178 : vector<1x1x392xf32> to vector<1x392xf32>
    %180 = vector.broadcast %179 : vector<1x392xf32> to vector<8x392xf32>
    %181 = arith.mulf %177, %180 : vector<8x392xf32>
    %c192 = arith.constant 192 : index
    %c0_139 = arith.constant 0 : index
    %182 = vector.load %arg32[%c192, %c0_139] : memref<200x392xf32, #tpu.memory_space<vmem>>, vector<8x392xf32>
    tpu.vector_store %arg32[%c192, %c0_139], %181 {strides = array<i32>} : memref<200x392xf32, #tpu.memory_space<vmem>>, vector<8x392xf32>,
    %c0_140 = arith.constant 0 : index
    %c0_141 = arith.constant 0 : index
    %183 = vector.load %arg5[%c0_140, %c0_141] : memref<21x200xf32, #tpu.memory_space<vmem>>, vector<21x200xf32>
    %c0_142 = arith.constant 0 : index
    %c0_143 = arith.constant 0 : index
    %184 = vector.load %arg32[%c0_142, %c0_143] : memref<200x392xf32, #tpu.memory_space<vmem>>, vector<200x392xf32>
    %cst_144 = arith.constant dense<0.000000e+00> : vector<21x392xf32>
    %185 = tpu.matmul %183, %184, %cst_144 {dimension_numbers = #tpu.dot_dimension_numbers<[1], [0], [0], [1], [0, 0, 1, 1], [], []>} : vector<21x200xf32>, vector<200x392xf32>, vector<21x392xf32> -> vector<21x392xf32>
    %c0_145 = arith.constant 0 : index
    %c0_146 = arith.constant 0 : index
    %186 = vector.load %arg6[%c0_145, %c0_146] : memref<21x1xf32, #tpu.memory_space<vmem>>, vector<21x1xf32>
    %187 = vector.broadcast %186 : vector<21x1xf32> to vector<21x392xf32>
    %188 = arith.addf %185, %187 : vector<21x392xf32>
    %cst_147 = arith.constant 0.000000e+00 : f32
    %189 = vector.broadcast %cst_147 : f32 to vector<21x392xf32>
    %190 = arith.maximumf %188, %189 : vector<21x392xf32>
    %cst_148 = arith.constant dense<0.000000e+00> : vector<21xf32>
    %191 = vector.multi_reduction <add>, %190, %cst_148 [1] : vector<21x392xf32> to vector<21xf32>
    %192 = vector.shape_cast %191 : vector<21xf32> to vector<21x1xf32>
    %cst_149 = arith.constant 3.920000e+02 : f32
    %193 = vector.broadcast %cst_149 : f32 to vector<21x1xf32>
    %194 = arith.divf %192, %193 : vector<21x1xf32>
    %195 = arith.mulf %190, %190 : vector<21x392xf32>
    %cst_150 = arith.constant dense<0.000000e+00> : vector<21xf32>
    %196 = vector.multi_reduction <add>, %195, %cst_150 [1] : vector<21x392xf32> to vector<21xf32>
    %197 = vector.shape_cast %196 : vector<21xf32> to vector<21x1xf32>
    %cst_151 = arith.constant 3.920000e+02 : f32
    %198 = vector.broadcast %cst_151 : f32 to vector<21x1xf32>
    %199 = arith.divf %197, %198 : vector<21x1xf32>
    %200 = arith.mulf %194, %194 : vector<21x1xf32>
    %201 = arith.subf %199, %200 : vector<21x1xf32>
    %cst_152 = arith.constant 0.000000e+00 : f32
    %202 = vector.broadcast %cst_152 : f32 to vector<21x1xf32>
    %203 = arith.maximumf %201, %202 : vector<21x1xf32>
    %cst_153 = arith.constant 9.99999974E-6 : f32
    %204 = vector.broadcast %cst_153 : f32 to vector<21x1xf32>
    %205 = arith.addf %203, %204 : vector<21x1xf32>
    %206 = math.rsqrt %205 : vector<21x1xf32>
    %207 = vector.broadcast %194 : vector<21x1xf32> to vector<21x392xf32>
    %208 = arith.subf %190, %207 : vector<21x392xf32>
    %209 = vector.broadcast %206 : vector<21x1xf32> to vector<21x392xf32>
    %210 = arith.mulf %208, %209 : vector<21x392xf32>
    %c0_154 = arith.constant 0 : index
    %c0_155 = arith.constant 0 : index
    %211 = vector.load %arg7[%c0_154, %c0_155] : memref<21x1xf32, #tpu.memory_space<vmem>>, vector<21x1xf32>
    %212 = vector.broadcast %211 : vector<21x1xf32> to vector<21x392xf32>
    %213 = arith.mulf %210, %212 : vector<21x392xf32>
    %c0_156 = arith.constant 0 : index
    %c0_157 = arith.constant 0 : index
    %214 = vector.load %arg8[%c0_156, %c0_157] : memref<21x1xf32, #tpu.memory_space<vmem>>, vector<21x1xf32>
    %215 = vector.broadcast %214 : vector<21x1xf32> to vector<21x392xf32>
    %216 = arith.addf %213, %215 : vector<21x392xf32>
    %c0_158 = arith.constant 0 : index
    %c0_159 = arith.constant 0 : index
    %217 = vector.load %arg30[%c0_158, %c0_159] : memref<24x408xf32, #tpu.memory_space<vmem>>, vector<21x392xf32>
    tpu.vector_store %arg30[%c0_158, %c0_159], %216 {strides = array<i32>} : memref<24x408xf32, #tpu.memory_space<vmem>>, vector<21x392xf32>,
    %cst_160 = arith.constant 0.000000e+00 : f32
    %218 = vector.broadcast %cst_160 : f32 to vector<21x16xf32>
    %c0_161 = arith.constant 0 : index
    %c392 = arith.constant 392 : index
    %219 = vector.load %arg30[%c0_161, %c392] : memref<24x408xf32, #tpu.memory_space<vmem>>, vector<21x16xf32>
    tpu.vector_store %arg30[%c0_161, %c392], %218 {strides = array<i32>} : memref<24x408xf32, #tpu.memory_space<vmem>>, vector<21x16xf32>,
    %c0_162 = arith.constant 0 : index
    %c1_163 = arith.constant 1 : index
    %220 = vector.load %arg30[%c0_162, %c1_163] : memref<24x408xf32, #tpu.memory_space<vmem>>, vector<21x392xf32>
    %221 = arith.maximumf %216, %220 : vector<21x392xf32>
    %c0_164 = arith.constant 0 : index
    %c14_165 = arith.constant 14 : index
    %222 = vector.load %arg30[%c0_164, %c14_165] : memref<24x408xf32, #tpu.memory_space<vmem>>, vector<21x392xf32>
    %223 = arith.maximumf %221, %222 : vector<21x392xf32>
    %c0_166 = arith.constant 0 : index
    %c15_167 = arith.constant 15 : index
    %224 = vector.load %arg30[%c0_166, %c15_167] : memref<24x408xf32, #tpu.memory_space<vmem>>, vector<21x392xf32>
    %225 = arith.maximumf %223, %224 : vector<21x392xf32>
    %c0_168 = arith.constant 0 : index
    %c0_169 = arith.constant 0 : index
    %226 = vector.load %arg10[%c0_168, %c0_169] : memref<392x98xf32, #tpu.memory_space<vmem>>, vector<392x98xf32>
    %cst_170 = arith.constant dense<0.000000e+00> : vector<21x98xf32>
    %227 = tpu.matmul %225, %226, %cst_170 {dimension_numbers = #tpu.dot_dimension_numbers<[1], [0], [0], [1], [0, 0, 1, 1], [], []>} : vector<21x392xf32>, vector<392x98xf32>, vector<21x98xf32> -> vector<21x98xf32>
    %c0_171 = arith.constant 0 : index
    %c0_172 = arith.constant 0 : index
    %228 = vector.load %arg11[%c0_171, %c0_172] : memref<8x21xf32, #tpu.memory_space<vmem>>, vector<8x21xf32>
    %cst_173 = arith.constant dense<0.000000e+00> : vector<8x98xf32>
    %229 = tpu.matmul %228, %227, %cst_173 {dimension_numbers = #tpu.dot_dimension_numbers<[1], [0], [0], [1], [0, 0, 1, 1], [], []>} : vector<8x21xf32>, vector<21x98xf32>, vector<8x98xf32> -> vector<8x98xf32>
    %c0_174 = arith.constant 0 : index
    %c0_175 = arith.constant 0 : index
    %230 = vector.load %arg12[%c0_174, %c0_175] : memref<8x1xf32, #tpu.memory_space<vmem>>, vector<8x1xf32>
    %231 = vector.broadcast %230 : vector<8x1xf32> to vector<8x98xf32>
    %232 = arith.addf %229, %231 : vector<8x98xf32>
    %cst_176 = arith.constant 0.000000e+00 : f32
    %233 = vector.broadcast %cst_176 : f32 to vector<8x98xf32>
    %234 = arith.maximumf %232, %233 : vector<8x98xf32>
    %cst_177 = arith.constant 0.000000e+00 : f32
    %235 = vector.broadcast %cst_177 : f32 to vector<8x128xf32>
    %c0_178 = arith.constant 0 : index
    %c0_179 = arith.constant 0 : index
    %236 = vector.load %arg31[%c0_178, %c0_179] : memref<8x552xf32, #tpu.memory_space<vmem>>, vector<8x128xf32>
    tpu.vector_store %arg31[%c0_178, %c0_179], %235 {strides = array<i32>} : memref<8x552xf32, #tpu.memory_space<vmem>>, vector<8x128xf32>,
    %c0_180 = arith.constant 0 : index
    %c128_181 = arith.constant 128 : index
    %237 = vector.load %arg31[%c0_180, %c128_181] : memref<8x552xf32, #tpu.memory_space<vmem>>, vector<8x98xf32>
    tpu.vector_store %arg31[%c0_180, %c128_181], %234 {strides = array<i32>} : memref<8x552xf32, #tpu.memory_space<vmem>>, vector<8x98xf32>,
    %cst_182 = arith.constant 0.000000e+00 : f32
    %238 = vector.broadcast %cst_182 : f32 to vector<8x326xf32>
    %c0_183 = arith.constant 0 : index
    %c226 = arith.constant 226 : index
    %239 = vector.load %arg31[%c0_183, %c226] : memref<8x552xf32, #tpu.memory_space<vmem>>, vector<8x326xf32>
    tpu.vector_store %arg31[%c0_183, %c226], %238 {strides = array<i32>} : memref<8x552xf32, #tpu.memory_space<vmem>>, vector<8x326xf32>,
    %c0_184 = arith.constant 0 : index
    %c112_185 = arith.constant 112 : index
    %240 = vector.load %arg31[%c0_184, %c112_185] : memref<8x552xf32, #tpu.memory_space<vmem>>, vector<8x98xf32>
    %c0_186 = arith.constant 0 : index
    %c0_187 = arith.constant 0 : index
    %c0_188 = arith.constant 0 : index
    %241 = vector.load %arg17[%c0_186, %c0_187, %c0_188] : memref<25x1x98xf32, #tpu.memory_space<vmem>>, vector<1x1x98xf32>
    %242 = vector.shape_cast %241 : vector<1x1x98xf32> to vector<1x98xf32>
    %243 = vector.broadcast %242 : vector<1x98xf32> to vector<8x98xf32>
    %244 = arith.mulf %240, %243 : vector<8x98xf32>
    %c0_189 = arith.constant 0 : index
    %c0_190 = arith.constant 0 : index
    %245 = vector.load %arg32[%c0_189, %c0_190] : memref<200x392xf32, #tpu.memory_space<vmem>>, vector<8x98xf32>
    tpu.vector_store %arg32[%c0_189, %c0_190], %244 {strides = array<i32>} : memref<200x392xf32, #tpu.memory_space<vmem>>, vector<8x98xf32>,
    %c0_191 = arith.constant 0 : index
    %c113_192 = arith.constant 113 : index
    %246 = vector.load %arg31[%c0_191, %c113_192] : memref<8x552xf32, #tpu.memory_space<vmem>>, vector<8x98xf32>
    %c1_193 = arith.constant 1 : index
    %c0_194 = arith.constant 0 : index
    %c0_195 = arith.constant 0 : index
    %247 = vector.load %arg17[%c1_193, %c0_194, %c0_195] : memref<25x1x98xf32, #tpu.memory_space<vmem>>, vector<1x1x98xf32>
    %248 = vector.shape_cast %247 : vector<1x1x98xf32> to vector<1x98xf32>
    %249 = vector.broadcast %248 : vector<1x98xf32> to vector<8x98xf32>
    %250 = arith.mulf %246, %249 : vector<8x98xf32>
    %c8_196 = arith.constant 8 : index
    %c0_197 = arith.constant 0 : index
    %251 = vector.load %arg32[%c8_196, %c0_197] : memref<200x392xf32, #tpu.memory_space<vmem>>, vector<8x98xf32>
    tpu.vector_store %arg32[%c8_196, %c0_197], %250 {strides = array<i32>} : memref<200x392xf32, #tpu.memory_space<vmem>>, vector<8x98xf32>,
    %c0_198 = arith.constant 0 : index
    %c114_199 = arith.constant 114 : index
    %252 = vector.load %arg31[%c0_198, %c114_199] : memref<8x552xf32, #tpu.memory_space<vmem>>, vector<8x98xf32>
    %c2_200 = arith.constant 2 : index
    %c0_201 = arith.constant 0 : index
    %c0_202 = arith.constant 0 : index
    %253 = vector.load %arg17[%c2_200, %c0_201, %c0_202] : memref<25x1x98xf32, #tpu.memory_space<vmem>>, vector<1x1x98xf32>
    %254 = vector.shape_cast %253 : vector<1x1x98xf32> to vector<1x98xf32>
    %255 = vector.broadcast %254 : vector<1x98xf32> to vector<8x98xf32>
    %256 = arith.mulf %252, %255 : vector<8x98xf32>
    %c16_203 = arith.constant 16 : index
    %c0_204 = arith.constant 0 : index
    %257 = vector.load %arg32[%c16_203, %c0_204] : memref<200x392xf32, #tpu.memory_space<vmem>>, vector<8x98xf32>
    tpu.vector_store %arg32[%c16_203, %c0_204], %256 {strides = array<i32>} : memref<200x392xf32, #tpu.memory_space<vmem>>, vector<8x98xf32>,
    %c0_205 = arith.constant 0 : index
    %c115_206 = arith.constant 115 : index
    %258 = vector.load %arg31[%c0_205, %c115_206] : memref<8x552xf32, #tpu.memory_space<vmem>>, vector<8x98xf32>
    %c3_207 = arith.constant 3 : index
    %c0_208 = arith.constant 0 : index
    %c0_209 = arith.constant 0 : index
    %259 = vector.load %arg17[%c3_207, %c0_208, %c0_209] : memref<25x1x98xf32, #tpu.memory_space<vmem>>, vector<1x1x98xf32>
    %260 = vector.shape_cast %259 : vector<1x1x98xf32> to vector<1x98xf32>
    %261 = vector.broadcast %260 : vector<1x98xf32> to vector<8x98xf32>
    %262 = arith.mulf %258, %261 : vector<8x98xf32>
    %c24_210 = arith.constant 24 : index
    %c0_211 = arith.constant 0 : index
    %263 = vector.load %arg32[%c24_210, %c0_211] : memref<200x392xf32, #tpu.memory_space<vmem>>, vector<8x98xf32>
    tpu.vector_store %arg32[%c24_210, %c0_211], %262 {strides = array<i32>} : memref<200x392xf32, #tpu.memory_space<vmem>>, vector<8x98xf32>,
    %c0_212 = arith.constant 0 : index
    %c116_213 = arith.constant 116 : index
    %264 = vector.load %arg31[%c0_212, %c116_213] : memref<8x552xf32, #tpu.memory_space<vmem>>, vector<8x98xf32>
    %c4_214 = arith.constant 4 : index
    %c0_215 = arith.constant 0 : index
    %c0_216 = arith.constant 0 : index
    %265 = vector.load %arg17[%c4_214, %c0_215, %c0_216] : memref<25x1x98xf32, #tpu.memory_space<vmem>>, vector<1x1x98xf32>
    %266 = vector.shape_cast %265 : vector<1x1x98xf32> to vector<1x98xf32>
    %267 = vector.broadcast %266 : vector<1x98xf32> to vector<8x98xf32>
    %268 = arith.mulf %264, %267 : vector<8x98xf32>
    %c32_217 = arith.constant 32 : index
    %c0_218 = arith.constant 0 : index
    %269 = vector.load %arg32[%c32_217, %c0_218] : memref<200x392xf32, #tpu.memory_space<vmem>>, vector<8x98xf32>
    tpu.vector_store %arg32[%c32_217, %c0_218], %268 {strides = array<i32>} : memref<200x392xf32, #tpu.memory_space<vmem>>, vector<8x98xf32>,
    %c0_219 = arith.constant 0 : index
    %c119 = arith.constant 119 : index
    %270 = vector.load %arg31[%c0_219, %c119] : memref<8x552xf32, #tpu.memory_space<vmem>>, vector<8x98xf32>
    %c5_220 = arith.constant 5 : index
    %c0_221 = arith.constant 0 : index
    %c0_222 = arith.constant 0 : index
    %271 = vector.load %arg17[%c5_220, %c0_221, %c0_222] : memref<25x1x98xf32, #tpu.memory_space<vmem>>, vector<1x1x98xf32>
    %272 = vector.shape_cast %271 : vector<1x1x98xf32> to vector<1x98xf32>
    %273 = vector.broadcast %272 : vector<1x98xf32> to vector<8x98xf32>
    %274 = arith.mulf %270, %273 : vector<8x98xf32>
    %c40_223 = arith.constant 40 : index
    %c0_224 = arith.constant 0 : index
    %275 = vector.load %arg32[%c40_223, %c0_224] : memref<200x392xf32, #tpu.memory_space<vmem>>, vector<8x98xf32>
    tpu.vector_store %arg32[%c40_223, %c0_224], %274 {strides = array<i32>} : memref<200x392xf32, #tpu.memory_space<vmem>>, vector<8x98xf32>,
    %c0_225 = arith.constant 0 : index
    %c120_226 = arith.constant 120 : index
    %276 = vector.load %arg31[%c0_225, %c120_226] : memref<8x552xf32, #tpu.memory_space<vmem>>, vector<8x98xf32>
    %c6_227 = arith.constant 6 : index
    %c0_228 = arith.constant 0 : index
    %c0_229 = arith.constant 0 : index
    %277 = vector.load %arg17[%c6_227, %c0_228, %c0_229] : memref<25x1x98xf32, #tpu.memory_space<vmem>>, vector<1x1x98xf32>
    %278 = vector.shape_cast %277 : vector<1x1x98xf32> to vector<1x98xf32>
    %279 = vector.broadcast %278 : vector<1x98xf32> to vector<8x98xf32>
    %280 = arith.mulf %276, %279 : vector<8x98xf32>
    %c48_230 = arith.constant 48 : index
    %c0_231 = arith.constant 0 : index
    %281 = vector.load %arg32[%c48_230, %c0_231] : memref<200x392xf32, #tpu.memory_space<vmem>>, vector<8x98xf32>
    tpu.vector_store %arg32[%c48_230, %c0_231], %280 {strides = array<i32>} : memref<200x392xf32, #tpu.memory_space<vmem>>, vector<8x98xf32>,
    %c0_232 = arith.constant 0 : index
    %c121 = arith.constant 121 : index
    %282 = vector.load %arg31[%c0_232, %c121] : memref<8x552xf32, #tpu.memory_space<vmem>>, vector<8x98xf32>
    %c7_233 = arith.constant 7 : index
    %c0_234 = arith.constant 0 : index
    %c0_235 = arith.constant 0 : index
    %283 = vector.load %arg17[%c7_233, %c0_234, %c0_235] : memref<25x1x98xf32, #tpu.memory_space<vmem>>, vector<1x1x98xf32>
    %284 = vector.shape_cast %283 : vector<1x1x98xf32> to vector<1x98xf32>
    %285 = vector.broadcast %284 : vector<1x98xf32> to vector<8x98xf32>
    %286 = arith.mulf %282, %285 : vector<8x98xf32>
    %c56_236 = arith.constant 56 : index
    %c0_237 = arith.constant 0 : index
    %287 = vector.load %arg32[%c56_236, %c0_237] : memref<200x392xf32, #tpu.memory_space<vmem>>, vector<8x98xf32>
    tpu.vector_store %arg32[%c56_236, %c0_237], %286 {strides = array<i32>} : memref<200x392xf32, #tpu.memory_space<vmem>>, vector<8x98xf32>,
    %c0_238 = arith.constant 0 : index
    %c122 = arith.constant 122 : index
    %288 = vector.load %arg31[%c0_238, %c122] : memref<8x552xf32, #tpu.memory_space<vmem>>, vector<8x98xf32>
    %c8_239 = arith.constant 8 : index
    %c0_240 = arith.constant 0 : index
    %c0_241 = arith.constant 0 : index
    %289 = vector.load %arg17[%c8_239, %c0_240, %c0_241] : memref<25x1x98xf32, #tpu.memory_space<vmem>>, vector<1x1x98xf32>
    %290 = vector.shape_cast %289 : vector<1x1x98xf32> to vector<1x98xf32>
    %291 = vector.broadcast %290 : vector<1x98xf32> to vector<8x98xf32>
    %292 = arith.mulf %288, %291 : vector<8x98xf32>
    %c64_242 = arith.constant 64 : index
    %c0_243 = arith.constant 0 : index
    %293 = vector.load %arg32[%c64_242, %c0_243] : memref<200x392xf32, #tpu.memory_space<vmem>>, vector<8x98xf32>
    tpu.vector_store %arg32[%c64_242, %c0_243], %292 {strides = array<i32>} : memref<200x392xf32, #tpu.memory_space<vmem>>, vector<8x98xf32>,
    %c0_244 = arith.constant 0 : index
    %c123 = arith.constant 123 : index
    %294 = vector.load %arg31[%c0_244, %c123] : memref<8x552xf32, #tpu.memory_space<vmem>>, vector<8x98xf32>
    %c9_245 = arith.constant 9 : index
    %c0_246 = arith.constant 0 : index
    %c0_247 = arith.constant 0 : index
    %295 = vector.load %arg17[%c9_245, %c0_246, %c0_247] : memref<25x1x98xf32, #tpu.memory_space<vmem>>, vector<1x1x98xf32>
    %296 = vector.shape_cast %295 : vector<1x1x98xf32> to vector<1x98xf32>
    %297 = vector.broadcast %296 : vector<1x98xf32> to vector<8x98xf32>
    %298 = arith.mulf %294, %297 : vector<8x98xf32>
    %c72_248 = arith.constant 72 : index
    %c0_249 = arith.constant 0 : index
    %299 = vector.load %arg32[%c72_248, %c0_249] : memref<200x392xf32, #tpu.memory_space<vmem>>, vector<8x98xf32>
    tpu.vector_store %arg32[%c72_248, %c0_249], %298 {strides = array<i32>} : memref<200x392xf32, #tpu.memory_space<vmem>>, vector<8x98xf32>,
    %c0_250 = arith.constant 0 : index
    %c126_251 = arith.constant 126 : index
    %300 = vector.load %arg31[%c0_250, %c126_251] : memref<8x552xf32, #tpu.memory_space<vmem>>, vector<8x98xf32>
    %c10_252 = arith.constant 10 : index
    %c0_253 = arith.constant 0 : index
    %c0_254 = arith.constant 0 : index
    %301 = vector.load %arg17[%c10_252, %c0_253, %c0_254] : memref<25x1x98xf32, #tpu.memory_space<vmem>>, vector<1x1x98xf32>
    %302 = vector.shape_cast %301 : vector<1x1x98xf32> to vector<1x98xf32>
    %303 = vector.broadcast %302 : vector<1x98xf32> to vector<8x98xf32>
    %304 = arith.mulf %300, %303 : vector<8x98xf32>
    %c80_255 = arith.constant 80 : index
    %c0_256 = arith.constant 0 : index
    %305 = vector.load %arg32[%c80_255, %c0_256] : memref<200x392xf32, #tpu.memory_space<vmem>>, vector<8x98xf32>
    tpu.vector_store %arg32[%c80_255, %c0_256], %304 {strides = array<i32>} : memref<200x392xf32, #tpu.memory_space<vmem>>, vector<8x98xf32>,
    %c0_257 = arith.constant 0 : index
    %c127_258 = arith.constant 127 : index
    %306 = vector.load %arg31[%c0_257, %c127_258] : memref<8x552xf32, #tpu.memory_space<vmem>>, vector<8x98xf32>
    %c11_259 = arith.constant 11 : index
    %c0_260 = arith.constant 0 : index
    %c0_261 = arith.constant 0 : index
    %307 = vector.load %arg17[%c11_259, %c0_260, %c0_261] : memref<25x1x98xf32, #tpu.memory_space<vmem>>, vector<1x1x98xf32>
    %308 = vector.shape_cast %307 : vector<1x1x98xf32> to vector<1x98xf32>
    %309 = vector.broadcast %308 : vector<1x98xf32> to vector<8x98xf32>
    %310 = arith.mulf %306, %309 : vector<8x98xf32>
    %c88_262 = arith.constant 88 : index
    %c0_263 = arith.constant 0 : index
    %311 = vector.load %arg32[%c88_262, %c0_263] : memref<200x392xf32, #tpu.memory_space<vmem>>, vector<8x98xf32>
    tpu.vector_store %arg32[%c88_262, %c0_263], %310 {strides = array<i32>} : memref<200x392xf32, #tpu.memory_space<vmem>>, vector<8x98xf32>,
    %c0_264 = arith.constant 0 : index
    %c128_265 = arith.constant 128 : index
    %312 = vector.load %arg31[%c0_264, %c128_265] : memref<8x552xf32, #tpu.memory_space<vmem>>, vector<8x98xf32>
    %c12_266 = arith.constant 12 : index
    %c0_267 = arith.constant 0 : index
    %c0_268 = arith.constant 0 : index
    %313 = vector.load %arg17[%c12_266, %c0_267, %c0_268] : memref<25x1x98xf32, #tpu.memory_space<vmem>>, vector<1x1x98xf32>
    %314 = vector.shape_cast %313 : vector<1x1x98xf32> to vector<1x98xf32>
    %315 = vector.broadcast %314 : vector<1x98xf32> to vector<8x98xf32>
    %316 = arith.mulf %312, %315 : vector<8x98xf32>
    %c96_269 = arith.constant 96 : index
    %c0_270 = arith.constant 0 : index
    %317 = vector.load %arg32[%c96_269, %c0_270] : memref<200x392xf32, #tpu.memory_space<vmem>>, vector<8x98xf32>
    tpu.vector_store %arg32[%c96_269, %c0_270], %316 {strides = array<i32>} : memref<200x392xf32, #tpu.memory_space<vmem>>, vector<8x98xf32>,
    %c0_271 = arith.constant 0 : index
    %c129_272 = arith.constant 129 : index
    %318 = vector.load %arg31[%c0_271, %c129_272] : memref<8x552xf32, #tpu.memory_space<vmem>>, vector<8x98xf32>
    %c13_273 = arith.constant 13 : index
    %c0_274 = arith.constant 0 : index
    %c0_275 = arith.constant 0 : index
    %319 = vector.load %arg17[%c13_273, %c0_274, %c0_275] : memref<25x1x98xf32, #tpu.memory_space<vmem>>, vector<1x1x98xf32>
    %320 = vector.shape_cast %319 : vector<1x1x98xf32> to vector<1x98xf32>
    %321 = vector.broadcast %320 : vector<1x98xf32> to vector<8x98xf32>
    %322 = arith.mulf %318, %321 : vector<8x98xf32>
    %c104_276 = arith.constant 104 : index
    %c0_277 = arith.constant 0 : index
    %323 = vector.load %arg32[%c104_276, %c0_277] : memref<200x392xf32, #tpu.memory_space<vmem>>, vector<8x98xf32>
    tpu.vector_store %arg32[%c104_276, %c0_277], %322 {strides = array<i32>} : memref<200x392xf32, #tpu.memory_space<vmem>>, vector<8x98xf32>,
    %c0_278 = arith.constant 0 : index
    %c130_279 = arith.constant 130 : index
    %324 = vector.load %arg31[%c0_278, %c130_279] : memref<8x552xf32, #tpu.memory_space<vmem>>, vector<8x98xf32>
    %c14_280 = arith.constant 14 : index
    %c0_281 = arith.constant 0 : index
    %c0_282 = arith.constant 0 : index
    %325 = vector.load %arg17[%c14_280, %c0_281, %c0_282] : memref<25x1x98xf32, #tpu.memory_space<vmem>>, vector<1x1x98xf32>
    %326 = vector.shape_cast %325 : vector<1x1x98xf32> to vector<1x98xf32>
    %327 = vector.broadcast %326 : vector<1x98xf32> to vector<8x98xf32>
    %328 = arith.mulf %324, %327 : vector<8x98xf32>
    %c112_283 = arith.constant 112 : index
    %c0_284 = arith.constant 0 : index
    %329 = vector.load %arg32[%c112_283, %c0_284] : memref<200x392xf32, #tpu.memory_space<vmem>>, vector<8x98xf32>
    tpu.vector_store %arg32[%c112_283, %c0_284], %328 {strides = array<i32>} : memref<200x392xf32, #tpu.memory_space<vmem>>, vector<8x98xf32>,
    %c0_285 = arith.constant 0 : index
    %c133 = arith.constant 133 : index
    %330 = vector.load %arg31[%c0_285, %c133] : memref<8x552xf32, #tpu.memory_space<vmem>>, vector<8x98xf32>
    %c15_286 = arith.constant 15 : index
    %c0_287 = arith.constant 0 : index
    %c0_288 = arith.constant 0 : index
    %331 = vector.load %arg17[%c15_286, %c0_287, %c0_288] : memref<25x1x98xf32, #tpu.memory_space<vmem>>, vector<1x1x98xf32>
    %332 = vector.shape_cast %331 : vector<1x1x98xf32> to vector<1x98xf32>
    %333 = vector.broadcast %332 : vector<1x98xf32> to vector<8x98xf32>
    %334 = arith.mulf %330, %333 : vector<8x98xf32>
    %c120_289 = arith.constant 120 : index
    %c0_290 = arith.constant 0 : index
    %335 = vector.load %arg32[%c120_289, %c0_290] : memref<200x392xf32, #tpu.memory_space<vmem>>, vector<8x98xf32>
    tpu.vector_store %arg32[%c120_289, %c0_290], %334 {strides = array<i32>} : memref<200x392xf32, #tpu.memory_space<vmem>>, vector<8x98xf32>,
    %c0_291 = arith.constant 0 : index
    %c134 = arith.constant 134 : index
    %336 = vector.load %arg31[%c0_291, %c134] : memref<8x552xf32, #tpu.memory_space<vmem>>, vector<8x98xf32>
    %c16_292 = arith.constant 16 : index
    %c0_293 = arith.constant 0 : index
    %c0_294 = arith.constant 0 : index
    %337 = vector.load %arg17[%c16_292, %c0_293, %c0_294] : memref<25x1x98xf32, #tpu.memory_space<vmem>>, vector<1x1x98xf32>
    %338 = vector.shape_cast %337 : vector<1x1x98xf32> to vector<1x98xf32>
    %339 = vector.broadcast %338 : vector<1x98xf32> to vector<8x98xf32>
    %340 = arith.mulf %336, %339 : vector<8x98xf32>
    %c128_295 = arith.constant 128 : index
    %c0_296 = arith.constant 0 : index
    %341 = vector.load %arg32[%c128_295, %c0_296] : memref<200x392xf32, #tpu.memory_space<vmem>>, vector<8x98xf32>
    tpu.vector_store %arg32[%c128_295, %c0_296], %340 {strides = array<i32>} : memref<200x392xf32, #tpu.memory_space<vmem>>, vector<8x98xf32>,
    %c0_297 = arith.constant 0 : index
    %c135 = arith.constant 135 : index
    %342 = vector.load %arg31[%c0_297, %c135] : memref<8x552xf32, #tpu.memory_space<vmem>>, vector<8x98xf32>
    %c17_298 = arith.constant 17 : index
    %c0_299 = arith.constant 0 : index
    %c0_300 = arith.constant 0 : index
    %343 = vector.load %arg17[%c17_298, %c0_299, %c0_300] : memref<25x1x98xf32, #tpu.memory_space<vmem>>, vector<1x1x98xf32>
    %344 = vector.shape_cast %343 : vector<1x1x98xf32> to vector<1x98xf32>
    %345 = vector.broadcast %344 : vector<1x98xf32> to vector<8x98xf32>
    %346 = arith.mulf %342, %345 : vector<8x98xf32>
    %c136_301 = arith.constant 136 : index
    %c0_302 = arith.constant 0 : index
    %347 = vector.load %arg32[%c136_301, %c0_302] : memref<200x392xf32, #tpu.memory_space<vmem>>, vector<8x98xf32>
    tpu.vector_store %arg32[%c136_301, %c0_302], %346 {strides = array<i32>} : memref<200x392xf32, #tpu.memory_space<vmem>>, vector<8x98xf32>,
    %c0_303 = arith.constant 0 : index
    %c136_304 = arith.constant 136 : index
    %348 = vector.load %arg31[%c0_303, %c136_304] : memref<8x552xf32, #tpu.memory_space<vmem>>, vector<8x98xf32>
    %c18_305 = arith.constant 18 : index
    %c0_306 = arith.constant 0 : index
    %c0_307 = arith.constant 0 : index
    %349 = vector.load %arg17[%c18_305, %c0_306, %c0_307] : memref<25x1x98xf32, #tpu.memory_space<vmem>>, vector<1x1x98xf32>
    %350 = vector.shape_cast %349 : vector<1x1x98xf32> to vector<1x98xf32>
    %351 = vector.broadcast %350 : vector<1x98xf32> to vector<8x98xf32>
    %352 = arith.mulf %348, %351 : vector<8x98xf32>
    %c144_308 = arith.constant 144 : index
    %c0_309 = arith.constant 0 : index
    %353 = vector.load %arg32[%c144_308, %c0_309] : memref<200x392xf32, #tpu.memory_space<vmem>>, vector<8x98xf32>
    tpu.vector_store %arg32[%c144_308, %c0_309], %352 {strides = array<i32>} : memref<200x392xf32, #tpu.memory_space<vmem>>, vector<8x98xf32>,
    %c0_310 = arith.constant 0 : index
    %c137 = arith.constant 137 : index
    %354 = vector.load %arg31[%c0_310, %c137] : memref<8x552xf32, #tpu.memory_space<vmem>>, vector<8x98xf32>
    %c19_311 = arith.constant 19 : index
    %c0_312 = arith.constant 0 : index
    %c0_313 = arith.constant 0 : index
    %355 = vector.load %arg17[%c19_311, %c0_312, %c0_313] : memref<25x1x98xf32, #tpu.memory_space<vmem>>, vector<1x1x98xf32>
    %356 = vector.shape_cast %355 : vector<1x1x98xf32> to vector<1x98xf32>
    %357 = vector.broadcast %356 : vector<1x98xf32> to vector<8x98xf32>
    %358 = arith.mulf %354, %357 : vector<8x98xf32>
    %c152_314 = arith.constant 152 : index
    %c0_315 = arith.constant 0 : index
    %359 = vector.load %arg32[%c152_314, %c0_315] : memref<200x392xf32, #tpu.memory_space<vmem>>, vector<8x98xf32>
    tpu.vector_store %arg32[%c152_314, %c0_315], %358 {strides = array<i32>} : memref<200x392xf32, #tpu.memory_space<vmem>>, vector<8x98xf32>,
    %c0_316 = arith.constant 0 : index
    %c140_317 = arith.constant 140 : index
    %360 = vector.load %arg31[%c0_316, %c140_317] : memref<8x552xf32, #tpu.memory_space<vmem>>, vector<8x98xf32>
    %c20_318 = arith.constant 20 : index
    %c0_319 = arith.constant 0 : index
    %c0_320 = arith.constant 0 : index
    %361 = vector.load %arg17[%c20_318, %c0_319, %c0_320] : memref<25x1x98xf32, #tpu.memory_space<vmem>>, vector<1x1x98xf32>
    %362 = vector.shape_cast %361 : vector<1x1x98xf32> to vector<1x98xf32>
    %363 = vector.broadcast %362 : vector<1x98xf32> to vector<8x98xf32>
    %364 = arith.mulf %360, %363 : vector<8x98xf32>
    %c160_321 = arith.constant 160 : index
    %c0_322 = arith.constant 0 : index
    %365 = vector.load %arg32[%c160_321, %c0_322] : memref<200x392xf32, #tpu.memory_space<vmem>>, vector<8x98xf32>
    tpu.vector_store %arg32[%c160_321, %c0_322], %364 {strides = array<i32>} : memref<200x392xf32, #tpu.memory_space<vmem>>, vector<8x98xf32>,
    %c0_323 = arith.constant 0 : index
    %c141_324 = arith.constant 141 : index
    %366 = vector.load %arg31[%c0_323, %c141_324] : memref<8x552xf32, #tpu.memory_space<vmem>>, vector<8x98xf32>
    %c21_325 = arith.constant 21 : index
    %c0_326 = arith.constant 0 : index
    %c0_327 = arith.constant 0 : index
    %367 = vector.load %arg17[%c21_325, %c0_326, %c0_327] : memref<25x1x98xf32, #tpu.memory_space<vmem>>, vector<1x1x98xf32>
    %368 = vector.shape_cast %367 : vector<1x1x98xf32> to vector<1x98xf32>
    %369 = vector.broadcast %368 : vector<1x98xf32> to vector<8x98xf32>
    %370 = arith.mulf %366, %369 : vector<8x98xf32>
    %c168_328 = arith.constant 168 : index
    %c0_329 = arith.constant 0 : index
    %371 = vector.load %arg32[%c168_328, %c0_329] : memref<200x392xf32, #tpu.memory_space<vmem>>, vector<8x98xf32>
    tpu.vector_store %arg32[%c168_328, %c0_329], %370 {strides = array<i32>} : memref<200x392xf32, #tpu.memory_space<vmem>>, vector<8x98xf32>,
    %c0_330 = arith.constant 0 : index
    %c142_331 = arith.constant 142 : index
    %372 = vector.load %arg31[%c0_330, %c142_331] : memref<8x552xf32, #tpu.memory_space<vmem>>, vector<8x98xf32>
    %c22_332 = arith.constant 22 : index
    %c0_333 = arith.constant 0 : index
    %c0_334 = arith.constant 0 : index
    %373 = vector.load %arg17[%c22_332, %c0_333, %c0_334] : memref<25x1x98xf32, #tpu.memory_space<vmem>>, vector<1x1x98xf32>
    %374 = vector.shape_cast %373 : vector<1x1x98xf32> to vector<1x98xf32>
    %375 = vector.broadcast %374 : vector<1x98xf32> to vector<8x98xf32>
    %376 = arith.mulf %372, %375 : vector<8x98xf32>
    %c176_335 = arith.constant 176 : index
    %c0_336 = arith.constant 0 : index
    %377 = vector.load %arg32[%c176_335, %c0_336] : memref<200x392xf32, #tpu.memory_space<vmem>>, vector<8x98xf32>
    tpu.vector_store %arg32[%c176_335, %c0_336], %376 {strides = array<i32>} : memref<200x392xf32, #tpu.memory_space<vmem>>, vector<8x98xf32>,
    %c0_337 = arith.constant 0 : index
    %c143_338 = arith.constant 143 : index
    %378 = vector.load %arg31[%c0_337, %c143_338] : memref<8x552xf32, #tpu.memory_space<vmem>>, vector<8x98xf32>
    %c23_339 = arith.constant 23 : index
    %c0_340 = arith.constant 0 : index
    %c0_341 = arith.constant 0 : index
    %379 = vector.load %arg17[%c23_339, %c0_340, %c0_341] : memref<25x1x98xf32, #tpu.memory_space<vmem>>, vector<1x1x98xf32>
    %380 = vector.shape_cast %379 : vector<1x1x98xf32> to vector<1x98xf32>
    %381 = vector.broadcast %380 : vector<1x98xf32> to vector<8x98xf32>
    %382 = arith.mulf %378, %381 : vector<8x98xf32>
    %c184_342 = arith.constant 184 : index
    %c0_343 = arith.constant 0 : index
    %383 = vector.load %arg32[%c184_342, %c0_343] : memref<200x392xf32, #tpu.memory_space<vmem>>, vector<8x98xf32>
    tpu.vector_store %arg32[%c184_342, %c0_343], %382 {strides = array<i32>} : memref<200x392xf32, #tpu.memory_space<vmem>>, vector<8x98xf32>,
    %c0_344 = arith.constant 0 : index
    %c144_345 = arith.constant 144 : index
    %384 = vector.load %arg31[%c0_344, %c144_345] : memref<8x552xf32, #tpu.memory_space<vmem>>, vector<8x98xf32>
    %c24_346 = arith.constant 24 : index
    %c0_347 = arith.constant 0 : index
    %c0_348 = arith.constant 0 : index
    %385 = vector.load %arg17[%c24_346, %c0_347, %c0_348] : memref<25x1x98xf32, #tpu.memory_space<vmem>>, vector<1x1x98xf32>
    %386 = vector.shape_cast %385 : vector<1x1x98xf32> to vector<1x98xf32>
    %387 = vector.broadcast %386 : vector<1x98xf32> to vector<8x98xf32>
    %388 = arith.mulf %384, %387 : vector<8x98xf32>
    %c192_349 = arith.constant 192 : index
    %c0_350 = arith.constant 0 : index
    %389 = vector.load %arg32[%c192_349, %c0_350] : memref<200x392xf32, #tpu.memory_space<vmem>>, vector<8x98xf32>
    tpu.vector_store %arg32[%c192_349, %c0_350], %388 {strides = array<i32>} : memref<200x392xf32, #tpu.memory_space<vmem>>, vector<8x98xf32>,
    %c0_351 = arith.constant 0 : index
    %c0_352 = arith.constant 0 : index
    %390 = vector.load %arg13[%c0_351, %c0_352] : memref<21x200xf32, #tpu.memory_space<vmem>>, vector<21x200xf32>
    %c0_353 = arith.constant 0 : index
    %c0_354 = arith.constant 0 : index
    %391 = vector.load %arg32[%c0_353, %c0_354] : memref<200x392xf32, #tpu.memory_space<vmem>>, vector<200x98xf32>
    %cst_355 = arith.constant dense<0.000000e+00> : vector<21x98xf32>
    %392 = tpu.matmul %390, %391, %cst_355 {dimension_numbers = #tpu.dot_dimension_numbers<[1], [0], [0], [1], [0, 0, 1, 1], [], []>} : vector<21x200xf32>, vector<200x98xf32>, vector<21x98xf32> -> vector<21x98xf32>
    %c0_356 = arith.constant 0 : index
    %c0_357 = arith.constant 0 : index
    %393 = vector.load %arg14[%c0_356, %c0_357] : memref<21x1xf32, #tpu.memory_space<vmem>>, vector<21x1xf32>
    %394 = vector.broadcast %393 : vector<21x1xf32> to vector<21x98xf32>
    %395 = arith.addf %392, %394 : vector<21x98xf32>
    %cst_358 = arith.constant 0.000000e+00 : f32
    %396 = vector.broadcast %cst_358 : f32 to vector<21x98xf32>
    %397 = arith.maximumf %395, %396 : vector<21x98xf32>
    %cst_359 = arith.constant dense<0.000000e+00> : vector<21xf32>
    %398 = vector.multi_reduction <add>, %397, %cst_359 [1] : vector<21x98xf32> to vector<21xf32>
    %399 = vector.shape_cast %398 : vector<21xf32> to vector<21x1xf32>
    %cst_360 = arith.constant 9.800000e+01 : f32
    %400 = vector.broadcast %cst_360 : f32 to vector<21x1xf32>
    %401 = arith.divf %399, %400 : vector<21x1xf32>
    %402 = arith.mulf %397, %397 : vector<21x98xf32>
    %cst_361 = arith.constant dense<0.000000e+00> : vector<21xf32>
    %403 = vector.multi_reduction <add>, %402, %cst_361 [1] : vector<21x98xf32> to vector<21xf32>
    %404 = vector.shape_cast %403 : vector<21xf32> to vector<21x1xf32>
    %cst_362 = arith.constant 9.800000e+01 : f32
    %405 = vector.broadcast %cst_362 : f32 to vector<21x1xf32>
    %406 = arith.divf %404, %405 : vector<21x1xf32>
    %407 = arith.mulf %401, %401 : vector<21x1xf32>
    %408 = arith.subf %406, %407 : vector<21x1xf32>
    %cst_363 = arith.constant 0.000000e+00 : f32
    %409 = vector.broadcast %cst_363 : f32 to vector<21x1xf32>
    %410 = arith.maximumf %408, %409 : vector<21x1xf32>
    %cst_364 = arith.constant 9.99999974E-6 : f32
    %411 = vector.broadcast %cst_364 : f32 to vector<21x1xf32>
    %412 = arith.addf %410, %411 : vector<21x1xf32>
    %413 = math.rsqrt %412 : vector<21x1xf32>
    %414 = vector.broadcast %401 : vector<21x1xf32> to vector<21x98xf32>
    %415 = arith.subf %397, %414 : vector<21x98xf32>
    %416 = vector.broadcast %413 : vector<21x1xf32> to vector<21x98xf32>
    %417 = arith.mulf %415, %416 : vector<21x98xf32>
    %c0_365 = arith.constant 0 : index
    %c0_366 = arith.constant 0 : index
    %418 = vector.load %arg15[%c0_365, %c0_366] : memref<21x1xf32, #tpu.memory_space<vmem>>, vector<21x1xf32>
    %419 = vector.broadcast %418 : vector<21x1xf32> to vector<21x98xf32>
    %420 = arith.mulf %417, %419 : vector<21x98xf32>
    %c0_367 = arith.constant 0 : index
    %c0_368 = arith.constant 0 : index
    %421 = vector.load %arg16[%c0_367, %c0_368] : memref<21x1xf32, #tpu.memory_space<vmem>>, vector<21x1xf32>
    %422 = vector.broadcast %421 : vector<21x1xf32> to vector<21x98xf32>
    %423 = arith.addf %420, %422 : vector<21x98xf32>
    %c0_369 = arith.constant 0 : index
    %c0_370 = arith.constant 0 : index
    %424 = vector.load %arg18[%c0_369, %c0_370] : memref<8x21xf32, #tpu.memory_space<vmem>>, vector<8x21xf32>
    %cst_371 = arith.constant dense<0.000000e+00> : vector<8x98xf32>
    %425 = tpu.matmul %424, %423, %cst_371 {dimension_numbers = #tpu.dot_dimension_numbers<[1], [0], [0], [1], [0, 0, 1, 1], [], []>} : vector<8x21xf32>, vector<21x98xf32>, vector<8x98xf32> -> vector<8x98xf32>
    %c0_372 = arith.constant 0 : index
    %c0_373 = arith.constant 0 : index
    %426 = vector.load %arg19[%c0_372, %c0_373] : memref<8x1xf32, #tpu.memory_space<vmem>>, vector<8x1xf32>
    %427 = vector.broadcast %426 : vector<8x1xf32> to vector<8x98xf32>
    %428 = arith.addf %425, %427 : vector<8x98xf32>
    %cst_374 = arith.constant 0.000000e+00 : f32
    %429 = vector.broadcast %cst_374 : f32 to vector<8x98xf32>
    %430 = arith.maximumf %428, %429 : vector<8x98xf32>
    %cst_375 = arith.constant 0.000000e+00 : f32
    %431 = vector.broadcast %cst_375 : f32 to vector<8x128xf32>
    %c0_376 = arith.constant 0 : index
    %c0_377 = arith.constant 0 : index
    %432 = vector.load %arg31[%c0_376, %c0_377] : memref<8x552xf32, #tpu.memory_space<vmem>>, vector<8x128xf32>
    tpu.vector_store %arg31[%c0_376, %c0_377], %431 {strides = array<i32>} : memref<8x552xf32, #tpu.memory_space<vmem>>, vector<8x128xf32>,
    %c0_378 = arith.constant 0 : index
    %c128_379 = arith.constant 128 : index
    %433 = vector.load %arg31[%c0_378, %c128_379] : memref<8x552xf32, #tpu.memory_space<vmem>>, vector<8x98xf32>
    tpu.vector_store %arg31[%c0_378, %c128_379], %430 {strides = array<i32>} : memref<8x552xf32, #tpu.memory_space<vmem>>, vector<8x98xf32>,
    %cst_380 = arith.constant 0.000000e+00 : f32
    %434 = vector.broadcast %cst_380 : f32 to vector<8x326xf32>
    %c0_381 = arith.constant 0 : index
    %c226_382 = arith.constant 226 : index
    %435 = vector.load %arg31[%c0_381, %c226_382] : memref<8x552xf32, #tpu.memory_space<vmem>>, vector<8x326xf32>
    tpu.vector_store %arg31[%c0_381, %c226_382], %434 {strides = array<i32>} : memref<8x552xf32, #tpu.memory_space<vmem>>, vector<8x326xf32>,
    %c0_383 = arith.constant 0 : index
    %c112_384 = arith.constant 112 : index
    %436 = vector.load %arg31[%c0_383, %c112_384] : memref<8x552xf32, #tpu.memory_space<vmem>>, vector<8x98xf32>
    %c0_385 = arith.constant 0 : index
    %c0_386 = arith.constant 0 : index
    %c0_387 = arith.constant 0 : index
    %437 = vector.load %arg17[%c0_385, %c0_386, %c0_387] : memref<25x1x98xf32, #tpu.memory_space<vmem>>, vector<1x1x98xf32>
    %438 = vector.shape_cast %437 : vector<1x1x98xf32> to vector<1x98xf32>
    %439 = vector.broadcast %438 : vector<1x98xf32> to vector<8x98xf32>
    %440 = arith.mulf %436, %439 : vector<8x98xf32>
    %c0_388 = arith.constant 0 : index
    %c0_389 = arith.constant 0 : index
    %441 = vector.load %arg32[%c0_388, %c0_389] : memref<200x392xf32, #tpu.memory_space<vmem>>, vector<8x98xf32>
    tpu.vector_store %arg32[%c0_388, %c0_389], %440 {strides = array<i32>} : memref<200x392xf32, #tpu.memory_space<vmem>>, vector<8x98xf32>,
    %c0_390 = arith.constant 0 : index
    %c113_391 = arith.constant 113 : index
    %442 = vector.load %arg31[%c0_390, %c113_391] : memref<8x552xf32, #tpu.memory_space<vmem>>, vector<8x98xf32>
    %c1_392 = arith.constant 1 : index
    %c0_393 = arith.constant 0 : index
    %c0_394 = arith.constant 0 : index
    %443 = vector.load %arg17[%c1_392, %c0_393, %c0_394] : memref<25x1x98xf32, #tpu.memory_space<vmem>>, vector<1x1x98xf32>
    %444 = vector.shape_cast %443 : vector<1x1x98xf32> to vector<1x98xf32>
    %445 = vector.broadcast %444 : vector<1x98xf32> to vector<8x98xf32>
    %446 = arith.mulf %442, %445 : vector<8x98xf32>
    %c8_395 = arith.constant 8 : index
    %c0_396 = arith.constant 0 : index
    %447 = vector.load %arg32[%c8_395, %c0_396] : memref<200x392xf32, #tpu.memory_space<vmem>>, vector<8x98xf32>
    tpu.vector_store %arg32[%c8_395, %c0_396], %446 {strides = array<i32>} : memref<200x392xf32, #tpu.memory_space<vmem>>, vector<8x98xf32>,
    %c0_397 = arith.constant 0 : index
    %c114_398 = arith.constant 114 : index
    %448 = vector.load %arg31[%c0_397, %c114_398] : memref<8x552xf32, #tpu.memory_space<vmem>>, vector<8x98xf32>
    %c2_399 = arith.constant 2 : index
    %c0_400 = arith.constant 0 : index
    %c0_401 = arith.constant 0 : index
    %449 = vector.load %arg17[%c2_399, %c0_400, %c0_401] : memref<25x1x98xf32, #tpu.memory_space<vmem>>, vector<1x1x98xf32>
    %450 = vector.shape_cast %449 : vector<1x1x98xf32> to vector<1x98xf32>
    %451 = vector.broadcast %450 : vector<1x98xf32> to vector<8x98xf32>
    %452 = arith.mulf %448, %451 : vector<8x98xf32>
    %c16_402 = arith.constant 16 : index
    %c0_403 = arith.constant 0 : index
    %453 = vector.load %arg32[%c16_402, %c0_403] : memref<200x392xf32, #tpu.memory_space<vmem>>, vector<8x98xf32>
    tpu.vector_store %arg32[%c16_402, %c0_403], %452 {strides = array<i32>} : memref<200x392xf32, #tpu.memory_space<vmem>>, vector<8x98xf32>,
    %c0_404 = arith.constant 0 : index
    %c115_405 = arith.constant 115 : index
    %454 = vector.load %arg31[%c0_404, %c115_405] : memref<8x552xf32, #tpu.memory_space<vmem>>, vector<8x98xf32>
    %c3_406 = arith.constant 3 : index
    %c0_407 = arith.constant 0 : index
    %c0_408 = arith.constant 0 : index
    %455 = vector.load %arg17[%c3_406, %c0_407, %c0_408] : memref<25x1x98xf32, #tpu.memory_space<vmem>>, vector<1x1x98xf32>
    %456 = vector.shape_cast %455 : vector<1x1x98xf32> to vector<1x98xf32>
    %457 = vector.broadcast %456 : vector<1x98xf32> to vector<8x98xf32>
    %458 = arith.mulf %454, %457 : vector<8x98xf32>
    %c24_409 = arith.constant 24 : index
    %c0_410 = arith.constant 0 : index
    %459 = vector.load %arg32[%c24_409, %c0_410] : memref<200x392xf32, #tpu.memory_space<vmem>>, vector<8x98xf32>
    tpu.vector_store %arg32[%c24_409, %c0_410], %458 {strides = array<i32>} : memref<200x392xf32, #tpu.memory_space<vmem>>, vector<8x98xf32>,
    %c0_411 = arith.constant 0 : index
    %c116_412 = arith.constant 116 : index
    %460 = vector.load %arg31[%c0_411, %c116_412] : memref<8x552xf32, #tpu.memory_space<vmem>>, vector<8x98xf32>
    %c4_413 = arith.constant 4 : index
    %c0_414 = arith.constant 0 : index
    %c0_415 = arith.constant 0 : index
    %461 = vector.load %arg17[%c4_413, %c0_414, %c0_415] : memref<25x1x98xf32, #tpu.memory_space<vmem>>, vector<1x1x98xf32>
    %462 = vector.shape_cast %461 : vector<1x1x98xf32> to vector<1x98xf32>
    %463 = vector.broadcast %462 : vector<1x98xf32> to vector<8x98xf32>
    %464 = arith.mulf %460, %463 : vector<8x98xf32>
    %c32_416 = arith.constant 32 : index
    %c0_417 = arith.constant 0 : index
    %465 = vector.load %arg32[%c32_416, %c0_417] : memref<200x392xf32, #tpu.memory_space<vmem>>, vector<8x98xf32>
    tpu.vector_store %arg32[%c32_416, %c0_417], %464 {strides = array<i32>} : memref<200x392xf32, #tpu.memory_space<vmem>>, vector<8x98xf32>,
    %c0_418 = arith.constant 0 : index
    %c119_419 = arith.constant 119 : index
    %466 = vector.load %arg31[%c0_418, %c119_419] : memref<8x552xf32, #tpu.memory_space<vmem>>, vector<8x98xf32>
    %c5_420 = arith.constant 5 : index
    %c0_421 = arith.constant 0 : index
    %c0_422 = arith.constant 0 : index
    %467 = vector.load %arg17[%c5_420, %c0_421, %c0_422] : memref<25x1x98xf32, #tpu.memory_space<vmem>>, vector<1x1x98xf32>
    %468 = vector.shape_cast %467 : vector<1x1x98xf32> to vector<1x98xf32>
    %469 = vector.broadcast %468 : vector<1x98xf32> to vector<8x98xf32>
    %470 = arith.mulf %466, %469 : vector<8x98xf32>
    %c40_423 = arith.constant 40 : index
    %c0_424 = arith.constant 0 : index
    %471 = vector.load %arg32[%c40_423, %c0_424] : memref<200x392xf32, #tpu.memory_space<vmem>>, vector<8x98xf32>
    tpu.vector_store %arg32[%c40_423, %c0_424], %470 {strides = array<i32>} : memref<200x392xf32, #tpu.memory_space<vmem>>, vector<8x98xf32>,
    %c0_425 = arith.constant 0 : index
    %c120_426 = arith.constant 120 : index
    %472 = vector.load %arg31[%c0_425, %c120_426] : memref<8x552xf32, #tpu.memory_space<vmem>>, vector<8x98xf32>
    %c6_427 = arith.constant 6 : index
    %c0_428 = arith.constant 0 : index
    %c0_429 = arith.constant 0 : index
    %473 = vector.load %arg17[%c6_427, %c0_428, %c0_429] : memref<25x1x98xf32, #tpu.memory_space<vmem>>, vector<1x1x98xf32>
    %474 = vector.shape_cast %473 : vector<1x1x98xf32> to vector<1x98xf32>
    %475 = vector.broadcast %474 : vector<1x98xf32> to vector<8x98xf32>
    %476 = arith.mulf %472, %475 : vector<8x98xf32>
    %c48_430 = arith.constant 48 : index
    %c0_431 = arith.constant 0 : index
    %477 = vector.load %arg32[%c48_430, %c0_431] : memref<200x392xf32, #tpu.memory_space<vmem>>, vector<8x98xf32>
    tpu.vector_store %arg32[%c48_430, %c0_431], %476 {strides = array<i32>} : memref<200x392xf32, #tpu.memory_space<vmem>>, vector<8x98xf32>,
    %c0_432 = arith.constant 0 : index
    %c121_433 = arith.constant 121 : index
    %478 = vector.load %arg31[%c0_432, %c121_433] : memref<8x552xf32, #tpu.memory_space<vmem>>, vector<8x98xf32>
    %c7_434 = arith.constant 7 : index
    %c0_435 = arith.constant 0 : index
    %c0_436 = arith.constant 0 : index
    %479 = vector.load %arg17[%c7_434, %c0_435, %c0_436] : memref<25x1x98xf32, #tpu.memory_space<vmem>>, vector<1x1x98xf32>
    %480 = vector.shape_cast %479 : vector<1x1x98xf32> to vector<1x98xf32>
    %481 = vector.broadcast %480 : vector<1x98xf32> to vector<8x98xf32>
    %482 = arith.mulf %478, %481 : vector<8x98xf32>
    %c56_437 = arith.constant 56 : index
    %c0_438 = arith.constant 0 : index
    %483 = vector.load %arg32[%c56_437, %c0_438] : memref<200x392xf32, #tpu.memory_space<vmem>>, vector<8x98xf32>
    tpu.vector_store %arg32[%c56_437, %c0_438], %482 {strides = array<i32>} : memref<200x392xf32, #tpu.memory_space<vmem>>, vector<8x98xf32>,
    %c0_439 = arith.constant 0 : index
    %c122_440 = arith.constant 122 : index
    %484 = vector.load %arg31[%c0_439, %c122_440] : memref<8x552xf32, #tpu.memory_space<vmem>>, vector<8x98xf32>
    %c8_441 = arith.constant 8 : index
    %c0_442 = arith.constant 0 : index
    %c0_443 = arith.constant 0 : index
    %485 = vector.load %arg17[%c8_441, %c0_442, %c0_443] : memref<25x1x98xf32, #tpu.memory_space<vmem>>, vector<1x1x98xf32>
    %486 = vector.shape_cast %485 : vector<1x1x98xf32> to vector<1x98xf32>
    %487 = vector.broadcast %486 : vector<1x98xf32> to vector<8x98xf32>
    %488 = arith.mulf %484, %487 : vector<8x98xf32>
    %c64_444 = arith.constant 64 : index
    %c0_445 = arith.constant 0 : index
    %489 = vector.load %arg32[%c64_444, %c0_445] : memref<200x392xf32, #tpu.memory_space<vmem>>, vector<8x98xf32>
    tpu.vector_store %arg32[%c64_444, %c0_445], %488 {strides = array<i32>} : memref<200x392xf32, #tpu.memory_space<vmem>>, vector<8x98xf32>,
    %c0_446 = arith.constant 0 : index
    %c123_447 = arith.constant 123 : index
    %490 = vector.load %arg31[%c0_446, %c123_447] : memref<8x552xf32, #tpu.memory_space<vmem>>, vector<8x98xf32>
    %c9_448 = arith.constant 9 : index
    %c0_449 = arith.constant 0 : index
    %c0_450 = arith.constant 0 : index
    %491 = vector.load %arg17[%c9_448, %c0_449, %c0_450] : memref<25x1x98xf32, #tpu.memory_space<vmem>>, vector<1x1x98xf32>
    %492 = vector.shape_cast %491 : vector<1x1x98xf32> to vector<1x98xf32>
    %493 = vector.broadcast %492 : vector<1x98xf32> to vector<8x98xf32>
    %494 = arith.mulf %490, %493 : vector<8x98xf32>
    %c72_451 = arith.constant 72 : index
    %c0_452 = arith.constant 0 : index
    %495 = vector.load %arg32[%c72_451, %c0_452] : memref<200x392xf32, #tpu.memory_space<vmem>>, vector<8x98xf32>
    tpu.vector_store %arg32[%c72_451, %c0_452], %494 {strides = array<i32>} : memref<200x392xf32, #tpu.memory_space<vmem>>, vector<8x98xf32>,
    %c0_453 = arith.constant 0 : index
    %c126_454 = arith.constant 126 : index
    %496 = vector.load %arg31[%c0_453, %c126_454] : memref<8x552xf32, #tpu.memory_space<vmem>>, vector<8x98xf32>
    %c10_455 = arith.constant 10 : index
    %c0_456 = arith.constant 0 : index
    %c0_457 = arith.constant 0 : index
    %497 = vector.load %arg17[%c10_455, %c0_456, %c0_457] : memref<25x1x98xf32, #tpu.memory_space<vmem>>, vector<1x1x98xf32>
    %498 = vector.shape_cast %497 : vector<1x1x98xf32> to vector<1x98xf32>
    %499 = vector.broadcast %498 : vector<1x98xf32> to vector<8x98xf32>
    %500 = arith.mulf %496, %499 : vector<8x98xf32>
    %c80_458 = arith.constant 80 : index
    %c0_459 = arith.constant 0 : index
    %501 = vector.load %arg32[%c80_458, %c0_459] : memref<200x392xf32, #tpu.memory_space<vmem>>, vector<8x98xf32>
    tpu.vector_store %arg32[%c80_458, %c0_459], %500 {strides = array<i32>} : memref<200x392xf32, #tpu.memory_space<vmem>>, vector<8x98xf32>,
    %c0_460 = arith.constant 0 : index
    %c127_461 = arith.constant 127 : index
    %502 = vector.load %arg31[%c0_460, %c127_461] : memref<8x552xf32, #tpu.memory_space<vmem>>, vector<8x98xf32>
    %c11_462 = arith.constant 11 : index
    %c0_463 = arith.constant 0 : index
    %c0_464 = arith.constant 0 : index
    %503 = vector.load %arg17[%c11_462, %c0_463, %c0_464] : memref<25x1x98xf32, #tpu.memory_space<vmem>>, vector<1x1x98xf32>
    %504 = vector.shape_cast %503 : vector<1x1x98xf32> to vector<1x98xf32>
    %505 = vector.broadcast %504 : vector<1x98xf32> to vector<8x98xf32>
    %506 = arith.mulf %502, %505 : vector<8x98xf32>
    %c88_465 = arith.constant 88 : index
    %c0_466 = arith.constant 0 : index
    %507 = vector.load %arg32[%c88_465, %c0_466] : memref<200x392xf32, #tpu.memory_space<vmem>>, vector<8x98xf32>
    tpu.vector_store %arg32[%c88_465, %c0_466], %506 {strides = array<i32>} : memref<200x392xf32, #tpu.memory_space<vmem>>, vector<8x98xf32>,
    %c0_467 = arith.constant 0 : index
    %c128_468 = arith.constant 128 : index
    %508 = vector.load %arg31[%c0_467, %c128_468] : memref<8x552xf32, #tpu.memory_space<vmem>>, vector<8x98xf32>
    %c12_469 = arith.constant 12 : index
    %c0_470 = arith.constant 0 : index
    %c0_471 = arith.constant 0 : index
    %509 = vector.load %arg17[%c12_469, %c0_470, %c0_471] : memref<25x1x98xf32, #tpu.memory_space<vmem>>, vector<1x1x98xf32>
    %510 = vector.shape_cast %509 : vector<1x1x98xf32> to vector<1x98xf32>
    %511 = vector.broadcast %510 : vector<1x98xf32> to vector<8x98xf32>
    %512 = arith.mulf %508, %511 : vector<8x98xf32>
    %c96_472 = arith.constant 96 : index
    %c0_473 = arith.constant 0 : index
    %513 = vector.load %arg32[%c96_472, %c0_473] : memref<200x392xf32, #tpu.memory_space<vmem>>, vector<8x98xf32>
    tpu.vector_store %arg32[%c96_472, %c0_473], %512 {strides = array<i32>} : memref<200x392xf32, #tpu.memory_space<vmem>>, vector<8x98xf32>,
    %c0_474 = arith.constant 0 : index
    %c129_475 = arith.constant 129 : index
    %514 = vector.load %arg31[%c0_474, %c129_475] : memref<8x552xf32, #tpu.memory_space<vmem>>, vector<8x98xf32>
    %c13_476 = arith.constant 13 : index
    %c0_477 = arith.constant 0 : index
    %c0_478 = arith.constant 0 : index
    %515 = vector.load %arg17[%c13_476, %c0_477, %c0_478] : memref<25x1x98xf32, #tpu.memory_space<vmem>>, vector<1x1x98xf32>
    %516 = vector.shape_cast %515 : vector<1x1x98xf32> to vector<1x98xf32>
    %517 = vector.broadcast %516 : vector<1x98xf32> to vector<8x98xf32>
    %518 = arith.mulf %514, %517 : vector<8x98xf32>
    %c104_479 = arith.constant 104 : index
    %c0_480 = arith.constant 0 : index
    %519 = vector.load %arg32[%c104_479, %c0_480] : memref<200x392xf32, #tpu.memory_space<vmem>>, vector<8x98xf32>
    tpu.vector_store %arg32[%c104_479, %c0_480], %518 {strides = array<i32>} : memref<200x392xf32, #tpu.memory_space<vmem>>, vector<8x98xf32>,
    %c0_481 = arith.constant 0 : index
    %c130_482 = arith.constant 130 : index
    %520 = vector.load %arg31[%c0_481, %c130_482] : memref<8x552xf32, #tpu.memory_space<vmem>>, vector<8x98xf32>
    %c14_483 = arith.constant 14 : index
    %c0_484 = arith.constant 0 : index
    %c0_485 = arith.constant 0 : index
    %521 = vector.load %arg17[%c14_483, %c0_484, %c0_485] : memref<25x1x98xf32, #tpu.memory_space<vmem>>, vector<1x1x98xf32>
    %522 = vector.shape_cast %521 : vector<1x1x98xf32> to vector<1x98xf32>
    %523 = vector.broadcast %522 : vector<1x98xf32> to vector<8x98xf32>
    %524 = arith.mulf %520, %523 : vector<8x98xf32>
    %c112_486 = arith.constant 112 : index
    %c0_487 = arith.constant 0 : index
    %525 = vector.load %arg32[%c112_486, %c0_487] : memref<200x392xf32, #tpu.memory_space<vmem>>, vector<8x98xf32>
    tpu.vector_store %arg32[%c112_486, %c0_487], %524 {strides = array<i32>} : memref<200x392xf32, #tpu.memory_space<vmem>>, vector<8x98xf32>,
    %c0_488 = arith.constant 0 : index
    %c133_489 = arith.constant 133 : index
    %526 = vector.load %arg31[%c0_488, %c133_489] : memref<8x552xf32, #tpu.memory_space<vmem>>, vector<8x98xf32>
    %c15_490 = arith.constant 15 : index
    %c0_491 = arith.constant 0 : index
    %c0_492 = arith.constant 0 : index
    %527 = vector.load %arg17[%c15_490, %c0_491, %c0_492] : memref<25x1x98xf32, #tpu.memory_space<vmem>>, vector<1x1x98xf32>
    %528 = vector.shape_cast %527 : vector<1x1x98xf32> to vector<1x98xf32>
    %529 = vector.broadcast %528 : vector<1x98xf32> to vector<8x98xf32>
    %530 = arith.mulf %526, %529 : vector<8x98xf32>
    %c120_493 = arith.constant 120 : index
    %c0_494 = arith.constant 0 : index
    %531 = vector.load %arg32[%c120_493, %c0_494] : memref<200x392xf32, #tpu.memory_space<vmem>>, vector<8x98xf32>
    tpu.vector_store %arg32[%c120_493, %c0_494], %530 {strides = array<i32>} : memref<200x392xf32, #tpu.memory_space<vmem>>, vector<8x98xf32>,
    %c0_495 = arith.constant 0 : index
    %c134_496 = arith.constant 134 : index
    %532 = vector.load %arg31[%c0_495, %c134_496] : memref<8x552xf32, #tpu.memory_space<vmem>>, vector<8x98xf32>
    %c16_497 = arith.constant 16 : index
    %c0_498 = arith.constant 0 : index
    %c0_499 = arith.constant 0 : index
    %533 = vector.load %arg17[%c16_497, %c0_498, %c0_499] : memref<25x1x98xf32, #tpu.memory_space<vmem>>, vector<1x1x98xf32>
    %534 = vector.shape_cast %533 : vector<1x1x98xf32> to vector<1x98xf32>
    %535 = vector.broadcast %534 : vector<1x98xf32> to vector<8x98xf32>
    %536 = arith.mulf %532, %535 : vector<8x98xf32>
    %c128_500 = arith.constant 128 : index
    %c0_501 = arith.constant 0 : index
    %537 = vector.load %arg32[%c128_500, %c0_501] : memref<200x392xf32, #tpu.memory_space<vmem>>, vector<8x98xf32>
    tpu.vector_store %arg32[%c128_500, %c0_501], %536 {strides = array<i32>} : memref<200x392xf32, #tpu.memory_space<vmem>>, vector<8x98xf32>,
    %c0_502 = arith.constant 0 : index
    %c135_503 = arith.constant 135 : index
    %538 = vector.load %arg31[%c0_502, %c135_503] : memref<8x552xf32, #tpu.memory_space<vmem>>, vector<8x98xf32>
    %c17_504 = arith.constant 17 : index
    %c0_505 = arith.constant 0 : index
    %c0_506 = arith.constant 0 : index
    %539 = vector.load %arg17[%c17_504, %c0_505, %c0_506] : memref<25x1x98xf32, #tpu.memory_space<vmem>>, vector<1x1x98xf32>
    %540 = vector.shape_cast %539 : vector<1x1x98xf32> to vector<1x98xf32>
    %541 = vector.broadcast %540 : vector<1x98xf32> to vector<8x98xf32>
    %542 = arith.mulf %538, %541 : vector<8x98xf32>
    %c136_507 = arith.constant 136 : index
    %c0_508 = arith.constant 0 : index
    %543 = vector.load %arg32[%c136_507, %c0_508] : memref<200x392xf32, #tpu.memory_space<vmem>>, vector<8x98xf32>
    tpu.vector_store %arg32[%c136_507, %c0_508], %542 {strides = array<i32>} : memref<200x392xf32, #tpu.memory_space<vmem>>, vector<8x98xf32>,
    %c0_509 = arith.constant 0 : index
    %c136_510 = arith.constant 136 : index
    %544 = vector.load %arg31[%c0_509, %c136_510] : memref<8x552xf32, #tpu.memory_space<vmem>>, vector<8x98xf32>
    %c18_511 = arith.constant 18 : index
    %c0_512 = arith.constant 0 : index
    %c0_513 = arith.constant 0 : index
    %545 = vector.load %arg17[%c18_511, %c0_512, %c0_513] : memref<25x1x98xf32, #tpu.memory_space<vmem>>, vector<1x1x98xf32>
    %546 = vector.shape_cast %545 : vector<1x1x98xf32> to vector<1x98xf32>
    %547 = vector.broadcast %546 : vector<1x98xf32> to vector<8x98xf32>
    %548 = arith.mulf %544, %547 : vector<8x98xf32>
    %c144_514 = arith.constant 144 : index
    %c0_515 = arith.constant 0 : index
    %549 = vector.load %arg32[%c144_514, %c0_515] : memref<200x392xf32, #tpu.memory_space<vmem>>, vector<8x98xf32>
    tpu.vector_store %arg32[%c144_514, %c0_515], %548 {strides = array<i32>} : memref<200x392xf32, #tpu.memory_space<vmem>>, vector<8x98xf32>,
    %c0_516 = arith.constant 0 : index
    %c137_517 = arith.constant 137 : index
    %550 = vector.load %arg31[%c0_516, %c137_517] : memref<8x552xf32, #tpu.memory_space<vmem>>, vector<8x98xf32>
    %c19_518 = arith.constant 19 : index
    %c0_519 = arith.constant 0 : index
    %c0_520 = arith.constant 0 : index
    %551 = vector.load %arg17[%c19_518, %c0_519, %c0_520] : memref<25x1x98xf32, #tpu.memory_space<vmem>>, vector<1x1x98xf32>
    %552 = vector.shape_cast %551 : vector<1x1x98xf32> to vector<1x98xf32>
    %553 = vector.broadcast %552 : vector<1x98xf32> to vector<8x98xf32>
    %554 = arith.mulf %550, %553 : vector<8x98xf32>
    %c152_521 = arith.constant 152 : index
    %c0_522 = arith.constant 0 : index
    %555 = vector.load %arg32[%c152_521, %c0_522] : memref<200x392xf32, #tpu.memory_space<vmem>>, vector<8x98xf32>
    tpu.vector_store %arg32[%c152_521, %c0_522], %554 {strides = array<i32>} : memref<200x392xf32, #tpu.memory_space<vmem>>, vector<8x98xf32>,
    %c0_523 = arith.constant 0 : index
    %c140_524 = arith.constant 140 : index
    %556 = vector.load %arg31[%c0_523, %c140_524] : memref<8x552xf32, #tpu.memory_space<vmem>>, vector<8x98xf32>
    %c20_525 = arith.constant 20 : index
    %c0_526 = arith.constant 0 : index
    %c0_527 = arith.constant 0 : index
    %557 = vector.load %arg17[%c20_525, %c0_526, %c0_527] : memref<25x1x98xf32, #tpu.memory_space<vmem>>, vector<1x1x98xf32>
    %558 = vector.shape_cast %557 : vector<1x1x98xf32> to vector<1x98xf32>
    %559 = vector.broadcast %558 : vector<1x98xf32> to vector<8x98xf32>
    %560 = arith.mulf %556, %559 : vector<8x98xf32>
    %c160_528 = arith.constant 160 : index
    %c0_529 = arith.constant 0 : index
    %561 = vector.load %arg32[%c160_528, %c0_529] : memref<200x392xf32, #tpu.memory_space<vmem>>, vector<8x98xf32>
    tpu.vector_store %arg32[%c160_528, %c0_529], %560 {strides = array<i32>} : memref<200x392xf32, #tpu.memory_space<vmem>>, vector<8x98xf32>,
    %c0_530 = arith.constant 0 : index
    %c141_531 = arith.constant 141 : index
    %562 = vector.load %arg31[%c0_530, %c141_531] : memref<8x552xf32, #tpu.memory_space<vmem>>, vector<8x98xf32>
    %c21_532 = arith.constant 21 : index
    %c0_533 = arith.constant 0 : index
    %c0_534 = arith.constant 0 : index
    %563 = vector.load %arg17[%c21_532, %c0_533, %c0_534] : memref<25x1x98xf32, #tpu.memory_space<vmem>>, vector<1x1x98xf32>
    %564 = vector.shape_cast %563 : vector<1x1x98xf32> to vector<1x98xf32>
    %565 = vector.broadcast %564 : vector<1x98xf32> to vector<8x98xf32>
    %566 = arith.mulf %562, %565 : vector<8x98xf32>
    %c168_535 = arith.constant 168 : index
    %c0_536 = arith.constant 0 : index
    %567 = vector.load %arg32[%c168_535, %c0_536] : memref<200x392xf32, #tpu.memory_space<vmem>>, vector<8x98xf32>
    tpu.vector_store %arg32[%c168_535, %c0_536], %566 {strides = array<i32>} : memref<200x392xf32, #tpu.memory_space<vmem>>, vector<8x98xf32>,
    %c0_537 = arith.constant 0 : index
    %c142_538 = arith.constant 142 : index
    %568 = vector.load %arg31[%c0_537, %c142_538] : memref<8x552xf32, #tpu.memory_space<vmem>>, vector<8x98xf32>
    %c22_539 = arith.constant 22 : index
    %c0_540 = arith.constant 0 : index
    %c0_541 = arith.constant 0 : index
    %569 = vector.load %arg17[%c22_539, %c0_540, %c0_541] : memref<25x1x98xf32, #tpu.memory_space<vmem>>, vector<1x1x98xf32>
    %570 = vector.shape_cast %569 : vector<1x1x98xf32> to vector<1x98xf32>
    %571 = vector.broadcast %570 : vector<1x98xf32> to vector<8x98xf32>
    %572 = arith.mulf %568, %571 : vector<8x98xf32>
    %c176_542 = arith.constant 176 : index
    %c0_543 = arith.constant 0 : index
    %573 = vector.load %arg32[%c176_542, %c0_543] : memref<200x392xf32, #tpu.memory_space<vmem>>, vector<8x98xf32>
    tpu.vector_store %arg32[%c176_542, %c0_543], %572 {strides = array<i32>} : memref<200x392xf32, #tpu.memory_space<vmem>>, vector<8x98xf32>,
    %c0_544 = arith.constant 0 : index
    %c143_545 = arith.constant 143 : index
    %574 = vector.load %arg31[%c0_544, %c143_545] : memref<8x552xf32, #tpu.memory_space<vmem>>, vector<8x98xf32>
    %c23_546 = arith.constant 23 : index
    %c0_547 = arith.constant 0 : index
    %c0_548 = arith.constant 0 : index
    %575 = vector.load %arg17[%c23_546, %c0_547, %c0_548] : memref<25x1x98xf32, #tpu.memory_space<vmem>>, vector<1x1x98xf32>
    %576 = vector.shape_cast %575 : vector<1x1x98xf32> to vector<1x98xf32>
    %577 = vector.broadcast %576 : vector<1x98xf32> to vector<8x98xf32>
    %578 = arith.mulf %574, %577 : vector<8x98xf32>
    %c184_549 = arith.constant 184 : index
    %c0_550 = arith.constant 0 : index
    %579 = vector.load %arg32[%c184_549, %c0_550] : memref<200x392xf32, #tpu.memory_space<vmem>>, vector<8x98xf32>
    tpu.vector_store %arg32[%c184_549, %c0_550], %578 {strides = array<i32>} : memref<200x392xf32, #tpu.memory_space<vmem>>, vector<8x98xf32>,
    %c0_551 = arith.constant 0 : index
    %c144_552 = arith.constant 144 : index
    %580 = vector.load %arg31[%c0_551, %c144_552] : memref<8x552xf32, #tpu.memory_space<vmem>>, vector<8x98xf32>
    %c24_553 = arith.constant 24 : index
    %c0_554 = arith.constant 0 : index
    %c0_555 = arith.constant 0 : index
    %581 = vector.load %arg17[%c24_553, %c0_554, %c0_555] : memref<25x1x98xf32, #tpu.memory_space<vmem>>, vector<1x1x98xf32>
    %582 = vector.shape_cast %581 : vector<1x1x98xf32> to vector<1x98xf32>
    %583 = vector.broadcast %582 : vector<1x98xf32> to vector<8x98xf32>
    %584 = arith.mulf %580, %583 : vector<8x98xf32>
    %c192_556 = arith.constant 192 : index
    %c0_557 = arith.constant 0 : index
    %585 = vector.load %arg32[%c192_556, %c0_557] : memref<200x392xf32, #tpu.memory_space<vmem>>, vector<8x98xf32>
    tpu.vector_store %arg32[%c192_556, %c0_557], %584 {strides = array<i32>} : memref<200x392xf32, #tpu.memory_space<vmem>>, vector<8x98xf32>,
    %c0_558 = arith.constant 0 : index
    %c0_559 = arith.constant 0 : index
    %586 = vector.load %arg20[%c0_558, %c0_559] : memref<15x200xf32, #tpu.memory_space<vmem>>, vector<15x200xf32>
    %c0_560 = arith.constant 0 : index
    %c0_561 = arith.constant 0 : index
    %587 = vector.load %arg32[%c0_560, %c0_561] : memref<200x392xf32, #tpu.memory_space<vmem>>, vector<200x98xf32>
    %cst_562 = arith.constant dense<0.000000e+00> : vector<15x98xf32>
    %588 = tpu.matmul %586, %587, %cst_562 {dimension_numbers = #tpu.dot_dimension_numbers<[1], [0], [0], [1], [0, 0, 1, 1], [], []>} : vector<15x200xf32>, vector<200x98xf32>, vector<15x98xf32> -> vector<15x98xf32>
    %c0_563 = arith.constant 0 : index
    %c0_564 = arith.constant 0 : index
    %589 = vector.load %arg21[%c0_563, %c0_564] : memref<15x1xf32, #tpu.memory_space<vmem>>, vector<15x1xf32>
    %590 = vector.broadcast %589 : vector<15x1xf32> to vector<15x98xf32>
    %591 = arith.addf %588, %590 : vector<15x98xf32>
    %cst_565 = arith.constant 0.000000e+00 : f32
    %592 = vector.broadcast %cst_565 : f32 to vector<15x98xf32>
    %593 = arith.maximumf %591, %592 : vector<15x98xf32>
    %cst_566 = arith.constant dense<0.000000e+00> : vector<15xf32>
    %594 = vector.multi_reduction <add>, %593, %cst_566 [1] : vector<15x98xf32> to vector<15xf32>
    %595 = vector.shape_cast %594 : vector<15xf32> to vector<15x1xf32>
    %cst_567 = arith.constant 9.800000e+01 : f32
    %596 = vector.broadcast %cst_567 : f32 to vector<15x1xf32>
    %597 = arith.divf %595, %596 : vector<15x1xf32>
    %598 = arith.mulf %593, %593 : vector<15x98xf32>
    %cst_568 = arith.constant dense<0.000000e+00> : vector<15xf32>
    %599 = vector.multi_reduction <add>, %598, %cst_568 [1] : vector<15x98xf32> to vector<15xf32>
    %600 = vector.shape_cast %599 : vector<15xf32> to vector<15x1xf32>
    %cst_569 = arith.constant 9.800000e+01 : f32
    %601 = vector.broadcast %cst_569 : f32 to vector<15x1xf32>
    %602 = arith.divf %600, %601 : vector<15x1xf32>
    %603 = arith.mulf %597, %597 : vector<15x1xf32>
    %604 = arith.subf %602, %603 : vector<15x1xf32>
    %cst_570 = arith.constant 0.000000e+00 : f32
    %605 = vector.broadcast %cst_570 : f32 to vector<15x1xf32>
    %606 = arith.maximumf %604, %605 : vector<15x1xf32>
    %cst_571 = arith.constant 9.99999974E-6 : f32
    %607 = vector.broadcast %cst_571 : f32 to vector<15x1xf32>
    %608 = arith.addf %606, %607 : vector<15x1xf32>
    %609 = math.rsqrt %608 : vector<15x1xf32>
    %610 = vector.broadcast %597 : vector<15x1xf32> to vector<15x98xf32>
    %611 = arith.subf %593, %610 : vector<15x98xf32>
    %612 = vector.broadcast %609 : vector<15x1xf32> to vector<15x98xf32>
    %613 = arith.mulf %611, %612 : vector<15x98xf32>
    %c0_572 = arith.constant 0 : index
    %c0_573 = arith.constant 0 : index
    %614 = vector.load %arg22[%c0_572, %c0_573] : memref<15x1xf32, #tpu.memory_space<vmem>>, vector<15x1xf32>
    %615 = vector.broadcast %614 : vector<15x1xf32> to vector<15x98xf32>
    %616 = arith.mulf %613, %615 : vector<15x98xf32>
    %c0_574 = arith.constant 0 : index
    %c0_575 = arith.constant 0 : index
    %617 = vector.load %arg23[%c0_574, %c0_575] : memref<15x1xf32, #tpu.memory_space<vmem>>, vector<15x1xf32>
    %618 = vector.broadcast %617 : vector<15x1xf32> to vector<15x98xf32>
    %619 = arith.addf %616, %618 : vector<15x98xf32>
    %c0_576 = arith.constant 0 : index
    %c0_577 = arith.constant 0 : index
    %c0_578 = arith.constant 0 : index
    %620 = vector.load %arg24[%c0_576, %c0_577, %c0_578] : memref<15x50x98xf32, #tpu.memory_space<vmem>>, vector<1x50x98xf32>
    %621 = vector.shape_cast %620 : vector<1x50x98xf32> to vector<50x98xf32>
    %622 = vector.extract_strided_slice %619 {offsets = [0, 0], sizes = [1, 98], strides = [1, 1]} : vector<15x98xf32> to vector<1x98xf32>
    %623 = vector.broadcast %622 : vector<1x98xf32> to vector<50x98xf32>
    %624 = arith.mulf %621, %623 : vector<50x98xf32>
    %c1_579 = arith.constant 1 : index
    %c0_580 = arith.constant 0 : index
    %c0_581 = arith.constant 0 : index
    %625 = vector.load %arg24[%c1_579, %c0_580, %c0_581] : memref<15x50x98xf32, #tpu.memory_space<vmem>>, vector<1x50x98xf32>
    %626 = vector.shape_cast %625 : vector<1x50x98xf32> to vector<50x98xf32>
    %627 = vector.extract_strided_slice %619 {offsets = [1, 0], sizes = [1, 98], strides = [1, 1]} : vector<15x98xf32> to vector<1x98xf32>
    %628 = vector.broadcast %627 : vector<1x98xf32> to vector<50x98xf32>
    %629 = arith.mulf %626, %628 : vector<50x98xf32>
    %630 = arith.addf %624, %629 : vector<50x98xf32>
    %c2_582 = arith.constant 2 : index
    %c0_583 = arith.constant 0 : index
    %c0_584 = arith.constant 0 : index
    %631 = vector.load %arg24[%c2_582, %c0_583, %c0_584] : memref<15x50x98xf32, #tpu.memory_space<vmem>>, vector<1x50x98xf32>
    %632 = vector.shape_cast %631 : vector<1x50x98xf32> to vector<50x98xf32>
    %633 = vector.extract_strided_slice %619 {offsets = [2, 0], sizes = [1, 98], strides = [1, 1]} : vector<15x98xf32> to vector<1x98xf32>
    %634 = vector.broadcast %633 : vector<1x98xf32> to vector<50x98xf32>
    %635 = arith.mulf %632, %634 : vector<50x98xf32>
    %636 = arith.addf %630, %635 : vector<50x98xf32>
    %c3_585 = arith.constant 3 : index
    %c0_586 = arith.constant 0 : index
    %c0_587 = arith.constant 0 : index
    %637 = vector.load %arg24[%c3_585, %c0_586, %c0_587] : memref<15x50x98xf32, #tpu.memory_space<vmem>>, vector<1x50x98xf32>
    %638 = vector.shape_cast %637 : vector<1x50x98xf32> to vector<50x98xf32>
    %639 = vector.extract_strided_slice %619 {offsets = [3, 0], sizes = [1, 98], strides = [1, 1]} : vector<15x98xf32> to vector<1x98xf32>
    %640 = vector.broadcast %639 : vector<1x98xf32> to vector<50x98xf32>
    %641 = arith.mulf %638, %640 : vector<50x98xf32>
    %642 = arith.addf %636, %641 : vector<50x98xf32>
    %c4_588 = arith.constant 4 : index
    %c0_589 = arith.constant 0 : index
    %c0_590 = arith.constant 0 : index
    %643 = vector.load %arg24[%c4_588, %c0_589, %c0_590] : memref<15x50x98xf32, #tpu.memory_space<vmem>>, vector<1x50x98xf32>
    %644 = vector.shape_cast %643 : vector<1x50x98xf32> to vector<50x98xf32>
    %645 = vector.extract_strided_slice %619 {offsets = [4, 0], sizes = [1, 98], strides = [1, 1]} : vector<15x98xf32> to vector<1x98xf32>
    %646 = vector.broadcast %645 : vector<1x98xf32> to vector<50x98xf32>
    %647 = arith.mulf %644, %646 : vector<50x98xf32>
    %648 = arith.addf %642, %647 : vector<50x98xf32>
    %c5_591 = arith.constant 5 : index
    %c0_592 = arith.constant 0 : index
    %c0_593 = arith.constant 0 : index
    %649 = vector.load %arg24[%c5_591, %c0_592, %c0_593] : memref<15x50x98xf32, #tpu.memory_space<vmem>>, vector<1x50x98xf32>
    %650 = vector.shape_cast %649 : vector<1x50x98xf32> to vector<50x98xf32>
    %651 = vector.extract_strided_slice %619 {offsets = [5, 0], sizes = [1, 98], strides = [1, 1]} : vector<15x98xf32> to vector<1x98xf32>
    %652 = vector.broadcast %651 : vector<1x98xf32> to vector<50x98xf32>
    %653 = arith.mulf %650, %652 : vector<50x98xf32>
    %654 = arith.addf %648, %653 : vector<50x98xf32>
    %c6_594 = arith.constant 6 : index
    %c0_595 = arith.constant 0 : index
    %c0_596 = arith.constant 0 : index
    %655 = vector.load %arg24[%c6_594, %c0_595, %c0_596] : memref<15x50x98xf32, #tpu.memory_space<vmem>>, vector<1x50x98xf32>
    %656 = vector.shape_cast %655 : vector<1x50x98xf32> to vector<50x98xf32>
    %657 = vector.extract_strided_slice %619 {offsets = [6, 0], sizes = [1, 98], strides = [1, 1]} : vector<15x98xf32> to vector<1x98xf32>
    %658 = vector.broadcast %657 : vector<1x98xf32> to vector<50x98xf32>
    %659 = arith.mulf %656, %658 : vector<50x98xf32>
    %660 = arith.addf %654, %659 : vector<50x98xf32>
    %c7_597 = arith.constant 7 : index
    %c0_598 = arith.constant 0 : index
    %c0_599 = arith.constant 0 : index
    %661 = vector.load %arg24[%c7_597, %c0_598, %c0_599] : memref<15x50x98xf32, #tpu.memory_space<vmem>>, vector<1x50x98xf32>
    %662 = vector.shape_cast %661 : vector<1x50x98xf32> to vector<50x98xf32>
    %663 = vector.extract_strided_slice %619 {offsets = [7, 0], sizes = [1, 98], strides = [1, 1]} : vector<15x98xf32> to vector<1x98xf32>
    %664 = vector.broadcast %663 : vector<1x98xf32> to vector<50x98xf32>
    %665 = arith.mulf %662, %664 : vector<50x98xf32>
    %666 = arith.addf %660, %665 : vector<50x98xf32>
    %c8_600 = arith.constant 8 : index
    %c0_601 = arith.constant 0 : index
    %c0_602 = arith.constant 0 : index
    %667 = vector.load %arg24[%c8_600, %c0_601, %c0_602] : memref<15x50x98xf32, #tpu.memory_space<vmem>>, vector<1x50x98xf32>
    %668 = vector.shape_cast %667 : vector<1x50x98xf32> to vector<50x98xf32>
    %669 = vector.extract_strided_slice %619 {offsets = [8, 0], sizes = [1, 98], strides = [1, 1]} : vector<15x98xf32> to vector<1x98xf32>
    %670 = vector.broadcast %669 : vector<1x98xf32> to vector<50x98xf32>
    %671 = arith.mulf %668, %670 : vector<50x98xf32>
    %672 = arith.addf %666, %671 : vector<50x98xf32>
    %c9_603 = arith.constant 9 : index
    %c0_604 = arith.constant 0 : index
    %c0_605 = arith.constant 0 : index
    %673 = vector.load %arg24[%c9_603, %c0_604, %c0_605] : memref<15x50x98xf32, #tpu.memory_space<vmem>>, vector<1x50x98xf32>
    %674 = vector.shape_cast %673 : vector<1x50x98xf32> to vector<50x98xf32>
    %675 = vector.extract_strided_slice %619 {offsets = [9, 0], sizes = [1, 98], strides = [1, 1]} : vector<15x98xf32> to vector<1x98xf32>
    %676 = vector.broadcast %675 : vector<1x98xf32> to vector<50x98xf32>
    %677 = arith.mulf %674, %676 : vector<50x98xf32>
    %678 = arith.addf %672, %677 : vector<50x98xf32>
    %c10_606 = arith.constant 10 : index
    %c0_607 = arith.constant 0 : index
    %c0_608 = arith.constant 0 : index
    %679 = vector.load %arg24[%c10_606, %c0_607, %c0_608] : memref<15x50x98xf32, #tpu.memory_space<vmem>>, vector<1x50x98xf32>
    %680 = vector.shape_cast %679 : vector<1x50x98xf32> to vector<50x98xf32>
    %681 = vector.extract_strided_slice %619 {offsets = [10, 0], sizes = [1, 98], strides = [1, 1]} : vector<15x98xf32> to vector<1x98xf32>
    %682 = vector.broadcast %681 : vector<1x98xf32> to vector<50x98xf32>
    %683 = arith.mulf %680, %682 : vector<50x98xf32>
    %684 = arith.addf %678, %683 : vector<50x98xf32>
    %c11_609 = arith.constant 11 : index
    %c0_610 = arith.constant 0 : index
    %c0_611 = arith.constant 0 : index
    %685 = vector.load %arg24[%c11_609, %c0_610, %c0_611] : memref<15x50x98xf32, #tpu.memory_space<vmem>>, vector<1x50x98xf32>
    %686 = vector.shape_cast %685 : vector<1x50x98xf32> to vector<50x98xf32>
    %687 = vector.extract_strided_slice %619 {offsets = [11, 0], sizes = [1, 98], strides = [1, 1]} : vector<15x98xf32> to vector<1x98xf32>
    %688 = vector.broadcast %687 : vector<1x98xf32> to vector<50x98xf32>
    %689 = arith.mulf %686, %688 : vector<50x98xf32>
    %690 = arith.addf %684, %689 : vector<50x98xf32>
    %c12_612 = arith.constant 12 : index
    %c0_613 = arith.constant 0 : index
    %c0_614 = arith.constant 0 : index
    %691 = vector.load %arg24[%c12_612, %c0_613, %c0_614] : memref<15x50x98xf32, #tpu.memory_space<vmem>>, vector<1x50x98xf32>
    %692 = vector.shape_cast %691 : vector<1x50x98xf32> to vector<50x98xf32>
    %693 = vector.extract_strided_slice %619 {offsets = [12, 0], sizes = [1, 98], strides = [1, 1]} : vector<15x98xf32> to vector<1x98xf32>
    %694 = vector.broadcast %693 : vector<1x98xf32> to vector<50x98xf32>
    %695 = arith.mulf %692, %694 : vector<50x98xf32>
    %696 = arith.addf %690, %695 : vector<50x98xf32>
    %c13_615 = arith.constant 13 : index
    %c0_616 = arith.constant 0 : index
    %c0_617 = arith.constant 0 : index
    %697 = vector.load %arg24[%c13_615, %c0_616, %c0_617] : memref<15x50x98xf32, #tpu.memory_space<vmem>>, vector<1x50x98xf32>
    %698 = vector.shape_cast %697 : vector<1x50x98xf32> to vector<50x98xf32>
    %699 = vector.extract_strided_slice %619 {offsets = [13, 0], sizes = [1, 98], strides = [1, 1]} : vector<15x98xf32> to vector<1x98xf32>
    %700 = vector.broadcast %699 : vector<1x98xf32> to vector<50x98xf32>
    %701 = arith.mulf %698, %700 : vector<50x98xf32>
    %702 = arith.addf %696, %701 : vector<50x98xf32>
    %c14_618 = arith.constant 14 : index
    %c0_619 = arith.constant 0 : index
    %c0_620 = arith.constant 0 : index
    %703 = vector.load %arg24[%c14_618, %c0_619, %c0_620] : memref<15x50x98xf32, #tpu.memory_space<vmem>>, vector<1x50x98xf32>
    %704 = vector.shape_cast %703 : vector<1x50x98xf32> to vector<50x98xf32>
    %705 = vector.extract_strided_slice %619 {offsets = [14, 0], sizes = [1, 98], strides = [1, 1]} : vector<15x98xf32> to vector<1x98xf32>
    %706 = vector.broadcast %705 : vector<1x98xf32> to vector<50x98xf32>
    %707 = arith.mulf %704, %706 : vector<50x98xf32>
    %708 = arith.addf %702, %707 : vector<50x98xf32>
    %c0_621 = arith.constant 0 : index
    %c0_622 = arith.constant 0 : index
    %709 = vector.load %arg25[%c0_621, %c0_622] : memref<2x98xf32, #tpu.memory_space<vmem>>, vector<2x98xf32>
    %cst_623 = arith.constant dense<0.000000e+00> : vector<2x50xf32>
    %710 = tpu.matmul %709, %708, %cst_623 {dimension_numbers = #tpu.dot_dimension_numbers<[1], [1], [0], [0], [0, 0, 1, 0], [], []>} : vector<2x98xf32>, vector<50x98xf32>, vector<2x50xf32> -> vector<2x50xf32>
    %c0_624 = arith.constant 0 : index
    %c0_625 = arith.constant 0 : index
    %711 = vector.load %arg26[%c0_624, %c0_625] : memref<1x50xf32, #tpu.memory_space<vmem>>, vector<1x50xf32>
    %712 = vector.broadcast %711 : vector<1x50xf32> to vector<2x50xf32>
    %713 = arith.addf %710, %712 : vector<2x50xf32>
    %cst_626 = arith.constant 0.000000e+00 : f32
    %714 = vector.broadcast %cst_626 : f32 to vector<2x50xf32>
    %715 = arith.maximumf %713, %714 : vector<2x50xf32>
    %c0_627 = arith.constant 0 : index
    %c0_628 = arith.constant 0 : index
    %716 = vector.load %arg27[%c0_627, %c0_628] : memref<50x10xf32, #tpu.memory_space<vmem>>, vector<50x10xf32>
    %cst_629 = arith.constant dense<0.000000e+00> : vector<2x10xf32>
    %717 = tpu.matmul %715, %716, %cst_629 {dimension_numbers = #tpu.dot_dimension_numbers<[1], [0], [0], [1], [0, 0, 1, 1], [], []>} : vector<2x50xf32>, vector<50x10xf32>, vector<2x10xf32> -> vector<2x10xf32>
    %c0_630 = arith.constant 0 : index
    %c0_631 = arith.constant 0 : index
    %718 = vector.load %arg28[%c0_630, %c0_631] : memref<1x10xf32, #tpu.memory_space<vmem>>, vector<1x10xf32>
    %719 = vector.broadcast %718 : vector<1x10xf32> to vector<2x10xf32>
    %720 = arith.addf %717, %719 : vector<2x10xf32>
    %cst_632 = arith.constant dense<0xFF800000> : vector<2xf32>
    %721 = vector.multi_reduction <maximumf>, %720, %cst_632 [1] : vector<2x10xf32> to vector<2xf32>
    %722 = vector.shape_cast %721 : vector<2xf32> to vector<2x1xf32>
    %723 = vector.broadcast %722 : vector<2x1xf32> to vector<2x10xf32>
    %724 = arith.subf %720, %723 : vector<2x10xf32>
    %725 = math.exp %724 : vector<2x10xf32>
    %cst_633 = arith.constant dense<0.000000e+00> : vector<2xf32>
    %726 = vector.multi_reduction <add>, %725, %cst_633 [1] : vector<2x10xf32> to vector<2xf32>
    %727 = vector.shape_cast %726 : vector<2xf32> to vector<2x1xf32>
    %728 = math.log %727 : vector<2x1xf32>
    %729 = vector.broadcast %728 : vector<2x1xf32> to vector<2x10xf32>
    %730 = arith.subf %724, %729 : vector<2x10xf32>
    %c0_634 = arith.constant 0 : index
    %c0_635 = arith.constant 0 : index
    %731 = vector.load %arg29[%c0_634, %c0_635] : memref<2x10xf32, #tpu.memory_space<vmem>>, vector<2x10xf32>
    tpu.vector_store %arg29[%c0_634, %c0_635], %730 {strides = array<i32>} : memref<2x10xf32, #tpu.memory_space<vmem>>, vector<2x10xf32>,
    return
  }
}

</mosaic_0001>

<bundles_post_ra>
// kernel: inception_like_net.1
= control target key start
LH: loop header
LB: loop body
LE: loop exit
PB: predicated region body
PF: predicated region fallthrough
CT: control target
= control target key end

     0   :  { %s6363_s6 = smov 1   ;;  %s6364_s10 = smov 2   ;;  %s9179_s0 = inlined_call_operand.smem [shape: u32[30], index: -1, kind: input, shape index: {}] }
   0x1   :  { %s6438_s5 = sld [smem:[%s9179_s0]]   ;;  %s6365_s14 = smov 3  }
   0x2   :  { %s6443_s9 = sld [smem:[%s9179_s0 + %s6363_s6]]   ;;  %s6366_s18 = smov 4  }
   0x3   :  { %s6448_s13 = sld [smem:[%s9179_s0 + %s6364_s10]]   ;;  %s6367_s22 = smov 5  }
   0x4   :  { %s6453_s17 = sld [smem:[%s9179_s0 + %s6365_s14]]   ;;  %s6368_s26 = smov 6  }
   0x5   :  { %s6458_s21 = sld [smem:[%s9179_s0 + %s6366_s18]]   ;;  %s6369_s30 = smov 7  }
   0x6   :  { %s6463_s25 = sld [smem:[%s9179_s0 + %s6367_s22]]   ;;  %s6370_s4 = smov 8  }
   0x7   :  { %s6468_s29 = sld [smem:[%s9179_s0 + %s6368_s26]]   ;;  %s6371_s10 = smov 9  }
   0x8   :  { %s6473_s3 = sld [smem:[%s9179_s0 + %s6369_s30]]   ;;  %s6372_s15 = smov 10  }
   0x9   :  { %s6478_s8 = sld [smem:[%s9179_s0 + %s6370_s4]]   ;;  %s6373_s20 = smov 11  }
   0xa   :  { %s6483_s14 = sld [smem:[%s9179_s0 + %s6371_s10]]   ;;  %s6374_s26 = smov 12  }
   0xb   :  { %s6488_s19 = sld [smem:[%s9179_s0 + %s6372_s15]]   ;;  %s6375_s1 = smov 13  }
   0xc   :  { %s6493_s24 = sld [smem:[%s9179_s0 + %s6373_s20]]   ;;  %s6376_s7 = smov 14  }
   0xd   :  { %s6498_s30 = sld [smem:[%s9179_s0 + %s6374_s26]]   ;;  %s6377_s15 = smov 15  }
   0xe   :  { %s6503_s6 = sld [smem:[%s9179_s0 + %s6375_s1]]   ;;  %s6378_s22 = smov 16  }
   0xf   :  { %s6508_s12 = sld [smem:[%s9179_s0 + %s6376_s7]]   ;;  %s6379_s28 = smov 17  }
  0x10   :  { %s6513_s20 = sld [smem:[%s9179_s0 + %s6377_s15]]   ;;  %s6380_s7 = smov 18  }
  0x11   :  { %s6518_s27 = sld [smem:[%s9179_s0 + %s6378_s22]]   ;;  %s6381_s15 = smov 19  }
  0x12   :  { %s6523_s4 = sld [smem:[%s9179_s0 + %s6379_s28]]   ;;  %s6382_s22 = smov 20  }
  0x13   :  { %s6383_s28 = smov 21  }
  0x14   :  { %9255 = sst [smem:[#allocation8_spill]] %s6503_s6 }
  0x15   :  { %9256 = sst [smem:[#allocation9_spill]] %s6508_s12 }
  0x16   :  { %9257 = sst [smem:[#allocation10_spill]] %s6513_s20 }
  0x17   :  { %9258 = sst [smem:[#allocation11_spill]] %s6518_s27 }
  0x18   :  { %s6528_s6 = sld [smem:[%s9179_s0 + %s6380_s7]]   ;;  %s6384_s7 = smov 22  }
  0x19   :  { %s6533_s20 = sld [smem:[%s9179_s0 + %s6381_s15]]   ;;  %s6385_s15 = smov 23  }
  0x1a   :  { %s6538_s27 = sld [smem:[%s9179_s0 + %s6382_s22]]   ;;  %s6386_s22 = smov 24  }
  0x1b   :  { %s6543_s12 = sld [smem:[%s9179_s0 + %s6383_s28]]   ;;  %s6387_s28 = smov 25  }
  0x1e   :  { %9259 = sst [smem:[#allocation12_spill]] %s6528_s6 }
  0x1f   :  { %9260 = sst [smem:[#allocation13_spill]] %s6533_s20 }
  0x20   :  { %9261 = sst [smem:[#allocation14_spill]] %s6538_s27 }
  0x21   :  { %9262 = sst [smem:[#allocation15_spill]] %s6543_s12 }
  0x22   :  { %s6548_s6 = sld [smem:[%s9179_s0 + %s6384_s7]]   ;;  %s6388_s7 = smov 26  }
  0x23   :  { %s6553_s20 = sld [smem:[%s9179_s0 + %s6385_s15]]   ;;  %s6389_s15 = smov 27  }
  0x24   :  { %s6558_s27 = sld [smem:[%s9179_s0 + %s6386_s22]]   ;;  %s6390_s22 = smov 28  }
  0x25   :  { %s6563_s12 = sld [smem:[%s9179_s0 + %s6387_s28]]   ;;  %s6391_s28 = smov 29  }
  0x28   :  { %9263 = sst [smem:[#allocation16_spill]] %s6548_s6 }
  0x29   :  { %9264 = sst [smem:[#allocation17_spill]] %s6553_s20 }
  0x2a   :  { %9265 = sst [smem:[#allocation18_spill]] %s6558_s27 }
  0x2b   :  { %9266 = sst [smem:[#allocation19_spill]] %s6563_s12 }
  0x2c   :  { %s6568_s6 = sld [smem:[%s9179_s0 + %s6388_s7]]  }
  0x2d   :  { %s6573_s20 = sld [smem:[%s9179_s0 + %s6389_s15]]  }
  0x2e   :  { %s6578_s27 = sld [smem:[%s9179_s0 + %s6390_s22]]  }
  0x2f   :  { %s6583_s12 = sld [smem:[%s9179_s0 + %s6391_s28]]  }
  0x30   :  { %v125_v0 = vld [vmem:[%s6438_s5] sm:$0xff]  ;;  %vm138_vm0 = vcmask 1043456   ;;  %v126_v1 = vld [vmem:[%s6438_s5 + $0x8] sm:$0xff]  ;;  %v6392_v4 = vmov 0.0   ;;  %v5776_v5 = vld [vmem:[%s6438_s5 + $0x10] sm:$0xff]  ;;  %vm131_vm1 = vcmask 31744   ;;  %v1044_v11 = vlaneseq }
  0x31   :  { %v129_v2 = vcombine.high %v125_v0, %v125_v0  ;;  %v130_v3 = vcombine.high %v126_v1, %v126_v1  ;;  %211 = vmatprep.mubr.f32.mxu0 %v6392_v4  ;;  %288 = vmatprep.mubr.f32.mxu1 %v6392_v4  ;;  %v5777_v6 = vld [vmem:[%s6438_s5 + $0x18] sm:$0xff]  ;;  %4481 = vst [vmem:[#allocation3 + $0x18] sm:$0xff] %v6392_v4  ;;  %v6593_v7 = vld [vmem:[%s6443_s9] sm:$0xff]  ;;  %v6393_v8 = vmov 0   ;;  %v5787_v13 = vld [vmem:[%s6438_s5 + $0x28] sm:$0xff] }
  0x32   :  { %6246 = vset.pattern.permute.xlu0 %v6393_v8  ;;  %6247 = vset.pattern.permute.xlu1 %v6393_v8  ;;  %v306_v9 = vcombine.high %v5776_v5, %v5776_v5  ;;  %v307_v10 = vcombine.high %v5777_v6, %v5777_v6  ;;  %v5786_v12 = vld [vmem:[%s6438_s5 + $0x20] sm:$0xff]  ;;  %v6608_v14 = vld [vmem:[%s6443_s9 + $0x8] sm:$0x7f]  ;;  %v484_v16 = vcombine.high %v5787_v13, %v5787_v13  ;;  %v6612_v17 = vshrl.u32 %v1044_v11, 7  ;;  %v5796_v18 = vld [vmem:[%s6438_s5 + $0x30] sm:$0xff] }
  0x33   :  { %5768 = vmatprep.subr.msk.mxu0 %vm138_vm0, %v129_v2  ;;  %5772 = vmatprep.subr.msk.mxu1 %vm138_vm0, %v130_v3  ;;  %v483_v15 = vcombine.high %v5786_v12, %v5786_v12 }
  0x34   :  { %5769 = vmatpush1.msk.msra.mxu0 %vm138_vm0, %v125_v0  ;;  %5773 = vmatpush1.msk.msra.mxu1 %vm138_vm0, %v126_v1  ;;  %9267 = vst [vmem:[#allocation20_spill] sm:$0xff] %v6612_v17 }
  0x35   :  { %5770 = vmatmul.mubr.msk.f32.vlgmr.msra.gmra.mxu0 %vm131_vm1, %v6593_v7  ;;  %5774 = vmatmul.mubr.msk.f32.vlgmr.msra.gmra.mxu1 %vm131_vm1, %v6593_v7 }
  0x36   :  { %217 = vmatprep.mubr.f32.mxu0 %v6392_v4  ;;  %294 = vmatprep.mubr.f32.mxu1 %v6392_v4 }
  0x37   :  { %5778 = vmatprep.subr.msk.mxu0 %vm138_vm0, %v306_v9  ;;  %5782 = vmatprep.subr.msk.mxu1 %vm138_vm0, %v307_v10 }
  0x38   :  { %5779 = vmatpush1.msk.msra.mxu0 %vm138_vm0, %v5776_v5  ;;  %5783 = vmatpush1.msk.msra.mxu1 %vm138_vm0, %v5777_v6 }
  0x39   :  { %64 = vsyncpa [#allocation6], 0  ;;  %5771 = vmatmul.mubr.msk.f32.gmra.mxu0 %vm131_vm1, %v6608_v14  ;;  %5775 = vmatmul.mubr.msk.f32.gmra.mxu1 %vm131_vm1, %v6608_v14  ;;  %v5797_v19 = vld [vmem:[%s6438_s5 + $0x38] sm:$0xff]  ;;  %v833_v20 = vld [vmem:[%s6448_s13 + $0x8] sm:$0x7f]  ;;  %v6629_v22 = vsub.s32 0, %v6612_v17  ;;  %v660_v23 = vcombine.high %v5796_v18, %v5796_v18 }
  0x3a   :  { %v861_v21 = vld [vmem:[%s6458_s21] sm:$0xff]  ;;  %380 = vmatprep.mubr.f32.mxu0 %v6392_v4  ;;  %457 = vmatprep.mubr.f32.mxu1 %v6392_v4  ;;  %v661_v24 = vcombine.high %v5797_v19, %v5797_v19  ;;  %v6632_v25 = vld [vmem:[%s6483_s14 + $0x3c] sm:$0xf]  ;;  %v6648_v28 = vsub.s32 2, %v6612_v17  ;;  %v6651_v29 = vsub.s32 1, %v6612_v17  ;;  %s6394_s0 = smov 12  }
  0x3b   :  { %5788 = vmatprep.subr.msk.mxu0 %vm138_vm0, %v483_v15  ;;  %5792 = vmatprep.subr.msk.mxu1 %vm138_vm0, %v484_v16  ;;  %9268 = vst [vmem:[#allocation21_spill] sm:$0xff] %v6629_v22  ;;  %v2029_v26 = vrot.slane %v6632_v25, %v6629_v22  ;;  %v832_v27 = vld [vmem:[%s6448_s13] sm:$0xff]  ;;  %v5825_v32 = vld [vmem:[%s6483_s14 + $0x38] sm:$0xf]  ;;  %v5824_v35 = vld [vmem:[%s6483_s14 + $0x34] sm:$0xf] }
  0x3c   :  { %841 = vperm.xlu0 %6246, %v833_v20   ;;  %864 = vperm.xlu1 %6247, %v861_v21   ;;  %9269 = vst [vmem:[#allocation22_spill] sm:$0xff] %v6648_v28  ;;  %9270 = vst [vmem:[#allocation23_spill] sm:$0xff] %v6651_v29  ;;  %v2037_v30 = vrot.slane %v6632_v25, %v6648_v28  ;;  %v2033_v31 = vrot.slane %v6632_v25, %v6651_v29  ;;  %s6395_s5 = smov 2   ;;  %s9243_s9 = smov 1   ;;  %v6699_v40 = vsub.s32 3, %v6612_v17  ;;  %vm871_vm2 = vcmask 1046528  }
  0x3d   :  { %5780 = vmatmul.mubr.msk.f32.vlgmr.msra.gmra.mxu0 %vm131_vm1, %v6593_v7  ;;  %5784 = vmatmul.mubr.msk.f32.vlgmr.msra.gmra.mxu1 %vm131_vm1, %v6593_v7  ;;  %v1968_v33 = vrot.slane %v5825_v32, %v6651_v29  ;;  %v1964_v34 = vrot.slane %v5825_v32, %v6629_v22  ;;  %v1899_v36 = vrot.slane %v5824_v35, %v6629_v22  ;;  %v5822_v43 = vld [vmem:[%s6483_s14 + $0x2c] sm:$0xf]  ;;  %s6397_s13 = smov 127   ;;  %v5821_v48 = vld [vmem:[%s6483_s14 + $0x28] sm:$0xf]  ;;  %s6398_s21 = smov 126  }
  0x3e   :  { %386 = vmatprep.mubr.f32.mxu0 %v6392_v4  ;;  %463 = vmatprep.mubr.f32.mxu1 %v6392_v4  ;;  %v1972_v37 = vrot.slane %v5825_v32, %v6648_v28  ;;  %v1907_v38 = vrot.slane %v5824_v35, %v6648_v28  ;;  %v1903_v39 = vrot.slane %v5824_v35, %v6651_v29  ;;  %v5820_v51 = vld [vmem:[%s6483_s14 + $0x24] sm:$0xf]  ;;  %s6399_s7 = smov 116   ;;  %v5819_v56 = vld [vmem:[%s6483_s14 + $0x20] sm:$0xf]  ;;  %s9189_s10 = smov 115  }
  0x3f   :  { %5789 = vmatpush1.msk.msra.mxu0 %vm138_vm0, %v5786_v12  ;;  %5793 = vmatpush1.msk.msra.mxu1 %vm138_vm0, %v5787_v13  ;;  %9271 = vst [vmem:[#allocation24_spill] sm:$0xff] %v6699_v40  ;;  %v1976_v41 = vrot.slane %v5825_v32, %v6699_v40  ;;  %v2041_v42 = vrot.slane %v6632_v25, %v6699_v40  ;;  %v5818_v61 = vld [vmem:[%s6483_s14 + $0x1c] sm:$0xf]  ;;  %s9191_s11 = smov 114   ;;  %v5817_v2 = vld [vmem:[%s6483_s14 + $0x18] sm:$0xf] }
  0x40   :  { %5798 = vmatprep.subr.msk.mxu0 %vm138_vm0, %v660_v23  ;;  %5802 = vmatprep.subr.msk.mxu1 %vm138_vm0, %v661_v24  ;;  %v1795_v44 = vrot.slane %v5822_v43, %v6651_v29  ;;  %v1791_v45 = vrot.slane %v5822_v43, %v6629_v22  ;;  %v1911_v46 = vrot.slane %v5824_v35, %v6699_v40  ;;  %s9193_s15 = smov 113   ;;  %s9195_s16 = smov 112   ;;  %v5815_v12 = vld [vmem:[%s6483_s14 + $0x10] sm:$0xf]  ;;  %v5813_v24 = vld [vmem:[%s6483_s14 + $0x8] sm:$0xf] }
  0x41   :  { %5781 = vmatmul.mubr.msk.f32.gmra.mxu0 %vm131_vm1, %v6608_v14  ;;  %5785 = vmatmul.mubr.msk.f32.gmra.mxu1 %vm131_vm1, %v6608_v14  ;;  %v1799_v47 = vrot.slane %v5822_v43, %v6648_v28  ;;  %v1721_v49 = vrot.slane %v5821_v48, %v6651_v29  ;;  %v1717_v50 = vrot.slane %v5821_v48, %v6629_v22  ;;  %s9197_s18 = smov 102   ;;  %s9201_s22 = smov 101   ;;  %vm9235_vm3 = vcmask 121856  }
  0x42   :  { %557 = vmatprep.mubr.f32.mxu0 %v6392_v4  ;;  %634 = vmatprep.mubr.f32.mxu1 %v6392_v4  ;;  %v1649_v52 = vrot.slane %v5820_v51, %v6629_v22  ;;  %v1725_v53 = vrot.slane %v5821_v48, %v6648_v28  ;;  %v1657_v54 = vrot.slane %v5820_v51, %v6648_v28  ;;  %s6406_s23 = smov 100   ;;  %s9199_s26 = smov 99   ;;  %vm9241_vm4 = vcmask 97280  }
  0x43   :  { %836 = vperm.xlu0 %6246, %v832_v27   ;;  %2042 = vrot.lane.b32.xlu1 %v2029_v26, %s6394_s0  ;;  %v1653_v55 = vrot.slane %v5820_v51, %v6651_v29  ;;  %v1582_v57 = vrot.slane %v5819_v56, %v6629_v22  ;;  %v1803_v58 = vrot.slane %v5822_v43, %v6699_v40  ;;  %s6408_s28 = smov 98   ;;  %s6409_s1 = smov 30   ;;  %vm9234_vm5 = vcmask 64512  }
  0x44   :  { %v1590_v59 = vrot.slane %v5819_v56, %v6648_v28  ;;  %v1586_v60 = vrot.slane %v5819_v56, %v6651_v29  ;;  %v1515_v62 = vrot.slane %v5818_v61, %v6629_v22  ;;  %v1729_v63 = vrot.slane %v5821_v48, %v6699_v40  ;;  %v5834_v48 = vld [vmem:[%s6483_s14 + $0x5c] sm:$0xf]  ;;  %s6410_s2 = smov 29  }
  0x45   :  { %5790 = vmatmul.mubr.msk.f32.vlgmr.msra.gmra.mxu0 %vm131_vm1, %v6593_v7  ;;  %5794 = vmatmul.mubr.msk.f32.vlgmr.msra.gmra.mxu1 %vm131_vm1, %v6593_v7  ;;  %v1523_v0 = vrot.slane %v5818_v61, %v6648_v28  ;;  %v1519_v1 = vrot.slane %v5818_v61, %v6651_v29  ;;  %v1449_v3 = vrot.slane %v5817_v2, %v6629_v22  ;;  %vm1036_vm6 = vcmask 326720  }
  0x46   :  { %563 = vmatprep.mubr.f32.mxu0 %v6392_v4  ;;  %640 = vmatprep.mubr.f32.mxu1 %v6392_v4  ;;  %v1457_v5 = vrot.slane %v5817_v2, %v6648_v28  ;;  %v1453_v6 = vrot.slane %v5817_v2, %v6651_v29  ;;  %v1594_v9 = vrot.slane %v5819_v56, %v6699_v40  ;;  %vm1767_vm7 = vcmask 15360  }
  0x47   :  { %5799 = vmatpush1.msk.msra.mxu0 %vm138_vm0, %v5796_v18  ;;  %5803 = vmatpush1.msk.msra.mxu1 %vm138_vm0, %v5797_v19  ;;  %v1315_v13 = vrot.slane %v5815_v12, %v6629_v22  ;;  %v1323_v15 = vrot.slane %v5815_v12, %v6648_v28  ;;  %v1319_v16 = vrot.slane %v5815_v12, %v6651_v29  ;;  %v5814_v18 = vld [vmem:[%s6483_s14 + $0xc] sm:$0xf]  ;;  %vm1841_vm8 = vcmask 7168  }
  0x48   :  { %2046 = vrot.lane.b32.xlu1 %v2037_v30, %s6394_s0  ;;  %2044 = vrot.lane.b32.xlu0 %v2033_v31, %s6394_s0  ;;  %v1248_v19 = vrot.slane %v5814_v18, %v6629_v22  ;;  %v1461_v20 = vrot.slane %v5817_v2, %v6699_v40  ;;  %v1256_v21 = vrot.slane %v5814_v18, %v6648_v28  ;;  %v5812_v31 = vld [vmem:[%s6483_s14 + $0x4] sm:$0xf]  ;;  %vm1812_vm9 = vcmask 1039360  }
  0x49   :  { %5791 = vmatmul.mubr.msk.f32.gmra.mxu0 %vm131_vm1, %v6608_v14  ;;  %5795 = vmatmul.mubr.msk.f32.gmra.mxu1 %vm131_vm1, %v6608_v14  ;;  %v1252_v23 = vrot.slane %v5814_v18, %v6651_v29  ;;  %v1181_v25 = vrot.slane %v5813_v24, %v6629_v22  ;;  %v1189_v27 = vrot.slane %v5813_v24, %v6648_v28  ;;  %vm1670_vm10 = vcmask 949248  }
  0x4a   :  { %734 = vmatprep.mubr.f32.mxu0 %v6392_v4  ;;  %811 = vmatprep.mubr.f32.mxu1 %v6392_v4  ;;  %v1185_v30 = vrot.slane %v5813_v24, %v6651_v29  ;;  %v1114_v32 = vrot.slane %v5812_v31, %v6629_v22  ;;  %v1118_v35 = vrot.slane %v5812_v31, %v6651_v29  ;;  %vm1738_vm11 = vcmask 1031168  }
  0x4b   :  { %vm9245_vm12 = vcmask 941056   ;;  %vm9246_vm13 = vcmask 932864   ;;  %vm9247_vm14 = vcmask 924672   ;;  %vm9248_vm15 = vcmask 916480  }
  0x4c   :  { %1979 = vrot.lane.b32.xlu1 %v1968_v33, %s6395_s5  ;;  %1977 = vrot.lane.b32.xlu0 %v1964_v34, %s6395_s5  ;;  %v1327_v33 = vrot.slane %v5815_v12, %v6699_v40  ;;  %v1122_v34 = vrot.slane %v5812_v31, %v6648_v28  ;;  %vm9249_vm0 = vcmask 834560  }
  0x4d   :  { %5800 = vmatmul.mubr.msk.f32.vlgmr.msra.gmra.mxu0 %vm131_vm1, %v6593_v7  ;;  %5804 = vmatmul.mubr.msk.f32.vlgmr.msra.gmra.mxu1 %vm131_vm1, %v6593_v7  ;;  %v5816_v7 = vld [vmem:[%s6483_s14 + $0x14] sm:$0xf] }
  0x4e   :  { %740 = vmatprep.mubr.f32.mxu0 %v6392_v4  ;;  %817 = vmatprep.mubr.f32.mxu1 %v6392_v4  ;;  %v1382_v8 = vrot.slane %v5816_v7, %v6629_v22  ;;  %v1390_v10 = vrot.slane %v5816_v7, %v6648_v28  ;;  %v1386_v11 = vrot.slane %v5816_v7, %v6651_v29 }
  0x4f   :  { %v1394_v26 = vrot.slane %v5816_v7, %v6699_v40 }
  0x50   :  { %1912 = vrot.lane.b32.xlu1 %v1899_v36, %s9243_s9  ;;  %1981 = vrot.lane.b32.xlu0 %v1972_v37, %s6395_s5  ;;  %v1042_v36 = vld [vmem:[%s6483_s14] sm:$0xf] }
  0x51   :  { %5801 = vmatmul.mubr.msk.f32.gmra.mxu0 %vm131_vm1, %v6608_v14  ;;  %5805 = vmatmul.mubr.msk.f32.gmra.mxu1 %vm131_vm1, %v6608_v14  ;;  %v1527_v14 = vrot.slane %v5818_v61, %v6699_v40  ;;  %v1047_v37 = vrot.slane %v1042_v36, %v6629_v22  ;;  %vm9250_vm1 = vcmask 826368  }
  0x52   :  { %948 = vmatprep.mubr.f32.mxu0 %v6392_v4  ;;  %1019 = vmatprep.mubr.f32.mxu1 %v6392_v4  ;;  %v1661_v4 = vrot.slane %v5820_v51, %v6699_v40  ;;  %v1126_v51 = vrot.slane %v5812_v31, %v6699_v40 }
  0x54   :  { %1916 = vrot.lane.b32.xlu1 %v1907_v38, %s9243_s9  ;;  %1914 = vrot.lane.b32.xlu0 %v1903_v39, %s9243_s9  ;;  %v1260_v38 = vrot.slane %v5814_v18, %v6699_v40  ;;  %v1055_v39 = vrot.slane %v1042_v36, %v6648_v28 }
  0x58   :  { %1983 = vrot.lane.b32.xlu1 %v1976_v41, %s6395_s5  ;;  %2048 = vrot.lane.b32.xlu0 %v2041_v42, %s6394_s0  ;;  %v1051_v41 = vrot.slane %v1042_v36, %v6651_v29  ;;  %v5835_v42 = vld [vmem:[%s6483_s14 + $0x60] sm:$0xf] }
  0x59   :  { %v2614_v43 = vrot.slane %v5835_v42, %v6629_v22 }
  0x5c   :  { %1806 = vrot.lane.b32.xlu1 %v1795_v44, %s6397_s13  ;;  %1804 = vrot.lane.b32.xlu0 %v1791_v45, %s6397_s13  ;;  %v1193_v44 = vrot.slane %v5813_v24, %v6699_v40  ;;  %v5829_v24 = vld [vmem:[%s6483_s14 + $0x48] sm:$0xf] }
  0x60   :  { %1918 = vrot.lane.b32.xlu1 %v1911_v46, %s9243_s9  ;;  %1808 = vrot.lane.b32.xlu0 %v1799_v47, %s6397_s13  ;;  %v2622_v46 = vrot.slane %v5835_v42, %v6648_v28  ;;  %v2618_v47 = vrot.slane %v5835_v42, %v6651_v29 }
  0x64   :  { %1732 = vrot.lane.b32.xlu1 %v1721_v49, %s6398_s21  ;;  %1730 = vrot.lane.b32.xlu0 %v1717_v50, %s6398_s21  ;;  %v2549_v50 = vrot.slane %v5834_v48, %v6629_v22 }
  0x68   :  { %1662 = vrot.lane.b32.xlu1 %v1649_v52, %s6399_s7  ;;  %1734 = vrot.lane.b32.xlu0 %v1725_v53, %s6398_s21  ;;  %v2557_v53 = vrot.slane %v5834_v48, %v6648_v28 }
  0x6c   :  { %1666 = vrot.lane.b32.xlu1 %v1657_v54, %s6399_s7  ;;  %1664 = vrot.lane.b32.xlu0 %v1653_v55, %s6399_s7  ;;  %v2553_v54 = vrot.slane %v5834_v48, %v6651_v29  ;;  %v5833_v55 = vld [vmem:[%s6483_s14 + $0x58] sm:$0xf] }
  0x6d   :  { %v2488_v61 = vrot.slane %v5833_v55, %v6651_v29 }
  0x70   :  { %1595 = vrot.lane.b32.xlu1 %v1582_v57, %s9189_s10  ;;  %1810 = vrot.lane.b32.xlu0 %v1803_v58, %s6397_s13  ;;  %v2484_v57 = vrot.slane %v5833_v55, %v6629_v22  ;;  %v1059_v58 = vrot.slane %v1042_v36, %v6699_v40 }
  0x74   :  { %1599 = vrot.lane.b32.xlu1 %v1590_v59, %s9189_s10  ;;  %1597 = vrot.lane.b32.xlu0 %v1586_v60, %s9189_s10  ;;  %v2492_v60 = vrot.slane %v5833_v55, %v6648_v28 }
  0x78   :  { %1528 = vrot.lane.b32.xlu1 %v1515_v62, %s9191_s11  ;;  %1736 = vrot.lane.b32.xlu0 %v1729_v63, %s6398_s21  ;;  %v5832_v62 = vld [vmem:[%s6483_s14 + $0x54] sm:$0xf] }
  0x7c   :  { %1532 = vrot.lane.b32.xlu1 %v1523_v0, %s9191_s11  ;;  %1530 = vrot.lane.b32.xlu0 %v1519_v1, %s9191_s11  ;;  %v2419_v0 = vrot.slane %v5832_v62, %v6629_v22  ;;  %v2626_v1 = vrot.slane %v5835_v42, %v6699_v40 }
  0x80   :  { %1462 = vrot.lane.b32.xlu1 %v1449_v3, %s9193_s15  ;;  %1668 = vrot.lane.b32.xlu0 %v1661_v4, %s6399_s7  ;;  %v2427_v3 = vrot.slane %v5832_v62, %v6648_v28  ;;  %v2423_v4 = vrot.slane %v5832_v62, %v6651_v29 }
  0x84   :  { %1466 = vrot.lane.b32.xlu1 %v1457_v5, %s9193_s15  ;;  %1464 = vrot.lane.b32.xlu0 %v1453_v6, %s9193_s15  ;;  %v5831_v5 = vld [vmem:[%s6483_s14 + $0x50] sm:$0xf] }
  0x85   :  { %v2362_v12 = vrot.slane %v5831_v5, %v6648_v28 }
  0x88   :  { %1395 = vrot.lane.b32.xlu1 %v1382_v8, %s9195_s16  ;;  %1601 = vrot.lane.b32.xlu0 %v1594_v9, %s9189_s10  ;;  %s6411_s10 = smov 28   ;;  %v2354_v8 = vrot.slane %v5831_v5, %v6629_v22  ;;  %v2561_v9 = vrot.slane %v5834_v48, %v6699_v40 }
  0x8c   :  { %1399 = vrot.lane.b32.xlu1 %v1390_v10, %s9195_s16  ;;  %1397 = vrot.lane.b32.xlu0 %v1386_v11, %s9195_s16 }
  0x90   :  { %1328 = vrot.lane.b32.xlu1 %v1315_v13, %s9197_s18  ;;  %1534 = vrot.lane.b32.xlu0 %v1527_v14, %s9191_s11  ;;  %s6412_s11 = smov 27   ;;  %v2358_v13 = vrot.slane %v5831_v5, %v6651_v29  ;;  %v5830_v14 = vld [vmem:[%s6483_s14 + $0x4c] sm:$0xf] }
  0x91   :  { %v2289_v18 = vrot.slane %v5830_v14, %v6629_v22 }
  0x94   :  { %1332 = vrot.lane.b32.xlu1 %v1323_v15, %s9197_s18  ;;  %1330 = vrot.lane.b32.xlu0 %v1319_v16, %s9197_s18 }
  0x98   :  { %1261 = vrot.lane.b32.xlu1 %v1248_v19, %s9201_s22  ;;  %1468 = vrot.lane.b32.xlu0 %v1461_v20, %s9193_s15  ;;  %s6413_s15 = smov 26   ;;  %v2496_v19 = vrot.slane %v5833_v55, %v6699_v40 }
  0x9c   :  { %1265 = vrot.lane.b32.xlu1 %v1256_v21, %s9201_s22  ;;  %1263 = vrot.lane.b32.xlu0 %v1252_v23, %s9201_s22  ;;  %v2297_v21 = vrot.slane %v5830_v14, %v6648_v28  ;;  %v2293_v23 = vrot.slane %v5830_v14, %v6651_v29 }
  0xa0   :  { %1194 = vrot.lane.b32.xlu1 %v1181_v25, %s6406_s23  ;;  %1401 = vrot.lane.b32.xlu0 %v1394_v26, %s9195_s16  ;;  %s6414_s16 = smov 16  }
  0xa4   :  { %1198 = vrot.lane.b32.xlu1 %v1189_v27, %s6406_s23  ;;  %1196 = vrot.lane.b32.xlu0 %v1185_v30, %s6406_s23  ;;  %v2224_v27 = vrot.slane %v5829_v24, %v6629_v22  ;;  %v2431_v30 = vrot.slane %v5832_v62, %v6699_v40 }
  0xa8   :  { %1127 = vrot.lane.b32.xlu1 %v1114_v32, %s9199_s26  ;;  %1334 = vrot.lane.b32.xlu0 %v1327_v33, %s9197_s18  ;;  %s6415_s18 = smov 15   ;;  %v2232_v33 = vrot.slane %v5829_v24, %v6648_v28 }
  0xac   :  { %1131 = vrot.lane.b32.xlu1 %v1122_v34, %s9199_s26  ;;  %1129 = vrot.lane.b32.xlu0 %v1118_v35, %s9199_s26  ;;  %v2228_v34 = vrot.slane %v5829_v24, %v6651_v29  ;;  %v5828_v35 = vld [vmem:[%s6483_s14 + $0x44] sm:$0xf] }
  0xad   :  { %v2167_v42 = vrot.slane %v5828_v35, %v6648_v28 }
  0xb0   :  { %1060 = vrot.lane.b32.xlu1 %v1047_v37, %s6408_s28  ;;  %1267 = vrot.lane.b32.xlu0 %v1260_v38, %s9201_s22  ;;  %v2159_v37 = vrot.slane %v5828_v35, %v6629_v22  ;;  %v2366_v38 = vrot.slane %v5831_v5, %v6699_v40  ;;  %s6417_s22 = smov 13   ;;  %v2236_v5 = vrot.slane %v5829_v24, %v6699_v40 }
  0xb4   :  { %1064 = vrot.lane.b32.xlu1 %v1055_v39, %s6408_s28  ;;  %1062 = vrot.lane.b32.xlu0 %v1051_v41, %s6408_s28 }
  0xb7   :  { %v6821_v45 = vpop.permute.xlu1 %864  ;;  %v6867_v6 = vpop.permute.xlu0 %841 }
  0xb8   :  { %2627 = vrot.lane.b32.xlu1 %v2614_v43, %s6409_s1  ;;  %1200 = vrot.lane.b32.xlu0 %v1193_v44, %s6406_s23  ;;  %v2163_v43 = vrot.slane %v5828_v35, %v6651_v29  ;;  %v5827_v44 = vld [vmem:[%s6483_s14 + $0x40] sm:$0xf] }
  0xb9   :  { %v2094_v48 = vrot.slane %v5827_v44, %v6629_v22 }
  0xbb   :  { %v6828_v49 = vpop.permute.xlu1 %2042 }
  0xbc   :  { %2631 = vrot.lane.b32.xlu1 %v2622_v46, %s6409_s1  ;;  %2629 = vrot.lane.b32.xlu0 %v2618_v47, %s6409_s1 }
  0xbe   :  { %v6877_v11 = vpop.permute.xlu0 %836 }
  0xbf   :  { %v6834_v52 = vpop.permute.xlu1 %2046 }
  0xc0   :  { %9272 = vst [vmem:[#allocation25_spill] sm:$0xff] %v6834_v52  ;;  %2562 = vrot.lane.b32.xlu1 %v2549_v50, %s6410_s2  ;;  %1133 = vrot.lane.b32.xlu0 %v1126_v51, %s9199_s26  ;;  %s6416_s26 = smov 14   ;;  %v2301_v50 = vrot.slane %v5830_v14, %v6699_v40 }
  0xc2   :  { %v6886_v16 = vpop.permute.xlu0 %2044 }
  0xc3   :  { %v6841_v56 = vpop.permute.xlu1 %1979 }
  0xc4   :  { %2566 = vrot.lane.b32.xlu1 %v2557_v53, %s6410_s2  ;;  %2564 = vrot.lane.b32.xlu0 %v2553_v54, %s6410_s2 }
  0xc6   :  { %v6899_v25 = vpop.permute.xlu0 %1977 }
  0xc7   :  { %v6847_v59 = vpop.permute.xlu1 %1912 }
  0xc8   :  { %2497 = vrot.lane.b32.xlu1 %v2484_v57, %s6411_s10  ;;  %1066 = vrot.lane.b32.xlu0 %v1059_v58, %s6408_s28  ;;  %v2102_v58 = vrot.slane %v5827_v44, %v6648_v28 }
  0xca   :  { %v6909_v32 = vpop.permute.xlu0 %1981 }
  0xcb   :  { %v6854_v63 = vpop.permute.xlu1 %1916  ;;  %9277 = vst [vmem:[#allocation30_spill] sm:$0xff] %v6909_v32 }
  0xcc   :  { %9273 = vst [vmem:[#allocation26_spill] sm:$0xff] %v6854_v63  ;;  %2501 = vrot.lane.b32.xlu1 %v2492_v60, %s6411_s10  ;;  %2499 = vrot.lane.b32.xlu0 %v2488_v61, %s6411_s10  ;;  %v2098_v60 = vrot.slane %v5827_v44, %v6651_v29 }
  0xce   :  { %v6922_v39 = vpop.permute.xlu0 %1914 }
  0xcf   :  { %v6860_v2 = vpop.permute.xlu1 %1983 }
  0xd0   :  { %9274 = vst [vmem:[#allocation27_spill] sm:$0xff] %v6860_v2  ;;  %2432 = vrot.lane.b32.xlu1 %v2419_v0, %s6412_s11  ;;  %2633 = vrot.lane.b32.xlu0 %v2626_v1, %s6409_s1 }
  0xd2   :  { %v6933_v47 = vpop.permute.xlu0 %2048 }
  0xd3   :  { %v6869_v7 = vpop.permute.xlu1 %1806  ;;  %9281 = vst [vmem:[#allocation34_spill] sm:$0xff] %v6933_v47 }
  0xd4   :  { %2436 = vrot.lane.b32.xlu1 %v2427_v3, %s6412_s11  ;;  %2434 = vrot.lane.b32.xlu0 %v2423_v4, %s6412_s11 }
  0xd6   :  { %v6953_v0 = vpop.permute.xlu0 %1804 }
  0xd7   :  { %v6875_v10 = vpop.permute.xlu1 %1918 }
  0xd8   :  { %9275 = vst [vmem:[#allocation28_spill] sm:$0xff] %v6875_v10  ;;  %2367 = vrot.lane.b32.xlu1 %v2354_v8, %s6413_s15  ;;  %2568 = vrot.lane.b32.xlu0 %v2561_v9, %s6410_s2  ;;  %v2171_v8 = vrot.slane %v5828_v35, %v6699_v40 }
  0xdb   :  { %v6884_v15 = vpop.permute.xlu1 %1732 }
  0xdc   :  { %2371 = vrot.lane.b32.xlu1 %v2362_v12, %s6413_s15  ;;  %2369 = vrot.lane.b32.xlu0 %v2358_v13, %s6413_s15 }
  0xdf   :  { %v6892_v20 = vpop.permute.xlu1 %1662 }
  0xe0   :  { %2302 = vrot.lane.b32.xlu1 %v2289_v18, %s6414_s16  ;;  %2503 = vrot.lane.b32.xlu0 %v2496_v19, %s6411_s10  ;;  %v6965_v18 = vpop.permute.xlu0 %1808  ;;  %v1678_v19 = vmul.f32 0.0, %v6892_v20 }
  0xe3   :  { %v6901_v26 = vpop.permute.xlu1 %1666 }
  0xe4   :  { %9276 = vst [vmem:[#allocation29_spill] sm:$0xff] %v6901_v26  ;;  %2306 = vrot.lane.b32.xlu1 %v2297_v21, %s6414_s16  ;;  %2304 = vrot.lane.b32.xlu0 %v2293_v23, %s6414_s16  ;;  %v2106_v23 = vrot.slane %v5827_v44, %v6699_v40 }
  0xe7   :  { %v6907_v31 = vpop.permute.xlu1 %1595 }
  0xe8   :  { %2237 = vrot.lane.b32.xlu1 %v2224_v27, %s6415_s18  ;;  %2438 = vrot.lane.b32.xlu0 %v2431_v30, %s6412_s11  ;;  %v1611_v17 = vmul.f32 0.0, %v6907_v31 }
  0xeb   :  { %v6916_v36 = vpop.permute.xlu1 %1599 }
  0xec   :  { %9278 = vst [vmem:[#allocation31_spill] sm:$0xff] %v6916_v36  ;;  %2241 = vrot.lane.b32.xlu1 %v2232_v33, %s6415_s18  ;;  %2239 = vrot.lane.b32.xlu0 %v2228_v34, %s6415_s18  ;;  %v1821_v34 = vmul.f32 0.0, %v6953_v0 }
  0xef   :  { %v6924_v41 = vpop.permute.xlu1 %1528 }
  0xf0   :  { %9279 = vst [vmem:[#allocation32_spill] sm:$0xff] %v6924_v41  ;;  %2172 = vrot.lane.b32.xlu1 %v2159_v37, %s6416_s26  ;;  %2373 = vrot.lane.b32.xlu0 %v2366_v38, %s6413_s15  ;;  %v1544_v35 = vmul.f32 0.0, %v6924_v41 }
  0xf3   :  { %v6931_v46 = vpop.permute.xlu1 %1532 }
  0xf4   :  { %9280 = vst [vmem:[#allocation33_spill] sm:$0xff] %v6931_v46  ;;  %2176 = vrot.lane.b32.xlu1 %v2167_v42, %s6416_s26  ;;  %2174 = vrot.lane.b32.xlu0 %v2163_v43, %s6416_s26  ;;  %v6979_v43 = vpop.permute.xlu0 %1730 }
  0xf5   :  { %v6939_v51 = vpop.f32.mrf.mxu0  ;;  %v6941_v53 = vpop.f32.mrf.mxu1 }
  0xf7   :  { %v6943_v54 = vpop.f32.mrf.mxu0  ;;  %v6945_v55 = vpop.f32.mrf.mxu1 }
  0xf8   :  { %v6947_v57 = vpop.permute.xlu1 %1462  ;;  %2107 = vrot.lane.b32.xlu1 %v2094_v48, %s6417_s22  ;;  %2308 = vrot.lane.b32.xlu0 %v2301_v50, %s6414_s16  ;;  %v1747_v50 = vmul.f32 0.0, %v6979_v43 }
  0xf9   :  { %9282 = vst [vmem:[#allocation35_spill] sm:$0xff] %v6947_v57  ;;  %v219_v61 = vpop.f32.mrf.mxu0  ;;  %v296_v62 = vpop.f32.mrf.mxu1 }
  0xfb   :  { %v6955_v1 = vpop.f32.mrf.mxu0  ;;  %v6957_v3 = vpop.f32.mrf.mxu1 }
  0xfc   :  { %v6959_v4 = vpop.permute.xlu1 %1466  ;;  %2111 = vrot.lane.b32.xlu1 %v2102_v58, %s6417_s22  ;;  %2109 = vrot.lane.b32.xlu0 %v2098_v60, %s6417_s22  ;;  %v1478_v58 = vmul.f32 0.0, %v6947_v57 }
  0xfd   :  { %9283 = vst [vmem:[#allocation36_spill] sm:$0xff] %v6959_v4  ;;  %v382_v9 = vpop.f32.mrf.mxu0  ;;  %v459_v12 = vpop.f32.mrf.mxu1 }
  0xff   :  { %v384_v13 = vpop.f32.mrf.mxu0  ;;  %v461_v14 = vpop.f32.mrf.mxu1 }
 0x100   :  { %v6968_v21 = vpop.permute.xlu1 %1395  ;;  %2243 = vrot.lane.b32.xlu0 %v2236_v5, %s6415_s18  ;;  %2178 = vrot.lane.b32.xlu1 %v2171_v8, %s6416_s26  ;;  %v471_v4 = vmax.f32 %v6943_v54, %v384_v13  ;;  %v473_v46 = vmax.f32 %v6945_v55, %v461_v14 }
 0x101   :  { %v388_v27 = vpop.f32.mrf.mxu0  ;;  %v465_v24 = vpop.f32.mrf.mxu1  ;;  %v1411_v2 = vmul.f32 0.0, %v6968_v21 }
 0x103   :  { %v390_v30 = vpop.f32.mrf.mxu0  ;;  %v467_v33 = vpop.f32.mrf.mxu1 }
 0x104   :  { %v6975_v37 = vpop.permute.xlu1 %1399  ;;  %2113 = vrot.lane.b32.xlu0 %v2106_v23, %s6417_s22  ;;  %1686 = vrot.lane.b32.xlu1 %v1678_v19, %s6394_s0 }
 0x105   :  { %9284 = vst [vmem:[#allocation37_spill] sm:$0xff] %v6975_v37  ;;  %v559_v38 = vpop.f32.mrf.mxu0  ;;  %v636_v42 = vpop.f32.mrf.mxu1  ;;  %v474_v37 = vmax.f32 %v219_v61, %v388_v27  ;;  %v477_v61 = vmax.f32 %v6957_v3, %v467_v33 }
 0x107   :  { %v561_v44 = vpop.f32.mrf.mxu0  ;;  %v638_v48 = vpop.f32.mrf.mxu1 }
 0x108   :  { %v6983_v60 = vpop.permute.xlu1 %1328  ;;  %1831 = vrot.lane.b32.xlu0 %v1821_v34, %s9243_s9  ;;  %1552 = vrot.lane.b32.xlu1 %v1544_v35, %s6416_s26  ;;  %v476_v34 = vmax.f32 %v296_v62, %v465_v24  ;;  %v470_v35 = vmax.f32 %v6939_v51, %v382_v9  ;;  %v648_v62 = vmax.f32 %v471_v4, %v561_v44 }
 0x109   :  { %v565_v5 = vpop.f32.mrf.mxu0  ;;  %v642_v8 = vpop.f32.mrf.mxu1  ;;  %v650_v51 = vmax.f32 %v473_v46, %v638_v48  ;;  %v1344_v55 = vmul.f32 0.0, %v6983_v60 }
 0x10a   :  { %v651_v57 = vmax.f32 %v474_v37, %v565_v5  ;;  %v647_v13 = vmax.f32 %v470_v35, %v559_v38 }
 0x10b   :  { %v567_v23 = vpop.f32.mrf.mxu0  ;;  %v644_v19 = vpop.f32.mrf.mxu1 }
 0x10c   :  { %v6988_v40 = vpop.permute.xlu1 %1332  ;;  %1757 = vrot.lane.b32.xlu0 %v1747_v50, %s6395_s5  ;;  %1486 = vrot.lane.b32.xlu1 %v1478_v58, %s6415_s18  ;;  %v475_v50 = vmax.f32 %v6955_v1, %v390_v30  ;;  %v653_v58 = vmax.f32 %v476_v34, %v642_v8  ;;  %v654_v27 = vmax.f32 %v477_v61, %v644_v19 }
 0x10d   :  { %9285 = vst [vmem:[#allocation38_spill] sm:$0xff] %v6988_v40  ;;  %v736_v47 = vpop.f32.mrf.mxu0  ;;  %v813_v10 = vpop.f32.mrf.mxu1  ;;  %v472_v40 = vmax.f32 %v6941_v53, %v459_v12 }
 0x10e   :  { %v652_v14 = vmax.f32 %v475_v50, %v567_v23  ;;  %v824_v5 = vmax.f32 %v647_v13, %v736_v47  ;;  %v7036_v13 = vpop.permute.xlu0 %1734 }
 0x10f   :  { %v738_v36 = vpop.f32.mrf.mxu0  ;;  %v815_v26 = vpop.f32.mrf.mxu1  ;;  %v649_v53 = vmax.f32 %v472_v40, %v636_v42 }
 0x110   :  { %v6998_v41 = vpop.permute.xlu1 %1261  ;;  %1619 = vrot.lane.b32.xlu0 %v1611_v17, %s6417_s22  ;;  %1419 = vrot.lane.b32.xlu1 %v1411_v2, %s6414_s16  ;;  %v825_v24 = vmax.f32 %v648_v62, %v738_v36  ;;  %v827_v30 = vmax.f32 %v650_v51, %v815_v26  ;;  %v844_v47 = vadd.f32 %v6877_v11, %v824_v5 }
 0x111   :  { %v742_v9 = vpop.f32.mrf.mxu0  ;;  %v819_v54 = vpop.f32.mrf.mxu1  ;;  %v826_v3 = vmax.f32 %v649_v53, %v813_v10  ;;  %v1277_v44 = vmul.f32 0.0, %v6998_v41 }
 0x112   :  { %v828_v12 = vmax.f32 %v651_v57, %v742_v9  ;;  %v830_v1 = vmax.f32 %v653_v58, %v819_v54  ;;  %v845_v57 = vadd.f32 %v6877_v11, %v825_v24  ;;  %v847_v26 = vadd.f32 %v6877_v11, %v827_v30  ;;  %v860_v58 = vld [vmem:[%s6453_s17] sm:$0xff]  ;;  %v7038_v53 = vpop.permute.xlu0 %1664  ;;  %s9317_s17 = smov 101  }
 0x113   :  { %v744_v37 = vpop.f32.mrf.mxu0  ;;  %v821_v17 = vpop.f32.mrf.mxu1  ;;  %v846_v38 = vadd.f32 %v6877_v11, %v826_v3 }
 0x114   :  { %v7004_v4 = vpop.permute.xlu1 %1265  ;;  %v829_v46 = vmax.f32 %v652_v14, %v744_v37  ;;  %v831_v33 = vmax.f32 %v654_v27, %v821_v17  ;;  %1352 = vrot.lane.b32.xlu1 %v1344_v55, %s6413_s15  ;;  %v848_v40 = vadd.f32 %v6867_v6, %v828_v12  ;;  %v850_v2 = vadd.f32 %v6867_v6, %v830_v1 }
 0x115   :  { %v853_v34 = vmax.f32 %v845_v57, 0.0  ;;  %v855_v35 = vmax.f32 %v847_v26, 0.0  ;;  %v854_v50 = vmax.f32 %v846_v38, 0.0 }
 0x116   :  { %v849_v36 = vadd.f32 %v6867_v6, %v829_v46  ;;  %v851_v10 = vadd.f32 %v6867_v6, %v831_v33  ;;  %v856_v23 = vmax.f32 %v848_v40, 0.0  ;;  %v858_v19 = vmax.f32 %v850_v2, 0.0  ;;  %v7040_v12 = vpop.permute.xlu0 %1810 }
 0x117   :  { %v852_v6 = vmax.f32 %v844_v47, 0.0 }
 0x118   :  { %v7016_v42 = vpop.permute.xlu1 %1194  ;;  %v857_v48 = vmax.f32 %v849_v36, 0.0  ;;  %v859_v8 = vmax.f32 %v851_v10, 0.0  ;;  %1285 = vrot.lane.b32.xlu1 %v1277_v44, %s6412_s11 }
 0x119   :  { %v1210_v11 = vmul.f32 0.0, %v7016_v42 }
 0x11a   :  { %5806 = vmatprep.subr.msk.mxu0 %vm871_vm2, %v857_v48  ;;  %5809 = vmatprep.subr.msk.mxu1 %vm871_vm2, %v859_v8  ;;  %v7042_v1 = vpop.permute.xlu0 %1597 }
 0x11b   :  { %5807 = vmatpush1.msk.msra.mxu0 %vm871_vm2, %v856_v23  ;;  %5810 = vmatpush1.msk.msra.mxu1 %vm871_vm2, %v858_v19  ;;  %vm9242_vm2 = vcmask 818176  }
 0x11c   :  { %v7021_v61 = vpop.permute.xlu1 %1198  ;;  %914 = vmatprep.subr.mxu0 %v853_v34  ;;  %985 = vmatprep.subr.mxu1 %v855_v35 }
 0x11d   :  { %915 = vmatpush1.msra.mxu0 %v852_v6  ;;  %986 = vmatpush1.msra.mxu1 %v854_v50  ;;  %v7095_v6 = vld [vmem:[%s6483_s14 + $0x30] sm:$0xf]  ;;  %s9319_s14 = smov 99  }
 0x11e   :  { %5808 = vmatmul.mubr.msk.f32.vlgmr.msra.gmra.mxu0 %vm9235_vm3, %v860_v58  ;;  %5811 = vmatmul.mubr.msk.f32.vlgmr.msra.gmra.mxu1 %vm9235_vm3, %v860_v58  ;;  %v7044_v14 = vpop.permute.xlu0 %1736  ;;  %vm1092_vm3 = vcmask 244736  }
 0x11f   :  { %1218 = vrot.lane.b32.xlu1 %v1210_v11, %s6411_s10 }
 0x120   :  { %v7025_v62 = vpop.permute.xlu1 %1127 }
 0x121   :  { %v1143_v51 = vmul.f32 0.0, %v7025_v62 }
 0x122   :  { %v7046_v27 = vpop.permute.xlu0 %1530 }
 0x123   :  { %1151 = vrot.lane.b32.xlu1 %v1143_v51, %s6410_s2 }
 0x124   :  { %v7029_v9 = vpop.permute.xlu1 %1131 }
 0x126   :  { %v7048_v24 = vpop.permute.xlu0 %1668 }
 0x128   :  { %v7032_v54 = vpop.permute.xlu1 %1060 }
 0x129   :  { %v1076_v55 = vmul.f32 0.0, %v7032_v54 }
 0x12a   :  { %v7050_v30 = vpop.permute.xlu0 %1464 }
 0x12b   :  { %1084 = vrot.lane.b32.xlu1 %v1076_v55, %s6409_s1  ;;  %v1864_v55 = vrot.slane %v7095_v6, %v6629_v22 }
 0x12c   :  { %v7066_v40 = vpop.permute.xlu1 %1064 }
 0x12e   :  { %v7052_v37 = vpop.permute.xlu0 %1601 }
 0x130   :  { %v7070_v57 = vpop.permute.xlu1 %2627 }
 0x131   :  { %9286 = vst [vmem:[#allocation39_spill] sm:$0xff] %v7070_v57 }
 0x132   :  { %v7054_v17 = vpop.permute.xlu0 %1397 }
 0x134   :  { %v7074_v36 = vpop.permute.xlu1 %2631 }
 0x135   :  { %9287 = vst [vmem:[#allocation40_spill] sm:$0xff] %v7074_v36 }
 0x136   :  { %v7056_v5 = vpop.permute.xlu0 %1534 }
 0x138   :  { %v7078_v47 = vpop.permute.xlu1 %2562 }
 0x139   :  { %9288 = vst [vmem:[#allocation41_spill] sm:$0xff] %v7078_v47 }
 0x13a   :  { %v7058_v3 = vpop.permute.xlu0 %1330 }
 0x13c   :  { %v7082_v48 = vpop.permute.xlu1 %2566 }
 0x13d   :  { %9289 = vst [vmem:[#allocation42_spill] sm:$0xff] %v7082_v48  ;;  %v1872_v48 = vrot.slane %v7095_v6, %v6648_v28 }
 0x13e   :  { %v7060_v46 = vpop.permute.xlu0 %1468 }
 0x140   :  { %v7086_v23 = vpop.permute.xlu1 %2497 }
 0x141   :  { %9290 = vst [vmem:[#allocation43_spill] sm:$0xff] %v7086_v23 }
 0x142   :  { %v7062_v33 = vpop.permute.xlu0 %1263 }
 0x144   :  { %v7090_v34 = vpop.permute.xlu1 %2501 }
 0x145   :  { %9291 = vst [vmem:[#allocation44_spill] sm:$0xff] %v7090_v34 }
 0x146   :  { %v7064_v44 = vpop.permute.xlu0 %1401 }
 0x148   :  { %v7097_v50 = vpop.permute.xlu1 %2432 }
 0x149   :  { %9293 = vst [vmem:[#allocation46_spill] sm:$0xff] %v7097_v50 }
 0x14a   :  { %v7068_v2 = vpop.permute.xlu0 %1196 }
 0x14c   :  { %v7115_v22 = vpop.permute.xlu1 %2436 }
 0x14e   :  { %v7072_v26 = vpop.permute.xlu0 %1334 }
 0x152   :  { %v7076_v10 = vpop.permute.xlu0 %1129 }
 0x156   :  { %v7080_v38 = vpop.permute.xlu0 %1267 }
 0x15a   :  { %v7084_v8 = vpop.permute.xlu0 %1062 }
 0x15e   :  { %v7088_v19 = vpop.permute.xlu0 %1200 }
 0x162   :  { %v7092_v35 = vpop.permute.xlu0 %2629 }
 0x163   :  { %9292 = vst [vmem:[#allocation45_spill] sm:$0xff] %v7092_v35 }
 0x166   :  { %v7113_v35 = vpop.permute.xlu0 %1133 }
 0x1de   :  { %v950_v58 = vpop.f32.mrf.mxu0  ;;  %v1021_v11 = vpop.f32.mrf.mxu1 }
 0x1df   :  { %v951_v51 = vadd.f32 %v950_v58, %v6821_v45  ;;  %v1022_v47 = vadd.f32 %v1021_v11, %v6821_v45  ;;  %v2051_v58 = vsel %vm9241_vm4, %v6886_v16, %v6834_v52  ;;  %v7127_v52 = vld [vmem:[#allocation3 + $0x18] sm:$0xff] }
 0x1e0   :  { %v1023_v57 = vpop.f32.mrf.mxu1  ;;  %9295 = vst [vmem:[#allocation48_spill] sm:$0xff] %v7127_v52 }
 0x1e1   :  { %v7105_v34 = vmax.f32 %v951_v51, 0.0  ;;  %v7107_v23 = vmax.f32 %v1022_v47, 0.0  ;;  %v1024_v50 = vadd.f32 %v1023_v57, %v6821_v45 }
 0x1e3   :  { %1031 = vst [vmem:[#allocation3 + $0x8] sm:$0xff] %v7105_v34  ;;  %v7119_v11 = vmul.f32 %v1864_v55, %v7105_v34  ;;  %v1883_v51 = vmul.f32 %v1872_v48, %v7107_v23  ;;  %v1029_v47 = vmax.f32 %v1024_v50, 0.0  ;;  %v2059_v57 = vmul.f32 %v2051_v58, %v7107_v23  ;;  %v7135_v50 = vpop.permute.xlu0 %2564  ;;  %v7139_v58 = vpop.permute.xlu1 %2367 }
 0x1e4   :  { %v2057_v28 = vmul.f32 %v6828_v49, %v7105_v34  ;;  %v1986_v48 = vsel %vm1767_vm7, %v6841_v56, %v6909_v32  ;;  %v1992_v55 = vmul.f32 %v6899_v25, %v7105_v34 }
 0x1e5   :  { %9294 = vst [vmem:[#allocation47_spill] sm:$0xff] %v7119_v11  ;;  %1885 = vst [vmem:[#allocation4 + $0x180] sm:$0xff] %v7119_v11  ;;  %2069 = vrot.lane.b32.xlu0 %v2059_v57, %s6399_s7  ;;  %v1927_v57 = vmul.f32 %v6847_v59, %v7105_v34 }
 0x1e6   :  { %1887 = vst [vmem:[#allocation4 + $0x190] sm:$0xff] %v1883_v51  ;;  %1035 = vst.msk [vmem:[#allocation3 + $0x20] sm:$0xff] %vm9234_vm5, %v1029_v47  ;;  %2065 = vrot.lane.b32.xlu1 %v2057_v28, %s6399_s7  ;;  %v1994_v51 = vmul.f32 %v1986_v48, %v7107_v23  ;;  %v1921_v28 = vsel %vm1841_vm8, %v6922_v39, %v6854_v63  ;;  %v1813_v48 = vsel %vm1812_vm9, %v6953_v0, %v6869_v7  ;;  %vm9236_vm5 = vcmask 801792  }
 0x1e7   :  { %1037 = vst.msk [vmem:[#allocation3 + $0x20] sm:$0xff] %vm1036_vm6, %v7127_v52  ;;  %v1929_v47 = vmul.f32 %v1921_v28, %v7107_v23  ;;  %v7150_v11 = vpop.permute.xlu0 %1066  ;;  %v952_v52 = vpop.f32.mrf.mxu0  ;;  %v1822_v28 = vmul.f32 %v1813_v48, %v7105_v34  ;;  %v1739_v0 = vsel %vm1738_vm11, %v6979_v43, %v6884_v15  ;;  %v1868_v43 = vrot.slane %v7095_v6, %v6651_v29 }
 0x1e8   :  { %v953_v63 = vadd.f32 %v952_v52, %v6821_v45  ;;  %vm9239_vm6 = vcmask 809984  }
 0x1e9   :  { %2000 = vrot.lane.b32.xlu0 %v1992_v55, %s6398_s21  ;;  %v7156_v55 = vpop.permute.xlu1 %2371 }
 0x1ea   :  { %2004 = vrot.lane.b32.xlu1 %v1994_v51, %s6398_s21  ;;  %v1671_v51 = vsel %vm1670_vm10, %v6892_v20, %v7038_v53  ;;  %v7178_v52 = vmax.f32 %v953_v63, 0.0 }
 0x1eb   :  { %v1679_v32 = vmul.f32 %v1671_v51, %v7105_v34  ;;  %v7173_v20 = vpop.permute.xlu0 %2499  ;;  %v9296_v51 = vld [vmem:[#allocation32_spill] sm:$0xff] }
 0x1ed   :  { %1939 = vrot.lane.b32.xlu0 %v1929_v47, %s6397_s13  ;;  %v1815_v47 = vsel %vm1812_vm9, %v6965_v18, %v7040_v12  ;;  %v7176_v45 = vpop.permute.xlu1 %2302 }
 0x1ee   :  { %1935 = vrot.lane.b32.xlu1 %v1927_v57, %s6397_s13  ;;  %v1748_v57 = vmul.f32 %v1739_v0, %v7105_v34  ;;  %v1824_v48 = vmul.f32 %v1815_v47, %v7107_v23  ;;  %v7194_v47 = vmul.f32 %v1868_v43, %v7178_v52 }
 0x1ef   :  { %v7196_v29 = vpop.permute.xlu0 %2633 }
 0x1f0   :  { %9297 = vst [vmem:[#allocation32_spill] sm:$0xff] %v7194_v47  ;;  %9298 = vst [vmem:[#allocation49_spill] sm:$0xff] %v7196_v29 }
 0x1f1   :  { %1833 = vrot.lane.b32.xlu0 %v1822_v28, %s9243_s9  ;;  %v1537_v28 = vsel %vm9246_vm13, %v9296_v51, %v7046_v27 }
 0x1f2   :  { %1688 = vrot.lane.b32.xlu1 %v1679_v32, %s6394_s0  ;;  %v1604_v32 = vsel %vm9245_vm12, %v6907_v31, %v7042_v1  ;;  %v1545_v0 = vmul.f32 %v1537_v28, %v7105_v34  ;;  %v1741_v31 = vsel %vm1738_vm11, %v7036_v13, %v7044_v14  ;;  %v9300_v28 = vld [vmem:[#allocation29_spill] sm:$0xff] }
 0x1f3   :  { %v1612_v63 = vmul.f32 %v1604_v32, %v7105_v34  ;;  %v1750_v51 = vmul.f32 %v1741_v31, %v7107_v23  ;;  %v7218_v47 = vpop.permute.xlu0 %2434 }
 0x1f5   :  { %1759 = vrot.lane.b32.xlu0 %v1748_v57, %s6395_s5  ;;  %v7202_v57 = vpop.permute.xlu1 %2306 }
 0x1f6   :  { %1837 = vrot.lane.b32.xlu1 %v1824_v48, %s9243_s9  ;;  %v9299_v48 = vld [vmem:[#allocation35_spill] sm:$0xff] }
 0x1f7   :  { %v1471_v32 = vsel %vm9247_vm14, %v9299_v48, %v7050_v30  ;;  %v7234_v29 = vpop.permute.xlu0 %2568 }
 0x1f8   :  { %v1479_v43 = vmul.f32 %v1471_v32, %v7105_v34  ;;  %9302 = vst [vmem:[#allocation35_spill] sm:$0xff] %v7234_v29 }
 0x1f9   :  { %1621 = vrot.lane.b32.xlu0 %v1612_v63, %s6417_s22  ;;  %v1673_v63 = vsel %vm1670_vm10, %v9300_v28, %v7048_v24  ;;  %v7221_v31 = vpop.permute.xlu1 %2237 }
 0x1fa   :  { %1554 = vrot.lane.b32.xlu1 %v1545_v0, %s6416_s26  ;;  %v1404_v0 = vsel %vm9248_vm15, %v6968_v21, %v7054_v17  ;;  %v1681_v48 = vmul.f32 %v1673_v63, %v7107_v23  ;;  %v1337_v21 = vsel %vm9249_vm0, %v6983_v60, %v7058_v3  ;;  %v1270_v60 = vsel %vm9250_vm1, %v6998_v41, %v7062_v33 }
 0x1fb   :  { %v1412_v32 = vmul.f32 %v1404_v0, %v7105_v34  ;;  %v1345_v63 = vmul.f32 %v1337_v21, %v7105_v34  ;;  %v9303_v0 = vld [vmem:[#allocation33_spill] sm:$0xff]  ;;  %v1203_v21 = vsel %vm9242_vm2, %v7016_v42, %v7068_v2  ;;  %v1136_v42 = vsel %vm9239_vm6, %v7025_v62, %v7076_v10  ;;  %v9307_v62 = vld [vmem:[#allocation38_spill] sm:$0xff] }
 0x1fd   :  { %1763 = vrot.lane.b32.xlu0 %v1750_v51, %s6395_s5  ;;  %v9301_v51 = vld [vmem:[#allocation31_spill] sm:$0xff] }
 0x1fe   :  { %1488 = vrot.lane.b32.xlu1 %v1479_v43, %s6415_s18  ;;  %v1606_v24 = vsel %vm9245_vm12, %v9301_v51, %v7052_v37  ;;  %v7240_v37 = vpop.permute.xlu1 %2241 }
 0x1ff   :  { %v1614_v43 = vmul.f32 %v1606_v24, %v7107_v23  ;;  %v1278_v24 = vmul.f32 %v1270_v60, %v7105_v34  ;;  %v1211_v60 = vmul.f32 %v1203_v21, %v7105_v34  ;;  %v1069_v21 = vsel %vm9236_vm5, %v7032_v54, %v7084_v8 }
 0x200   :  { %v1077_v54 = vmul.f32 %v1069_v21, %v7105_v34 }
 0x201   :  { %1692 = vrot.lane.b32.xlu0 %v1681_v48, %s6394_s0  ;;  %v1539_v48 = vsel %vm9246_vm13, %v9303_v0, %v7056_v5  ;;  %v9304_v5 = vld [vmem:[#allocation36_spill] sm:$0xff] }
 0x202   :  { %1421 = vrot.lane.b32.xlu1 %v1412_v32, %s6414_s16  ;;  %v1547_v32 = vmul.f32 %v1539_v48, %v7107_v23  ;;  %v7259_v48 = vpop.permute.xlu1 %2172 }
 0x205   :  { %1625 = vrot.lane.b32.xlu0 %v1614_v43, %s6417_s22  ;;  %v1473_v43 = vsel %vm9247_vm14, %v9304_v5, %v7060_v46 }
 0x206   :  { %1354 = vrot.lane.b32.xlu1 %v1345_v63, %s6413_s15  ;;  %v7256_v63 = vpop.permute.xlu0 %2369  ;;  %v1481_v41 = vmul.f32 %v1473_v43, %v7107_v23  ;;  %v1144_v43 = vmul.f32 %v1136_v42, %v7105_v34  ;;  %v1272_v42 = vsel %vm9250_vm1, %v7004_v4, %v7080_v38 }
 0x209   :  { %1558 = vrot.lane.b32.xlu0 %v1547_v32, %s6416_s26  ;;  %v9305_v32 = vld [vmem:[#allocation37_spill] sm:$0xff] }
 0x20a   :  { %1287 = vrot.lane.b32.xlu1 %v1278_v24, %s6412_s11  ;;  %v1406_v46 = vsel %vm9248_vm15, %v9305_v32, %v7064_v44  ;;  %v7275_v29 = vpop.permute.xlu0 %2503  ;;  %v7281_v44 = vpop.permute.xlu1 %2176 }
 0x20b   :  { %v1414_v24 = vmul.f32 %v1406_v46, %v7107_v23  ;;  %9306 = vst [vmem:[#allocation29_spill] sm:$0xff] %v7275_v29  ;;  %v1138_v46 = vsel %vm9239_vm6, %v7029_v9, %v7113_v35  ;;  %v1071_v35 = vsel %vm9236_vm5, %v7066_v40, %v7150_v11  ;;  %vm1159_vm5 = vcmask 236544   ;;  %v9315_v29 = vld [vmem:[#allocation42_spill] sm:$0xff] }
 0x20c   :  { %v1146_v38 = vmul.f32 %v1138_v46, %v7107_v23  ;;  %vm1226_vm6 = vcmask 228352  }
 0x20d   :  { %1492 = vrot.lane.b32.xlu0 %v1481_v41, %s6415_s18  ;;  %v1339_v41 = vsel %vm9249_vm0, %v9307_v62, %v7072_v26 }
 0x20e   :  { %1220 = vrot.lane.b32.xlu1 %v1211_v60, %s6411_s10  ;;  %v1347_v60 = vmul.f32 %v1339_v41, %v7107_v23  ;;  %v7294_v26 = vpop.permute.xlu0 %2304  ;;  %v7300_v41 = vpop.permute.xlu1 %2107 }
 0x20f   :  { %9308 = vst [vmem:[#allocation31_spill] sm:$0xff] %v7300_v41 }
 0x211   :  { %1425 = vrot.lane.b32.xlu0 %v1414_v24, %s6414_s16  ;;  %v1280_v24 = vmul.f32 %v1272_v42, %v7107_v23 }
 0x212   :  { %1153 = vrot.lane.b32.xlu1 %v1144_v43, %s6410_s2  ;;  %v1205_v43 = vsel %vm9242_vm2, %v7021_v61, %v7088_v19  ;;  %v1079_v19 = vmul.f32 %v1071_v35, %v7107_v23  ;;  %v7316_v46 = vpop.permute.xlu1 %2111  ;;  %vm1360_vm2 = vcmask 211968  }
 0x213   :  { %v1213_v21 = vmul.f32 %v1205_v43, %v7107_v23  ;;  %9311 = vst [vmem:[#allocation36_spill] sm:$0xff] %v7316_v46 }
 0x215   :  { %1358 = vrot.lane.b32.xlu0 %v1347_v60, %s6413_s15  ;;  %v9309_v60 = vld [vmem:[#allocation45_spill] sm:$0xff] }
 0x216   :  { %1086 = vrot.lane.b32.xlu1 %v1077_v54, %s6409_s1  ;;  %v2636_v42 = vsel %vm1092_vm3, %v9309_v60, %v7074_v36  ;;  %v7313_v54 = vpop.permute.xlu0 %2438  ;;  %v7323_v43 = vpop.permute.xlu1 %2178 }
 0x217   :  { %9310 = vst [vmem:[#allocation33_spill] sm:$0xff] %v7313_v54  ;;  %v2644_v11 = vmul.f32 %v2636_v42, %v7107_v23  ;;  %9313 = vst [vmem:[#allocation37_spill] sm:$0xff] %v7323_v43  ;;  %v9316_v42 = vld [vmem:[#allocation46_spill] sm:$0xff] }
 0x218   :  { %v2447_v36 = vmul.f32 %v9316_v42, %v7105_v34 }
 0x219   :  { %1291 = vrot.lane.b32.xlu0 %v1280_v24, %s6412_s11  ;;  %v9312_v24 = vld [vmem:[#allocation43_spill] sm:$0xff] }
 0x21a   :  { %1157 = vrot.lane.b32.xlu1 %v1146_v38, %s6410_s2  ;;  %v2512_v38 = vmul.f32 %v9312_v24, %v7105_v34  ;;  %v7326_v35 = vpop.permute.xlu0 %2239  ;;  %v7341_v43 = vpop.permute.xlu1 %1686 }
 0x21d   :  { %1224 = vrot.lane.b32.xlu0 %v1213_v21, %s6411_s10  ;;  %v9314_v21 = vld [vmem:[#allocation39_spill] sm:$0xff] }
 0x21e   :  { %1090 = vrot.lane.b32.xlu1 %v1079_v19, %s6409_s1  ;;  %v2642_v54 = vmul.f32 %v9314_v21, %v7105_v34  ;;  %v2571_v19 = vsel %vm1159_vm5, %v7135_v50, %v9315_v29  ;;  %v7344_v46 = vpop.permute.xlu0 %2373  ;;  %v7357_v29 = vpop.permute.xlu1 %1552 }
 0x21f   :  { %9318 = vst [vmem:[#allocation38_spill] sm:$0xff] %v7344_v46 }
 0x221   :  { %2654 = vrot.lane.b32.xlu0 %v2644_v11, %s6408_s28  ;;  %v2050_v11 = vsel %vm9241_vm4, %v6828_v49, %v6886_v16  ;;  %v9321_v16 = vld [vmem:[#allocation44_spill] sm:$0xff]  ;;  %vm1293_vm4 = vcmask 220160  }
 0x222   :  { %2520 = vrot.lane.b32.xlu1 %v2512_v38, %s6406_s23  ;;  %v2579_v38 = vmul.f32 %v2571_v19, %v7107_v23  ;;  %v2058_v41 = vmul.f32 %v2050_v11, %v7178_v52  ;;  %v2506_v19 = vsel %vm1226_vm6, %v7173_v20, %v9321_v16  ;;  %v7371_v46 = vpop.permute.xlu1 %1486 }
 0x225   :  { %2650 = vrot.lane.b32.xlu0 %v2642_v54, %s6408_s28  ;;  %v9320_v54 = vld [vmem:[#allocation41_spill] sm:$0xff] }
 0x226   :  { %2455 = vrot.lane.b32.xlu1 %v2447_v36, %s9317_s17  ;;  %v1920_v36 = vsel %vm1841_vm8, %v6847_v59, %v6922_v39  ;;  %v2577_v49 = vmul.f32 %v9320_v54, %v7105_v34  ;;  %v1814_v59 = vsel %vm1812_vm9, %v6869_v7, %v6965_v18  ;;  %v7364_v39 = vpop.permute.xlu0 %2174  ;;  %v1740_v7 = vsel %vm1738_vm11, %v6884_v15, %v7036_v13 }
 0x227   :  { %v1928_v11 = vmul.f32 %v1920_v36, %v7178_v52  ;;  %v1823_v36 = vmul.f32 %v1814_v59, %v7178_v52  ;;  %v1605_v15 = vsel %vm9245_vm12, %v7042_v1, %v9301_v51  ;;  %vm9327_vm12 = vcmask 818176  }
 0x229   :  { %2589 = vrot.lane.b32.xlu0 %v2579_v38, %s9319_s14  ;;  %v2441_v38 = vsel %vm1293_vm4, %v7218_v47, %v7115_v22 }
 0x22a   :  { %2067 = vrot.lane.b32.xlu1 %v2058_v41, %s6399_s7  ;;  %v2514_v41 = vmul.f32 %v2506_v19, %v7107_v23  ;;  %v2449_v18 = vmul.f32 %v2441_v38, %v7107_v23  ;;  %v1749_v19 = vmul.f32 %v1740_v7, %v7178_v52  ;;  %v7385_v59 = vpop.permute.xlu0 %2308  ;;  %v2635_v38 = vsel %vm1092_vm3, %v9314_v21, %v9309_v60 }
 0x22b   :  { %v2643_v51 = vmul.f32 %v2635_v38, %v7178_v52  ;;  %v2570_v60 = vsel %vm1159_vm5, %v9320_v54, %v7135_v50  ;;  %v2505_v50 = vsel %vm1226_vm6, %v9312_v24, %v7173_v20  ;;  %v1472_v20 = vsel %vm9247_vm14, %v7050_v30, %v9304_v5 }
 0x22c   :  { %v2513_v54 = vmul.f32 %v2505_v50, %v7178_v52  ;;  %vm1427_vm14 = vcmask 130048  }
 0x22d   :  { %2585 = vrot.lane.b32.xlu0 %v2577_v49, %s9319_s14  ;;  %v2376_v49 = vsel %vm1360_vm2, %v7256_v63, %v7156_v55 }
 0x22e   :  { %1937 = vrot.lane.b32.xlu1 %v1928_v11, %s6397_s13  ;;  %v7383_v11 = vpop.permute.xlu1 %1419  ;;  %v2384_v13 = vmul.f32 %v2376_v49, %v7107_v23  ;;  %v2578_v49 = vmul.f32 %v2570_v60, %v7178_v52 }
 0x231   :  { %2524 = vrot.lane.b32.xlu0 %v2514_v41, %s6406_s23  ;;  %v1613_v41 = vmul.f32 %v1605_v15, %v7178_v52  ;;  %v2440_v15 = vsel %vm1293_vm4, %v9316_v42, %v7218_v47  ;;  %v2375_v47 = vsel %vm1360_vm2, %v7139_v58, %v7256_v63  ;;  %v1405_v42 = vsel %vm9248_vm15, %v7054_v17, %v9305_v32  ;;  %v9323_v17 = vld [vmem:[#allocation27_spill] sm:$0xff]  ;;  %v9324_v32 = vld [vmem:[#allocation30_spill] sm:$0xff] }
 0x232   :  { %1835 = vrot.lane.b32.xlu1 %v1823_v36, %s9243_s9  ;;  %s9322_s9 = smov 102   ;;  %v1985_v36 = vsel %vm1767_vm7, %v6899_v25, %v6841_v56  ;;  %v7402_v7 = vpop.permute.xlu1 %1352  ;;  %v1672_v56 = vsel %vm1670_vm10, %v7038_v53, %v9300_v28  ;;  %v1538_v53 = vsel %vm9246_vm13, %v7046_v27, %v9303_v0  ;;  %v1480_v0 = vmul.f32 %v1472_v20, %v7178_v52 }
 0x233   :  { %v1993_v1 = vmul.f32 %v1985_v36, %v7178_v52  ;;  %v1680_v21 = vmul.f32 %v1672_v56, %v7178_v52  ;;  %v1546_v28 = vmul.f32 %v1538_v53, %v7178_v52  ;;  %v2448_v24 = vmul.f32 %v2440_v15, %v7178_v52  ;;  %v7458_v36 = vld [vmem:[#allocation3 + $0x20] sm:$0xff] }
 0x234   :  { %v1413_v5 = vmul.f32 %v1405_v42, %v7178_v52  ;;  %v1338_v63 = vsel %vm9249_vm0, %v7058_v3, %v9307_v62  ;;  %v9325_v62 = vld [vmem:[#allocation28_spill] sm:$0xff]  ;;  %vm9328_vm13 = vcmask 809984   ;;  %vm3664_vm15 = vcmask 326656  }
 0x235   :  { %2459 = vrot.lane.b32.xlu0 %v2449_v18, %s9317_s17  ;;  %v7404_v18 = vpop.permute.xlu0 %2109  ;;  %v1346_v60 = vmul.f32 %v1338_v63, %v7178_v52  ;;  %v1137_v20 = vsel %vm9328_vm13, %v7076_v10, %v7029_v9  ;;  %v2382_v9 = vmul.f32 %v7139_v58, %v7105_v34  ;;  %v9331_v58 = vld [vmem:[#allocation25_spill] sm:$0xff]  ;;  %vm9332_vm13 = vcmask 97280  }
 0x236   :  { %1761 = vrot.lane.b32.xlu1 %v1749_v19, %s6395_s5  ;;  %v7420_v19 = vpop.permute.xlu1 %1285  ;;  %vm9340_vm0 = vcmask 121856  }
 0x239   :  { %2394 = vrot.lane.b32.xlu0 %v2384_v13, %s9322_s9  ;;  %v7416_v25 = vpop.permute.xlu0 %2243 }
 0x23a   :  { %1623 = vrot.lane.b32.xlu1 %v1613_v41, %s6417_s22  ;;  %v7442_v27 = vpop.permute.xlu1 %1218  ;;  %v2383_v41 = vmul.f32 %v2375_v47, %v7178_v52 }
 0x23d   :  { %2002 = vrot.lane.b32.xlu0 %v1993_v1, %s6398_s21  ;;  %v7435_v13 = vpop.permute.xlu0 %2113  ;;  %v1987_v1 = vsel %vm1767_vm7, %v9324_v32, %v9323_v17 }
 0x23e   :  { %2652 = vrot.lane.b32.xlu1 %v2643_v51, %s6408_s28  ;;  %v7456_v38 = vpop.permute.xlu1 %1151  ;;  %v1995_v56 = vmul.f32 %v7458_v36, %v1987_v1 }
 0x241   :  { %1690 = vrot.lane.b32.xlu0 %v1680_v21, %s6394_s0  ;;  %v1832_v30 = vpop.permute.xlu0 %1831  ;;  %v1271_v21 = vsel %vm9250_vm1, %v7062_v33, %v7004_v4  ;;  %vm1560_vm1 = vcmask 113664  }
 0x242   :  { %2587 = vrot.lane.b32.xlu1 %v2578_v49, %s9319_s14  ;;  %v7475_v3 = vpop.permute.xlu1 %1084  ;;  %v9326_v49 = vld [vmem:[#allocation26_spill] sm:$0xff] }
 0x243   :  { %v1922_v50 = vsel %vm1841_vm8, %v9326_v49, %v9325_v62  ;;  %v9335_v49 = vld [vmem:[#allocation24_spill] sm:$0xff] }
 0x244   :  { %v1930_v15 = vmul.f32 %v7458_v36, %v1922_v50  ;;  %v1876_v50 = vrot.slane %v7095_v6, %v9335_v49 }
 0x245   :  { %1556 = vrot.lane.b32.xlu0 %v1546_v28, %s6416_s26  ;;  %v1758_v51 = vpop.permute.xlu0 %1757  ;;  %v1279_v28 = vmul.f32 %v1271_v21, %v7178_v52 }
 0x246   :  { %2522 = vrot.lane.b32.xlu1 %v2513_v54, %s6406_s23  ;;  %v1204_v54 = vsel %vm9327_vm12, %v7068_v2, %v7021_v61  ;;  %v1145_v2 = vmul.f32 %v1137_v20, %v7178_v52  ;;  %vm9329_vm12 = vcmask 801792  }
 0x247   :  { %v1212_v33 = vmul.f32 %v1204_v54, %v7178_v52  ;;  %v1070_v47 = vsel %vm9329_vm12, %v7084_v8, %v7066_v40  ;;  %v9330_v8 = vld [vmem:[#allocation34_spill] sm:$0xff]  ;;  %vm9334_vm12 = vcmask 121856  }
 0x248   :  { %v2052_v63 = vsel %vm9332_vm13, %v9331_v58, %v9330_v8  ;;  %v2245_v21 = vsel %vm9334_vm12, %v7221_v31, %v7326_v35  ;;  %vm9338_vm12 = vcmask 64512  }
 0x249   :  { %1490 = vrot.lane.b32.xlu0 %v1480_v0, %s6415_s18  ;;  %v1620_v53 = vpop.permute.xlu0 %1619  ;;  %v2060_v32 = vmul.f32 %v7458_v36, %v2052_v63  ;;  %v2253_v20 = vmul.f32 %v2245_v21, %v7178_v52 }
 0x24a   :  { %2457 = vrot.lane.b32.xlu1 %v2448_v24, %s9317_s17  ;;  %v1751_v24 = vmul.f32 %v7458_v36, %v7044_v14  ;;  %v2310_v14 = vsel %vm1427_vm14, %v7176_v45, %v7294_v26 }
 0x24b   :  { %v2318_v40 = vmul.f32 %v2310_v14, %v7178_v52  ;;  %v2181_v14 = vsel %vm1560_vm1, %v7364_v39, %v7281_v44 }
 0x24c   :  { %v2189_v8 = vmul.f32 %v2181_v14, %v7107_v23 }
 0x24d   :  { %1423 = vrot.lane.b32.xlu0 %v1413_v5, %s6414_s16  ;;  %v1078_v5 = vmul.f32 %v1070_v47, %v7178_v52  ;;  %v2252_v47 = vmul.f32 %v7221_v31, %v7105_v34 }
 0x24e   :  { %2392 = vrot.lane.b32.xlu1 %v2383_v41, %s9322_s9 }
 0x251   :  { %1356 = vrot.lane.b32.xlu0 %v1346_v60, %s6413_s15  ;;  %s9339_s15 = smov 113  }
 0x252   :  { %2006 = vrot.lane.b32.xlu1 %v1995_v56, %s6398_s21  ;;  %v2317_v56 = vmul.f32 %v7176_v45, %v7105_v34 }
 0x255   :  { %1289 = vrot.lane.b32.xlu0 %v1279_v28, %s6412_s11  ;;  %v1825_v28 = vmul.f32 %v7458_v36, %v7040_v12  ;;  %s9337_s11 = smov 1  }
 0x256   :  { %1941 = vrot.lane.b32.xlu1 %v1930_v15, %s6397_s13  ;;  %v9336_v15 = vld [vmem:[#allocation48_spill] sm:$0xff] }
 0x257   :  { %v7487_v4 = vpop.permute.xlu0 %2069 }
 0x258   :  { %v7493_v0 = vpop.permute.xlu1 %2065 }
 0x259   :  { %1222 = vrot.lane.b32.xlu0 %v1212_v33, %s6411_s10  ;;  %s9333_s10 = smov 112  }
 0x25a   :  { %1765 = vrot.lane.b32.xlu1 %v1751_v24, %s6395_s5 }
 0x25b   :  { %v7499_v61 = vpop.permute.xlu0 %2000 }
 0x25c   :  { %v7505_v42 = vpop.permute.xlu1 %2004 }
 0x25d   :  { %1155 = vrot.lane.b32.xlu0 %v1145_v2, %s6410_s2  ;;  %s9349_s2 = smov 115  }
 0x25e   :  { %2390 = vrot.lane.b32.xlu1 %v2382_v9, %s9322_s9  ;;  %v2180_v9 = vsel %vm1560_vm1, %v7259_v48, %v7364_v39  ;;  %v9343_v39 = vld [vmem:[#allocation36_spill] sm:$0xff] }
 0x25f   :  { %v7514_v10 = vpop.permute.xlu0 %1939 }
 0x260   :  { %v7517_v41 = vpop.permute.xlu1 %1935 }
 0x261   :  { %1088 = vrot.lane.b32.xlu0 %v1078_v5, %s6409_s1  ;;  %v2188_v5 = vmul.f32 %v2180_v9, %v7178_v52  ;;  %s9342_s1 = smov 114  }
 0x262   :  { %2327 = vrot.lane.b32.xlu1 %v2318_v40, %s9333_s10 }
 0x263   :  { %v7525_v17 = vpop.permute.xlu0 %1833 }
 0x264   :  { %v7530_v1 = vsel %vm1841_vm8, %v1832_v30, %v7525_v17  ;;  %v7532_v60 = vpop.permute.xlu1 %1688  ;;  %v1857_v30 = vld [vmem:[#allocation3 + $0x20] sm:$0xff] }
 0x265   :  { %1850 = vst [vmem:[#allocation4 + $0x160] sm:$0xff] %v7530_v1  ;;  %v7543_v62 = vsel %vm9332_vm13, %v7341_v43, %v7532_v60  ;;  %2071 = vrot.lane.b32.xlu0 %v2060_v32, %s6399_s7  ;;  %v1884_v54 = vmul.f32 %v1876_v50, %v1857_v30  ;;  %3665 = vst.msk [vmem:[#allocation3 + $0x20] sm:$0xff] %vm3664_vm15, %v9336_v15  ;;  %v2311_v43 = vsel %vm1427_vm14, %v7294_v26, %v7202_v57  ;;  %vm9252_vm13 = vcmask 105472  }
 0x266   :  { %1702 = vst [vmem:[#allocation4 + $0x120] sm:$0xff] %v7543_v62  ;;  %2325 = vrot.lane.b32.xlu1 %v2317_v56, %s9333_s10  ;;  %4482 = vst.msk [vmem:[#allocation3 + $0x20] sm:$0xff] %vm3664_vm15, %v9336_v15  ;;  %v2319_v26 = vmul.f32 %v2311_v43, %v7107_v23  ;;  %v2116_v63 = vsel %vm9252_vm13, %v7404_v18, %v9343_v39  ;;  %v2187_v32 = vmul.f32 %v7259_v48, %v7105_v34  ;;  %v9345_v56 = vld [vmem:[#allocation31_spill] sm:$0xff]  ;;  %v9346_v48 = vld [vmem:[#allocation49_spill] sm:$0xff] }
 0x267   :  { %v7550_v45 = vpop.permute.xlu0 %1759  ;;  %1888 = vst.msk [vmem:[#allocation4 + $0x198] sm:$0xff] %vm9338_vm12, %v1884_v54  ;;  %vm9341_vm15 = vmmov %vm9340_vm0  ;;  %v2115_v21 = vsel %vm9252_vm13, %v9345_v56, %v7404_v18  ;;  %v2124_v50 = vmul.f32 %v2116_v63, %v7107_v23  ;;  %v9347_v54 = vld [vmem:[#allocation40_spill] sm:$0xff]  ;;  %v9353_v63 = vld [vmem:[#allocation29_spill] sm:$0xff] }
 0x268   :  { %v7560_v6 = vsel %vm1767_vm7, %v1758_v51, %v7550_v45  ;;  %v7562_v33 = vpop.permute.xlu1 %1837  ;;  %v2246_v51 = vsel %vm9340_vm0, %v7326_v35, %v7240_v37  ;;  %vm9344_vm0 = vmmov %vm9338_vm12  ;;  %v2637_v15 = vsel %vm1092_vm3, %v9347_v54, %v9346_v48  ;;  %v2123_v18 = vmul.f32 %v2115_v21, %v7178_v52  ;;  %v9355_v48 = vld [vmem:[#allocation33_spill] sm:$0xff] }
 0x269   :  { %1776 = vst [vmem:[#allocation4 + $0x140] sm:$0xff] %v7560_v6  ;;  %1839 = vrot.lane.b32.xlu0 %v1825_v28, %s9337_s11  ;;  %v2254_v31 = vmul.f32 %v2246_v51, %v7107_v23  ;;  %vm9348_vm12 = vmmov %vm9344_vm0  ;;  %v2670_v23 = vld [vmem:[%s6463_s25 + $0x8] sm:$0xff]  ;;  %v9351_v51 = vld [vmem:[#allocation42_spill] sm:$0xff]  ;;  %v2442_v54 = vsel %vm1293_vm4, %v7115_v22, %v9355_v48 }
 0x26a   :  { %2262 = vrot.lane.b32.xlu1 %v2253_v20, %s9339_s15  ;;  %v2645_v20 = vmul.f32 %v2637_v15, %v7458_v36  ;;  %v2450_v22 = vmul.f32 %v2442_v54, %v7458_v36  ;;  %v2776_v54 = vld [vmem:[%s6468_s29 + $0x8] sm:$0xff] }
 0x26b   :  { %v7570_v12 = vpop.permute.xlu0 %1621 }
 0x26c   :  { %v7578_v24 = vsel %vm9252_vm13, %v1620_v53, %v7570_v12  ;;  %v7580_v2 = vpop.permute.xlu1 %1554 }
 0x26d   :  { %1635 = vst [vmem:[#allocation4 + $0x100] sm:$0xff] %v7578_v24  ;;  %v7591_v35 = vsel %vm1560_vm1, %v7357_v29, %v7580_v2  ;;  %2329 = vrot.lane.b32.xlu0 %v2319_v26, %s9333_s10  ;;  %v9350_v26 = vld [vmem:[#allocation35_spill] sm:$0xff] }
 0x26e   :  { %1568 = vst [vmem:[#allocation4 + $0xe0] sm:$0xff] %v7591_v35  ;;  %2260 = vrot.lane.b32.xlu1 %v2252_v47, %s9339_s15  ;;  %v2122_v47 = vmul.f32 %v9345_v56, %v7105_v34 }
 0x26f   :  { %v7596_v53 = vpop.permute.xlu0 %1763 }
 0x270   :  { %v7603_v40 = vpop.permute.xlu1 %1488 }
 0x271   :  { %v7608_v29 = vsel %vm9341_vm15, %v7371_v46, %v7603_v40  ;;  %2264 = vrot.lane.b32.xlu0 %v2254_v31, %s9339_s15  ;;  %vm9251_vm15 = vcmask 588800   ;;  %v9352_v31 = vld [vmem:[#allocation37_spill] sm:$0xff] }
 0x272   :  { %1501 = vst [vmem:[#allocation4 + $0xc0] sm:$0xff] %v7608_v29  ;;  %2197 = vrot.lane.b32.xlu1 %v2188_v5, %s9342_s1  ;;  %5836 = vmatprep.mubr.msk.f32.mxu0 %vm9251_vm15, %v2670_v23  ;;  %v2182_v14 = vsel %vm1560_vm1, %v7281_v44, %v9352_v31  ;;  %v2507_v44 = vsel %vm1226_vm6, %v9321_v16, %v9353_v63  ;;  %v3084_v63 = vld [vmem:[%s6473_s3 + $0x8] sm:$0xff] }
 0x273   :  { %v7614_v58 = vpop.permute.xlu0 %1692  ;;  %5839 = vmatprep.mubr.msk.f32.mxu1 %vm9251_vm15, %v2670_v23  ;;  %v2515_v21 = vmul.f32 %v2507_v44, %v7458_v36  ;;  %v2777_v23 = vld [vmem:[%s6468_s29 + $0x10] sm:$0x1f]  ;;  %v2312_v31 = vsel %vm1427_vm14, %v7202_v57, %v7385_v59  ;;  %vm9359_vm15 = vcmask 121856  }
 0x274   :  { %1705 = vst.msk [vmem:[#allocation4 + $0x138] sm:$0xff] %vm9344_vm0, %v7614_v58  ;;  %v7621_v46 = vpop.permute.xlu1 %1421  ;;  %v2247_v57 = vsel %vm9359_vm15, %v7240_v37, %v7416_v25  ;;  %v2117_v37 = vsel %vm9252_vm13, %v9343_v39, %v7435_v13  ;;  %v3113_v39 = vld [vmem:[%s6478_s8] sm:$0xff]  ;;  %vm9361_vm15 = vcmask 801792  }
 0x275   :  { %v7631_v30 = vsel %vm1427_vm14, %v7383_v11, %v7621_v46  ;;  %2199 = vrot.lane.b32.xlu0 %v2189_v8, %s9342_s1  ;;  %v2255_v44 = vmul.f32 %v7458_v36, %v2247_v57 }
 0x276   :  { %1435 = vst [vmem:[#allocation4 + $0xa0] sm:$0xff] %v7631_v30  ;;  %2195 = vrot.lane.b32.xlu1 %v2187_v32, %s9342_s1  ;;  %v2190_v32 = vmul.f32 %v7458_v36, %v2182_v14 }
 0x277   :  { %v7637_v28 = vpop.permute.xlu0 %1625 }
 0x278   :  { %1638 = vst.msk [vmem:[#allocation4 + $0x118] sm:$0xff] %vm9348_vm12, %v7637_v28  ;;  %v7645_v11 = vpop.permute.xlu1 %1354  ;;  %vm9354_vm12 = vmmov %vm9344_vm0 }
 0x279   :  { %v7650_v43 = vsel %vm1360_vm2, %v7402_v7, %v7645_v11  ;;  %2134 = vrot.lane.b32.xlu0 %v2124_v50, %s9349_s2  ;;  %v2572_v7 = vsel %vm1159_vm5, %v9351_v51, %v9350_v26  ;;  %v2775_v50 = vld [vmem:[%s6468_s29] sm:$0xff]  ;;  %s6420_s29 = smov 123  }
 0x27a   :  { %1368 = vst [vmem:[#allocation4 + $0x80] sm:$0xff] %v7650_v43  ;;  %2132 = vrot.lane.b32.xlu1 %v2123_v18, %s9349_s2  ;;  %v2580_v8 = vmul.f32 %v2572_v7, %v7458_v36 }
 0x27b   :  { %v7657_v52 = vpop.permute.xlu0 %1558 }
 0x27c   :  { %1571 = vst.msk [vmem:[#allocation4 + $0xf8] sm:$0xff] %vm9344_vm0, %v7657_v52  ;;  %v7668_v9 = vpop.permute.xlu1 %1287 }
 0x27d   :  { %v7676_v5 = vsel %vm1293_vm4, %v7420_v19, %v7668_v9  ;;  %2656 = vrot.lane.b32.xlu0 %v2645_v20, %s6408_s28  ;;  %v9356_v20 = vld [vmem:[#allocation38_spill] sm:$0xff]  ;;  %s6427_s28 = smov 6  }
 0x27e   :  { %1301 = vst [vmem:[#allocation4 + $0x60] sm:$0xff] %v7676_v5  ;;  %2130 = vrot.lane.b32.xlu1 %v2122_v47, %s9349_s2  ;;  %v2377_v26 = vsel %vm1360_vm2, %v7156_v55, %v9356_v20  ;;  %v3083_v47 = vld [vmem:[%s6473_s3] sm:$0xff] }
 0x27f   :  { %v7681_v34 = vpop.permute.xlu0 %1492  ;;  %v2385_v55 = vmul.f32 %v2377_v26, %v7458_v36 }
 0x280   :  { %1504 = vst.msk [vmem:[#allocation4 + $0xd8] sm:$0xff] %vm9354_vm12, %v7681_v34  ;;  %v7690_v19 = vpop.permute.xlu1 %1220  ;;  %vm9357_vm12 = vmmov %vm9344_vm0 }
 0x281   :  { %v7695_v56 = vsel %vm1226_vm6, %v7442_v27, %v7690_v19  ;;  %2591 = vrot.lane.b32.xlu0 %v2580_v8, %s9319_s14  ;;  %s9439_s14 = sld [smem:[#allocation10_spill]] }
 0x282   :  { %1234 = vst [vmem:[#allocation4 + $0x40] sm:$0xff] %v7695_v56  ;;  %2201 = vrot.lane.b32.xlu1 %v2190_v32, %s9342_s1 }
 0x283   :  { %v7700_v16 = vpop.permute.xlu0 %1425 }
 0x284   :  { %1438 = vst.msk [vmem:[#allocation4 + $0xb8] sm:$0xff] %vm9344_vm0, %v7700_v16  ;;  %v7709_v27 = vpop.permute.xlu1 %1153 }
 0x285   :  { %v7714_v15 = vsel %vm1159_vm5, %v7456_v38, %v7709_v27  ;;  %2526 = vrot.lane.b32.xlu0 %v2515_v21, %s6406_s23  ;;  %v2125_v21 = vmul.f32 %v7458_v36, %v2117_v37  ;;  %s6426_s23 = smov 9  }
 0x286   :  { %1167 = vst [vmem:[#allocation4 + $0x20] sm:$0xff] %v7714_v15  ;;  %2780 = vperm.xlu1 %6247, %v2775_v50  }
 0x287   :  { %v7718_v18 = vpop.permute.xlu0 %1358 }
 0x288   :  { %1371 = vst.msk [vmem:[#allocation4 + $0x98] sm:$0xff] %vm9357_vm12, %v7718_v18  ;;  %v7727_v38 = vpop.permute.xlu1 %1086  ;;  %vm9358_vm12 = vmmov %vm9344_vm0 }
 0x289   :  { %v7732_v51 = vsel %vm1092_vm3, %v7475_v3, %v7727_v38  ;;  %2461 = vrot.lane.b32.xlu0 %v2450_v22, %s9317_s17  ;;  %v2320_v3 = vmul.f32 %v2312_v31, %v7458_v36  ;;  %s6428_s17 = smov 7  }
 0x28a   :  { %1100 = vst [vmem:[#allocation4] sm:$0xff] %v7732_v51  ;;  %2790 = vperm.xlu1 %6247, %v2777_v23  }
 0x28b   :  { %v7736_v7 = vpop.permute.xlu0 %1291 }
 0x28c   :  { %1304 = vst.msk [vmem:[#allocation4 + $0x78] sm:$0xff] %vm9344_vm0, %v7736_v7  ;;  %v7745_v14 = vpop.permute.xlu1 %1157 }
 0x28d   :  { %1170 = vst.msk [vmem:[#allocation4 + $0x38] sm:$0xff] %vm9358_vm12, %v7745_v14  ;;  %2396 = vrot.lane.b32.xlu0 %v2385_v55, %s9322_s9  ;;  %vm9360_vm12 = vmmov %vm9344_vm0  ;;  %s6425_s9 = smov 8  }
 0x28e   :  { %3088 = vperm.xlu1 %6247, %v3083_v47  }
 0x28f   :  { %v7751_v8 = vpop.permute.xlu0 %1224 }
 0x290   :  { %1237 = vst.msk [vmem:[#allocation4 + $0x58] sm:$0xff] %vm9344_vm0, %v7751_v8  ;;  %v7759_v59 = vpop.permute.xlu1 %1090  ;;  %vm9362_vm0 = vmmov %vm9361_vm15 }
 0x291   :  { %1103 = vst.msk [vmem:[#allocation4 + $0x18] sm:$0xff] %vm9360_vm12, %v7759_v59  ;;  %2331 = vrot.lane.b32.xlu0 %v2320_v3, %s9333_s10  ;;  %vm9363_vm12 = vcmask 97280  }
 0x292   :  { %3093 = vperm.xlu1 %6247, %v3084_v63  }
 0x293   :  { %v7765_v32 = vpop.permute.xlu0 %2654 }
 0x294   :  { %v2521_v25 = vpop.permute.xlu1 %2520 }
 0x295   :  { %2266 = vrot.lane.b32.xlu0 %v2255_v44, %s9339_s15 }
 0x297   :  { %v2651_v50 = vpop.permute.xlu0 %2650 }
 0x298   :  { %v7772_v48 = vpop.permute.xlu1 %2455 }
 0x299   :  { %2136 = vrot.lane.b32.xlu0 %v2125_v21, %s9349_s2 }
 0x29b   :  { %v7776_v22 = vpop.permute.xlu0 %2589 }
 0x29c   :  { %v2068_v23 = vpop.permute.xlu1 %2067 }
 0x29d   :  { %v2073_v20 = vsel %vm1670_vm10, %v7493_v0, %v2068_v23  ;;  %v2074_v13 = vsel %vm1670_vm10, %v2068_v23, %v7487_v4  ;;  %2785 = vperm.xlu0 %6246, %v2776_v54  }
 0x29e   :  { %2080 = vst [vmem:[#allocation4 + $0x1e0] sm:$0xff] %v2073_v20  ;;  %2803 = vmatprep.subr.mxu0 %v2074_v13 }
 0x29f   :  { %v2586_v36 = vpop.permute.xlu0 %2585  ;;  %2804 = vmatpush1.msra.mxu0 %v2073_v20 }
 0x2a0   :  { %v1938_v26 = vpop.permute.xlu1 %1937 }
 0x2a1   :  { %v1943_v55 = vsel %vm1812_vm9, %v7517_v41, %v1938_v26  ;;  %v1944_v47 = vsel %vm1812_vm9, %v1938_v26, %v7514_v10  ;;  %3118 = vperm.xlu0 %6246, %v3113_v39  }
 0x2a2   :  { %1950 = vst [vmem:[#allocation4 + $0x1a0] sm:$0xff] %v1943_v55 }
 0x2a3   :  { %v7787_v31 = vpop.permute.xlu0 %2524 }
 0x2a4   :  { %v1836_v0 = vpop.permute.xlu1 %1835 }
 0x2a5   :  { %v1843_v3 = vsel %vm1841_vm8, %v7525_v17, %v1836_v0  ;;  %v7793_v63 = vsel %vm1841_vm8, %v1836_v0, %v7562_v33 }
 0x2a7   :  { %v7795_v57 = vpop.permute.xlu0 %2459 }
 0x2a8   :  { %v1762_v44 = vpop.permute.xlu1 %1761 }
 0x2a9   :  { %v1769_v41 = vsel %vm1767_vm7, %v7550_v45, %v1762_v44  ;;  %v7801_v37 = vsel %vm1767_vm7, %v1762_v44, %v7596_v53 }
 0x2ab   :  { %v7803_v21 = vpop.permute.xlu0 %2394 }
 0x2ac   :  { %v1624_v54 = vpop.permute.xlu1 %1623 }
 0x2ad   :  { %v1629_v17 = vsel %vm9252_vm13, %v7570_v12, %v1624_v54  ;;  %v7809_v23 = vsel %vm9252_vm13, %v1624_v54, %v7637_v28  ;;  %vm9364_vm13 = vmmov %vm9363_vm12 }
 0x2af   :  { %v2003_v20 = vpop.permute.xlu0 %2002 }
 0x2b0   :  { %v2008_v13 = vsel %vm1738_vm11, %v7499_v61, %v2003_v20  ;;  %v2009_v45 = vsel %vm1738_vm11, %v2003_v20, %v7505_v42  ;;  %v2653_v39 = vpop.permute.xlu1 %2652  ;;  %v9367_v20 = vld [vmem:[#allocation32_spill] sm:$0xff] }
 0x2b1   :  { %2015 = vst [vmem:[#allocation4 + $0x1c0] sm:$0xff] %v2008_v13  ;;  %v7816_v26 = vsel %vm9361_vm15, %v2651_v50, %v2653_v39  ;;  %v7820_v0 = vsel %vm9362_vm0, %v2653_v39, %v7765_v32  ;;  %2805 = vmatprep.subr.mxu0 %v2009_v45  ;;  %vm9365_vm15 = vcmask 809984  }
 0x2b2   :  { %2665 = vst [vmem:[#allocation4 + $0x300] sm:$0xff] %v7816_v26  ;;  %2806 = vmatpush1.msra.mxu0 %v2008_v13  ;;  %vm9366_vm0 = vmmov %vm9365_vm15 }
 0x2b3   :  { %v1691_v12 = vpop.permute.xlu0 %1690  ;;  %2807 = vmatprep.subr.mxu0 %v1944_v47  ;;  %v9368_v47 = vld [vmem:[#allocation47_spill] sm:$0xff] }
 0x2b4   :  { %v1696_v61 = vsel %vm9363_vm12, %v7532_v60, %v1691_v12  ;;  %v7827_v28 = vsel %vm9364_vm13, %v1691_v12, %v7614_v58  ;;  %v2588_v44 = vpop.permute.xlu1 %2587  ;;  %2808 = vmatpush1.msra.mxu0 %v1943_v55  ;;  %vm9369_vm13 = vcmask 818176  }
 0x2b5   :  { %v7830_v50 = vsel %vm9365_vm15, %v2586_v36, %v2588_v44  ;;  %v7834_v54 = vsel %vm9366_vm0, %v2588_v44, %v7776_v22  ;;  %2809 = vmatprep.subr.mxu0 %v9367_v20  ;;  %vm9370_vm12 = vmmov %vm9369_vm13  ;;  %vm9371_vm15 = vcmask 121856  }
 0x2b6   :  { %2600 = vst [vmem:[#allocation4 + $0x2e0] sm:$0xff] %v7830_v50  ;;  %2810 = vmatpush1.msra.mxu0 %v9368_v47  ;;  %vm9372_vm0 = vmmov %vm9371_vm15 }
 0x2b7   :  { %v1557_v60 = vpop.permute.xlu0 %1556  ;;  %2811 = vmatprep.subr.mxu0 %v1843_v3 }
 0x2b8   :  { %v1562_v58 = vsel %vm1560_vm1, %v7580_v2, %v1557_v60  ;;  %v7843_v55 = vsel %vm1560_vm1, %v1557_v60, %v7657_v52  ;;  %v2523_v36 = vpop.permute.xlu1 %2522  ;;  %2812 = vmatpush1.msra.mxu0 %v7530_v1 }
 0x2b9   :  { %v7847_v13 = vsel %vm9369_vm13, %v2521_v25, %v2523_v36  ;;  %v7851_v45 = vsel %vm9370_vm12, %v2523_v36, %v7787_v31  ;;  %2813 = vmatprep.subr.mxu0 %v1769_v41  ;;  %vm9373_vm13 = vcmask 826368   ;;  %v2726_v36 = vld [vmem:[#allocation4 + $0x198] sm:$0xff] }
 0x2ba   :  { %2535 = vst [vmem:[#allocation4 + $0x2c0] sm:$0xff] %v7847_v13  ;;  %2814 = vmatpush1.msra.mxu0 %v7560_v6  ;;  %vm9374_vm12 = vmmov %vm9373_vm13 }
 0x2bb   :  { %v1491_v2 = vpop.permute.xlu0 %1490  ;;  %2815 = vmatprep.subr.mxu0 %v1696_v61 }
 0x2bc   :  { %v1495_v52 = vsel %vm9371_vm15, %v7603_v40, %v1491_v2  ;;  %v7859_v1 = vsel %vm9372_vm0, %v1491_v2, %v7681_v34  ;;  %v2458_v25 = vpop.permute.xlu1 %2457  ;;  %2816 = vmatpush1.msra.mxu0 %v7543_v62  ;;  %vm9375_vm15 = vcmask 834560   ;;  %vm9376_vm0 = vcmask 64512   ;;  %v2725_v2 = vld [vmem:[#allocation4 + $0x190] sm:$0xff] }
 0x2bd   :  { %v7864_v3 = vsel %vm9373_vm13, %v7772_v48, %v2458_v25  ;;  %v7868_v41 = vsel %vm9374_vm12, %v2458_v25, %v7795_v57  ;;  %2817 = vmatprep.subr.mxu0 %v1629_v17  ;;  %vm9384_vm13 = vcmask 924672  }
 0x2be   :  { %2470 = vst [vmem:[#allocation4 + $0x2a0] sm:$0xff] %v7864_v3  ;;  %2818 = vmatpush1.msra.mxu0 %v7578_v24  ;;  %vm9385_vm12 = vmmov %vm9384_vm13 }
 0x2bf   :  { %v1424_v6 = vpop.permute.xlu0 %1423  ;;  %2819 = vmatprep.subr.mxu0 %v1562_v58 }
 0x2c0   :  { %v1429_v40 = vsel %vm1427_vm14, %v7621_v46, %v1424_v6  ;;  %v7876_v62 = vsel %vm1427_vm14, %v1424_v6, %v7700_v16  ;;  %v2393_v34 = vpop.permute.xlu1 %2392  ;;  %2820 = vmatpush1.msra.mxu0 %v7591_v35 }
 0x2c1   :  { %v2399_v48 = vsel %vm9375_vm15, %v2393_v34, %v7803_v21  ;;  %2821 = vmatprep.subr.mxu0 %v1495_v52 }
 0x2c2   :  { %2822 = vmatpush1.msra.mxu0 %v7608_v29 }
 0x2c3   :  { %v1357_v17 = vpop.permute.xlu0 %1356  ;;  %2823 = vmatprep.subr.mxu0 %v1429_v40 }
 0x2c4   :  { %v1362_v24 = vsel %vm1360_vm2, %v7645_v11, %v1357_v17  ;;  %v7886_v46 = vsel %vm1360_vm2, %v1357_v17, %v7718_v18  ;;  %v2007_v16 = vpop.permute.xlu1 %2006  ;;  %2824 = vmatpush1.msra.mxu0 %v7631_v30  ;;  %vm9379_vm2 = vmmov %vm9375_vm15  ;;  %vm9386_vm15 = vcmask 932864  }
 0x2c5   :  { %v7891_v35 = vsel %vm1738_vm11, %v7505_v42, %v2007_v16  ;;  %2018 = vst.msk [vmem:[#allocation4 + $0x1d8] sm:$0xff] %vm9376_vm0, %v2007_v16  ;;  %2825 = vmatprep.subr.mxu0 %v1362_v24  ;;  %vm9377_vm11 = vmmov %vm9376_vm0 }
 0x2c6   :  { %2826 = vmatpush1.msra.mxu0 %v7650_v43 }
 0x2c7   :  { %v1290_v29 = vpop.permute.xlu0 %1289 }
 0x2c8   :  { %v1295_v11 = vsel %vm1293_vm4, %v7668_v9, %v1290_v29  ;;  %v7899_v18 = vsel %vm1293_vm4, %v1290_v29, %v7736_v7  ;;  %v1942_v39 = vpop.permute.xlu1 %1941  ;;  %vm9378_vm4 = vmmov %vm9376_vm0 }
 0x2c9   :  { %v7903_v30 = vsel %vm1812_vm9, %v7514_v10, %v1942_v39  ;;  %1953 = vst.msk [vmem:[#allocation4 + $0x1b8] sm:$0xff] %vm9377_vm11, %v1942_v39  ;;  %2827 = vmatprep.subr.mxu0 %v1295_v11  ;;  %vm9388_vm11 = vcmask 941056   ;;  %v7972_v11 = vld [vmem:[%s6463_s25] sm:$0xff] }
 0x2ca   :  { %2828 = vmatpush1.msra.mxu0 %v7676_v5 }
 0x2cb   :  { %v1223_v42 = vpop.permute.xlu0 %1222 }
 0x2cc   :  { %v1228_v43 = vsel %vm1226_vm6, %v7690_v19, %v1223_v42  ;;  %v7911_v9 = vsel %vm1226_vm6, %v1223_v42, %v7751_v8  ;;  %v1766_v7 = vpop.permute.xlu1 %1765  ;;  %vm9381_vm6 = vcmask 916480   ;;  %v2734_v47 = vld [vmem:[#allocation4 + $0x1d8] sm:$0xff] }
 0x2cd   :  { %v1771_v12 = vsel %vm1767_vm7, %v7596_v53, %v1766_v7  ;;  %2829 = vmatprep.subr.mxu0 %v1228_v43 }
 0x2ce   :  { %1779 = vst.msk [vmem:[#allocation4 + $0x158] sm:$0xff] %vm9378_vm4, %v1771_v12  ;;  %2830 = vmatpush1.msra.mxu0 %v7695_v56  ;;  %vm9389_vm4 = vcmask 801792   ;;  %v7995_v12 = vld [vmem:[%s6463_s25 + $0x28] sm:$0x1f] }
 0x2cf   :  { %v1156_v10 = vpop.permute.xlu0 %1155 }
 0x2d0   :  { %v1161_v5 = vsel %vm1159_vm5, %v7709_v27, %v1156_v10  ;;  %v7921_v19 = vsel %vm1159_vm5, %v1156_v10, %v7745_v14  ;;  %v2391_v61 = vpop.permute.xlu1 %2390  ;;  %vm9380_vm5 = vmmov %vm9376_vm0  ;;  %v2730_v58 = vld [vmem:[#allocation4 + $0x1b8] sm:$0xff] }
 0x2d1   :  { %v2398_v8 = vsel %vm9379_vm2, %v2391_v61, %v2393_v34  ;;  %2831 = vmatprep.subr.mxu0 %v1161_v5  ;;  %v2690_v10 = vld [vmem:[#allocation4 + $0x78] sm:$0xff] }
 0x2d2   :  { %2405 = vst [vmem:[#allocation4 + $0x280] sm:$0xff] %v2398_v8  ;;  %2832 = vmatpush1.msra.mxu0 %v7714_v15  ;;  %v2686_v61 = vld [vmem:[#allocation4 + $0x58] sm:$0xff] }
 0x2d3   :  { %v1089_v53 = vpop.permute.xlu0 %1088 }
 0x2d4   :  { %v1094_v44 = vsel %vm1092_vm3, %v7727_v38, %v1089_v53  ;;  %v7929_v56 = vsel %vm1092_vm3, %v1089_v53, %v7759_v59  ;;  %v2328_v27 = vpop.permute.xlu1 %2327  ;;  %vm9382_vm3 = vmmov %vm9376_vm0 }
 0x2d5   :  { %2833 = vmatprep.subr.mxu0 %v1094_v44  ;;  %vm9387_vm0 = vmmov %vm9386_vm15  ;;  %v2718_v40 = vld [vmem:[#allocation4 + $0x158] sm:$0xff] }
 0x2d6   :  { %2834 = vmatpush1.msra.mxu0 %v7732_v51  ;;  %vm9390_vm2 = vmmov %vm9382_vm3 }
 0x2d7   :  { %v2072_v14 = vpop.permute.xlu0 %2071  ;;  %2849 = vmatprep.subr.mxu0 %v7820_v0 }
 0x2d8   :  { %v2075_v20 = vsel %vm1670_vm10, %v7487_v4, %v2072_v14  ;;  %2083 = vst.msk [vmem:[#allocation4 + $0x1f8] sm:$0xff] %vm9380_vm5, %v2072_v14  ;;  %v2326_v15 = vpop.permute.xlu1 %2325  ;;  %2850 = vmatpush2.msra.mxu0 %v7816_v26  ;;  %vm9383_vm10 = vmmov %vm9381_vm6 }
 0x2d9   :  { %v2333_v38 = vsel %vm9381_vm6, %v2326_v15, %v2328_v27  ;;  %2851 = vmatprep.subr.mxu0 %v7834_v54  ;;  %vm9391_vm5 = vmmov %vm9388_vm11  ;;  %vm9392_vm6 = vcmask 809984  }
 0x2da   :  { %2340 = vst [vmem:[#allocation4 + $0x260] sm:$0xff] %v2333_v38  ;;  %2852 = vmatpush2.msra.mxu0 %v7830_v50 }
 0x2db   :  { %v1840_v59 = vpop.permute.xlu0 %1839  ;;  %2853 = vmatprep.subr.mxu0 %v7851_v45 }
 0x2dc   :  { %v1845_v51 = vsel %vm1841_vm8, %v7562_v33, %v1840_v59  ;;  %v2263_v0 = vpop.permute.xlu1 %2262  ;;  %2854 = vmatpush2.msra.mxu0 %v7847_v13 }
 0x2dd   :  { %1853 = vst.msk [vmem:[#allocation4 + $0x178] sm:$0xff] %vm9382_vm3, %v1845_v51  ;;  %2855 = vmatprep.subr.mxu0 %v7868_v41  ;;  %vm9393_vm3 = vmmov %vm9390_vm2 }
 0x2de   :  { %2856 = vmatpush2.msra.mxu0 %v7864_v3 }
 0x2df   :  { %v7947_v4 = vpop.permute.xlu0 %2329  ;;  %v2738_v26 = vld [vmem:[#allocation4 + $0x1f8] sm:$0xff]  ;;  %2857 = vmatprep.subr.mxu0 %v2399_v48 }
 0x2e0   :  { %v2334_v50 = vsel %vm9383_vm10, %v2328_v27, %v7947_v4  ;;  %v2261_v54 = vpop.permute.xlu1 %2260  ;;  %2886 = vmatprep.subr.mxu1 %v2738_v26  ;;  %2858 = vmatpush2.msra.mxu0 %v2398_v8  ;;  %v2714_v48 = vld [vmem:[#allocation4 + $0x138] sm:$0xff]  ;;  %vm9394_vm10 = vcmask 588800  }
 0x2e1   :  { %v2268_v33 = vsel %vm9384_vm13, %v2261_v54, %v2263_v0  ;;  %2887 = vmatpush1.msra.mxu1 %v2075_v20  ;;  %2859 = vmatprep.subr.mxu0 %v2334_v50  ;;  %vm9395_vm13 = vmmov %vm9387_vm0  ;;  %v8026_v50 = vld [vmem:[#allocation3 + $0x18] sm:$0xff] }
 0x2e2   :  { %2275 = vst [vmem:[#allocation4 + $0x240] sm:$0xff] %v2268_v33  ;;  %2888 = vmatprep.subr.mxu1 %v2734_v47  ;;  %2860 = vmatpush2.msra.mxu0 %v2333_v38 }
 0x2e3   :  { %v7952_v60 = vpop.permute.xlu0 %2264  ;;  %2889 = vmatpush1.msra.mxu1 %v7891_v35  ;;  %v2706_v35 = vld [vmem:[#allocation4 + $0xf8] sm:$0xff] }
 0x2e4   :  { %v2269_v13 = vsel %vm9385_vm12, %v2263_v0, %v7952_v60  ;;  %v2198_v45 = vpop.permute.xlu1 %2197  ;;  %2890 = vmatprep.subr.mxu1 %v2730_v58  ;;  %v2722_v25 = vld [vmem:[#allocation4 + $0x178] sm:$0xff]  ;;  %vm9396_vm12 = vmmov %vm9390_vm2 }
 0x2e5   :  { %2891 = vmatpush1.msra.mxu1 %v7903_v30  ;;  %2861 = vmatprep.subr.mxu0 %v2269_v13  ;;  %v7977_v30 = vld [vmem:[%s6463_s25 + $0x18] sm:$0xff] }
 0x2e6   :  { %2892 = vmatprep.subr.mxu1 %v2726_v36  ;;  %2862 = vmatpush2.msra.mxu0 %v2268_v33 }
 0x2e7   :  { %v2200_v52 = vpop.permute.xlu0 %2199  ;;  %2893 = vmatpush1.msra.mxu1 %v2725_v2 }
 0x2e8   :  { %v2204_v3 = vsel %vm9386_vm15, %v2198_v45, %v2200_v52  ;;  %v2196_v41 = vpop.permute.xlu1 %2195  ;;  %2894 = vmatprep.subr.mxu1 %v2722_v25  ;;  %vm9397_vm15 = vcmask 818176  }
 0x2e9   :  { %v2203_v6 = vsel %vm9387_vm0, %v2196_v41, %v2198_v45  ;;  %2895 = vmatpush1.msra.mxu1 %v7793_v63  ;;  %2863 = vmatprep.subr.mxu0 %v2204_v3  ;;  %v2710_v63 = vld [vmem:[#allocation4 + $0x118] sm:$0xff]  ;;  %vm9398_vm0 = vmmov %vm9390_vm2 }
 0x2ea   :  { %2210 = vst [vmem:[#allocation4 + $0x220] sm:$0xff] %v2203_v6  ;;  %2896 = vmatprep.subr.mxu1 %v2718_v40  ;;  %2864 = vmatpush2.msra.mxu0 %v2203_v6 }
 0x2eb   :  { %v7961_v34 = vpop.permute.xlu0 %2134  ;;  %2897 = vmatpush1.msra.mxu1 %v7801_v37 }
 0x2ec   :  { %v2133_v17 = vpop.permute.xlu1 %2132  ;;  %2898 = vmatprep.subr.mxu1 %v2714_v48 }
 0x2ed   :  { %v2139_v24 = vsel %vm9388_vm11, %v2133_v17, %v7961_v34  ;;  %2899 = vmatpush1.msra.mxu1 %v7827_v28  ;;  %v2702_v28 = vld [vmem:[#allocation4 + $0xd8] sm:$0xff]  ;;  %vm9399_vm11 = vmmov %vm9394_vm10 }
 0x2ee   :  { %2900 = vmatprep.subr.mxu1 %v2710_v63  ;;  %2865 = vmatprep.subr.mxu0 %v2139_v24 }
 0x2ef   :  { %v2657_v16 = vpop.permute.xlu0 %2656  ;;  %2901 = vmatpush1.msra.mxu1 %v7809_v23 }
 0x2f0   :  { %v2660_v37 = vsel %vm9389_vm4, %v7765_v32, %v2657_v16  ;;  %2668 = vst.msk [vmem:[#allocation4 + $0x318] sm:$0xff] %vm9390_vm2, %v2657_v16  ;;  %v2131_v29 = vpop.permute.xlu1 %2130  ;;  %2902 = vmatprep.subr.mxu1 %v2706_v35  ;;  %v2698_v32 = vld [vmem:[#allocation4 + $0xb8] sm:$0xff]  ;;  %vm9400_vm4 = vcmask 826368   ;;  %vm9401_vm2 = vmmov %vm9398_vm0 }
 0x2f1   :  { %v2138_v39 = vsel %vm9391_vm5, %v2131_v29, %v2133_v17  ;;  %2903 = vmatpush1.msra.mxu1 %v7843_v55  ;;  %v7987_v55 = vld [vmem:[%s6463_s25 + $0x10] sm:$0xff]  ;;  %vm9402_vm5 = vcmask 834560  }
 0x2f2   :  { %2145 = vst [vmem:[#allocation4 + $0x200] sm:$0xff] %v2138_v39  ;;  %2904 = vmatprep.subr.mxu1 %v2702_v28  ;;  %2866 = vmatpush2.msra.mxu0 %v2138_v39 }
 0x2f3   :  { %v2592_v23 = vpop.permute.xlu0 %2591  ;;  %2905 = vmatpush1.msra.mxu1 %v7859_v1  ;;  %2868 = vmatmul.mubr.f32.vlgmr.msra.gmra.mxu0 %v7972_v11  ;;  %v2694_v1 = vld [vmem:[#allocation4 + $0x98] sm:$0xff] }
 0x2f4   :  { %v2595_v42 = vsel %vm9392_vm6, %v7776_v22, %v2592_v23  ;;  %2603 = vst.msk [vmem:[#allocation4 + $0x2f8] sm:$0xff] %vm9393_vm3, %v2592_v23  ;;  %v2202_v43 = vpop.permute.xlu1 %2201  ;;  %2906 = vmatprep.subr.mxu1 %v2698_v32  ;;  %5837 = vmatprep.mubr.msk.f32.mxu0 %vm9394_vm10, %v7977_v30  ;;  %vm9403_vm6 = vmmov %vm9398_vm0  ;;  %vm9404_vm3 = vcmask 916480  }
 0x2f5   :  { %v7990_v7 = vsel %vm9395_vm13, %v2200_v52, %v2202_v43  ;;  %2213 = vst.msk [vmem:[#allocation4 + $0x238] sm:$0xff] %vm9396_vm12, %v2202_v43  ;;  %2907 = vmatpush1.msra.mxu1 %v7876_v62  ;;  %v2673_v62 = vld [vmem:[%s6463_s25 + $0x20] sm:$0x1f]  ;;  %vm9405_vm10 = vmmov %vm9398_vm0  ;;  %vm9406_vm13 = vcmask 924672   ;;  %s6419_s25 = smov 5  }
 0x2f6   :  { %2908 = vmatprep.subr.mxu1 %v2694_v1  ;;  %vm9407_vm12 = vmmov %vm9398_vm0 }
 0x2f7   :  { %v2527_v22 = vpop.permute.xlu0 %2526  ;;  %2909 = vmatpush1.msra.mxu1 %v7886_v46  ;;  %2874 = vmatmul.mubr.f32.gmra.mxu0 %v7987_v55  ;;  %v2682_v46 = vld [vmem:[#allocation4 + $0x38] sm:$0xff] }
 0x2f8   :  { %v2530_v5 = vsel %vm9397_vm15, %v7787_v31, %v2527_v22  ;;  %2538 = vst.msk [vmem:[#allocation4 + $0x2d8] sm:$0xff] %vm9398_vm0, %v2527_v22  ;;  %2910 = vmatprep.subr.mxu1 %v2690_v10  ;;  %5838 = vmatprep.mubr.msk.f32.mxu0 %vm9399_vm11, %v7995_v12  ;;  %v2678_v31 = vld [vmem:[#allocation4 + $0x18] sm:$0xff]  ;;  %vm9408_vm15 = vcmask 941056  }
 0x2f9   :  { %2911 = vmatpush1.msra.mxu1 %v7899_v18  ;;  %v2774_v18 = vld [vmem:[#allocation4 + $0x318] sm:$0xff] }
 0x2fa   :  { %2912 = vmatprep.subr.mxu1 %v2686_v61 }
 0x2fb   :  { %v2462_v8 = vpop.permute.xlu0 %2461  ;;  %2913 = vmatpush1.msra.mxu1 %v7911_v9  ;;  %2880 = vmatmul.mubr.f32.gmra.mxu0 %v2673_v62  ;;  %v2770_v9 = vld [vmem:[#allocation4 + $0x2f8] sm:$0xff] }
 0x2fc   :  { %v2465_v53 = vsel %vm9400_vm4, %v7795_v57, %v2462_v8  ;;  %2473 = vst.msk [vmem:[#allocation4 + $0x2b8] sm:$0xff] %vm9401_vm2, %v2462_v8  ;;  %2914 = vmatprep.subr.mxu1 %v2682_v46  ;;  %vm9409_vm4 = vmmov %vm9399_vm11 }
 0x2fd   :  { %2915 = vmatpush1.msra.mxu1 %v7921_v19  ;;  %vm9410_vm2 = vmmov %vm9398_vm0 }
 0x2fe   :  { %2916 = vmatprep.subr.mxu1 %v2678_v31 }
 0x2ff   :  { %v2397_v44 = vpop.permute.xlu0 %2396  ;;  %2917 = vmatpush1.msra.mxu1 %v7929_v56  ;;  %v2766_v14 = vld [vmem:[#allocation4 + $0x2d8] sm:$0xff] }
 0x300   :  { %v2400_v27 = vsel %vm9402_vm5, %v7803_v21, %v2397_v44  ;;  %2408 = vst.msk [vmem:[#allocation4 + $0x298] sm:$0xff] %vm9403_vm6, %v2397_v44  ;;  %2932 = vmatprep.subr.mxu1 %v2774_v18  ;;  %vm2993_vm5 = vcmask 1044480   ;;  %vm9411_vm6 = vmmov %vm9398_vm0 }
 0x301   :  { %2933 = vmatpush2.msra.mxu1 %v2660_v37  ;;  %v2781_v58 = vpop.permute.xlu1 %2780 }
 0x302   :  { %2934 = vmatprep.subr.mxu1 %v2770_v9 }
 0x303   :  { %v2332_v57 = vpop.permute.xlu0 %2331  ;;  %2935 = vmatpush2.msra.mxu1 %v2595_v42  ;;  %v2762_v56 = vld [vmem:[#allocation4 + $0x2b8] sm:$0xff] }
 0x304   :  { %v2335_v19 = vsel %vm9404_vm3, %v7947_v4, %v2332_v57  ;;  %2343 = vst.msk [vmem:[#allocation4 + $0x278] sm:$0xff] %vm9405_vm10, %v2332_v57  ;;  %2936 = vmatprep.subr.mxu1 %v2766_v14  ;;  %v2746_v4 = vld [vmem:[#allocation4 + $0x238] sm:$0xff]  ;;  %vm9412_vm3 = vmmov %vm9398_vm0 }
 0x305   :  { %2937 = vmatpush2.msra.mxu1 %v2530_v5  ;;  %v2791_v41 = vpop.permute.xlu1 %2790  ;;  %vm9413_vm10 = vmmov %vm9398_vm0 }
 0x306   :  { %2938 = vmatprep.subr.mxu1 %v2762_v56 }
 0x307   :  { %v2267_v20 = vpop.permute.xlu0 %2266  ;;  %2939 = vmatpush2.msra.mxu1 %v2465_v53  ;;  %v2758_v21 = vld [vmem:[#allocation4 + $0x298] sm:$0xff] }
 0x308   :  { %v2270_v15 = vsel %vm9406_vm13, %v7952_v60, %v2267_v20  ;;  %2278 = vst.msk [vmem:[#allocation4 + $0x258] sm:$0xff] %vm9407_vm12, %v2267_v20  ;;  %2940 = vmatprep.subr.mxu1 %v2758_v21  ;;  %vm2999_vm13 = vcmask 61440   ;;  %vm3155_vm12 = vcmask 195648  }
 0x309   :  { %2941 = vmatpush2.msra.mxu1 %v2400_v27 }
 0x30b   :  { %v2137_v38 = vpop.permute.xlu0 %2136  ;;  %v2754_v59 = vld [vmem:[#allocation4 + $0x278] sm:$0xff] }
 0x30c   :  { %v2140_v51 = vsel %vm9408_vm15, %v7961_v34, %v2137_v38  ;;  %2148 = vst.msk [vmem:[#allocation4 + $0x218] sm:$0xff] %vm9398_vm0, %v2137_v38  ;;  %2942 = vmatprep.subr.mxu1 %v2754_v59  ;;  %vm9414_vm15 = vmmov %vm9398_vm0 }
 0x30d   :  { %2943 = vmatpush2.msra.mxu1 %v2335_v19 }
 0x30f   :  { %v2750_v0 = vld [vmem:[#allocation4 + $0x258] sm:$0xff] }
 0x310   :  { %2944 = vmatprep.subr.mxu1 %v2750_v0 }
 0x311   :  { %2945 = vmatpush2.msra.mxu1 %v2270_v15 }
 0x312   :  { %2946 = vmatprep.subr.mxu1 %v2746_v4 }
 0x313   :  { %2947 = vmatpush2.msra.mxu1 %v7990_v7  ;;  %v2742_v26 = vld [vmem:[#allocation4 + $0x218] sm:$0xff] }
 0x314   :  { %2948 = vmatprep.subr.mxu1 %v2742_v26 }
 0x315   :  { %2949 = vmatpush2.msra.mxu1 %v2140_v51 }
 0x316   :  { %2951 = vmatmul.mubr.f32.vlgmr.msra.gmra.mxu1 %v7972_v11  ;;  %3493 = vmatprep.subr.mxu1 %v8026_v50 }
 0x317   :  { %5840 = vmatprep.mubr.msk.f32.mxu1 %vm9399_vm11, %v7977_v30  ;;  %vm3158_vm11 = vcmask 192576  }
 0x318   :  { %v2786_v2 = vpop.permute.xlu0 %2785 }
 0x31a   :  { %2957 = vmatmul.mubr.f32.gmra.mxu1 %v7987_v55 }
 0x31b   :  { %5841 = vmatprep.mubr.msk.f32.mxu1 %vm9409_vm4, %v7995_v12  ;;  %vm9415_vm4 = vcmask 932864  }
 0x31e   :  { %2963 = vmatmul.mubr.f32.gmra.mxu1 %v2673_v62 }
 0x3b3   :  { %v2869_v54 = vpop.f32.mrf.mxu0 }
 0x3b4   :  { %v2870_v45 = vadd.f32 %v2869_v54, %v2781_v58 }
 0x3b5   :  { %v2871_v33 = vpop.f32.mrf.mxu0 }
 0x3b6   :  { %v2872_v13 = vadd.f32 %v2871_v33, %v2781_v58  ;;  %v8036_v6 = vmax.f32 %v2870_v45, 0.0 }
 0x3b7   :  { %v2875_v47 = vpop.f32.mrf.mxu0 }
 0x3b8   :  { %v8034_v25 = vmax.f32 %v2872_v13, 0.0  ;;  %v2876_v40 = vadd.f32 %v2875_v47, %v2786_v2  ;;  %v3008_v39 = vmul.f32 %v8036_v6, %v8036_v6 }
 0x3b9   :  { %v2877_v60 = vpop.f32.mrf.mxu0 }
 0x3ba   :  { %v2878_v3 = vadd.f32 %v2877_v60, %v2786_v2  ;;  %v3009_v24 = vmul.f32 %v8034_v25, %v8034_v25  ;;  %v2981_v37 = vadd.f32 %v8034_v25, %v8036_v6  ;;  %v8048_v28 = vmax.f32 %v2876_v40, 0.0  ;;  %v3114_v40 = vld [vmem:[%s6478_s8 + $0x8] sm:$0xff] }
 0x3bb   :  { %v2881_v36 = vpop.f32.mrf.mxu0 }
 0x3bc   :  { %v8040_v63 = vmax.f32 %v2878_v3, 0.0  ;;  %v2882_v16 = vadd.f32 %v2881_v36, %v2791_v41  ;;  %v3020_v7 = vadd.f32 %v3009_v24, %v3008_v39  ;;  %v3012_v46 = vmul.f32 %v8048_v28, %v8048_v28  ;;  %v3115_v39 = vld [vmem:[%s6478_s8 + $0x10] sm:$0x1f]  ;;  %s6422_s8 = smov 121  }
 0x3bd   :  { %v2883_v52 = vpop.f32.mrf.mxu0 }
 0x3be   :  { %v2884_v34 = vadd.f32 %v2883_v52, %v2791_v41  ;;  %v2987_v1 = vadd.f32 %v8040_v63, %v8048_v28  ;;  %v3013_v12 = vmul.f32 %v8040_v63, %v8040_v63  ;;  %v8061_v22 = vmax.f32 %v2882_v16, 0.0 }
 0x3c0   :  { %v8050_v30 = vmax.f32 %v2884_v34, 0.0  ;;  %v3026_v19 = vadd.f32 %v3013_v12, %v3012_v46  ;;  %v3016_v56 = vmul.f32 %v8061_v22, %v8061_v22  ;;  %v3085_v34 = vld [vmem:[%s6473_s3 + $0x10] sm:$0x1f]  ;;  %v8122_v46 = vpop.permute.xlu1 %3088  ;;  %s6421_s3 = smov 122  }
 0x3c1   :  { %v3369_v12 = vld [vmem:[%s6488_s19 + $0x70] sm:$0xff] }
 0x3c2   :  { %v3017_v53 = vmul.f32 %v8050_v30, %v8050_v30  ;;  %v3032_v60 = vsel %vm2993_vm5, %v3016_v56, 0.0 }
 0x3c4   :  { %v3033_v0 = vsel %vm2993_vm5, %v3017_v53, 0.0  ;;  %v3398_v53 = vld [vmem:[%s6488_s19 + $0x158] sm:$0xff]  ;;  %v8136_v56 = vpop.permute.xlu1 %3093 }
 0x3c5   :  { %v3034_v13 = vadd.f32 %v3033_v0, %v3032_v60 }
 0x3d6   :  { %v2952_v48 = vpop.f32.mrf.mxu1 }
 0x3d7   :  { %v2953_v17 = vadd.f32 %v2952_v48, %v2781_v58  ;;  %v2995_v48 = vsel %vm2993_vm5, %v8050_v30, 0.0 }
 0x3d8   :  { %v2954_v35 = vpop.f32.mrf.mxu1 }
 0x3d9   :  { %v8044_v29 = vmax.f32 %v2953_v17, 0.0  ;;  %v2955_v11 = vadd.f32 %v2954_v35, %v2781_v58  ;;  %v2994_v17 = vsel %vm2993_vm5, %v8061_v22, 0.0 }
 0x3da   :  { %v2958_v23 = vpop.f32.mrf.mxu1  ;;  %v2996_v16 = vadd.f32 %v2995_v48, %v2994_v17  ;;  %v3380_v48 = vld [vmem:[%s6488_s19 + $0xc8] sm:$0xff] }
 0x3db   :  { %v2982_v32 = vadd.f32 %v2981_v37, %v8044_v29  ;;  %v3010_v42 = vmul.f32 %v8044_v29, %v8044_v29  ;;  %v8055_v43 = vmax.f32 %v2955_v11, 0.0  ;;  %v2959_v55 = vadd.f32 %v2958_v23, %v2786_v2  ;;  %v3402_v23 = vld [vmem:[%s6488_s19 + $0x178] sm:$0xff] }
 0x3dc   :  { %v2960_v10 = vpop.f32.mrf.mxu1  ;;  %3494 = vmatpush1.msra.mxu1 %v3402_v23 }
 0x3dd   :  { %v3011_v5 = vmul.f32 %v8055_v43, %v8055_v43  ;;  %v8065_v62 = vmax.f32 %v2959_v55, 0.0  ;;  %v2961_v61 = vadd.f32 %v2960_v10, %v2786_v2  ;;  %v2983_v8 = vsel %vm9410_vm2, %v8055_v43, 0.0  ;;  %v3370_v55 = vld [vmem:[%s6488_s19 + $0x78] sm:$0xff]  ;;  %3495 = vmatprep.subr.mxu1 %v8026_v50  ;;  %v3384_v10 = vld [vmem:[%s6488_s19 + $0xe8] sm:$0xff] }
 0x3de   :  { %v2964_v31 = vpop.f32.mrf.mxu1  ;;  %v2984_v44 = vadd.f32 %v2983_v8, %v2982_v32  ;;  %v3021_v18 = vadd.f32 %v3020_v7, %v3010_v42  ;;  %v3401_v32 = vld [vmem:[%s6488_s19 + $0x170] sm:$0xff]  ;;  %v3386_v42 = vld [vmem:[%s6488_s19 + $0xf8] sm:$0xff]  ;;  %v3400_v7 = vld [vmem:[%s6488_s19 + $0x168] sm:$0xff]  ;;  %vm9416_vm2 = vcmask 924672  }
 0x3df   :  { %v2988_v27 = vadd.f32 %v2987_v1, %v8065_v62  ;;  %v3014_v9 = vmul.f32 %v8065_v62, %v8065_v62  ;;  %v8076_v57 = vmax.f32 %v2961_v61, 0.0  ;;  %v2965_v14 = vadd.f32 %v2964_v31, %v2791_v41  ;;  %6062 = vmatprep.subr.mxu0 %v3386_v42  ;;  %v3385_v1 = vld [vmem:[%s6488_s19 + $0xf0] sm:$0xff]  ;;  %3496 = vmatpush1.msra.mxu1 %v3401_v32  ;;  %v3368_v61 = vld [vmem:[%s6488_s19 + $0x68] sm:$0xff]  ;;  %v3383_v8 = vld [vmem:[%s6488_s19 + $0xe0] sm:$0xff] }
 0x3e0   :  { %v2966_v20 = vpop.f32.mrf.mxu1  ;;  %2985 = vadd.xlane.f32.xlu0 %v2984_v44  ;;  %v3022_v21 = vsel %vm9411_vm6, %v3011_v5, 0.0  ;;  %6063 = vmatpush3.msra.mxu0 %v3370_v55  ;;  %v3399_v5 = vld [vmem:[%s6488_s19 + $0x160] sm:$0xff]  ;;  %v3382_v44 = vld [vmem:[%s6488_s19 + $0xd8] sm:$0xff]  ;;  %vm9417_vm6 = vmmov %vm9415_vm4 }
 0x3e1   :  { %v3015_v15 = vmul.f32 %v8076_v57, %v8076_v57  ;;  %v8083_v38 = vmax.f32 %v2965_v14, 0.0  ;;  %v2967_v59 = vadd.f32 %v2966_v20, %v2791_v41  ;;  %v3023_v51 = vadd.f32 %v3022_v21, %v3021_v18  ;;  %3497 = vmatprep.subr.mxu1 %v8026_v50  ;;  %6064 = vmatprep.subr.mxu0 %v3385_v1  ;;  %v3367_v31 = vld [vmem:[%s6488_s19 + $0x60] sm:$0xff]  ;;  %v3397_v18 = vld [vmem:[%s6488_s19 + $0x150] sm:$0xff] }
 0x3e2   :  { %v2989_v4 = vsel %vm9412_vm3, %v8076_v57, 0.0  ;;  %v3027_v47 = vadd.f32 %v3026_v19, %v3014_v9  ;;  %3498 = vmatpush1.msra.mxu1 %v3400_v7  ;;  %6065 = vmatpush3.msra.mxu0 %v3369_v12  ;;  %v8131_v9 = vpop.permute.xlu0 %3118  ;;  %v3381_v14 = vld [vmem:[%s6488_s19 + $0xd0] sm:$0xff]  ;;  %v3396_v19 = vld [vmem:[%s6488_s19 + $0x148] sm:$0xff]  ;;  %v3395_v20 = vld [vmem:[%s6488_s19 + $0x140] sm:$0xff] }
 0x3e3   :  { %v3018_v26 = vmul.f32 %v8083_v38, %v8083_v38  ;;  %v8090_v54 = vmax.f32 %v2967_v59, 0.0  ;;  %3024 = vadd.xlane.f32.xlu1 %v3023_v51  ;;  %v2990_v33 = vadd.f32 %v2989_v4, %v2988_v27  ;;  %v3028_v58 = vsel %vm9413_vm10, %v3015_v15, 0.0  ;;  %3499 = vmatprep.subr.mxu1 %v8026_v50  ;;  %v3366_v27 = vld [vmem:[%s6488_s19 + $0x58] sm:$0xff]  ;;  %v3363_v7 = vld [vmem:[%s6488_s19 + $0x40] sm:$0xff]  ;;  %vm9418_vm3 = vmmov %vm9416_vm2 }
 0x3e4   :  { %v3029_v2 = vadd.f32 %v3028_v58, %v3027_v47  ;;  %v2997_v24 = vsel %vm2993_vm5, %v8083_v38, 0.0  ;;  %6066 = vmatprep.subr.mxu0 %v3384_v10  ;;  %3500 = vmatpush1.msra.mxu1 %v3399_v5  ;;  %v3394_v59 = vld [vmem:[%s6488_s19 + $0x138] sm:$0xff]  ;;  %v3391_v1 = vld [vmem:[%s6488_s19 + $0x120] sm:$0xff]  ;;  %vm9419_vm10 = vmmov %vm9398_vm0 }
 0x3e5   :  { %v3019_v36 = vmul.f32 %v8090_v54, %v8090_v54  ;;  %2991 = vadd.xlane.f32.xlu0 %v2990_v33  ;;  %v3035_v45 = vsel %vm2993_vm5, %v3018_v26, 0.0  ;;  %v2998_v35 = vadd.f32 %v2997_v24, %v2996_v16  ;;  %v3000_v37 = vsel %vm2999_vm13, %v8090_v54, 0.0  ;;  %6067 = vmatpush3.msra.mxu0 %v3368_v61  ;;  %v3378_v12 = vld [vmem:[%s6488_s19 + $0xb8] sm:$0xff] }
 0x3e6   :  { %v3036_v52 = vadd.f32 %v3035_v45, %v3034_v13  ;;  %3501 = vmatprep.subr.mxu1 %v8026_v50  ;;  %6068 = vmatprep.subr.mxu0 %v3383_v8  ;;  %v3362_v8 = vld [vmem:[%s6488_s19 + $0x38] sm:$0xff] }
 0x3e7   :  { %v3037_v3 = vsel %vm2999_vm13, %v3019_v36, 0.0  ;;  %v3001_v11 = vadd.f32 %v3000_v37, %v2998_v35  ;;  %3502 = vmatpush1.msra.mxu1 %v3398_v53  ;;  %6069 = vmatpush3.msra.mxu0 %v3367_v31  ;;  %v3364_v35 = vld [vmem:[%s6488_s19 + $0x48] sm:$0xff] }
 0x3e8   :  { %v3038_v41 = vadd.f32 %v3037_v3, %v3036_v52  ;;  %3503 = vmatprep.subr.mxu1 %v8026_v50  ;;  %6070 = vmatprep.subr.mxu0 %v3382_v44  ;;  %v3392_v37 = vld [vmem:[%s6488_s19 + $0x128] sm:$0xff] }
 0x3e9   :  { %3030 = vadd.xlane.f32.xlu0 %v3029_v2  ;;  %3504 = vmatpush1.msra.mxu1 %v3397_v18 }
 0x3ea   :  { %6071 = vmatpush3.msra.mxu0 %v3366_v27  ;;  %3505 = vmatprep.subr.mxu1 %v8026_v50 }
 0x3eb   :  { %6072 = vmatprep.subr.mxu0 %v3381_v14  ;;  %3506 = vmatpush1.msra.mxu1 %v3396_v19 }
 0x3ec   :  { %3507 = vmatprep.subr.mxu1 %v8026_v50 }
 0x3ed   :  { %3039 = vadd.xlane.f32.xlu0 %v3038_v41  ;;  %3508 = vmatpush1.msra.mxu1 %v3395_v20 }
 0x3ee   :  { %3509 = vmatprep.subr.mxu1 %v8026_v50 }
 0x3ef   :  { %3510 = vmatpush1.msra.mxu1 %v3394_v59 }
 0x3f0   :  { %3511 = vmatprep.subr.mxu1 %v8026_v50 }
 0x3f4   :  { %3123 = vperm.xlu1 %6247, %v3114_v40   ;;  %v3365_v40 = vld [vmem:[%s6488_s19 + $0x50] sm:$0xff] }
 0x3f5   :  { %6073 = vmatpush3.msra.mxu0 %v3365_v40  ;;  %v3403_v40 = vld [vmem:[%s6488_s19 + $0x180] sm:$0xff] }
 0x3f6   :  { %6074 = vmatprep.subr.mxu0 %v3380_v48 }
 0x3f7   :  { %6075 = vmatpush3.msra.mxu0 %v3364_v35  ;;  %v3371_v35 = vld [vmem:[%s6488_s19 + $0x80] sm:$0xff] }
 0x403   :  { %3098 = vperm.xlu0 %6246, %v3085_v34   ;;  %v3393_v34 = vld [vmem:[%s6488_s19 + $0x130] sm:$0xff] }
 0x404   :  { %3512 = vmatpush1.msra.mxu1 %v3393_v34  ;;  %v3373_v34 = vld [vmem:[%s6488_s19 + $0x90] sm:$0xff] }
 0x405   :  { %3513 = vmatprep.subr.mxu1 %v8026_v50 }
 0x406   :  { %3514 = vmatpush1.msra.mxu1 %v3392_v37  ;;  %v3355_v37 = vld [vmem:[%s6488_s19] sm:$0xff] }
 0x407   :  { %3515 = vmatprep.subr.mxu1 %v8026_v50 }
 0x408   :  { %3516 = vmatpush1.msra.mxu1 %v3391_v1 }
 0x409   :  { %3517 = vmatprep.subr.mxu1 %v8026_v50 }
 0x418   :  { %3002 = vadd.xlane.f32.xlu1 %v3001_v11  ;;  %v3379_v11 = vld [vmem:[%s6488_s19 + $0xc0] sm:$0xff] }
 0x419   :  { %6076 = vmatprep.subr.mxu0 %v3379_v11 }
 0x41a   :  { %6077 = vmatpush3.msra.mxu0 %v3363_v7 }
 0x41b   :  { %6078 = vmatprep.subr.mxu0 %v3378_v12 }
 0x41c   :  { %6079 = vmatpush3.msra.mxu0 %v3362_v8 }
 0x429   :  { %3128 = vperm.xlu1 %6247, %v3115_v39  }
 0x469   :  { %v2986_v21 = vpop.xlane.xlu0 %2985 }
 0x46a   :  { %v3005_v15 = vmul.f32 0.0025510204, %v2986_v21 }
 0x46c   :  { %v3025_v51 = vpop.xlane.xlu1 %3024  ;;  %v3044_v0 = vmul.f32 %v3005_v15, %v3005_v15  ;;  %v3059_v41 = vsub.f32 %v8036_v6, %v3005_v15  ;;  %v3060_v17 = vsub.f32 %v8034_v25, %v3005_v15  ;;  %v3061_v24 = vsub.f32 %v8044_v29, %v3005_v15 }
 0x46d   :  { %v3041_v4 = vmul.f32 0.0025510204, %v3025_v51  ;;  %v3062_v16 = vsub.f32 %v8055_v43, %v3005_v15 }
 0x46e   :  { %v2992_v26 = vpop.xlane.xlu0 %2991 }
 0x46f   :  { %v3047_v33 = vsub.f32 %v3041_v4, %v3044_v0  ;;  %v8144_v47 = vmul.f32 0.0025510204, %v2992_v26  ;;  %v3361_v0 = vld [vmem:[%s6488_s19 + $0x30] sm:$0xff]  ;;  %v3376_v26 = vld [vmem:[%s6488_s19 + $0xa8] sm:$0xff] }
 0x470   :  { %v3124_v59 = vpop.permute.xlu1 %3123  ;;  %v3389_v4 = vld [vmem:[%s6488_s19 + $0x110] sm:$0xff] }
 0x471   :  { %v3050_v60 = vmax.f32 %v3047_v33, 0.0  ;;  %v3045_v13 = vmul.f32 %v8144_v47, %v8144_v47  ;;  %v3063_v10 = vsub.f32 %v8048_v28, %v8144_v47  ;;  %v3064_v5 = vsub.f32 %v8040_v63, %v8144_v47  ;;  %v3377_v63 = vld [vmem:[%s6488_s19 + $0xb0] sm:$0xff] }
 0x472   :  { %v3031_v58 = vpop.xlane.xlu0 %3030  ;;  %v3065_v61 = vsub.f32 %v8065_v62, %v8144_v47  ;;  %v3066_v18 = vsub.f32 %v8076_v57, %v8144_v47  ;;  %6080 = vmatprep.subr.mxu0 %v3377_v63 }
 0x473   :  { %v3053_v36 = vadd.f32 1e-05, %v3050_v60  ;;  %v3042_v45 = vmul.f32 0.0025510204, %v3031_v58  ;;  %6081 = vmatpush3.msra.mxu0 %v3361_v0  ;;  %v3360_v58 = vld [vmem:[%s6488_s19 + $0x28] sm:$0xff] }
 0x474   :  { %6082 = vmatprep.subr.mxu0 %v3376_v26 }
 0x475   :  { %6316 = vrsqrt.f32 %v3053_v36  ;;  %v3048_v2 = vsub.f32 %v3042_v45, %v3045_v13  ;;  %v3388_v36 = vld [vmem:[%s6488_s19 + $0x108] sm:$0xff]  ;;  %v3375_v13 = vld [vmem:[%s6488_s19 + $0xa0] sm:$0xff]  ;;  %6083 = vmatpush3.msra.mxu0 %v3360_v58 }
 0x476   :  { %6084 = vmatprep.subr.mxu0 %v3375_v13 }
 0x477   :  { %v3051_v52 = vmax.f32 %v3048_v2, 0.0  ;;  %v3387_v2 = vld [vmem:[%s6488_s19 + $0x100] sm:$0xff] }
 0x479   :  { %v3054_v3 = vadd.f32 1e-05, %v3051_v52  ;;  %v3374_v52 = vld [vmem:[%s6488_s19 + $0x98] sm:$0xff] }
 0x47b   :  { %6318 = vrsqrt.f32 %v3054_v3 }
 0x482   :  { %v6317_v39 = vpop.eup %6316 }
 0x483   :  { %v3072_v6 = vmul.f32 %v6317_v39, %v3060_v17  ;;  %v3073_v23 = vmul.f32 %v6317_v39, %v3061_v24  ;;  %v3074_v32 = vmul.f32 %v6317_v39, %v3062_v16  ;;  %v3071_v25 = vmul.f32 %v6317_v39, %v3059_v41  ;;  %v3358_v41 = vld [vmem:[%s6488_s19 + $0x18] sm:$0xff]  ;;  %v3357_v17 = vld [vmem:[%s6488_s19 + $0x10] sm:$0xff]  ;;  %v3372_v24 = vld [vmem:[%s6488_s19 + $0x88] sm:$0xff] }
 0x484   :  { %v3356_v16 = vld [vmem:[%s6488_s19 + $0x8] sm:$0xff] }
 0x485   :  { %v3102_v29 = vmul.f32 %v8122_v46, %v3072_v6  ;;  %v3103_v43 = vmul.f32 %v8122_v46, %v3073_v23  ;;  %v3104_v42 = vmul.f32 %v8122_v46, %v3074_v32  ;;  %v3101_v55 = vmul.f32 %v8122_v46, %v3071_v25  ;;  %v3390_v46 = vld [vmem:[%s6488_s19 + $0x118] sm:$0xff]  ;;  %v3040_v6 = vpop.xlane.xlu0 %3039 }
 0x486   :  { %3518 = vmatpush1.msra.mxu1 %v3390_v46  ;;  %v3043_v25 = vmul.f32 0.0025510204, %v3040_v6 }
 0x487   :  { %v8176_v53 = vadd.f32 %v8131_v9, %v3102_v29  ;;  %v8179_v31 = vadd.f32 %v8131_v9, %v3103_v43  ;;  %v8182_v44 = vadd.f32 %v8131_v9, %v3104_v42  ;;  %v8185_v28 = vadd.f32 %v8131_v9, %v3101_v55  ;;  %3519 = vmatprep.subr.mxu1 %v8026_v50 }
 0x488   :  { %v6319_v62 = vpop.eup %6318  ;;  %3520 = vmatpush1.msra.mxu1 %v3389_v4 }
 0x489   :  { %v6258_v27 = vpack.i.bf16 %v8179_v31, %v8176_v53  ;;  %3146 = vst.msk [vmem:[#allocation2 + $0x18] sm:$0xff] %vm9414_vm15, %v8182_v44  ;;  %v3076_v14 = vmul.f32 %v6319_v62, %v3064_v5  ;;  %v3075_v9 = vmul.f32 %v6319_v62, %v3063_v10  ;;  %v3077_v19 = vmul.f32 %v6319_v62, %v3065_v61  ;;  %vm9422_vm15 = vmmov %vm9415_vm4 }
 0x48a   :  { %3156 = vst.msk [vmem:[#allocation2 + $0x18] sm:$0xff] %vm3155_vm12, %v8026_v50  ;;  %v3078_v57 = vmul.f32 %v6319_v62, %v3066_v18  ;;  %3521 = vmatprep.subr.mxu1 %v8026_v50  ;;  %v3099_v62 = vpop.permute.xlu0 %3098 }
 0x48b   :  { %6259 = vrot.lane.b32.xlu1 %v6258_v27, %s9339_s15  ;;  %6249 = vrot.lane.b32.xlu0 %v6258_v27, %s6397_s13  ;;  %v3106_v20 = vmul.f32 %v8136_v56, %v3076_v14  ;;  %v3105_v21 = vmul.f32 %v8136_v56, %v3075_v9  ;;  %v3107_v15 = vmul.f32 %v8136_v56, %v3077_v19 }
 0x48c   :  { %v3108_v51 = vmul.f32 %v8136_v56, %v3078_v57  ;;  %3522 = vmatpush1.msra.mxu1 %v3388_v36  ;;  %v3359_v56 = vld [vmem:[%s6488_s19 + $0x20] sm:$0xff]  ;;  %s6423_s19 = smov 120  }
 0x48d   :  { %v8207_v33 = vadd.f32 %v3124_v59, %v3106_v20  ;;  %v8209_v47 = vadd.f32 %v3124_v59, %v3105_v21  ;;  %v8211_v60 = vadd.f32 %v3124_v59, %v3107_v15  ;;  %3523 = vmatprep.subr.mxu1 %v8026_v50  ;;  %6085 = vmatpush3.msra.mxu0 %v3359_v56 }
 0x48e   :  { %v8216_v45 = vadd.f32 %v3124_v59, %v3108_v51  ;;  %3524 = vmatpush1.msra.mxu1 %v3387_v2  ;;  %6086 = vmatprep.subr.mxu0 %v3374_v52  ;;  %v3574_v51 = vld [vmem:[%s6498_s30] sm:$0xff]  ;;  %s6424_s30 = smov 119  }
 0x48f   :  { %6254 = vrot.lane.b32.xlu0 %v6258_v27, %s9342_s1  ;;  %v6263_v48 = vpack.i.bf16 %v8207_v33, %v8185_v28  ;;  %3555 = vmatprep.subr.mxu1 %v8026_v50  ;;  %v6273_v11 = vpack.i.bf16 %v8209_v47, %v8211_v60 }
 0x490   :  { %3150 = vst.msk [vmem:[#allocation2 + $0x38] sm:$0xff] %vm9398_vm0, %v8216_v45  ;;  %6087 = vmatpush3.msra.mxu0 %v3358_v41  ;;  %3556 = vmatpush2.msra.mxu1 %v3403_v40  ;;  %vm9423_vm0 = vmmov %vm9415_vm4 }
 0x491   :  { %v3163_v3 = vld [vmem:[#allocation2 + $0x18] sm:$0xff]  ;;  %3157 = vst.msk [vmem:[#allocation2 + $0x38] sm:$0xff] %vm3155_vm12, %v8026_v50  ;;  %6088 = vmatprep.subr.mxu0 %v3373_v34  ;;  %4218 = vmatprep.subr.mxu1 %v8026_v50  ;;  %vm9421_vm12 = vmmov %vm9416_vm2 }
 0x492   :  { %3247 = vrot.lane.b32.xlu1 %v3163_v3, %s9342_s1  ;;  %6089 = vmatpush3.msra.mxu0 %v3357_v17 }
 0x493   :  { %3190 = vrot.lane.b32.xlu0 %v3163_v3, %s6397_s13  ;;  %6090 = vmatprep.subr.mxu0 %v3372_v24 }
 0x494   :  { %6091 = vmatpush3.msra.mxu0 %v3356_v16 }
 0x495   :  { %6092 = vmatprep.subr.mxu0 %v3371_v35 }
 0x496   :  { %6264 = vrot.lane.b32.xlu1 %v6263_v48, %s6397_s13  ;;  %6093 = vmatpush3.msra.mxu0 %v3355_v37 }
 0x497   :  { %3304 = vrot.lane.b32.xlu0 %v3163_v3, %s9339_s15  ;;  %6127 = vmatprep.subr.mxu0 %v8026_v50 }
 0x498   :  { %v3167_v39 = vld [vmem:[#allocation2 + $0x38] sm:$0xff] }
 0x49a   :  { %6269 = vrot.lane.b32.xlu1 %v6263_v48, %s9342_s1 }
 0x49b   :  { %6274 = vrot.lane.b32.xlu0 %v6273_v11, %s6397_s13 }
 0x49e   :  { %6279 = vrot.lane.b32.xlu1 %v6263_v48, %s9339_s15 }
 0x49f   :  { %6284 = vrot.lane.b32.xlu0 %v6273_v11, %s9342_s1 }
 0x4a1   :  { %v3003_v23 = vpop.xlane.xlu1 %3002 }
 0x4a2   :  { %v3007_v32 = vmul.f32 0.0025510204, %v3003_v23  ;;  %6289 = vrot.lane.b32.xlu1 %v6273_v11, %s9339_s15 }
 0x4a3   :  { %3198 = vrot.lane.b32.xlu0 %v3167_v39, %s6397_s13 }
 0x4a4   :  { %v3046_v29 = vmul.f32 %v3007_v32, %v3007_v32  ;;  %v3067_v7 = vsub.f32 %v8061_v22, %v3007_v32  ;;  %v3068_v1 = vsub.f32 %v8050_v30, %v3007_v32  ;;  %v3069_v12 = vsub.f32 %v8083_v38, %v3007_v32 }
 0x4a5   :  { %v3070_v10 = vsub.f32 %v8090_v54, %v3007_v32  ;;  %v3129_v19 = vpop.permute.xlu1 %3128 }
 0x4a6   :  { %v3049_v43 = vsub.f32 %v3043_v25, %v3046_v29 }
 0x4a7   :  { %3255 = vrot.lane.b32.xlu0 %v3167_v39, %s9342_s1 }
 0x4a8   :  { %v3052_v42 = vmax.f32 %v3049_v43, 0.0 }
 0x4aa   :  { %v3055_v55 = vadd.f32 1e-05, %v3052_v42 }
 0x4ab   :  { %3312 = vrot.lane.b32.xlu0 %v3167_v39, %s9339_s15 }
 0x4ac   :  { %6320 = vrsqrt.f32 %v3055_v55 }
 0x4b9   :  { %v6321_v5 = vpop.eup %6320 }
 0x4ba   :  { %v3079_v61 = vmul.f32 %v6321_v5, %v3067_v7  ;;  %v3080_v8 = vmul.f32 %v6321_v5, %v3068_v1  ;;  %v3081_v46 = vmul.f32 %v6321_v5, %v3069_v12  ;;  %v3082_v63 = vmul.f32 %v6321_v5, %v3070_v10 }
 0x4bc   :  { %v3109_v18 = vmul.f32 %v3099_v62, %v3079_v61  ;;  %v3110_v27 = vmul.f32 %v3099_v62, %v3080_v8  ;;  %v3111_v14 = vmul.f32 %v3099_v62, %v3081_v46  ;;  %v3112_v9 = vmul.f32 %v3099_v62, %v3082_v63 }
 0x4be   :  { %v8259_v57 = vadd.f32 %v3129_v19, %v3109_v18  ;;  %v8261_v22 = vadd.f32 %v3129_v19, %v3110_v27  ;;  %v8263_v30 = vadd.f32 %v3129_v19, %v3111_v14  ;;  %v8265_v38 = vadd.f32 %v3129_v19, %v3112_v9 }
 0x4c0   :  { %3151 = vst [vmem:[#allocation2 + $0x40] sm:$0x1f] %v8259_v57  ;;  %3152 = vst [vmem:[#allocation2 + $0x48] sm:$0x1f] %v8261_v22 }
 0x4c1   :  { %3153 = vst [vmem:[#allocation2 + $0x50] sm:$0x1f] %v8263_v30  ;;  %3154 = vst.msk [vmem:[#allocation2 + $0x58] sm:$0x1f] %vm2999_vm13, %v8265_v38 }
 0x4c2   :  { %3159 = vst.msk [vmem:[#allocation2 + $0x58] sm:$0x1f] %vm3158_vm11, %v8026_v50  ;;  %vm9420_vm13 = vmmov %vm9415_vm4 }
 0x4c3   :  { %vm9424_vm11 = vmmov %vm9416_vm2 }
 0x4c7   :  { %v3168_v54 = vld [vmem:[#allocation2 + $0x40] sm:$0x1f]  ;;  %v3169_v20 = vld [vmem:[#allocation2 + $0x48] sm:$0x1f] }
 0x4c8   :  { %v3170_v21 = vld [vmem:[#allocation2 + $0x50] sm:$0x1f]  ;;  %3200 = vrot.lane.b32.xlu1 %v3168_v54, %s6397_s13 }
 0x4c9   :  { %v6293_v15 = vpack.i.bf16 %v3170_v21, %v3169_v20  ;;  %v3171_v59 = vld [vmem:[#allocation2 + $0x58] sm:$0x1f] }
 0x4cb   :  { %6294 = vrot.lane.b32.xlu0 %v6293_v15, %s6397_s13 }
 0x4cc   :  { %6299 = vrot.lane.b32.xlu1 %v6293_v15, %s9342_s1 }
 0x4cf   :  { %6304 = vrot.lane.b32.xlu0 %v6293_v15, %s9339_s15 }
 0x4d0   :  { %3257 = vrot.lane.b32.xlu1 %v3168_v54, %s9342_s1 }
 0x4d3   :  { %3263 = vrot.lane.b32.xlu0 %v3171_v59, %s9342_s1 }
 0x4d4   :  { %3314 = vrot.lane.b32.xlu1 %v3168_v54, %s9339_s15 }
 0x4d7   :  { %3577 = vperm.xlu0 %6246, %v3574_v51  }
 0x4d8   :  { %3206 = vrot.lane.b32.xlu1 %v3171_v59, %s6397_s13 }
 0x4dc   :  { %3320 = vrot.lane.b32.xlu1 %v3171_v59, %s9339_s15 }
 0x4fd   :  { %v6250_v0 = vpop.permute.xlu0 %6249  ;;  %v6260_v58 = vpop.permute.xlu1 %6259 }
 0x4fe   :  { %v6252_v4 = vunpack.i.h.bf16 %v6250_v0  ;;  %v6251_v26 = vunpack.i.l.bf16 %v6250_v0  ;;  %v6262_v56 = vunpack.i.h.bf16 %v6260_v58  ;;  %v6261_v2 = vunpack.i.l.bf16 %v6260_v58 }
 0x500   :  { %v3209_v36 = vsel %vm1812_vm9, %v6251_v26, %v6252_v4  ;;  %v3323_v35 = vsel %vm9416_vm2, %v6261_v2, %v6262_v56 }
 0x501   :  { %v6255_v13 = vpop.permute.xlu0 %6254  ;;  %v3230_v41 = vmax.f32 %v8176_v53, %v3209_v36 }
 0x502   :  { %v6257_v52 = vunpack.i.h.bf16 %v6255_v13  ;;  %v6256_v3 = vunpack.i.l.bf16 %v6255_v13 }
 0x504   :  { %v3248_v40 = vpop.permute.xlu1 %3247  ;;  %v3266_v34 = vsel %vm9415_vm4, %v6256_v3, %v6257_v52  ;;  %vm9425_vm4 = vmmov %vm9416_vm2 }
 0x505   :  { %v3191_v48 = vpop.permute.xlu0 %3190  ;;  %v3287_v17 = vmax.f32 %v3230_v41, %v3266_v34  ;;  %v3267_v39 = vsel %vm9417_vm6, %v6257_v52, %v3248_v40  ;;  %vm9426_vm2 = vmmov %vm9423_vm0 }
 0x506   :  { %v3210_v24 = vsel %vm1812_vm9, %v6252_v4, %v3191_v48  ;;  %v3232_v16 = vmax.f32 %v8182_v44, %v3191_v48  ;;  %vm9427_vm6 = vmmov %vm9418_vm3 }
 0x507   :  { %v3231_v37 = vmax.f32 %v8179_v31, %v3210_v24  ;;  %v3344_v11 = vmax.f32 %v3287_v17, %v3323_v35 }
 0x508   :  { %v6265_v6 = vpop.permute.xlu1 %6264  ;;  %v3289_v23 = vmax.f32 %v3232_v16, %v3248_v40 }
 0x509   :  { %v6266_v32 = vunpack.i.l.bf16 %v6265_v6  ;;  %v3305_v53 = vpop.permute.xlu0 %3304  ;;  %v3288_v25 = vmax.f32 %v3231_v37, %v3267_v39  ;;  %3477 = vmatprep.mubr.f32.mxu0 %v3344_v11  ;;  %v6267_v1 = vunpack.i.h.bf16 %v6265_v6 }
 0x50a   :  { %v3324_v29 = vsel %vm9418_vm3, %v6262_v56, %v3305_v53  ;;  %v3346_v43 = vmax.f32 %v3289_v23, %v3305_v53  ;;  %vm9428_vm3 = vmmov %vm9419_vm10 }
 0x50b   :  { %v3345_v42 = vmax.f32 %v3288_v25, %v3324_v29  ;;  %v3208_v44 = vsel %vm1812_vm9, %v6266_v32, %v6251_v26 }
 0x50c   :  { %v6270_v55 = vpop.permute.xlu1 %6269  ;;  %5842 = vmatprep.mubr.msk.f32.mxu1 %vm9419_vm10, %v3346_v43  ;;  %v3229_v61 = vmax.f32 %v8185_v28, %v3208_v44  ;;  %vm9429_vm10 = vmmov %vm9423_vm0 }
 0x50d   :  { %v6271_v7 = vunpack.i.l.bf16 %v6270_v55  ;;  %v6275_v31 = vpop.permute.xlu0 %6274  ;;  %3558 = vmatmul.mubr.f32.vlgmr.msra.gmra.mxu1 %v3345_v42  ;;  %v6272_v27 = vunpack.i.h.bf16 %v6270_v55 }
 0x50e   :  { %v6277_v12 = vunpack.i.h.bf16 %v6275_v31  ;;  %v6276_v10 = vunpack.i.l.bf16 %v6275_v31 }
 0x50f   :  { %v3265_v5 = vsel %vm9420_vm13, %v6271_v7, %v6256_v3  ;;  %vm9430_vm13 = vmmov %vm9423_vm0 }
 0x510   :  { %v3211_v8 = vsel %vm1812_vm9, %v6277_v12, %v6267_v1  ;;  %v3212_v46 = vsel %vm1812_vm9, %v6267_v1, %v6276_v10  ;;  %v6280_v63 = vpop.permute.xlu1 %6279  ;;  %v3286_v14 = vmax.f32 %v3229_v61, %v3265_v5 }
 0x511   :  { %v6281_v62 = vunpack.i.l.bf16 %v6280_v63  ;;  %v6285_v18 = vpop.permute.xlu0 %6284  ;;  %v3234_v20 = vmax.f32 %v8207_v33, %v3212_v46  ;;  %v3233_v21 = vmax.f32 %v8209_v47, %v3211_v8  ;;  %v6282_v15 = vunpack.i.h.bf16 %v6280_v63 }
 0x512   :  { %v6287_v9 = vunpack.i.h.bf16 %v6285_v18  ;;  %v6286_v19 = vunpack.i.l.bf16 %v6285_v18 }
 0x513   :  { %v3322_v54 = vsel %vm9421_vm12, %v6281_v62, %v6261_v2  ;;  %vm9431_vm12 = vmmov %vm9425_vm4 }
 0x514   :  { %v3343_v59 = vmax.f32 %v3286_v14, %v3322_v54  ;;  %v6290_v28 = vpop.permute.xlu1 %6289  ;;  %v3269_v51 = vsel %vm9422_vm15, %v6272_v27, %v6286_v19  ;;  %v3268_v0 = vsel %vm9423_vm0, %v6287_v9, %v6272_v27  ;;  %vm9432_vm15 = vmmov %vm9425_vm4 }
 0x515   :  { %v6292_v4 = vunpack.i.h.bf16 %v6290_v28  ;;  %v6291_v26 = vunpack.i.l.bf16 %v6290_v28  ;;  %v3199_v58 = vpop.permute.xlu0 %3198  ;;  %v3291_v36 = vmax.f32 %v3234_v20, %v3269_v51  ;;  %v3290_v13 = vmax.f32 %v3233_v21, %v3268_v0  ;;  %v8341_v28 = vld [vmem:[%s6523_s4 + $0xd] ss:$0 sm:$0xff]  ;;  %v8351_v51 = vld [vmem:[%s6523_s4 + $0x9] ss:$0 sm:$0xff]  ;;  %v8358_v0 = vld [vmem:[%s6523_s4 + $0x8] ss:$0 sm:$0xff] }
 0x516   :  { %3478 = vmatmul.mubr.f32.vlgmr.msra.gmra.mxu0 %v3343_v59  ;;  %v3213_v33 = vsel %vm1812_vm9, %v6276_v10, %v3199_v58  ;;  %v3236_v41 = vmax.f32 %v8216_v45, %v3199_v58  ;;  %v8338_v59 = vld [vmem:[%s6523_s4 + $0xb] ss:$0 sm:$0xff]  ;;  %v8371_v58 = vld [vmem:[%s6523_s4 + $0x5] ss:$0 sm:$0xff] }
 0x517   :  { %v3326_v56 = vsel %vm9424_vm11, %v6282_v15, %v6291_v26  ;;  %v3325_v2 = vsel %vm9425_vm4, %v6292_v4, %v6282_v15  ;;  %v3235_v34 = vmax.f32 %v8211_v60, %v3213_v33  ;;  %vm9433_vm11 = vmmov %vm9425_vm4  ;;  %v8361_v4 = vld [vmem:[%s6523_s4 + $0x7] ss:$0 sm:$0xff]  ;;  %v8398_v33 = vld [vmem:[%s6523_s4] ss:$0 sm:$0xff] }
 0x518   :  { %v3348_v47 = vmax.f32 %v3291_v36, %v3326_v56  ;;  %v3347_v52 = vmax.f32 %v3290_v13, %v3325_v2  ;;  %vm9434_vm4 = vmmov %vm9428_vm3  ;;  %v8378_v36 = vld [vmem:[%s6523_s4 + $0x4] ss:$0 sm:$0xff]  ;;  %v8381_v13 = vld [vmem:[%s6523_s4 + $0x3] ss:$0 sm:$0xff] }
 0x519   :  { %v3256_v3 = vpop.permute.xlu0 %3255  ;;  %v8388_v56 = vld [vmem:[%s6523_s4 + $0x2] ss:$0 sm:$0xff]  ;;  %v8391_v2 = vld [vmem:[%s6523_s4 + $0x1] ss:$0 sm:$0xff] }
 0x51a   :  { %v3270_v40 = vsel %vm9426_vm2, %v6286_v19, %v3256_v3  ;;  %3482 = vmatprep.mubr.f32.mxu0 %v3348_v47  ;;  %v3293_v48 = vmax.f32 %v3236_v41, %v3256_v3  ;;  %v8401_v47 = vld [vmem:[%s6523_s4 + $0x18] ss:$0 sm:$0xff]  ;;  %v8411_v3 = vld [vmem:[%s6523_s4 + $0x17] ss:$0 sm:$0xff]  ;;  %v8418_v41 = vld [vmem:[%s6523_s4 + $0x14] ss:$0 sm:$0xff] }
 0x51b   :  { %3483 = vmatmul.mubr.f32.gmra.mxu0 %v3347_v52  ;;  %v3292_v17 = vmax.f32 %v3235_v34, %v3270_v40  ;;  %v8408_v52 = vld [vmem:[%s6523_s4 + $0x16] ss:$0 sm:$0xff]  ;;  %v8421_v40 = vld [vmem:[%s6523_s4 + $0x15] ss:$0 sm:$0xff]  ;;  %v8428_v34 = vld [vmem:[%s6523_s4 + $0x12] ss:$0 sm:$0xff] }
 0x51c   :  { %vm3580_vm2 = vcmask 171008  }
 0x51d   :  { %v3313_v24 = vpop.permute.xlu0 %3312 }
 0x51e   :  { %v3327_v16 = vsel %vm9427_vm6, %v6291_v26, %v3313_v24  ;;  %v3350_v35 = vmax.f32 %v3293_v48, %v3313_v24  ;;  %v8368_v26 = vld [vmem:[%s6523_s4 + $0x6] ss:$0 sm:$0xff]  ;;  %v8431_v48 = vld [vmem:[%s6523_s4 + $0x13] ss:$0 sm:$0xff]  ;;  %v8441_v24 = vld [vmem:[%s6523_s4 + $0x11] ss:$0 sm:$0xff] }
 0x51f   :  { %v3349_v37 = vmax.f32 %v3292_v17, %v3327_v16  ;;  %v8438_v17 = vld [vmem:[%s6523_s4 + $0x10] ss:$0 sm:$0xff]  ;;  %vm3660_vm6 = vcmask 1048336  }
 0x520   :  { %5843 = vmatprep.mubr.msk.f32.mxu1 %vm9428_vm3, %v3350_v35  ;;  %vm9435_vm3 = vcmask 801792  }
 0x521   :  { %3563 = vmatmul.mubr.f32.gmra.mxu1 %v3349_v37 }
 0x53a   :  { %v3201_v11 = vpop.permute.xlu1 %3200 }
 0x53d   :  { %v6295_v39 = vpop.permute.xlu0 %6294 }
 0x53e   :  { %v6297_v6 = vunpack.i.h.bf16 %v6295_v39  ;;  %v6296_v45 = vunpack.i.l.bf16 %v6295_v39  ;;  %v6300_v23 = vpop.permute.xlu1 %6299 }
 0x53f   :  { %v6302_v53 = vunpack.i.h.bf16 %v6300_v23  ;;  %v6301_v60 = vunpack.i.l.bf16 %v6300_v23 }
 0x540   :  { %v3215_v32 = vsel %vm1812_vm9, %v6296_v45, %v6297_v6  ;;  %v3214_v55 = vsel %vm1812_vm9, %v3201_v11, %v6296_v45 }
 0x541   :  { %v6305_v25 = vpop.permute.xlu0 %6304  ;;  %v3238_v29 = vmax.f32 %v8261_v22, %v3215_v32  ;;  %v3272_v44 = vsel %vm9429_vm10, %v6301_v60, %v6302_v53  ;;  %v3237_v10 = vmax.f32 %v8259_v57, %v3214_v55  ;;  %vm9436_vm10 = vmmov %vm9435_vm3 }
 0x542   :  { %v6307_v43 = vunpack.i.h.bf16 %v6305_v25  ;;  %v6306_v42 = vunpack.i.l.bf16 %v6305_v25  ;;  %v3258_v7 = vpop.permute.xlu1 %3257 }
 0x543   :  { %v3295_v31 = vmax.f32 %v3238_v29, %v3272_v44  ;;  %v3271_v1 = vsel %vm9430_vm13, %v3258_v7, %v6301_v60  ;;  %v8447_v7 = vld [vmem:[#allocation3 + $0x18] sm:$0xff]  ;;  %vm9440_vm13 = vcmask 588800  }
 0x544   :  { %v3329_v12 = vsel %vm9431_vm12, %v6306_v42, %v6307_v43  ;;  %v3294_v61 = vmax.f32 %v3237_v10, %v3271_v1  ;;  %vm9441_vm12 = vmmov %vm9435_vm3 }
 0x545   :  { %v3352_v5 = vmax.f32 %v3295_v31, %v3329_v12  ;;  %v3264_v63 = vpop.permute.xlu0 %3263 }
 0x546   :  { %v3315_v8 = vpop.permute.xlu1 %3314  ;;  %v3273_v57 = vsel %vm9423_vm0, %v6302_v53, %v3264_v63  ;;  %vm9443_vm0 = vmmov %vm9435_vm3 }
 0x547   :  { %3487 = vmatprep.mubr.f32.mxu0 %v3352_v5  ;;  %v3328_v22 = vsel %vm9432_vm15, %v3315_v8, %v6306_v42  ;;  %vm9442_vm15 = vmmov %vm9435_vm3 }
 0x548   :  { %v3351_v46 = vmax.f32 %v3294_v61, %v3328_v22 }
 0x54a   :  { %v3207_v62 = vpop.permute.xlu1 %3206  ;;  %3488 = vmatmul.mubr.f32.gmra.mxu0 %v3351_v46 }
 0x54b   :  { %v3216_v18 = vsel %vm1812_vm9, %v6297_v6, %v3207_v62  ;;  %v3240_v27 = vmax.f32 %v8265_v38, %v3207_v62  ;;  %vm6418_vm9 = vmmov 0   ;;  %v8331_v38 = vld [vmem:[%s6523_s4 + $0xf] ss:$0 sm:$0xff] }
 0x54c   :  { %v3239_v14 = vmax.f32 %v8263_v30, %v3216_v18  ;;  %6133 = vmatprep.mubr.msk.f32.mxu0 %vm6418_vm9, %v8026_v50  ;;  %v8328_v30 = vld [vmem:[%s6523_s4 + $0xe] ss:$0 sm:$0xff]  ;;  %3998 = vrot.lane.b32.xlu1 %v8331_v38, %s6419_s25  ;;  %v8348_v50 = vld [vmem:[%s6523_s4 + $0xa] ss:$0 sm:$0xff] }
 0x54d   :  { %v3297_v9 = vmax.f32 %v3240_v27, %v3264_v63  ;;  %3981 = vrot.lane.b32.xlu0 %v8328_v30, %s6395_s5  ;;  %v3573_v63 = vld [vmem:[%s6493_s24] sm:$0xff]  ;;  %s9437_s24 = sld [smem:[#allocation9_spill]] }
 0x54e   :  { %v3321_v19 = vpop.permute.xlu1 %3320  ;;  %v3296_v54 = vmax.f32 %v3239_v14, %v3273_v57 }
 0x54f   :  { %v3330_v20 = vsel %vm9433_vm11, %v6307_v43, %v3321_v19  ;;  %v3354_v21 = vmax.f32 %v3297_v9, %v3321_v19  ;;  %vm9444_vm11 = vmmov %vm9443_vm0 }
 0x550   :  { %v3353_v15 = vmax.f32 %v3296_v54, %v3330_v20  ;;  %3964 = vrot.lane.b32.xlu1 %v8341_v28, %s9337_s11 }
 0x551   :  { %5844 = vmatprep.mubr.msk.f32.mxu1 %vm9434_vm4, %v3354_v21  ;;  %3931 = vrot.lane.b32.xlu0 %v8338_v59, %s6397_s13  ;;  %vm9445_vm4 = vmmov %vm9443_vm0 }
 0x552   :  { %3568 = vmatmul.mubr.f32.gmra.mxu1 %v3353_v15  ;;  %v3578_v32 = vpop.permute.xlu0 %3577 }
 0x554   :  { %3908 = vrot.lane.b32.xlu1 %v8348_v50, %s6398_s21 }
 0x555   :  { %3884 = vrot.lane.b32.xlu0 %v8351_v51, %s6420_s29 }
 0x558   :  { %3860 = vrot.lane.b32.xlu1 %v8358_v0, %s6421_s3 }
 0x559   :  { %3836 = vrot.lane.b32.xlu0 %v8361_v4, %s6422_s8 }
 0x55c   :  { %3813 = vrot.lane.b32.xlu1 %v8368_v26, %s6423_s19 }
 0x55d   :  { %3789 = vrot.lane.b32.xlu0 %v8371_v58, %s6424_s30 }
 0x560   :  { %3766 = vrot.lane.b32.xlu1 %v8378_v36, %s6399_s7 }
 0x561   :  { %3743 = vrot.lane.b32.xlu0 %v8381_v13, %s9349_s2 }
 0x564   :  { %3720 = vrot.lane.b32.xlu1 %v8388_v56, %s9342_s1 }
 0x565   :  { %3697 = vrot.lane.b32.xlu0 %v8391_v2, %s9339_s15 }
 0x568   :  { %3674 = vrot.lane.b32.xlu1 %v8398_v33, %s9333_s10 }
 0x569   :  { %4151 = vrot.lane.b32.xlu0 %v8401_v47, %s6414_s16 }
 0x56c   :  { %4134 = vrot.lane.b32.xlu1 %v8411_v3, %s6415_s18 }
 0x56d   :  { %4117 = vrot.lane.b32.xlu0 %v8408_v52, %s6416_s26 }
 0x570   :  { %4100 = vrot.lane.b32.xlu1 %v8421_v40, %s6417_s22 }
 0x571   :  { %4083 = vrot.lane.b32.xlu0 %v8418_v41, %s6394_s0 }
 0x574   :  { %4066 = vrot.lane.b32.xlu1 %v8431_v48, %s6426_s23 }
 0x575   :  { %4049 = vrot.lane.b32.xlu0 %v8428_v34, %s6425_s9 }
 0x578   :  { %4032 = vrot.lane.b32.xlu1 %v8441_v24, %s6428_s17 }
 0x579   :  { %4015 = vrot.lane.b32.xlu0 %v8438_v17, %s6427_s28 }
 0x5be   :  { %v3999_v25 = vpop.permute.xlu1 %3998 }
 0x5bf   :  { %v3982_v60 = vpop.permute.xlu0 %3981 }
 0x5c2   :  { %v3965_v55 = vpop.permute.xlu1 %3964 }
 0x5c3   :  { %v3932_v42 = vpop.permute.xlu0 %3931 }
 0x5c4   :  { %v3934_v31 = vmul.f32 %v8447_v7, %v3932_v42 }
 0x5c6   :  { %3938 = vrot.lane.b32.xlu0 %v3934_v31, %s9337_s11  ;;  %v3909_v8 = vpop.permute.xlu1 %3908 }
 0x5c7   :  { %v3911_v22 = vmul.f32 %v8447_v7, %v3909_v8  ;;  %v3885_v62 = vpop.permute.xlu0 %3884 }
 0x5c8   :  { %v3887_v18 = vmul.f32 %v8447_v7, %v3885_v62 }
 0x5ca   :  { %3915 = vrot.lane.b32.xlu0 %v3911_v22, %s6395_s5  ;;  %v3861_v27 = vpop.permute.xlu1 %3860 }
 0x5cb   :  { %v3863_v14 = vmul.f32 %v8447_v7, %v3861_v27  ;;  %v3837_v57 = vpop.permute.xlu0 %3836 }
 0x5cc   :  { %v3839_v9 = vmul.f32 %v8447_v7, %v3837_v57 }
 0x5cd   :  { %v3559_v16 = vpop.f32.mrf.mxu1 }
 0x5ce   :  { %3891 = vrot.lane.b32.xlu0 %v3887_v18, %s6419_s25 }
 0x5cf   :  { %v3561_v35 = vpop.f32.mrf.mxu1 }
 0x5d0   :  { %v3814_v35 = vpop.permute.xlu1 %3813 }
 0x5d2   :  { %3867 = vrot.lane.b32.xlu0 %v3863_v14, %s6427_s28 }
 0x5d6   :  { %v6094_v39 = vpop.f32.mrf.mxu0  ;;  %3843 = vrot.lane.b32.xlu0 %v3839_v9, %s6428_s17 }
 0x5d8   :  { %v6095_v6 = vpop.f32.mrf.mxu0 }
 0x5d9   :  { %v6096_v1 = vadd.f32 %v6095_v6, %v6094_v39  ;;  %v3816_v39 = vmul.f32 %v8447_v7, %v3814_v35  ;;  %v3790_v6 = vpop.permute.xlu0 %3789 }
 0x5db   :  { %v6097_v45 = vpop.f32.mrf.mxu0  ;;  %v3560_v46 = vadd.f32 %v6096_v1, %v3559_v16 }
 0x5dd   :  { %v6098_v23 = vpop.f32.mrf.mxu0 }
 0x5de   :  { %v6099_v12 = vadd.f32 %v6098_v23, %v6097_v45  ;;  %v8480_v45 = vld [vmem:[%s6523_s4 + $0xc] ss:$0 sm:$0xff]  ;;  %v3792_v23 = vmul.f32 %v8447_v7, %v3790_v6  ;;  %s9438_s4 = sld [smem:[#allocation8_spill]] }
 0x5e1   :  { %v3564_v37 = vpop.f32.mrf.mxu1 }
 0x5e2   :  { %v3565_v61 = vadd.f32 %v6099_v12, %v3564_v37 }
 0x5e3   :  { %v3566_v11 = vpop.f32.mrf.mxu1 }
 0x60a   :  { %v6100_v53 = vpop.f32.mrf.mxu0 }
 0x60c   :  { %v6101_v29 = vpop.f32.mrf.mxu0 }
 0x60d   :  { %v6102_v43 = vadd.f32 %v6101_v29, %v6100_v53 }
 0x612   :  { %v3569_v44 = vpop.f32.mrf.mxu1 }
 0x613   :  { %v3570_v10 = vadd.f32 %v6102_v43, %v3569_v44  ;;  %v3744_v43 = vpop.permute.xlu0 %3743 }
 0x614   :  { %v3571_v5 = vpop.f32.mrf.mxu1 }
 0x615   :  { %6128 = vmatpush3.msk.msra.mxu0 %vm2993_vm5, %v3570_v10 }
 0x616   :  { %6129 = vmatprep.subr.mxu0 %v8447_v7 }
 0x617   :  { %6130 = vmatpush3.msra.mxu0 %v3565_v61  ;;  %v3698_v31 = vpop.permute.xlu0 %3697 }
 0x618   :  { %6131 = vmatprep.subr.mxu0 %v8447_v7  ;;  %v3700_v5 = vmul.f32 %v8447_v7, %v3698_v31 }
 0x619   :  { %6132 = vmatpush3.msra.mxu0 %v3560_v46 }
 0x61a   :  { %6134 = vmatmul.mubr.msk.f32.vlgmr.msra.gmra.mxu0 %vm3580_vm2, %v3573_v63  ;;  %6136 = vmatprep.subr.mxu0 %v8447_v7 }
 0x61b   :  { %6142 = vmatprep.mubr.msk.f32.mxu0 %vm6418_vm9, %v8447_v7  ;;  %v4152_v10 = vpop.permute.xlu0 %4151 }
 0x61f   :  { %v4118_v46 = vpop.permute.xlu0 %4117 }
 0x6da   :  { %v3653_v19 = vpop.f32.mrf.mxu0 }
 0x6db   :  { %v3654_v54 = vadd.f32 %v3653_v19, %v3578_v32 }
 0x6dc   :  { %v6135_v20 = vpop.f32.mrf.mxu0 }
 0x6dd   :  { %v3657_v21 = vmax.f32 %v3654_v54, 0.0 }
 0x6df   :  { %3659 = vst.msk [vmem:[#allocation3 + $0x8] sm:$0xff] %vm9435_vm3, %v3657_v21  ;;  %vm3895_vm3 = vcmask 39936  }
 0x6e0   :  { %3661 = vst.msk [vmem:[#allocation3 + $0x8] sm:$0xff] %vm3660_vm6, %v8447_v7 }
 0x6e7   :  { %v8470_v15 = vld [vmem:[#allocation3 + $0x8] sm:$0xff] }
 0x6e8   :  { %v4001_v16 = vmul.f32 %v3999_v25, %v8470_v15  ;;  %v3984_v37 = vmul.f32 %v3982_v60, %v8470_v15  ;;  %v3967_v11 = vmul.f32 %v3965_v55, %v8470_v15  ;;  %v3954_v32 = vmul.f32 %v8480_v45, %v8470_v15  ;;  %v3767_v60 = vpop.permute.xlu1 %3766 }
 0x6e9   :  { %v3935_v53 = vmul.f32 %v3932_v42, %v8470_v15  ;;  %v3769_v25 = vmul.f32 %v8447_v7, %v3767_v60  ;;  %v3912_v29 = vmul.f32 %v3909_v8, %v8470_v15  ;;  %v3746_v55 = vmul.f32 %v8447_v7, %v3744_v43 }
 0x6ea   :  { %4003 = vrot.lane.b32.xlu1 %v4001_v16, %s6420_s29  ;;  %3986 = vrot.lane.b32.xlu0 %v3984_v37, %s6398_s21  ;;  %3955 = vst.msk [vmem:[#allocation4 + $0x180] sm:$0xff] %vm9436_vm10, %v3954_v32  ;;  %v3888_v42 = vmul.f32 %v3885_v62, %v8470_v15  ;;  %v3864_v12 = vmul.f32 %v8470_v15, %v3861_v27  ;;  %v4084_v27 = vpop.permute.xlu0 %4083  ;;  %vm9446_vm10 = vmmov %vm9443_vm0 }
 0x6eb   :  { %v3840_v61 = vmul.f32 %v8470_v15, %v3837_v57  ;;  %v3817_v22 = vmul.f32 %v8470_v15, %v3814_v35  ;;  %v3793_v62 = vmul.f32 %v8470_v15, %v3790_v6  ;;  %v4154_v18 = vmul.f32 %v4152_v10, %v8470_v15 }
 0x6ec   :  { %v3721_v44 = vpop.permute.xlu1 %3720  ;;  %v3770_v14 = vmul.f32 %v8470_v15, %v3767_v60  ;;  %v4120_v57 = vmul.f32 %v4118_v46, %v8470_v15  ;;  %v3747_v9 = vmul.f32 %v8470_v15, %v3744_v43  ;;  %v4086_v54 = vmul.f32 %v4084_v27, %v8470_v15 }
 0x6ed   :  { %v3723_v1 = vmul.f32 %v8447_v7, %v3721_v44  ;;  %v3724_v20 = vmul.f32 %v8470_v15, %v3721_v44  ;;  %v3701_v37 = vmul.f32 %v8470_v15, %v3698_v31  ;;  %v4191_v44 = vld [vmem:[%s9437_s24] sm:$0xff]  ;;  %v4353_v31 = vld [vmem:[%s9439_s14 + $0x10] sm:$0x1f] }
 0x6ee   :  { %3969 = vrot.lane.b32.xlu1 %v3967_v11, %s6397_s13  ;;  %3820 = vrot.lane.b32.xlu0 %v3816_v39, %s6425_s9  ;;  %v4050_v19 = vpop.permute.xlu0 %4049 }
 0x6ef   :  { %v4052_v21 = vmul.f32 %v4050_v19, %v8470_v15 }
 0x6f0   :  { %v3675_v8 = vpop.permute.xlu1 %3674 }
 0x6f1   :  { %v3677_v63 = vmul.f32 %v8447_v7, %v3675_v8  ;;  %v3678_v39 = vmul.f32 %v8470_v15, %v3675_v8  ;;  %v4178_v19 = vld [vmem:[#allocation4 + $0x180] sm:$0xff] }
 0x6f2   :  { %3940 = vrot.lane.b32.xlu1 %v3935_v53, %s9337_s11  ;;  %3796 = vrot.lane.b32.xlu0 %v3792_v23, %s6426_s23  ;;  %v4016_v16 = vpop.permute.xlu0 %4015  ;;  %v4192_v23 = vld [vmem:[%s9437_s24 + $0x8] sm:$0xff] }
 0x6f3   :  { %v4018_v11 = vmul.f32 %v4016_v16, %v8470_v15 }
 0x6f4   :  { %v4135_v35 = vpop.permute.xlu1 %4134 }
 0x6f5   :  { %v4137_v32 = vmul.f32 %v4135_v35, %v8470_v15 }
 0x6f6   :  { %3917 = vrot.lane.b32.xlu1 %v3912_v29, %s6395_s5  ;;  %3773 = vrot.lane.b32.xlu0 %v3769_v25, %s6394_s0 }
 0x6f8   :  { %v4101_v6 = vpop.permute.xlu1 %4100 }
 0x6f9   :  { %v4103_v60 = vmul.f32 %v4101_v6, %v8470_v15 }
 0x6fa   :  { %3893 = vrot.lane.b32.xlu1 %v3888_v42, %s6419_s25  ;;  %3750 = vrot.lane.b32.xlu0 %v3746_v55, %s6417_s22  ;;  %v4161_v55 = vld [vmem:[%s9438_s4 + $0x8] sm:$0xff]  ;;  %v4193_v42 = vld [vmem:[%s9437_s24 + $0x10] sm:$0x1f]  ;;  %s9469_s24 = sld [smem:[#allocation11_spill]] }
 0x6fb   :  { %5896 = vmatprep.mubr.msk.f32.mxu1 %vm9440_vm13, %v4161_v55  ;;  %vm3871_vm13 = vcmask 48128  }
 0x6fc   :  { %v4067_v53 = vpop.permute.xlu1 %4066 }
 0x6fd   :  { %v4069_v25 = vmul.f32 %v4067_v53, %v8470_v15 }
 0x6fe   :  { %3869 = vrot.lane.b32.xlu1 %v3864_v12, %s6427_s28  ;;  %3727 = vrot.lane.b32.xlu0 %v3723_v1, %s6416_s26  ;;  %v3939_v1 = vpop.permute.xlu0 %3938 }
 0x700   :  { %v4033_v29 = vpop.permute.xlu1 %4032 }
 0x701   :  { %v4035_v43 = vmul.f32 %v4033_v29, %v8470_v15 }
 0x702   :  { %3845 = vrot.lane.b32.xlu1 %v3840_v61, %s6428_s17  ;;  %3704 = vrot.lane.b32.xlu0 %v3700_v5, %s6415_s18  ;;  %v3916_v12 = vpop.permute.xlu0 %3915 }
 0x706   :  { %3822 = vrot.lane.b32.xlu1 %v3817_v22, %s6425_s9  ;;  %3681 = vrot.lane.b32.xlu0 %v3677_v63, %s6414_s16  ;;  %v3892_v10 = vpop.permute.xlu0 %3891 }
 0x70a   :  { %3798 = vrot.lane.b32.xlu1 %v3793_v62, %s6426_s23  ;;  %4156 = vrot.lane.b32.xlu0 %v4154_v18, %s9333_s10  ;;  %v3868_v5 = vpop.permute.xlu0 %3867 }
 0x70e   :  { %3775 = vrot.lane.b32.xlu1 %v3770_v14, %s6394_s0  ;;  %4122 = vrot.lane.b32.xlu0 %v4120_v57, %s9342_s1  ;;  %v3844_v61 = vpop.permute.xlu0 %3843 }
 0x712   :  { %3752 = vrot.lane.b32.xlu1 %v3747_v9, %s6417_s22  ;;  %4088 = vrot.lane.b32.xlu0 %v4086_v54, %s6399_s7 }
 0x716   :  { %3729 = vrot.lane.b32.xlu1 %v3724_v20, %s6416_s26  ;;  %4054 = vrot.lane.b32.xlu0 %v4052_v21, %s6423_s19 }
 0x71a   :  { %3706 = vrot.lane.b32.xlu1 %v3701_v37, %s6415_s18  ;;  %4020 = vrot.lane.b32.xlu0 %v4018_v11, %s6421_s3 }
 0x71e   :  { %3683 = vrot.lane.b32.xlu1 %v3678_v39, %s6414_s16  ;;  %4201 = vperm.xlu0 %6246, %v4192_v23  }
 0x722   :  { %4139 = vrot.lane.b32.xlu1 %v4137_v32, %s9339_s15 }
 0x726   :  { %4105 = vrot.lane.b32.xlu1 %v4103_v60, %s9349_s2 }
 0x72a   :  { %4071 = vrot.lane.b32.xlu1 %v4069_v25, %s6424_s30 }
 0x72e   :  { %4037 = vrot.lane.b32.xlu1 %v4035_v43, %s6422_s8 }
 0x732   :  { %4206 = vperm.xlu1 %6247, %v4193_v42  }
 0x736   :  { %4196 = vperm.xlu1 %6247, %v4191_v44  }
 0x73a   :  { %4366 = vperm.xlu1 %6247, %v4353_v31  }
 0x75c   :  { %v4004_v8 = vpop.permute.xlu1 %4003  ;;  %v3987_v15 = vpop.permute.xlu0 %3986 }
 0x75d   :  { %4006 = vst.msk [vmem:[#allocation4 + $0x1e0] sm:$0xff] %vm9441_vm12, %v4004_v8  ;;  %vm9447_vm12 = vmmov %vm9443_vm0 }
 0x75e   :  { %3989 = vst.msk [vmem:[#allocation4 + $0x1c0] sm:$0xff] %vm9442_vm15, %v3987_v15  ;;  %vm9253_vm15 = vcmask 56320  }
 0x760   :  { %v3970_v22 = vpop.permute.xlu1 %3969  ;;  %v3821_v46 = vpop.permute.xlu0 %3820 }
 0x761   :  { %3972 = vst.msk [vmem:[#allocation4 + $0x1a0] sm:$0xff] %vm9443_vm0, %v3970_v22 }
 0x764   :  { %v3941_v63 = vpop.permute.xlu1 %3940  ;;  %v4181_v62 = vld [vmem:[#allocation4 + $0x1e0] sm:$0xff]  ;;  %v3797_v27 = vpop.permute.xlu0 %3796 }
 0x765   :  { %v3942_v18 = vsel %vm1841_vm8, %v3939_v1, %v3941_v63  ;;  %4219 = vmatpush1.msra.mxu1 %v4181_v62  ;;  %v4180_v14 = vld [vmem:[#allocation4 + $0x1c0] sm:$0xff] }
 0x766   :  { %3944 = vst.msk [vmem:[#allocation4 + $0x160] sm:$0xff] %vm9444_vm11, %v3942_v18  ;;  %4220 = vmatprep.subr.mxu1 %v8447_v7  ;;  %vm9448_vm11 = vcmask 64512  }
 0x767   :  { %4221 = vmatpush1.msra.mxu1 %v4180_v14 }
 0x768   :  { %v3918_v57 = vpop.permute.xlu1 %3917  ;;  %4222 = vmatprep.subr.mxu1 %v8447_v7  ;;  %v4179_v9 = vld [vmem:[#allocation4 + $0x1a0] sm:$0xff]  ;;  %v3774_v20 = vpop.permute.xlu0 %3773 }
 0x769   :  { %v3919_v54 = vsel %vm1767_vm7, %v3916_v12, %v3918_v57  ;;  %4223 = vmatpush1.msra.mxu1 %v4179_v9 }
 0x76a   :  { %3921 = vst.msk [vmem:[#allocation4 + $0x140] sm:$0xff] %vm9445_vm4, %v3919_v54  ;;  %4224 = vmatprep.subr.mxu1 %v8447_v7  ;;  %vm9449_vm4 = vmmov %vm9443_vm0 }
 0x76b   :  { %4225 = vmatpush1.msra.mxu1 %v4178_v19 }
 0x76c   :  { %v3894_v21 = vpop.permute.xlu1 %3893  ;;  %4226 = vmatprep.subr.mxu1 %v8447_v7  ;;  %v3751_v37 = vpop.permute.xlu0 %3750 }
 0x76d   :  { %v3896_v16 = vsel %vm3895_vm3, %v3892_v10, %v3894_v21  ;;  %v4177_v35 = vld [vmem:[#allocation4 + $0x160] sm:$0xff] }
 0x76e   :  { %3898 = vst.msk [vmem:[#allocation4 + $0x120] sm:$0xff] %vm9446_vm10, %v3896_v16  ;;  %4227 = vmatpush1.msra.mxu1 %v4177_v35  ;;  %vm9254_vm10 = vcmask 72704  }
 0x76f   :  { %4228 = vmatprep.subr.mxu1 %v8447_v7 }
 0x770   :  { %v3870_v11 = vpop.permute.xlu1 %3869  ;;  %v3728_v23 = vpop.permute.xlu0 %3727 }
 0x771   :  { %v3872_v39 = vsel %vm3871_vm13, %v3868_v5, %v3870_v11  ;;  %v4176_v6 = vld [vmem:[#allocation4 + $0x140] sm:$0xff] }
 0x772   :  { %3874 = vst.msk [vmem:[#allocation4 + $0x100] sm:$0xff] %vm9447_vm12, %v3872_v39  ;;  %4229 = vmatpush1.msra.mxu1 %v4176_v6  ;;  %vm9450_vm12 = vmmov %vm9443_vm0 }
 0x773   :  { %4230 = vmatprep.subr.mxu1 %v8447_v7 }
 0x774   :  { %v3846_v32 = vpop.permute.xlu1 %3845  ;;  %v3705_v25 = vpop.permute.xlu0 %3704 }
 0x775   :  { %v3848_v53 = vsel %vm9253_vm15, %v3844_v61, %v3846_v32  ;;  %v4175_v60 = vld [vmem:[#allocation4 + $0x120] sm:$0xff]  ;;  %vm9453_vm15 = vmmov %vm9443_vm0 }
 0x776   :  { %3850 = vst.msk [vmem:[#allocation4 + $0xe0] sm:$0xff] %vm9443_vm0, %v3848_v53  ;;  %4231 = vmatpush1.msra.mxu1 %v4175_v60 }
 0x777   :  { %4232 = vmatprep.subr.mxu1 %v8447_v7 }
 0x778   :  { %v3823_v29 = vpop.permute.xlu1 %3822  ;;  %v3682_v42 = vpop.permute.xlu0 %3681 }
 0x779   :  { %v3824_v43 = vsel %vm9448_vm11, %v3821_v46, %v3823_v29  ;;  %v4174_v55 = vld [vmem:[#allocation4 + $0x100] sm:$0xff]  ;;  %vm9451_vm11 = vcmask 97280  }
 0x77a   :  { %3826 = vst.msk [vmem:[#allocation4 + $0xc0] sm:$0xff] %vm9449_vm4, %v3824_v43  ;;  %4233 = vmatpush1.msra.mxu1 %v4174_v55  ;;  %vm9452_vm4 = vmmov %vm9443_vm0 }
 0x77b   :  { %4234 = vmatprep.subr.mxu1 %v8447_v7 }
 0x77c   :  { %v3799_v44 = vpop.permute.xlu1 %3798  ;;  %v4157_v12 = vpop.permute.xlu0 %4156 }
 0x77d   :  { %v3801_v31 = vsel %vm9254_vm10, %v3797_v27, %v3799_v44  ;;  %v4173_v1 = vld [vmem:[#allocation4 + $0xe0] sm:$0xff]  ;;  %4159 = vst.msk [vmem:[#allocation4 + $0x300] sm:$0xff] %vm9443_vm0, %v4157_v12  ;;  %vm9454_vm10 = vcmask 105472   ;;  %v4162_v12 = vld [vmem:[%s9438_s4 + $0x10] sm:$0xff] }
 0x77e   :  { %3803 = vst.msk [vmem:[#allocation4 + $0xa0] sm:$0xff] %vm9450_vm12, %v3801_v31  ;;  %4235 = vmatpush1.msra.mxu1 %v4173_v1  ;;  %vm9455_vm12 = vmmov %vm9443_vm0  ;;  %v4160_v31 = vld [vmem:[%s9438_s4] sm:$0xff]  ;;  %v4163_v1 = vld [vmem:[%s9438_s4 + $0x18] sm:$0xff] }
 0x77f   :  { %4236 = vmatprep.subr.mxu1 %v8447_v7 }
 0x780   :  { %v3776_v10 = vpop.permute.xlu1 %3775  ;;  %v4123_v8 = vpop.permute.xlu0 %4122 }
 0x781   :  { %v3777_v5 = vsel %vm9451_vm11, %v3774_v20, %v3776_v10  ;;  %v4172_v61 = vld [vmem:[#allocation4 + $0xc0] sm:$0xff]  ;;  %4125 = vst.msk [vmem:[#allocation4 + $0x2c0] sm:$0xff] %vm9453_vm15, %v4123_v8  ;;  %vm9456_vm15 = vmmov %vm9443_vm0 }
 0x782   :  { %3779 = vst.msk [vmem:[#allocation4 + $0x80] sm:$0xff] %vm9452_vm4, %v3777_v5  ;;  %4237 = vmatpush1.msra.mxu1 %v4172_v61  ;;  %vm9457_vm11 = vmmov %vm9443_vm0  ;;  %v4165_v10 = vld [vmem:[%s9438_s4 + $0x28] sm:$0x1f]  ;;  %v4164_v5 = vld [vmem:[%s9438_s4 + $0x20] sm:$0x1f]  ;;  %s9472_s4 = sld [smem:[#allocation13_spill]] }
 0x783   :  { %4238 = vmatprep.subr.mxu1 %v8447_v7  ;;  %vm9459_vm4 = vmmov %vm9443_vm0 }
 0x784   :  { %v3753_v15 = vpop.permute.xlu1 %3752  ;;  %v4089_v63 = vpop.permute.xlu0 %4088  ;;  %v4190_v6 = vld [vmem:[#allocation4 + $0x300] sm:$0xff] }
 0x785   :  { %v3754_v22 = vsel %vm9454_vm10, %v3751_v37, %v3753_v15  ;;  %v4171_v46 = vld [vmem:[#allocation4 + $0xa0] sm:$0xff]  ;;  %4091 = vst.msk [vmem:[#allocation4 + $0x280] sm:$0xff] %vm9443_vm0, %v4089_v63  ;;  %vm9458_vm10 = vcmask 121856  }
 0x786   :  { %3756 = vst.msk [vmem:[#allocation4 + $0x60] sm:$0xff] %vm9455_vm12, %v3754_v22  ;;  %4239 = vmatpush1.msra.mxu1 %v4171_v46  ;;  %vm9460_vm12 = vmmov %vm9443_vm0 }
 0x787   :  { %4240 = vmatprep.subr.mxu1 %v8447_v7 }
 0x788   :  { %v3730_v62 = vpop.permute.xlu1 %3729  ;;  %v4055_v14 = vpop.permute.xlu0 %4054  ;;  %v4188_v53 = vld [vmem:[#allocation4 + $0x2c0] sm:$0xff] }
 0x789   :  { %v3731_v18 = vsel %vm1560_vm1, %v3728_v23, %v3730_v62  ;;  %v4170_v27 = vld [vmem:[#allocation4 + $0x80] sm:$0xff]  ;;  %4057 = vst.msk [vmem:[#allocation4 + $0x240] sm:$0xff] %vm9457_vm11, %v4055_v14  ;;  %vm9462_vm11 = vmmov %vm9443_vm0 }
 0x78a   :  { %3733 = vst.msk [vmem:[#allocation4 + $0x40] sm:$0xff] %vm9456_vm15, %v3731_v18  ;;  %4241 = vmatpush1.msra.mxu1 %v4170_v27  ;;  %vm9461_vm15 = vmmov %vm9443_vm0 }
 0x78b   :  { %4242 = vmatprep.subr.mxu1 %v8447_v7 }
 0x78c   :  { %v3707_v57 = vpop.permute.xlu1 %3706  ;;  %v4021_v54 = vpop.permute.xlu0 %4020  ;;  %v4186_v29 = vld [vmem:[#allocation4 + $0x280] sm:$0xff] }
 0x78d   :  { %v3708_v9 = vsel %vm9458_vm10, %v3705_v25, %v3707_v57  ;;  %v4169_v19 = vld [vmem:[#allocation4 + $0x60] sm:$0xff]  ;;  %4023 = vst.msk [vmem:[#allocation4 + $0x200] sm:$0xff] %vm9460_vm12, %v4021_v54  ;;  %vm9463_vm10 = vmmov %vm9443_vm0  ;;  %vm9465_vm12 = vcmask 588800  }
 0x78e   :  { %3710 = vst.msk [vmem:[#allocation4 + $0x20] sm:$0xff] %vm9459_vm4, %v3708_v9  ;;  %4243 = vmatpush1.msra.mxu1 %v4169_v19  ;;  %vm9464_vm4 = vmmov %vm9443_vm0 }
 0x78f   :  { %4244 = vmatprep.subr.mxu1 %v8447_v7 }
 0x790   :  { %v3684_v20 = vpop.permute.xlu1 %3683  ;;  %v4184_v55 = vld [vmem:[#allocation4 + $0x240] sm:$0xff] }
 0x791   :  { %v3685_v21 = vsel %vm1427_vm14, %v3682_v42, %v3684_v20  ;;  %v4168_v16 = vld [vmem:[#allocation4 + $0x40] sm:$0xff] }
 0x792   :  { %3687 = vst.msk [vmem:[#allocation4] sm:$0xff] %vm9443_vm0, %v3685_v21  ;;  %4245 = vmatpush1.msra.mxu1 %v4168_v16  ;;  %vm9466_vm0 = vmmov %vm9465_vm12 }
 0x793   :  { %4246 = vmatprep.subr.mxu1 %v8447_v7 }
 0x794   :  { %v4140_v35 = vpop.permute.xlu1 %4139  ;;  %v4182_v44 = vld [vmem:[#allocation4 + $0x200] sm:$0xff] }
 0x795   :  { %4142 = vst.msk [vmem:[#allocation4 + $0x2e0] sm:$0xff] %vm9461_vm15, %v4140_v35  ;;  %v4167_v37 = vld [vmem:[#allocation4 + $0x20] sm:$0xff]  ;;  %vm9467_vm15 = vmmov %vm9464_vm4 }
 0x796   :  { %4247 = vmatpush1.msra.mxu1 %v4167_v37 }
 0x797   :  { %4248 = vmatprep.subr.mxu1 %v8447_v7 }
 0x798   :  { %v4106_v11 = vpop.permute.xlu1 %4105 }
 0x799   :  { %4108 = vst.msk [vmem:[#allocation4 + $0x2a0] sm:$0xff] %vm9462_vm11, %v4106_v11  ;;  %v4166_v39 = vld [vmem:[#allocation4] sm:$0xff]  ;;  %v4202_v62 = vpop.permute.xlu0 %4201  ;;  %vm9468_vm11 = vmmov %vm9464_vm4 }
 0x79a   :  { %4249 = vmatpush1.msra.mxu1 %v4166_v39 }
 0x79b   :  { %4264 = vmatprep.subr.mxu1 %v8447_v7 }
 0x79c   :  { %4265 = vmatpush2.msra.mxu1 %v4190_v6  ;;  %v4072_v23 = vpop.permute.xlu1 %4071  ;;  %v4189_v32 = vld [vmem:[#allocation4 + $0x2e0] sm:$0xff] }
 0x79d   :  { %4266 = vmatprep.subr.mxu1 %v8447_v7  ;;  %4074 = vst.msk [vmem:[#allocation4 + $0x260] sm:$0xff] %vm9463_vm10, %v4072_v23  ;;  %vm9470_vm10 = vmmov %vm9464_vm4 }
 0x79e   :  { %4267 = vmatpush2.msra.mxu1 %v4189_v32 }
 0x79f   :  { %4268 = vmatprep.subr.mxu1 %v8447_v7 }
 0x7a0   :  { %4269 = vmatpush2.msra.mxu1 %v4188_v53  ;;  %v4038_v60 = vpop.permute.xlu1 %4037  ;;  %v4187_v25 = vld [vmem:[#allocation4 + $0x2a0] sm:$0xff]  ;;  %v4374_v53 = vld [vmem:[%s9469_s24 + $0x10] sm:$0x1f] }
 0x7a1   :  { %4270 = vmatprep.subr.mxu1 %v8447_v7  ;;  %4040 = vst.msk [vmem:[#allocation4 + $0x220] sm:$0xff] %vm9464_vm4, %v4038_v60  ;;  %vm4307_vm4 = vcmask 798720   ;;  %v4351_v60 = vld [vmem:[%s9439_s14] sm:$0xff] }
 0x7a2   :  { %4271 = vmatpush2.msra.mxu1 %v4187_v25  ;;  %v4372_v25 = vld [vmem:[%s9469_s24] sm:$0xff] }
 0x7a3   :  { %4272 = vmatprep.subr.mxu1 %v8447_v7 }
 0x7a4   :  { %4273 = vmatpush2.msra.mxu1 %v4186_v29  ;;  %v4185_v43 = vld [vmem:[#allocation4 + $0x260] sm:$0xff] }
 0x7a5   :  { %4274 = vmatprep.subr.mxu1 %v8447_v7  ;;  %v4352_v29 = vld [vmem:[%s9439_s14 + $0x8] sm:$0xff]  ;;  %s9473_s14 = sld [smem:[#allocation12_spill]] }
 0x7a6   :  { %4275 = vmatpush2.msra.mxu1 %v4185_v43  ;;  %v4373_v43 = vld [vmem:[%s9469_s24 + $0x8] sm:$0xff] }
 0x7a7   :  { %4276 = vmatprep.subr.mxu1 %v8447_v7 }
 0x7a8   :  { %4277 = vmatpush2.msra.mxu1 %v4184_v55  ;;  %v4183_v42 = vld [vmem:[#allocation4 + $0x220] sm:$0xff]  ;;  %v4394_v55 = vld [vmem:[%s9472_s4] sm:$0xff] }
 0x7a9   :  { %4278 = vmatprep.subr.mxu1 %v8447_v7 }
 0x7aa   :  { %4279 = vmatpush2.msra.mxu1 %v4183_v42 }
 0x7ab   :  { %4280 = vmatprep.subr.mxu1 %v8447_v7 }
 0x7ac   :  { %4281 = vmatpush2.msra.mxu1 %v4182_v44 }
 0x7ad   :  { %4283 = vmatmul.mubr.f32.vlgmr.msra.gmra.mxu1 %v4160_v31  ;;  %6145 = vmatprep.subr.mxu1 %v8447_v7  ;;  %v4207_v61 = vpop.permute.xlu1 %4206 }
 0x7ae   :  { %5897 = vmatprep.mubr.msk.f32.mxu1 %vm9465_vm12, %v4163_v1  ;;  %vm9471_vm12 = vmmov %vm9470_vm10 }
 0x7b1   :  { %4288 = vmatmul.mubr.f32.gmra.mxu1 %v4162_v12  ;;  %v4197_v8 = vpop.permute.xlu1 %4196 }
 0x7b2   :  { %5898 = vmatprep.mubr.msk.f32.mxu1 %vm9466_vm0, %v4165_v10 }
 0x7b5   :  { %4293 = vmatmul.mubr.f32.gmra.mxu1 %v4164_v5 }
 0x7b6   :  { %6159 = vmatprep.mubr.msk.f32.mxu1 %vm6418_vm9, %v8447_v7 }
 0x86d   :  { %v4284_v15 = vpop.f32.mrf.mxu1 }
 0x86e   :  { %v4285_v22 = vadd.f32 %v4284_v15, %v4197_v8 }
 0x86f   :  { %v4286_v46 = vpop.f32.mrf.mxu1 }
 0x870   :  { %v8616_v63 = vmax.f32 %v4285_v22, 0.0 }
 0x871   :  { %v4289_v18 = vpop.f32.mrf.mxu1 }
 0x872   :  { %v4290_v27 = vadd.f32 %v4289_v18, %v4202_v62  ;;  %v4301_v14 = vsel %vm9467_vm15, %v8616_v63, 0.0  ;;  %v4315_v57 = vmul.f32 %v8616_v63, %v8616_v63 }
 0x873   :  { %v4291_v9 = vpop.f32.mrf.mxu1  ;;  %4302 = vadd.xlane.f32.xlu0 %v4301_v14 }
 0x874   :  { %v8622_v19 = vmax.f32 %v4290_v27, 0.0  ;;  %v4318_v16 = vsel %vm9470_vm10, %v4315_v57, 0.0 }
 0x875   :  { %v4294_v54 = vpop.f32.mrf.mxu1 }
 0x876   :  { %v4295_v20 = vadd.f32 %v4294_v54, %v4207_v61  ;;  %v4304_v21 = vsel %vm9468_vm11, %v8622_v19, 0.0  ;;  %v4316_v35 = vmul.f32 %v8622_v19, %v8622_v19 }
 0x877   :  { %4305 = vadd.xlane.f32.xlu1 %v4304_v21  ;;  %4319 = vadd.xlane.f32.xlu0 %v4318_v16  ;;  %v4296_v37 = vpop.f32.mrf.mxu1 }
 0x878   :  { %v8629_v11 = vmax.f32 %v4295_v20, 0.0  ;;  %v4321_v39 = vsel %vm9471_vm12, %v4316_v35, 0.0  ;;  %vm9486_vm12 = vcmask 56320  }
 0x87a   :  { %v4308_v6 = vsel %vm4307_vm4, %v8629_v11, 0.0  ;;  %v4317_v23 = vmul.f32 %v8629_v11, %v8629_v11 }
 0x87b   :  { %4322 = vadd.xlane.f32.xlu1 %v4321_v39  ;;  %4309 = vadd.xlane.f32.xlu0 %v4308_v6 }
 0x87c   :  { %v4324_v32 = vsel %vm4307_vm4, %v4317_v23, 0.0  ;;  %v4393_v23 = vld [vmem:[%s9473_s14] sm:$0xff] }
 0x87f   :  { %4325 = vadd.xlane.f32.xlu0 %v4324_v32 }
 0x88c   :  { %4387 = vperm.xlu1 %6247, %v4374_v53  }
 0x890   :  { %4356 = vperm.xlu1 %6247, %v4351_v60  }
 0x894   :  { %4377 = vperm.xlu1 %6247, %v4372_v25  }
 0x895   :  { %4361 = vperm.xlu0 %6246, %v4352_v29  }
 0x898   :  { %4796 = vrot.lane.b32.xlu1 %v8331_v38, %s6419_s25 }
 0x899   :  { %4382 = vperm.xlu0 %6246, %v4373_v43  }
 0x89c   :  { %4764 = vrot.lane.b32.xlu1 %v8341_v28, %s9337_s11 }
 0x89d   :  { %4397 = vperm.xlu0 %6246, %v4394_v55  }
 0x8a0   :  { %4711 = vrot.lane.b32.xlu1 %v8348_v50, %s6398_s21 }
 0x8a1   :  { %4780 = vrot.lane.b32.xlu0 %v8328_v30, %s6395_s5  ;;  %v4367_v30 = vpop.permute.xlu1 %4366 }
 0x8a4   :  { %4667 = vrot.lane.b32.xlu1 %v8358_v0, %s6421_s3 }
 0x8a5   :  { %4733 = vrot.lane.b32.xlu0 %v8338_v59, %s6397_s13 }
 0x8a8   :  { %4623 = vrot.lane.b32.xlu1 %v8368_v26, %s6423_s19 }
 0x8a9   :  { %4689 = vrot.lane.b32.xlu0 %v8351_v51, %s6420_s29 }
 0x8ac   :  { %4579 = vrot.lane.b32.xlu1 %v8378_v36, %s6399_s7 }
 0x8ad   :  { %4645 = vrot.lane.b32.xlu0 %v8361_v4, %s6422_s8 }
 0x8b0   :  { %4535 = vrot.lane.b32.xlu1 %v8388_v56, %s9342_s1 }
 0x8b1   :  { %4601 = vrot.lane.b32.xlu0 %v8371_v58, %s6424_s30 }
 0x8b4   :  { %4491 = vrot.lane.b32.xlu1 %v8398_v33, %s9333_s10 }
 0x8b5   :  { %4557 = vrot.lane.b32.xlu0 %v8381_v13, %s9349_s2 }
 0x8b8   :  { %4924 = vrot.lane.b32.xlu1 %v8411_v3, %s6415_s18 }
 0x8b9   :  { %4513 = vrot.lane.b32.xlu0 %v8391_v2, %s9339_s15 }
 0x8bc   :  { %4892 = vrot.lane.b32.xlu1 %v8421_v40, %s6417_s22 }
 0x8bd   :  { %4940 = vrot.lane.b32.xlu0 %v8401_v47, %s6414_s16 }
 0x8c0   :  { %4860 = vrot.lane.b32.xlu1 %v8431_v48, %s6426_s23 }
 0x8c1   :  { %4908 = vrot.lane.b32.xlu0 %v8408_v52, %s6416_s26 }
 0x8c4   :  { %4828 = vrot.lane.b32.xlu1 %v8441_v24, %s6428_s17 }
 0x8c5   :  { %4876 = vrot.lane.b32.xlu0 %v8418_v41, %s6394_s0 }
 0x8c9   :  { %4844 = vrot.lane.b32.xlu0 %v8428_v34, %s6425_s9 }
 0x8cd   :  { %4812 = vrot.lane.b32.xlu0 %v8438_v17, %s6427_s28 }
 0x8fc   :  { %v4303_v38 = vpop.xlane.xlu0 %4302 }
 0x8fd   :  { %v4312_v59 = vmul.f32 0.010204081, %v4303_v38 }
 0x8ff   :  { %v4330_v51 = vmul.f32 %v4312_v59, %v4312_v59  ;;  %v4345_v18 = vsub.f32 %v8616_v63, %v4312_v59 }
 0x900   :  { %v4320_v28 = vpop.xlane.xlu0 %4319  ;;  %v4306_v50 = vpop.xlane.xlu1 %4305 }
 0x901   :  { %v4327_v0 = vmul.f32 0.010204081, %v4320_v28  ;;  %v4313_v4 = vmul.f32 0.010204081, %v4306_v50 }
 0x903   :  { %v4333_v26 = vsub.f32 %v4327_v0, %v4330_v51  ;;  %v4331_v13 = vmul.f32 %v4313_v4, %v4313_v4  ;;  %v4346_v22 = vsub.f32 %v8622_v19, %v4313_v4 }
 0x904   :  { %v4310_v58 = vpop.xlane.xlu0 %4309  ;;  %v4323_v36 = vpop.xlane.xlu1 %4322 }
 0x905   :  { %v4314_v56 = vmul.f32 0.010204081, %v4310_v58  ;;  %v4328_v2 = vmul.f32 0.010204081, %v4323_v36  ;;  %v4336_v33 = vmax.f32 %v4333_v26, 0.0 }
 0x907   :  { %v4334_v47 = vsub.f32 %v4328_v2, %v4331_v13  ;;  %v4332_v41 = vmul.f32 %v4314_v56, %v4314_v56  ;;  %v4339_v48 = vadd.f32 1e-05, %v4336_v33  ;;  %v4347_v27 = vsub.f32 %v8629_v11, %v4314_v56 }
 0x908   :  { %v4326_v52 = vpop.xlane.xlu0 %4325  ;;  %v4388_v3 = vpop.permute.xlu1 %4387 }
 0x909   :  { %v4337_v40 = vmax.f32 %v4334_v47, 0.0  ;;  %v4329_v34 = vmul.f32 0.010204081, %v4326_v52 }
 0x90b   :  { %v4340_v17 = vadd.f32 1e-05, %v4337_v40  ;;  %v4335_v24 = vsub.f32 %v4329_v34, %v4332_v41 }
 0x90c   :  { %v4357_v42 = vpop.permute.xlu1 %4356 }
 0x90d   :  { %6322 = vrsqrt.f32 %v4340_v17  ;;  %v4338_v44 = vmax.f32 %v4335_v24, 0.0 }
 0x90e   :  { %6324 = vrsqrt.f32 %v4339_v48 }
 0x90f   :  { %v4341_v31 = vadd.f32 1e-05, %v4338_v44 }
 0x910   :  { %v4362_v1 = vpop.permute.xlu0 %4361  ;;  %v4378_v12 = vpop.permute.xlu1 %4377 }
 0x911   :  { %6326 = vrsqrt.f32 %v4341_v31 }
 0x914   :  { %v4383_v10 = vpop.permute.xlu0 %4382  ;;  %v4797_v5 = vpop.permute.xlu1 %4796 }
 0x918   :  { %v4398_v61 = vpop.permute.xlu0 %4397  ;;  %v4765_v15 = vpop.permute.xlu1 %4764 }
 0x91a   :  { %v6323_v8 = vpop.eup %6322 }
 0x91b   :  { %v6325_v46 = vpop.eup %6324  ;;  %v4349_v14 = vmul.f32 %v6323_v8, %v4346_v22 }
 0x91c   :  { %v4781_v62 = vpop.permute.xlu0 %4780  ;;  %v4348_v54 = vmul.f32 %v6325_v46, %v4345_v18  ;;  %v4712_v21 = vpop.permute.xlu1 %4711 }
 0x91d   :  { %v4370_v35 = vmul.f32 %v4362_v1, %v4349_v14  ;;  %v4714_v19 = vmul.f32 %v8447_v7, %v4712_v21 }
 0x91e   :  { %v6327_v57 = vpop.eup %6326  ;;  %v4369_v6 = vmul.f32 %v4357_v42, %v4348_v54 }
 0x91f   :  { %v4350_v9 = vmul.f32 %v6327_v57, %v4347_v27  ;;  %v4391_v63 = vadd.f32 %v4383_v10, %v4370_v35 }
 0x920   :  { %v4734_v20 = vpop.permute.xlu0 %4733  ;;  %v4390_v11 = vadd.f32 %v4378_v12, %v4369_v6  ;;  %v4668_v60 = vpop.permute.xlu1 %4667 }
 0x921   :  { %v4371_v16 = vmul.f32 %v4367_v30, %v4350_v9  ;;  %v4736_v37 = vmul.f32 %v8447_v7, %v4734_v20  ;;  %v4670_v25 = vmul.f32 %v8447_v7, %v4668_v60 }
 0x923   :  { %v4392_v39 = vadd.f32 %v4388_v3, %v4371_v16  ;;  %4740 = vrot.lane.b32.xlu0 %v4736_v37, %s9337_s11 }
 0x924   :  { %v4690_v32 = vpop.permute.xlu0 %4689  ;;  %v4624_v51 = vpop.permute.xlu1 %4623 }
 0x925   :  { %6137 = vmatpush3.msk.msra.mxu0 %vm2993_vm5, %v4392_v39  ;;  %v4692_v53 = vmul.f32 %v8447_v7, %v4690_v32  ;;  %vm9474_vm5 = vmmov %vm9470_vm10  ;;  %v4626_v26 = vmul.f32 %v8447_v7, %v4624_v51 }
 0x926   :  { %6138 = vmatprep.subr.mxu0 %v8447_v7 }
 0x927   :  { %6139 = vmatpush3.msra.mxu0 %v4391_v63  ;;  %4718 = vrot.lane.b32.xlu0 %v4714_v19, %s6395_s5 }
 0x928   :  { %6140 = vmatprep.subr.mxu0 %v8447_v7  ;;  %v4646_v29 = vpop.permute.xlu0 %4645  ;;  %v4580_v2 = vpop.permute.xlu1 %4579 }
 0x929   :  { %6141 = vmatpush3.msra.mxu0 %v4390_v11  ;;  %v4648_v43 = vmul.f32 %v8447_v7, %v4646_v29  ;;  %v4582_v33 = vmul.f32 %v8447_v7, %v4580_v2 }
 0x92a   :  { %6143 = vmatmul.mubr.msk.f32.vlgmr.msra.gmra.mxu0 %vm3580_vm2, %v4393_v23  ;;  %4996 = vmatprep.subr.mxu0 %v8447_v7  ;;  %vm9475_vm2 = vmmov %vm9474_vm5 }
 0x92b   :  { %4696 = vrot.lane.b32.xlu0 %v4692_v53, %s6419_s25 }
 0x92c   :  { %v4602_v58 = vpop.permute.xlu0 %4601  ;;  %v4536_v41 = vpop.permute.xlu1 %4535 }
 0x92d   :  { %v4604_v13 = vmul.f32 %v8447_v7, %v4602_v58  ;;  %v4538_v34 = vmul.f32 %v8447_v7, %v4536_v41 }
 0x92f   :  { %4674 = vrot.lane.b32.xlu0 %v4670_v25, %s6427_s28 }
 0x930   :  { %v4558_v52 = vpop.permute.xlu0 %4557  ;;  %v4492_v44 = vpop.permute.xlu1 %4491 }
 0x931   :  { %v4494_v12 = vmul.f32 %v8447_v7, %v4492_v44 }
 0x933   :  { %4652 = vrot.lane.b32.xlu0 %v4648_v43, %s6428_s17 }
 0x934   :  { %v4514_v40 = vpop.permute.xlu0 %4513  ;;  %v4925_v14 = vpop.permute.xlu1 %4924 }
 0x935   :  { %v4516_v24 = vmul.f32 %v8447_v7, %v4514_v40 }
 0x938   :  { %v4941_v17 = vpop.permute.xlu0 %4940 }
 0x93c   :  { %v4909_v1 = vpop.permute.xlu0 %4908 }
 0x9ea   :  { %v4472_v55 = vpop.f32.mrf.mxu0 }
 0x9eb   :  { %v4473_v30 = vadd.f32 %v4472_v55, %v4398_v61  ;;  %v4877_v61 = vpop.permute.xlu0 %4876 }
 0x9ec   :  { %v6144_v38 = vpop.f32.mrf.mxu0 }
 0x9ed   :  { %v4476_v59 = vmax.f32 %v4473_v30, 0.0 }
 0x9ef   :  { %4478 = vst.msk [vmem:[#allocation3 + $0x8] sm:$0xff] %vm9474_vm5, %v4476_v59  ;;  %vm9488_vm5 = vcmask 64512  }
 0x9f0   :  { %4479 = vst.msk [vmem:[#allocation3 + $0x8] sm:$0xff] %vm3660_vm6, %v8447_v7  ;;  %vm9478_vm6 = vmmov %vm9466_vm0 }
 0x9f1   :  { %vm9479_vm0 = vmmov %vm9475_vm2 }
 0x9f2   :  { %vm9480_vm15 = vmmov %vm9479_vm0 }
 0x9f3   :  { %vm9481_vm11 = vmmov %vm9479_vm0 }
 0x9f4   :  { %vm9482_vm10 = vmmov %vm9479_vm0 }
 0x9f5   :  { %vm9484_vm4 = vmmov %vm9479_vm0 }
 0x9f7   :  { %v8711_v28 = vld [vmem:[#allocation3 + $0x8] sm:$0xff] }
 0x9f8   :  { %v4799_v50 = vmul.f32 %v4797_v5, %v8711_v28  ;;  %v4783_v0 = vmul.f32 %v4781_v62, %v8711_v28  ;;  %v4767_v4 = vmul.f32 %v4765_v15, %v8711_v28  ;;  %v4755_v36 = vmul.f32 %v8480_v45, %v8711_v28 }
 0x9f9   :  { %v4737_v56 = vmul.f32 %v4734_v20, %v8711_v28  ;;  %v4715_v47 = vmul.f32 %v4712_v21, %v8711_v28  ;;  %v4560_v45 = vmul.f32 %v8447_v7, %v4558_v52  ;;  %v4693_v3 = vmul.f32 %v4690_v32, %v8711_v28  ;;  %v4845_v7 = vpop.permute.xlu0 %4844  ;;  %v4893_v20 = vpop.permute.xlu1 %4892 }
 0x9fa   :  { %4801 = vrot.lane.b32.xlu1 %v4799_v50, %s6420_s29  ;;  %4785 = vrot.lane.b32.xlu0 %v4783_v0, %s6398_s21  ;;  %4756 = vst.msk [vmem:[#allocation4 + $0x180] sm:$0xff] %vm9475_vm2, %v4755_v36  ;;  %v4671_v48 = vmul.f32 %v8711_v28, %v4668_v60  ;;  %v4649_v42 = vmul.f32 %v8711_v28, %v4646_v29  ;;  %vm9490_vm2 = vcmask 72704   ;;  %s9509_s21 = sld [smem:[#allocation16_spill]] }
 0x9fb   :  { %v4627_v31 = vmul.f32 %v8711_v28, %v4624_v51  ;;  %v4605_v10 = vmul.f32 %v8711_v28, %v4602_v58  ;;  %v4943_v5 = vmul.f32 %v4941_v17, %v8711_v28  ;;  %v4583_v8 = vmul.f32 %v8711_v28, %v4580_v2  ;;  %v8787_v51 = vld [vmem:[#allocation3 + $0x18] sm:$0xff] }
 0x9fc   :  { %v4911_v15 = vmul.f32 %v4909_v1, %v8711_v28  ;;  %v4561_v22 = vmul.f32 %v8711_v28, %v4558_v52  ;;  %v4879_v46 = vmul.f32 %v4877_v61, %v8711_v28  ;;  %v4539_v62 = vmul.f32 %v8711_v28, %v4536_v41 }
 0x9fd   :  { %v4847_v18 = vmul.f32 %v4845_v7, %v8711_v28  ;;  %v4813_v27 = vpop.permute.xlu0 %4812  ;;  %v4517_v57 = vmul.f32 %v8711_v28, %v4514_v40  ;;  %v4495_v54 = vmul.f32 %v8711_v28, %v4492_v44  ;;  %v4927_v16 = vmul.f32 %v4925_v14, %v8711_v28  ;;  %v4861_v35 = vpop.permute.xlu1 %4860 }
 0x9fe   :  { %4769 = vrot.lane.b32.xlu1 %v4767_v4, %s6397_s13  ;;  %4630 = vrot.lane.b32.xlu0 %v4626_v26, %s6425_s9  ;;  %v4815_v9 = vmul.f32 %v4813_v27, %v8711_v28  ;;  %v4895_v37 = vmul.f32 %v4893_v20, %v8711_v28  ;;  %v4863_v39 = vmul.f32 %v4861_v35, %v8711_v28  ;;  %s9508_s13 = sld [smem:[#allocation17_spill]] }
 0xa01   :  { %v4829_v6 = vpop.permute.xlu1 %4828  ;;  %v4741_v23 = vpop.permute.xlu0 %4740  ;;  %v4965_v58 = vld [vmem:[#allocation4 + $0x180] sm:$0xff] }
 0xa02   :  { %4742 = vrot.lane.b32.xlu1 %v4737_v56, %s9337_s11  ;;  %4608 = vrot.lane.b32.xlu0 %v4604_v13, %s6426_s23  ;;  %v4831_v19 = vmul.f32 %v4829_v6, %v8711_v28 }
 0xa05   :  { %v4719_v32 = vpop.permute.xlu0 %4718 }
 0xa06   :  { %4720 = vrot.lane.b32.xlu1 %v4715_v47, %s6395_s5  ;;  %4586 = vrot.lane.b32.xlu0 %v4582_v33, %s6394_s0  ;;  %s9476_s5 = sld [smem:[#allocation15_spill]] }
 0xa09   :  { %v4697_v53 = vpop.permute.xlu0 %4696 }
 0xa0a   :  { %4698 = vrot.lane.b32.xlu1 %v4693_v3, %s6419_s25  ;;  %4564 = vrot.lane.b32.xlu0 %v4560_v45, %s6417_s22 }
 0xa0c   :  { %v4979_v21 = vld [vmem:[%s9476_s5 + $0x8] sm:$0x7f]  ;;  %v4978_v11 = vld [vmem:[%s9476_s5] sm:$0xff] }
 0xa0d   :  { %v4675_v60 = vpop.permute.xlu0 %4674 }
 0xa0e   :  { %4676 = vrot.lane.b32.xlu1 %v4671_v48, %s6427_s28  ;;  %4542 = vrot.lane.b32.xlu0 %v4538_v34, %s6416_s26 }
 0xa11   :  { %v4653_v25 = vpop.permute.xlu0 %4652 }
 0xa12   :  { %4654 = vrot.lane.b32.xlu1 %v4649_v42, %s6428_s17  ;;  %4520 = vrot.lane.b32.xlu0 %v4516_v24, %s6415_s18 }
 0xa16   :  { %4632 = vrot.lane.b32.xlu1 %v4627_v31, %s6425_s9  ;;  %4498 = vrot.lane.b32.xlu0 %v4494_v12, %s6414_s16 }
 0xa1a   :  { %4610 = vrot.lane.b32.xlu1 %v4605_v10, %s6426_s23  ;;  %4945 = vrot.lane.b32.xlu0 %v4943_v5, %s9333_s10 }
 0xa1e   :  { %4588 = vrot.lane.b32.xlu1 %v4583_v8, %s6394_s0  ;;  %4913 = vrot.lane.b32.xlu0 %v4911_v15, %s9342_s1  ;;  %s9477_s0 = sld [smem:[#allocation14_spill]] }
 0xa22   :  { %4566 = vrot.lane.b32.xlu1 %v4561_v22, %s6417_s22  ;;  %4881 = vrot.lane.b32.xlu0 %v4879_v46, %s6399_s7  ;;  %s9512_s7 = sld [smem:[#allocation18_spill]] }
 0xa24   :  { %v4950_v63 = vld [vmem:[%s9477_s0 + $0x8] sm:$0xff] }
 0xa25   :  { %5950 = vmatprep.mubr.msk.f32.mxu0 %vm9478_vm6, %v4950_v63  ;;  %vm9491_vm6 = vmmov %vm9479_vm0 }
 0xa26   :  { %4544 = vrot.lane.b32.xlu1 %v4539_v62, %s6416_s26  ;;  %4849 = vrot.lane.b32.xlu0 %v4847_v18, %s6423_s19 }
 0xa2a   :  { %4522 = vrot.lane.b32.xlu1 %v4517_v57, %s6415_s18  ;;  %4817 = vrot.lane.b32.xlu0 %v4815_v9, %s6421_s3 }
 0xa2e   :  { %4500 = vrot.lane.b32.xlu1 %v4495_v54, %s6414_s16  ;;  %4987 = vperm.xlu0 %6246, %v4979_v21   ;;  %s9521_s16 = sld [smem:[#allocation19_spill]] }
 0xa32   :  { %4929 = vrot.lane.b32.xlu1 %v4927_v16, %s9339_s15 }
 0xa36   :  { %4897 = vrot.lane.b32.xlu1 %v4895_v37, %s9349_s2 }
 0xa3a   :  { %4865 = vrot.lane.b32.xlu1 %v4863_v39, %s6424_s30 }
 0xa3e   :  { %4833 = vrot.lane.b32.xlu1 %v4831_v19, %s6422_s8 }
 0xa42   :  { %4982 = vperm.xlu1 %6247, %v4978_v11  }
 0xa6c   :  { %v4802_v29 = vpop.permute.xlu1 %4801  ;;  %v4786_v43 = vpop.permute.xlu0 %4785 }
 0xa6d   :  { %4804 = vst.msk [vmem:[#allocation4 + $0x1e0] sm:$0xff] %vm9479_vm0, %v4802_v29 }
 0xa6e   :  { %4788 = vst.msk [vmem:[#allocation4 + $0x1c0] sm:$0xff] %vm9480_vm15, %v4786_v43  ;;  %vm9492_vm15 = vcmask 97280  }
 0xa70   :  { %v4770_v55 = vpop.permute.xlu1 %4769  ;;  %v4631_v30 = vpop.permute.xlu0 %4630 }
 0xa71   :  { %4772 = vst.msk [vmem:[#allocation4 + $0x1a0] sm:$0xff] %vm9481_vm11, %v4770_v55  ;;  %vm9493_vm11 = vmmov %vm9479_vm0 }
 0xa74   :  { %v4743_v38 = vpop.permute.xlu1 %4742  ;;  %v4968_v59 = vld [vmem:[#allocation4 + $0x1e0] sm:$0xff]  ;;  %v4609_v50 = vpop.permute.xlu0 %4608 }
 0xa75   :  { %v4744_v28 = vsel %vm1841_vm8, %v4741_v23, %v4743_v38  ;;  %4997 = vmatpush1.msra.mxu0 %v4968_v59  ;;  %v4967_v0 = vld [vmem:[#allocation4 + $0x1c0] sm:$0xff]  ;;  %vm9483_vm8 = vmmov %vm9479_vm0 }
 0xa76   :  { %4746 = vst.msk [vmem:[#allocation4 + $0x160] sm:$0xff] %vm9482_vm10, %v4744_v28  ;;  %4998 = vmatprep.subr.mxu0 %v8787_v51  ;;  %vm9494_vm10 = vmmov %vm9479_vm0  ;;  %v4949_v28 = vld [vmem:[%s9477_s0] sm:$0xff] }
 0xa77   :  { %4999 = vmatpush1.msra.mxu0 %v4967_v0  ;;  %v4951_v0 = vld [vmem:[%s9477_s0 + $0x10] sm:$0x7f] }
 0xa78   :  { %v4721_v4 = vpop.permute.xlu1 %4720  ;;  %5000 = vmatprep.subr.mxu0 %v8787_v51  ;;  %v4966_v26 = vld [vmem:[#allocation4 + $0x1a0] sm:$0xff]  ;;  %v4587_v13 = vpop.permute.xlu0 %4586 }
 0xa79   :  { %v4722_v36 = vsel %vm1767_vm7, %v4719_v32, %v4721_v4  ;;  %5001 = vmatpush1.msra.mxu0 %v4966_v26  ;;  %vm9485_vm7 = vmmov %vm9479_vm0 }
 0xa7a   :  { %4724 = vst.msk [vmem:[#allocation4 + $0x140] sm:$0xff] %vm9483_vm8, %v4722_v36  ;;  %5002 = vmatprep.subr.mxu0 %v8787_v51  ;;  %vm9495_vm8 = vcmask 105472  }
 0xa7b   :  { %5003 = vmatpush1.msra.mxu0 %v4965_v58 }
 0xa7c   :  { %v4699_v56 = vpop.permute.xlu1 %4698  ;;  %5004 = vmatprep.subr.mxu0 %v8787_v51  ;;  %v4565_v47 = vpop.permute.xlu0 %4564 }
 0xa7d   :  { %v4700_v2 = vsel %vm3895_vm3, %v4697_v53, %v4699_v56  ;;  %v4964_v33 = vld [vmem:[#allocation4 + $0x160] sm:$0xff]  ;;  %vm9487_vm3 = vmmov %vm9479_vm0 }
 0xa7e   :  { %4702 = vst.msk [vmem:[#allocation4 + $0x120] sm:$0xff] %vm9484_vm4, %v4700_v2  ;;  %5005 = vmatpush1.msra.mxu0 %v4964_v33  ;;  %vm9496_vm4 = vmmov %vm9479_vm0 }
 0xa7f   :  { %5006 = vmatprep.subr.mxu0 %v8787_v51 }
 0xa80   :  { %v4677_v52 = vpop.permute.xlu1 %4676  ;;  %v4543_v41 = vpop.permute.xlu0 %4542 }
 0xa81   :  { %v4678_v45 = vsel %vm3871_vm13, %v4675_v60, %v4677_v52  ;;  %v4963_v3 = vld [vmem:[#allocation4 + $0x140] sm:$0xff]  ;;  %vm9489_vm13 = vmmov %vm9479_vm0 }
 0xa82   :  { %4680 = vst.msk [vmem:[#allocation4 + $0x100] sm:$0xff] %vm9485_vm7, %v4678_v45  ;;  %5007 = vmatpush1.msra.mxu0 %v4963_v3  ;;  %vm9497_vm7 = vmmov %vm9479_vm0 }
 0xa83   :  { %5008 = vmatprep.subr.mxu0 %v8787_v51 }
 0xa84   :  { %v4655_v40 = vpop.permute.xlu1 %4654  ;;  %v4521_v17 = vpop.permute.xlu0 %4520 }
 0xa85   :  { %v4656_v34 = vsel %vm9486_vm12, %v4653_v25, %v4655_v40  ;;  %v4962_v48 = vld [vmem:[#allocation4 + $0x120] sm:$0xff]  ;;  %vm9498_vm12 = vmmov %vm9479_vm0 }
 0xa86   :  { %4658 = vst.msk [vmem:[#allocation4 + $0xe0] sm:$0xff] %vm9487_vm3, %v4656_v34  ;;  %5009 = vmatpush1.msra.mxu0 %v4962_v48  ;;  %vm9499_vm3 = vmmov %vm9479_vm0  ;;  %v5120_v34 = vld [vmem:[%s9508_s13] sm:$0xff] }
 0xa87   :  { %5010 = vmatprep.subr.mxu0 %v8787_v51  ;;  %v5106_v48 = vld [vmem:[%s9509_s21] sm:$0xff] }
 0xa88   :  { %v4633_v24 = vpop.permute.xlu1 %4632  ;;  %v4499_v31 = vpop.permute.xlu0 %4498 }
 0xa89   :  { %v4634_v42 = vsel %vm9488_vm5, %v4631_v30, %v4633_v24  ;;  %v4961_v44 = vld [vmem:[#allocation4 + $0x100] sm:$0xff]  ;;  %vm9500_vm5 = vcmask 121856  }
 0xa8a   :  { %4636 = vst.msk [vmem:[#allocation4 + $0xc0] sm:$0xff] %vm9489_vm13, %v4634_v42  ;;  %5011 = vmatpush1.msra.mxu0 %v4961_v44  ;;  %vm9501_vm13 = vmmov %vm9479_vm0  ;;  %v5107_v44 = vld [vmem:[%s9509_s21 + $0x8] sm:$0x7f] }
 0xa8b   :  { %5012 = vmatprep.subr.mxu0 %v8787_v51 }
 0xa8c   :  { %v4611_v1 = vpop.permute.xlu1 %4610  ;;  %v4946_v5 = vpop.permute.xlu0 %4945 }
 0xa8d   :  { %v4612_v12 = vsel %vm9490_vm2, %v4609_v50, %v4611_v1  ;;  %v4960_v10 = vld [vmem:[#allocation4 + $0xe0] sm:$0xff]  ;;  %4948 = vst.msk [vmem:[#allocation4 + $0x300] sm:$0xff] %vm9479_vm0, %v4946_v5  ;;  %vm9502_vm2 = vmmov %vm9479_vm0  ;;  %v4952_v50 = vld [vmem:[%s9477_s0 + $0x18] sm:$0x7f] }
 0xa8e   :  { %4614 = vst.msk [vmem:[#allocation4 + $0xa0] sm:$0xff] %vm9491_vm6, %v4612_v12  ;;  %5013 = vmatpush1.msra.mxu0 %v4960_v10  ;;  %vm9504_vm6 = vmmov %vm9479_vm0  ;;  %v5624_v1 = vld [vmem:[%s6573_s20 + $0x28] sm:$0xff]  ;;  %v5623_v5 = vld [vmem:[%s6573_s20 + $0x20] sm:$0xff] }
 0xa8f   :  { %5014 = vmatprep.subr.mxu0 %v8787_v51 }
 0xa90   :  { %v4589_v61 = vpop.permute.xlu1 %4588  ;;  %v4914_v22 = vpop.permute.xlu0 %4913 }
 0xa91   :  { %v4590_v8 = vsel %vm9492_vm15, %v4587_v13, %v4589_v61  ;;  %v4959_v15 = vld [vmem:[#allocation4 + $0xc0] sm:$0xff]  ;;  %4916 = vst.msk [vmem:[#allocation4 + $0x2c0] sm:$0xff] %vm9494_vm10, %v4914_v22  ;;  %vm9506_vm15 = vmmov %vm9479_vm0  ;;  %v5622_v22 = vld [vmem:[%s6573_s20 + $0x18] sm:$0xff] }
 0xa92   :  { %4592 = vst.msk [vmem:[#allocation4 + $0x80] sm:$0xff] %vm9493_vm11, %v4590_v8  ;;  %5015 = vmatpush1.msra.mxu0 %v4959_v15  ;;  %vm9507_vm11 = vcmask 588800   ;;  %vm9510_vm10 = vmmov %vm9479_vm0 }
 0xa93   :  { %5016 = vmatprep.subr.mxu0 %v8787_v51 }
 0xa94   :  { %v4567_v7 = vpop.permute.xlu1 %4566  ;;  %v4882_v18 = vpop.permute.xlu0 %4881  ;;  %v4977_v23 = vld [vmem:[#allocation4 + $0x300] sm:$0xff] }
 0xa95   :  { %v4568_v46 = vsel %vm9495_vm8, %v4565_v47, %v4567_v7  ;;  %v4958_v62 = vld [vmem:[#allocation4 + $0xa0] sm:$0xff]  ;;  %4884 = vst.msk [vmem:[#allocation4 + $0x280] sm:$0xff] %vm9497_vm7, %v4882_v18  ;;  %vm5076_vm8 = vcmask 800768   ;;  %vm9517_vm7 = vmmov %vm9479_vm0 }
 0xa96   :  { %4570 = vst.msk [vmem:[#allocation4 + $0x60] sm:$0xff] %vm9496_vm4, %v4568_v46  ;;  %5017 = vmatpush1.msra.mxu0 %v4958_v62  ;;  %vm5637_vm4 = vcmask 1041408  }
 0xa97   :  { %5018 = vmatprep.subr.mxu0 %v8787_v51 }
 0xa98   :  { %v4545_v27 = vpop.permute.xlu1 %4544  ;;  %v4850_v9 = vpop.permute.xlu0 %4849  ;;  %v4975_v60 = vld [vmem:[#allocation4 + $0x2c0] sm:$0xff] }
 0xa99   :  { %v4546_v14 = vsel %vm1560_vm1, %v4543_v41, %v4545_v27  ;;  %v4957_v57 = vld [vmem:[#allocation4 + $0x80] sm:$0xff]  ;;  %4852 = vst.msk [vmem:[#allocation4 + $0x240] sm:$0xff] %vm9499_vm3, %v4850_v9  ;;  %vm9503_vm1 = vmmov %vm9479_vm0 }
 0xa9a   :  { %4548 = vst.msk [vmem:[#allocation4 + $0x40] sm:$0xff] %vm9498_vm12, %v4546_v14  ;;  %5019 = vmatpush1.msra.mxu0 %v4957_v57  ;;  %vm9518_vm12 = vmmov %vm9479_vm0 }
 0xa9b   :  { %5020 = vmatprep.subr.mxu0 %v8787_v51  ;;  %vm9519_vm3 = vmmov %vm9479_vm0 }
 0xa9c   :  { %v4523_v54 = vpop.permute.xlu1 %4522  ;;  %v4818_v16 = vpop.permute.xlu0 %4817  ;;  %v4973_v43 = vld [vmem:[#allocation4 + $0x280] sm:$0xff] }
 0xa9d   :  { %v4524_v20 = vsel %vm9500_vm5, %v4521_v17, %v4523_v54  ;;  %v4956_v21 = vld [vmem:[#allocation4 + $0x60] sm:$0xff]  ;;  %4820 = vst.msk [vmem:[#allocation4 + $0x200] sm:$0xff] %vm9502_vm2, %v4818_v16  ;;  %v9513_v16 = vld [vmem:[#allocation21_spill] sm:$0xff]  ;;  %vm9520_vm5 = vmmov %vm9479_vm0 }
 0xa9e   :  { %4526 = vst.msk [vmem:[#allocation4 + $0x20] sm:$0xff] %vm9501_vm13, %v4524_v20  ;;  %5021 = vmatpush1.msra.mxu0 %v4956_v21  ;;  %v5121_v17 = vld [vmem:[%s9508_s13 + $0x8] sm:$0x7f]  ;;  %vm9522_vm13 = vmmov %vm9479_vm0 }
 0xa9f   :  { %5022 = vmatprep.subr.mxu0 %v8787_v51  ;;  %vm9523_vm2 = vmmov %vm9479_vm0 }
 0xaa0   :  { %v4501_v35 = vpop.permute.xlu1 %4500  ;;  %v4971_v30 = vld [vmem:[#allocation4 + $0x240] sm:$0xff] }
 0xaa1   :  { %v4502_v37 = vsel %vm1427_vm14, %v4499_v31, %v4501_v35  ;;  %v4955_v39 = vld [vmem:[#allocation4 + $0x40] sm:$0xff]  ;;  %vm9505_vm14 = vmmov %vm9479_vm0  ;;  %v5625_v31 = vld [vmem:[%s6573_s20 + $0x30] sm:$0x3] }
 0xaa2   :  { %4504 = vst.msk [vmem:[#allocation4] sm:$0xff] %vm9503_vm1, %v4502_v37  ;;  %5023 = vmatpush1.msra.mxu0 %v4955_v39  ;;  %v9514_v37 = vld [vmem:[#allocation23_spill] sm:$0xff]  ;;  %vm9524_vm1 = vmmov %vm9479_vm0 }
 0xaa3   :  { %5024 = vmatprep.subr.mxu0 %v8787_v51 }
 0xaa4   :  { %v4930_v6 = vpop.permute.xlu1 %4929  ;;  %v4969_v59 = vld [vmem:[#allocation4 + $0x200] sm:$0xff] }
 0xaa5   :  { %4932 = vst.msk [vmem:[#allocation4 + $0x2e0] sm:$0xff] %vm9504_vm6, %v4930_v6  ;;  %v4954_v19 = vld [vmem:[#allocation4 + $0x20] sm:$0xff]  ;;  %v5140_v6 = vld [vmem:[%s9512_s7 + $0x30] sm:$0x3]  ;;  %vm9525_vm6 = vmmov %vm9479_vm0 }
 0xaa6   :  { %5025 = vmatpush1.msra.mxu0 %v4954_v19  ;;  %v5958_v19 = vld [vmem:[%s9512_s7 + $0x68] sm:$0x3] }
 0xaa7   :  { %5026 = vmatprep.subr.mxu0 %v8787_v51 }
 0xaa8   :  { %v4898_v63 = vpop.permute.xlu1 %4897 }
 0xaa9   :  { %4900 = vst.msk [vmem:[#allocation4 + $0x2a0] sm:$0xff] %vm9479_vm0, %v4898_v63  ;;  %v4953_v11 = vld [vmem:[#allocation4] sm:$0xff]  ;;  %v4988_v56 = vpop.permute.xlu0 %4987 }
 0xaaa   :  { %5027 = vmatpush1.msra.mxu0 %v4953_v11  ;;  %v5139_v63 = vld [vmem:[%s9512_s7 + $0x28] sm:$0xff] }
 0xaab   :  { %5042 = vmatprep.subr.mxu0 %v8787_v51 }
 0xaac   :  { %5043 = vmatpush2.msra.mxu0 %v4977_v23  ;;  %v4866_v32 = vpop.permute.xlu1 %4865  ;;  %v4976_v53 = vld [vmem:[#allocation4 + $0x2e0] sm:$0xff]  ;;  %v5957_v23 = vld [vmem:[%s9512_s7 + $0x60] sm:$0xff] }
 0xaad   :  { %5044 = vmatprep.subr.mxu0 %v8787_v51  ;;  %4868 = vst.msk [vmem:[#allocation4 + $0x260] sm:$0xff] %vm9505_vm14, %v4866_v32  ;;  %v5138_v32 = vld [vmem:[%s9512_s7 + $0x20] sm:$0xff]  ;;  %vm5711_vm14 = vcmask 74752  }
 0xaae   :  { %5045 = vmatpush2.msra.mxu0 %v4976_v53  ;;  %v5956_v53 = vld [vmem:[%s9512_s7 + $0x58] sm:$0xff] }
 0xaaf   :  { %5046 = vmatprep.subr.mxu0 %v8787_v51 }
 0xab0   :  { %5047 = vmatpush2.msra.mxu0 %v4975_v60  ;;  %v4834_v25 = vpop.permute.xlu1 %4833  ;;  %v4974_v29 = vld [vmem:[#allocation4 + $0x2a0] sm:$0xff] }
 0xab1   :  { %5048 = vmatprep.subr.mxu0 %v8787_v51  ;;  %4836 = vst.msk [vmem:[#allocation4 + $0x220] sm:$0xff] %vm9506_vm15, %v4834_v25 }
 0xab2   :  { %5049 = vmatpush2.msra.mxu0 %v4974_v29  ;;  %v9515_v29 = vld [vmem:[#allocation22_spill] sm:$0xff] }
 0xab3   :  { %5050 = vmatprep.subr.mxu0 %v8787_v51 }
 0xab4   :  { %5051 = vmatpush2.msra.mxu0 %v4973_v43  ;;  %v4972_v55 = vld [vmem:[#allocation4 + $0x260] sm:$0xff] }
 0xab5   :  { %5052 = vmatprep.subr.mxu0 %v8787_v51 }
 0xab6   :  { %5053 = vmatpush2.msra.mxu0 %v4972_v55  ;;  %v5137_v55 = vld [vmem:[%s9512_s7 + $0x18] sm:$0xff] }
 0xab7   :  { %5054 = vmatprep.subr.mxu0 %v8787_v51 }
 0xab8   :  { %5055 = vmatpush2.msra.mxu0 %v4971_v30  ;;  %v4970_v38 = vld [vmem:[#allocation4 + $0x220] sm:$0xff]  ;;  %v5955_v30 = vld [vmem:[%s9512_s7 + $0x50] sm:$0xff] }
 0xab9   :  { %5056 = vmatprep.subr.mxu0 %v8787_v51 }
 0xaba   :  { %5057 = vmatpush2.msra.mxu0 %v4970_v38 }
 0xabb   :  { %5058 = vmatprep.subr.mxu0 %v8787_v51 }
 0xabc   :  { %5059 = vmatpush2.msra.mxu0 %v4969_v59 }
 0xabd   :  { %5061 = vmatmul.mubr.f32.vlgmr.msra.gmra.mxu0 %v4949_v28  ;;  %6162 = vmatprep.subr.mxu0 %v8787_v51  ;;  %v4983_v4 = vpop.permute.xlu1 %4982 }
 0xabe   :  { %5951 = vmatprep.mubr.msk.f32.mxu0 %vm9507_vm11, %v4952_v50  ;;  %6163 = vmatpush3.msk.msra.mxu0 %vm5637_vm4, %v5625_v31 }
 0xabf   :  { %6164 = vmatprep.subr.mxu0 %v8787_v51 }
 0xac0   :  { %6165 = vmatpush3.msra.mxu0 %v5624_v1 }
 0xac1   :  { %5066 = vmatmul.mubr.f32.gmra.mxu0 %v4951_v0  ;;  %6166 = vmatprep.subr.mxu0 %v8787_v51 }
 0xac2   :  { %6176 = vmatprep.mubr.msk.f32.mxu0 %vm6418_vm9, %v8787_v51  ;;  %vm9511_vm9 = vmmov %vm9479_vm0  ;;  %6167 = vmatpush3.msra.mxu0 %v5623_v5  ;;  %vm5633_vm0 = vcmask 408576  }
 0xac3   :  { %6168 = vmatprep.subr.mxu0 %v8787_v51 }
 0xac4   :  { %6169 = vmatpush3.msra.mxu0 %v5622_v22 }
 0xac5   :  { %6170 = vmatprep.subr.mxu0 %v8787_v51 }
 0xb7d   :  { %v5062_v26 = vpop.f32.mrf.mxu0 }
 0xb7e   :  { %v5063_v58 = vadd.f32 %v5062_v26, %v4983_v4 }
 0xb7f   :  { %v5064_v36 = vpop.f32.mrf.mxu0 }
 0xb80   :  { %v5071_v13 = vmax.f32 %v5063_v58, 0.0  ;;  %v5965_v58 = vld [vmem:[%s9512_s7 + $0xa0] sm:$0x3]  ;;  %v5136_v36 = vld [vmem:[%s9512_s7 + $0x10] sm:$0xff] }
 0xb81   :  { %v5067_v2 = vpop.f32.mrf.mxu0 }
 0xb82   :  { %v5068_v33 = vadd.f32 %v5067_v2, %v4988_v56  ;;  %v5073_v47 = vsel %vm9510_vm10, %v5071_v13, 0.0  ;;  %v5082_v52 = vmul.f32 %v5071_v13, %v5071_v13 }
 0xb83   :  { %5074 = vadd.xlane.f32.xlu1 %v5073_v47  ;;  %v5069_v45 = vpop.f32.mrf.mxu0  ;;  %v5135_v47 = vld [vmem:[%s9512_s7 + $0x8] sm:$0xff] }
 0xb84   :  { %v8852_v3 = vmax.f32 %v5068_v33, 0.0  ;;  %v5084_v41 = vsel %vm9511_vm9, %v5082_v52, 0.0  ;;  %v5954_v33 = vld [vmem:[%s9512_s7 + $0x48] sm:$0xff]  ;;  %v5953_v52 = vld [vmem:[%s9512_s7 + $0x40] sm:$0xff] }
 0xb85   :  { %5085 = vadd.xlane.f32.xlu0 %v5084_v41 }
 0xb86   :  { %v5077_v40 = vsel %vm5076_vm8, %v8852_v3, 0.0  ;;  %v5083_v24 = vmul.f32 %v8852_v3, %v8852_v3 }
 0xb88   :  { %v5087_v42 = vsel %vm5076_vm8, %v5083_v24, 0.0 }
 0xb89   :  { %5078 = vadd.xlane.f32.xlu0 %v5077_v40  ;;  %v9516_v40 = vld [vmem:[#allocation20_spill] sm:$0xff] }
 0xb94   :  { %5124 = vperm.xlu1 %6247, %v5120_v34   ;;  %v5240_v34 = vsub.s32 4, %v9516_v40 }
 0xb9f   :  { %5110 = vperm.xlu0 %6246, %v5106_v48   ;;  %v5964_v48 = vld [vmem:[%s9512_s7 + $0x98] sm:$0xff] }
 0xba3   :  { %5129 = vperm.xlu0 %6246, %v5121_v17   ;;  %v5963_v17 = vld [vmem:[%s9512_s7 + $0x90] sm:$0xff] }
 0xbb8   :  { %5088 = vadd.xlane.f32.xlu1 %v5087_v42 }
 0xbc9   :  { %5115 = vperm.xlu1 %6247, %v5107_v44  }
 0xc0c   :  { %v5075_v12 = vpop.xlane.xlu1 %5074 }
 0xc0d   :  { %v5080_v10 = vmul.f32 0.010204081, %v5075_v12  ;;  %v5972_v12 = vld [vmem:[%s9512_s7 + $0xd8] sm:$0x3] }
 0xc0e   :  { %v5086_v61 = vpop.xlane.xlu0 %5085 }
 0xc0f   :  { %v5092_v8 = vmul.f32 %v5080_v10, %v5080_v10  ;;  %v5090_v15 = vmul.f32 0.010204081, %v5086_v61  ;;  %v5102_v27 = vsub.f32 %v5071_v13, %v5080_v10  ;;  %v5962_v10 = vld [vmem:[%s9512_s7 + $0x88] sm:$0xff] }
 0xc10   :  { %v5125_v20 = vpop.permute.xlu1 %5124 }
 0xc11   :  { %v5094_v7 = vsub.f32 %v5090_v15, %v5092_v8 }
 0xc12   :  { %v5079_v14 = vpop.xlane.xlu0 %5078 }
 0xc13   :  { %v5096_v46 = vmax.f32 %v5094_v7, 0.0  ;;  %v8883_v11 = vmul.f32 0.010204081, %v5079_v14  ;;  %v5971_v14 = vld [vmem:[%s9512_s7 + $0xd0] sm:$0xff] }
 0xc15   :  { %v5098_v62 = vadd.f32 1e-05, %v5096_v46  ;;  %v5093_v4 = vmul.f32 %v8883_v11, %v8883_v11 }
 0xc17   :  { %6328 = vrsqrt.f32 %v5098_v62 }
 0xc1a   :  { %v5111_v9 = vpop.permute.xlu0 %5110 }
 0xc24   :  { %v6329_v18 = vpop.eup %6328 }
 0xc25   :  { %v5104_v57 = vmul.f32 %v6329_v18, %v5102_v27  ;;  %v5266_v27 = vsub.s32 5, %v9516_v40 }
 0xc27   :  { %v5118_v54 = vmul.f32 %v5111_v9, %v5104_v57  ;;  %v5970_v57 = vld [vmem:[%s9512_s7 + $0xc8] sm:$0xff] }
 0xc29   :  { %v8870_v21 = vadd.f32 %v5125_v20, %v5118_v54 }
 0xc2b   :  { %v8874_v35 = vrot.slane %v8870_v21, %v9513_v16  ;;  %v8878_v39 = vrot.slane %v8870_v21, %v9514_v37  ;;  %v8892_v43 = vrot.slane %v8870_v21, %v9515_v29  ;;  %v8911_v45 = vrot.slane %v8870_v21, %v9335_v49 }
 0xc2c   :  { %v8928_v18 = vrot.slane %v8870_v21, %v5240_v34 }
 0xc2d   :  { %v5151_v60 = vmul.f32 %v8874_v35, %v5140_v6  ;;  %v5170_v25 = vmul.f32 %v5958_v19, %v8878_v39  ;;  %v5150_v59 = vmul.f32 %v8874_v35, %v5139_v63  ;;  %v5169_v28 = vmul.f32 %v5957_v23, %v8878_v39  ;;  %v5961_v19 = vld [vmem:[%s9512_s7 + $0x80] sm:$0xff]  ;;  %v5960_v63 = vld [vmem:[%s9512_s7 + $0x78] sm:$0xff] }
 0xc2e   :  { %v5149_v50 = vmul.f32 %v8874_v35, %v5138_v32  ;;  %v5168_v0 = vmul.f32 %v5956_v53, %v8878_v39  ;;  %v5148_v56 = vmul.f32 %v8874_v35, %v5137_v55  ;;  %v5167_v2 = vmul.f32 %v5955_v30, %v8878_v39  ;;  %v5979_v32 = vld [vmem:[%s9512_s7 + $0x110] sm:$0x3]  ;;  %v5969_v53 = vld [vmem:[%s9512_s7 + $0xc0] sm:$0xff] }
 0xc2f   :  { %v5177_v13 = vadd.f32 %v5170_v25, %v5151_v60  ;;  %v5196_v24 = vmul.f32 %v5965_v58, %v8892_v43  ;;  %v5176_v42 = vadd.f32 %v5169_v28, %v5150_v59  ;;  %v5147_v31 = vmul.f32 %v8874_v35, %v5136_v36  ;;  %v5977_v28 = vld [vmem:[%s9512_s7 + $0x100] sm:$0xff] }
 0xc30   :  { %v5175_v44 = vadd.f32 %v5168_v0, %v5149_v50  ;;  %v5166_v5 = vmul.f32 %v5954_v33, %v8878_v39  ;;  %v5146_v61 = vmul.f32 %v8874_v35, %v5135_v47  ;;  %v5165_v8 = vmul.f32 %v5953_v52, %v8878_v39  ;;  %v5134_v36 = vld [vmem:[%s9512_s7] sm:$0xff]  ;;  %v5968_v52 = vld [vmem:[%s9512_s7 + $0xb8] sm:$0xff] }
 0xc31   :  { %v5203_v15 = vadd.f32 %v5196_v24, %v5177_v13  ;;  %v5195_v22 = vmul.f32 %v5964_v48, %v8892_v43  ;;  %v5194_v7 = vmul.f32 %v5963_v17, %v8892_v43  ;;  %v5174_v46 = vadd.f32 %v5167_v2, %v5148_v56  ;;  %v5952_v13 = vld [vmem:[%s9512_s7 + $0x38] sm:$0xff]  ;;  %v5986_v48 = vld [vmem:[%s9512_s7 + $0x148] sm:$0x3] }
 0xc32   :  { %v5222_v9 = vmul.f32 %v5972_v12, %v8911_v45  ;;  %v5193_v6 = vmul.f32 %v5962_v10, %v8892_v43  ;;  %v5318_v23 = vsub.s32 7, %v9516_v40  ;;  %v5173_v60 = vadd.f32 %v5166_v5, %v5147_v31  ;;  %v5985_v12 = vld [vmem:[%s9512_s7 + $0x140] sm:$0xff] }
 0xc33   :  { %v5202_v54 = vadd.f32 %v5195_v22, %v5176_v42  ;;  %v5201_v20 = vadd.f32 %v5194_v7, %v5175_v44  ;;  %v5172_v25 = vadd.f32 %v5165_v8, %v5146_v61  ;;  %v5221_v30 = vmul.f32 %v5971_v14, %v8911_v45  ;;  %v5976_v42 = vld [vmem:[%s9512_s7 + $0xf8] sm:$0xff] }
 0xc34   :  { %v5229_v55 = vadd.f32 %v5222_v9, %v5203_v15  ;;  %v5220_v59 = vmul.f32 %v5970_v57, %v8911_v45  ;;  %v5200_v50 = vadd.f32 %v5193_v6, %v5174_v46  ;;  %v8947_v0 = vrot.slane %v8870_v21, %v5266_v27  ;;  %v5984_v15 = vld [vmem:[%s9512_s7 + $0x138] sm:$0xff]  ;;  %v5975_v57 = vld [vmem:[%s9512_s7 + $0xf0] sm:$0xff]  ;;  %v5974_v9 = vld [vmem:[%s9512_s7 + $0xe8] sm:$0xff] }
 0xc35   :  { %v5191_v58 = vmul.f32 %v5960_v63, %v8892_v43  ;;  %v5248_v56 = vmul.f32 %v5979_v32, %v8928_v18  ;;  %v5228_v2 = vadd.f32 %v5221_v30, %v5202_v54  ;;  %v5219_v47 = vmul.f32 %v5969_v53, %v8911_v45  ;;  %v5983_v6 = vld [vmem:[%s9512_s7 + $0x130] sm:$0xff] }
 0xc36   :  { %v5227_v33 = vadd.f32 %v5220_v59, %v5201_v20  ;;  %v5246_v24 = vmul.f32 %v5977_v28, %v8928_v18  ;;  %v5145_v5 = vmul.f32 %v8874_v35, %v5134_v36  ;;  %v5164_v61 = vmul.f32 %v5952_v13, %v8878_v39  ;;  %v5959_v32 = vld [vmem:[%s9512_s7 + $0x70] sm:$0xff] }
 0xc37   :  { %v5198_v31 = vadd.f32 %v5191_v58, %v5172_v25  ;;  %v5226_v10 = vadd.f32 %v5219_v47, %v5200_v50  ;;  %v5218_v22 = vmul.f32 %v5968_v52, %v8911_v45  ;;  %v5274_v46 = vmul.f32 %v5986_v48, %v8947_v0  ;;  %v5992_v25 = vld [vmem:[%s9512_s7 + $0x178] sm:$0xff]  ;;  %v5991_v59 = vld [vmem:[%s9512_s7 + $0x170] sm:$0xff]  ;;  %v5990_v47 = vld [vmem:[%s9512_s7 + $0x168] sm:$0xff] }
 0xc38   :  { %v5253_v35 = vadd.f32 %v5246_v24, %v5227_v33  ;;  %v5245_v39 = vmul.f32 %v5976_v42, %v8928_v18  ;;  %v8979_v54 = vrot.slane %v8870_v21, %v5318_v23  ;;  %v5273_v20 = vmul.f32 %v5985_v12, %v8947_v0  ;;  %v5999_v58 = vld [vmem:[%s9512_s7 + $0x1b0] sm:$0xff]  ;;  %v5966_v48 = vld [vmem:[%s9512_s7 + $0xa8] sm:$0xff] }
 0xc39   :  { %v5244_v28 = vmul.f32 %v5975_v57, %v8928_v18  ;;  %v5243_v50 = vmul.f32 %v5974_v9, %v8928_v18  ;;  %v5271_v13 = vmul.f32 %v5983_v6, %v8947_v0  ;;  %v5190_v33 = vmul.f32 %v5959_v32, %v8892_v43  ;;  %v5130_v32 = vpop.permute.xlu0 %5129 }
 0xc3a   :  { %v5252_v30 = vadd.f32 %v5245_v39, %v5226_v10  ;;  %v5997_v10 = vld [vmem:[%s9512_s7 + $0x1a0] sm:$0xff]  ;;  %v5216_v39 = vmul.f32 %v5966_v48, %v8911_v45 }
 0xc41   :  { %v5089_v38 = vpop.xlane.xlu1 %5088 }
 0xc42   :  { %v5091_v26 = vmul.f32 0.010204081, %v5089_v38  ;;  %v5978_v38 = vld [vmem:[%s9512_s7 + $0x108] sm:$0xff] }
 0xc43   :  { %v5247_v17 = vmul.f32 %v5978_v38, %v8928_v18  ;;  %v5171_v38 = vadd.f32 %v5164_v61, %v5145_v5 }
 0xc44   :  { %v5095_v41 = vsub.f32 %v5091_v26, %v5093_v4  ;;  %v5292_v4 = vsub.s32 6, %v9516_v40  ;;  %v5192_v26 = vmul.f32 %v5961_v19, %v8892_v43  ;;  %v5325_v43 = vmul.f32 %v5999_v58, %v8979_v54  ;;  %v6020_v40 = vld [vmem:[%s9512_s7 + $0x258] sm:$0xff] }
 0xc45   :  { %v5254_v14 = vadd.f32 %v5247_v17, %v5228_v2  ;;  %v5981_v2 = vld [vmem:[%s9512_s7 + $0x120] sm:$0xff] }
 0xc46   :  { %v5097_v1 = vmax.f32 %v5095_v41, 0.0  ;;  %v5967_v41 = vld [vmem:[%s9512_s7 + $0xb0] sm:$0xff]  ;;  %v5199_v44 = vadd.f32 %v5192_v26, %v5173_v60  ;;  %v8968_v8 = vrot.slane %v8870_v21, %v5292_v4  ;;  %v6000_v60 = vld [vmem:[%s9512_s7 + $0x1b8] sm:$0x3]  ;;  %v5103_v21 = vsub.f32 %v8852_v3, %v8883_v11 }
 0xc47   :  { %v5217_v7 = vmul.f32 %v5967_v41, %v8911_v45  ;;  %v5280_v26 = vadd.f32 %v5273_v20, %v5254_v14  ;;  %v5326_v3 = vmul.f32 %v6000_v60, %v8979_v54  ;;  %v5269_v61 = vmul.f32 %v5981_v2, %v8947_v0  ;;  %v5996_v14 = vld [vmem:[%s9512_s7 + $0x198] sm:$0xff]  ;;  %v6006_v2 = vld [vmem:[%s9512_s7 + $0x1e8] sm:$0xff] }
 0xc48   :  { %v5099_v62 = vadd.f32 1e-05, %v5097_v1  ;;  %v5255_v1 = vadd.f32 %v5248_v56, %v5229_v55  ;;  %v5225_v19 = vadd.f32 %v5218_v22, %v5199_v44  ;;  %v5272_v55 = vmul.f32 %v5984_v15, %v8947_v0  ;;  %v5982_v56 = vld [vmem:[%s9512_s7 + $0x128] sm:$0xff]  ;;  %v5116_v15 = vpop.permute.xlu1 %5115 }
 0xc49   :  { %v5224_v63 = vadd.f32 %v5217_v7, %v5198_v31  ;;  %v5299_v11 = vmul.f32 %v5992_v25, %v8968_v8  ;;  %v5298_v42 = vmul.f32 %v5991_v59, %v8968_v8  ;;  %v5998_v44 = vld [vmem:[%s9512_s7 + $0x1a8] sm:$0xff]  ;;  %v5278_v31 = vadd.f32 %v5271_v13, %v5252_v30  ;;  %v6007_v59 = vld [vmem:[%s9512_s7 + $0x1f0] sm:$0x3] }
 0xc4a   :  { %6330 = vrsqrt.f32 %v5099_v62  ;;  %v5993_v62 = vld [vmem:[%s9512_s7 + $0x180] sm:$0x3]  ;;  %v5281_v53 = vadd.f32 %v5274_v46, %v5255_v1  ;;  %v5279_v36 = vadd.f32 %v5272_v55, %v5253_v35  ;;  %v5251_v52 = vadd.f32 %v5244_v28, %v5225_v19  ;;  %v5988_v35 = vld [vmem:[%s9512_s7 + $0x158] sm:$0xff]  ;;  %v5995_v19 = vld [vmem:[%s9512_s7 + $0x190] sm:$0xff] }
 0xc4b   :  { %v5300_v23 = vmul.f32 %v5993_v62, %v8968_v8  ;;  %v5250_v41 = vadd.f32 %v5243_v50, %v5224_v63  ;;  %v5197_v1 = vadd.f32 %v5190_v33, %v5171_v38  ;;  %v5270_v5 = vmul.f32 %v5982_v56, %v8947_v0  ;;  %v5989_v62 = vld [vmem:[%s9512_s7 + $0x160] sm:$0xff] }
 0xc4c   :  { %v5306_v22 = vadd.f32 %v5299_v11, %v5280_v26  ;;  %v5305_v7 = vadd.f32 %v5298_v42, %v5279_v36  ;;  %v5297_v46 = vmul.f32 %v5990_v47, %v8968_v8  ;;  %v5324_v9 = vmul.f32 %v5998_v44, %v8979_v54  ;;  %v5973_v63 = vld [vmem:[%s9512_s7 + $0xe0] sm:$0xff]  ;;  %v5987_v36 = vld [vmem:[%s9512_s7 + $0x150] sm:$0xff]  ;;  %v5994_v11 = vld [vmem:[%s9512_s7 + $0x188] sm:$0xff] }
 0xc4d   :  { %v5307_v24 = vadd.f32 %v5300_v23, %v5281_v53  ;;  %v5277_v20 = vadd.f32 %v5270_v5, %v5251_v52  ;;  %v5276_v6 = vadd.f32 %v5269_v61, %v5250_v41  ;;  %v5323_v25 = vmul.f32 %v5997_v10, %v8979_v54  ;;  %v5980_v23 = vld [vmem:[%s9512_s7 + $0x118] sm:$0xff]  ;;  %v6049_v10 = vld [vmem:[%s9512_s7 + $0x340] sm:$0x3] }
 0xc4e   :  { %v5304_v60 = vadd.f32 %v5297_v46, %v5278_v31  ;;  %v5223_v55 = vadd.f32 %v5216_v39, %v5197_v1  ;;  %v5296_v45 = vmul.f32 %v5989_v62, %v8968_v8  ;;  %v5322_v38 = vmul.f32 %v5996_v14, %v8979_v54  ;;  %v6028_v44 = vld [vmem:[%s9512_s7 + $0x298] sm:$0x3]  ;;  %v6005_v1 = vld [vmem:[%s9512_s7 + $0x1e0] sm:$0xff]  ;;  %v6027_v39 = vld [vmem:[%s9512_s7 + $0x290] sm:$0xff] }
 0xc4f   :  { %v5333_v53 = vadd.f32 %v5326_v3, %v5307_v24  ;;  %v5332_v28 = vadd.f32 %v5325_v43, %v5306_v22  ;;  %v5331_v50 = vadd.f32 %v5324_v9, %v5305_v7  ;;  %v5321_v26 = vmul.f32 %v5995_v19, %v8979_v54  ;;  %v6013_v24 = vld [vmem:[%s9512_s7 + $0x220] sm:$0xff]  ;;  %v6004_v7 = vld [vmem:[%s9512_s7 + $0x1d8] sm:$0xff] }
 0xc50   :  { %v5242_v58 = vmul.f32 %v5973_v63, %v8928_v18  ;;  %v5303_v33 = vadd.f32 %v5296_v45, %v5277_v20  ;;  %v6014_v18 = vld [vmem:[%s9512_s7 + $0x228] sm:$0x3]  ;;  %v5330_v52 = vadd.f32 %v5323_v25, %v5304_v60  ;;  %v5268_v48 = vmul.f32 %v5980_v23, %v8947_v0  ;;  %v6019_v20 = vld [vmem:[%s9512_s7 + $0x250] sm:$0xff]  ;;  %v6041_v25 = vld [vmem:[%s9512_s7 + $0x300] sm:$0xff] }
 0xc51   :  { %v9049_v42 = vmul.f32 %v5987_v36, %v8968_v8  ;;  %v6026_v45 = vld [vmem:[%s9512_s7 + $0x288] sm:$0xff] }
 0xc52   :  { %v5249_v41 = vadd.f32 %v5242_v58, %v5223_v55  ;;  %v6018_v58 = vld [vmem:[%s9512_s7 + $0x248] sm:$0xff] }
 0xc54   :  { %v5275_v46 = vadd.f32 %v5268_v48, %v5249_v41 }
 0xc57   :  { %v6331_v17 = vpop.eup %6330 }
 0xc58   :  { %v5105_v12 = vmul.f32 %v6331_v17, %v5103_v21  ;;  %v5295_v21 = vmul.f32 %v5988_v35, %v8968_v8 }
 0xc5a   :  { %v5119_v57 = vmul.f32 %v5116_v15, %v5105_v12  ;;  %v5302_v3 = vadd.f32 %v5295_v21, %v5276_v6  ;;  %v9064_v12 = vmul.f32 %v5994_v11, %v8979_v54  ;;  %v6012_v54 = vld [vmem:[%s9512_s7 + $0x218] sm:$0xff]  ;;  %v6003_v21 = vld [vmem:[%s9512_s7 + $0x1d0] sm:$0xff]  ;;  %v6010_v11 = vld [vmem:[%s9512_s7 + $0x208] sm:$0xff] }
 0xc5c   :  { %v5133_v30 = vadd.f32 %v5130_v32, %v5119_v57  ;;  %v9070_v5 = vadd.f32 %v5321_v26, %v5302_v3  ;;  %v6034_v57 = vld [vmem:[%s9512_s7 + $0x2c8] sm:$0xff] }
 0xc5e   :  { %v9026_v13 = vrot.slane %v5133_v30, %v9513_v16  ;;  %v9029_v56 = vrot.slane %v5133_v30, %v9514_v37  ;;  %v9034_v47 = vrot.slane %v5133_v30, %v9515_v29  ;;  %v9039_v16 = vrot.slane %v5133_v30, %v9335_v49  ;;  %v6021_v29 = vld [vmem:[%s9512_s7 + $0x260] sm:$0x3] }
 0xc5f   :  { %v9043_v37 = vrot.slane %v5133_v30, %v5240_v34  ;;  %v9053_v0 = vrot.slane %v5133_v30, %v5266_v27  ;;  %v9057_v49 = vrot.slane %v5133_v30, %v5292_v4  ;;  %v6035_v34 = vld [vmem:[%s9512_s7 + $0x2d0] sm:$0x3]  ;;  %v6042_v27 = vld [vmem:[%s9512_s7 + $0x308] sm:$0x3]  ;;  %v5329_v4 = vadd.f32 %v5322_v38, %v5303_v33  ;;  %v6033_v33 = vld [vmem:[%s9512_s7 + $0x2c0] sm:$0xff] }
 0xc60   :  { %v5352_v17 = vmul.f32 %v6007_v59, %v9026_v13  ;;  %v5351_v31 = vmul.f32 %v6006_v2, %v9026_v13  ;;  %v5378_v43 = vmul.f32 %v6014_v18, %v9029_v56  ;;  %v5404_v61 = vmul.f32 %v6021_v29, %v9034_v47 }
 0xc61   :  { %v5377_v22 = vmul.f32 %v6013_v24, %v9029_v56  ;;  %v5430_v14 = vmul.f32 %v6028_v44, %v9039_v16  ;;  %v5456_v35 = vmul.f32 %v6035_v34, %v9043_v37  ;;  %v5350_v9 = vmul.f32 %v6005_v1, %v9026_v13 }
 0xc62   :  { %v5359_v8 = vadd.f32 %v5352_v17, %v5333_v53  ;;  %v5358_v15 = vadd.f32 %v5351_v31, %v5332_v28  ;;  %v5482_v6 = vmul.f32 %v6042_v27, %v9053_v0  ;;  %v5508_v19 = vmul.f32 %v6049_v10, %v9057_v49  ;;  %v6011_v53 = vld [vmem:[%s9512_s7 + $0x210] sm:$0xff]  ;;  %v6025_v17 = vld [vmem:[%s9512_s7 + $0x280] sm:$0xff]  ;;  %v6002_v10 = vld [vmem:[%s9512_s7 + $0x1c8] sm:$0xff] }
 0xc63   :  { %v5403_v32 = vmul.f32 %v6020_v40, %v9034_v47  ;;  %v5357_v55 = vadd.f32 %v5350_v9, %v5331_v50  ;;  %v5376_v30 = vmul.f32 %v6012_v54, %v9029_v56  ;;  %v5349_v38 = vmul.f32 %v6004_v7, %v9026_v13  ;;  %v6017_v31 = vld [vmem:[%s9512_s7 + $0x240] sm:$0xff] }
 0xc64   :  { %v5385_v62 = vadd.f32 %v5378_v43, %v5359_v8  ;;  %v5384_v63 = vadd.f32 %v5377_v22, %v5358_v15  ;;  %v5429_v59 = vmul.f32 %v6027_v39, %v9039_v16  ;;  %v5455_v28 = vmul.f32 %v6034_v57, %v9043_v37  ;;  %v6040_v22 = vld [vmem:[%s9512_s7 + $0x2f8] sm:$0xff]  ;;  %v6009_v57 = vld [vmem:[%s9512_s7 + $0x200] sm:$0xff] }
 0xc65   :  { %v5402_v26 = vmul.f32 %v6019_v20, %v9034_v47  ;;  %v5383_v2 = vadd.f32 %v5376_v30, %v5357_v55  ;;  %v5356_v50 = vadd.f32 %v5349_v38, %v5330_v52  ;;  %v5375_v3 = vmul.f32 %v6011_v53, %v9029_v56  ;;  %v6016_v30 = vld [vmem:[%s9512_s7 + $0x238] sm:$0xff]  ;;  %v6047_v38 = vld [vmem:[%s9512_s7 + $0x330] sm:$0xff] }
 0xc66   :  { %v5411_v60 = vadd.f32 %v5404_v61, %v5385_v62  ;;  %v5410_v23 = vadd.f32 %v5403_v32, %v5384_v63  ;;  %v5481_v41 = vmul.f32 %v6041_v25, %v9053_v0  ;;  %v5428_v48 = vmul.f32 %v6026_v45, %v9039_v16  ;;  %v6048_v61 = vld [vmem:[%s9512_s7 + $0x338] sm:$0xff]  ;;  %v6001_v45 = vld [vmem:[%s9512_s7 + $0x1c0] sm:$0xff] }
 0xc67   :  { %v5348_v29 = vmul.f32 %v6003_v21, %v9026_v13  ;;  %v5409_v44 = vadd.f32 %v5402_v26, %v5383_v2  ;;  %v5382_v34 = vadd.f32 %v5375_v3, %v5356_v50  ;;  %v5401_v52 = vmul.f32 %v6018_v58, %v9034_v47  ;;  %v6032_v62 = vld [vmem:[%s9512_s7 + $0x2b8] sm:$0xff]  ;;  %v6023_v58 = vld [vmem:[%s9512_s7 + $0x270] sm:$0xff] }
 0xc68   :  { %v5437_v36 = vadd.f32 %v5430_v14, %v5411_v60  ;;  %v5436_v18 = vadd.f32 %v5429_v59, %v5410_v23  ;;  %v5454_v8 = vmul.f32 %v6033_v33, %v9043_v37  ;;  %v5374_v27 = vmul.f32 %v6010_v11, %v9029_v56  ;;  %v6008_v2 = vld [vmem:[%s9512_s7 + $0x1f8] sm:$0xff] }
 0xc69   :  { %v5355_v43 = vadd.f32 %v5348_v29, %v5329_v4  ;;  %v5435_v15 = vadd.f32 %v5428_v48, %v5409_v44  ;;  %v5408_v54 = vadd.f32 %v5401_v52, %v5382_v34  ;;  %v5427_v7 = vmul.f32 %v6025_v17, %v9039_v16  ;;  %v6024_v4 = vld [vmem:[%s9512_s7 + $0x278] sm:$0xff]  ;;  %v6015_v48 = vld [vmem:[%s9512_s7 + $0x230] sm:$0xff]  ;;  %v6038_v52 = vld [vmem:[%s9512_s7 + $0x2e8] sm:$0xff] }
 0xc6a   :  { %v5463_v24 = vadd.f32 %v5456_v35, %v5437_v36  ;;  %v5462_v1 = vadd.f32 %v5455_v28, %v5436_v18  ;;  %v5400_v39 = vmul.f32 %v6017_v31, %v9034_v47  ;;  %v5301_v9 = vadd.f32 %v9049_v42, %v5275_v46  ;;  %v6039_v42 = vld [vmem:[%s9512_s7 + $0x2f0] sm:$0xff]  ;;  %v6030_v31 = vld [vmem:[%s9512_s7 + $0x2a8] sm:$0xff] }
 0xc6b   :  { %v5381_v35 = vadd.f32 %v5374_v27, %v5355_v43  ;;  %v5434_v63 = vadd.f32 %v5427_v7, %v5408_v54  ;;  %v5347_v32 = vmul.f32 %v6002_v10, %v9026_v13  ;;  %v5507_v53 = vmul.f32 %v6048_v61, %v9057_v49  ;;  %v6045_v54 = vld [vmem:[%s9512_s7 + $0x320] sm:$0xff] }
 0xc6c   :  { %v5489_v40 = vadd.f32 %v5482_v6, %v5463_v24  ;;  %v5488_v14 = vadd.f32 %v5481_v41, %v5462_v1  ;;  %v5461_v6 = vadd.f32 %v5454_v8, %v5435_v15  ;;  %v5480_v60 = vmul.f32 %v6040_v22, %v9053_v0  ;;  %v6022_v1 = vld [vmem:[%s9512_s7 + $0x268] sm:$0xff]  ;;  %v6340_v22 = vld [vmem:[#allocation3 + $0x18] sm:$0xff]  ;;  %v6037_v7 = vld [vmem:[%s9512_s7 + $0x2e0] sm:$0xff] }
 0xc6d   :  { %v5453_v25 = vmul.f32 %v6032_v62, %v9043_v37  ;;  %v5407_v55 = vadd.f32 %v5400_v39, %v5381_v35  ;;  %v5426_v46 = vmul.f32 %v6024_v4, %v9039_v16  ;;  %v5354_v21 = vadd.f32 %v5347_v32, %v9070_v5  ;;  %v6029_v62 = vld [vmem:[%s9512_s7 + $0x2a0] sm:$0xff] }
 0xc6e   :  { %v5515_v20 = vadd.f32 %v5508_v19, %v5489_v40  ;;  %v6031_v19 = vld [vmem:[%s9512_s7 + $0x2b0] sm:$0xff]  ;;  %v5373_v23 = vmul.f32 %v6009_v57, %v9029_v56  ;;  %v5514_v59 = vadd.f32 %v5507_v53, %v5488_v14  ;;  %v5487_v28 = vadd.f32 %v5480_v60, %v5461_v6 }
 0xc6f   :  { %v5460_v26 = vadd.f32 %v5453_v25, %v5434_v63  ;;  %v5327_v36 = vadd.f32 %v9064_v12, %v5301_v9  ;;  %v5433_v33 = vadd.f32 %v5426_v46, %v5407_v55  ;;  %v5399_v3 = vmul.f32 %v6016_v30, %v9034_v47  ;;  %v6046_v12 = vld [vmem:[%s9512_s7 + $0x328] sm:$0xff]  ;;  %v6043_v25 = vld [vmem:[%s9512_s7 + $0x310] sm:$0xff]  ;;  %v5619_v46 = vld [vmem:[%s6573_s20] sm:$0xff] }
 0xc70   :  { %6146 = vmatpush3.xpose.msk.msra.mxu1 %vm9517_vm7, %v5515_v20  ;;  %v5380_v50 = vadd.f32 %v5373_v23, %v5354_v21  ;;  %v5346_v5 = vmul.f32 %v6001_v45, %v9026_v13  ;;  %v5506_v11 = vmul.f32 %v6047_v38, %v9057_v49  ;;  %v5479_v18 = vmul.f32 %v6039_v42, %v9053_v0  ;;  %v6036_v20 = vld [vmem:[%s9512_s7 + $0x2d8] sm:$0xff]  ;;  %v5516_v38 = vld [vmem:[%s9521_s16] sm:$0x3]  ;;  %v5621_v42 = vld [vmem:[%s6573_s20 + $0x10] sm:$0xff] }
 0xc71   :  { %6147 = vmatprep.subr.mxu1 %v8787_v51  ;;  %v5452_v41 = vmul.f32 %v6031_v19, %v9043_v37  ;;  %v5425_v29 = vmul.f32 %v6023_v58, %v9039_v16  ;;  %v5372_v44 = vmul.f32 %v6008_v2, %v9029_v56  ;;  %v5398_v10 = vmul.f32 %v6015_v48, %v9034_v47  ;;  %v6050_v19 = vld [vmem:[%s6568_s6] ss:$0 sm:$0xff]  ;;  %s6429_s6 = smov [#allocation5]  }
 0xc72   :  { %v5406_v17 = vadd.f32 %v5399_v3, %v5380_v50  ;;  %v5353_v24 = vadd.f32 %v5346_v5, %v5327_v36  ;;  %v5513_v13 = vadd.f32 %v5506_v11, %v5487_v28  ;;  %v5486_v34 = vadd.f32 %v5479_v18, %v5460_v26  ;;  %6171 = vmatpush3.msra.mxu0 %v5621_v42  ;;  %v6059_v28 = vld [vmem:[%s6578_s27] ss:$0 sm:$0xff] }
 0xc73   :  { %v5459_v8 = vadd.f32 %v5452_v41, %v5433_v33  ;;  %v5505_v40 = vmul.f32 %v6046_v12, %v9057_v49  ;;  %v5478_v56 = vmul.f32 %v6038_v52, %v9053_v0  ;;  %v5424_v15 = vmul.f32 %v6022_v1, %v9039_v16  ;;  %v6044_v16 = vld [vmem:[%s9512_s7 + $0x318] sm:$0xff]  ;;  %6172 = vmatprep.subr.mxu0 %v6340_v22 }
 0xc74   :  { %6148 = vmatpush3.xpose.msk.msra.mxu1 %vm9518_vm12, %v5514_v59  ;;  %v5432_v43 = vadd.f32 %v5425_v29, %v5406_v17  ;;  %v5379_v27 = vadd.f32 %v5372_v44, %v5353_v24  ;;  %v5504_v4 = vmul.f32 %v6045_v54, %v9057_v49  ;;  %v5477_v57 = vmul.f32 %v6037_v7, %v9053_v0 }
 0xc75   :  { %6149 = vmatprep.subr.mxu1 %v8787_v51  ;;  %v5451_v51 = vmul.f32 %v6030_v31, %v9043_v37  ;;  %v5512_v14 = vadd.f32 %v5505_v40, %v5486_v34  ;;  %v5485_v47 = vadd.f32 %v5478_v56, %v5459_v8  ;;  %v5450_v9 = vmul.f32 %v6029_v62, %v9043_v37 }
 0xc76   :  { %v5405_v61 = vadd.f32 %v5398_v10, %v5379_v27  ;;  %v5503_v53 = vmul.f32 %v6044_v16, %v9057_v49  ;;  %v5476_v60 = vmul.f32 %v6036_v20, %v9053_v0  ;;  %v5502_v30 = vmul.f32 %v6043_v25, %v9057_v49  ;;  %v5620_v0 = vld [vmem:[%s6573_s20 + $0x8] sm:$0xff]  ;;  %s5731_s20 = sshll.u32 %s6429_s6, 4  ;;  %s5732_s20 = int_to_ptr.vmem [resolvable:$true] %s5731_s20 }
 0xc77   :  { %v5458_v35 = vadd.f32 %v5451_v51, %v5432_v43  ;;  %v5511_v6 = vadd.f32 %v5504_v4, %v5485_v47  ;;  %6173 = vmatpush3.msra.mxu0 %v5620_v0  ;;  %s6341_s27 = scalar_lea.vmem %s5732_s20, 32  ;;  %p6346_p1 = scmp.lt.s32.totalorder %s5732_s20, %s5732_s20 }
 0xc78   :  { %6150 = vmatpush3.xpose.msk.msra.mxu1 %vm9519_vm3, %v5513_v13  ;;  %v5431_v39 = vadd.f32 %v5424_v15, %v5405_v61  ;;  %6174 = vmatprep.subr.mxu0 %v6340_v22  ;;  %p6342_p0 = scmp.ne.s32.totalorder %s5732_s20, %s6341_s27  ;;  %p6347_p2 = scmp.lt.s32.totalorder %s6341_s27, %s6341_s27 }
 0xc79   :  { %6151 = vmatprep.subr.mxu1 %v6340_v22  ;;  %v5484_v63 = vadd.f32 %v5477_v57, %v5458_v35  ;;  %6175 = vmatpush3.msra.mxu0 %v5619_v46 }
 0xc7a   :  { %v5457_v32 = vadd.f32 %v5450_v9, %v5431_v39  ;;  %p6348_p3 = por %p6347_p2, %p6346_p1 }
 0xc7b   :  { %v5510_v55 = vadd.f32 %v5503_v53, %v5484_v63 }
 0xc7c   :  { %6152 = vmatpush3.xpose.msk.msra.mxu1 %vm9520_vm5, %v5512_v14  ;;  %v5483_v37 = vadd.f32 %v5476_v60, %v5457_v32  ;;  %p6349_p4 = pnand %p6348_p3, %p6342_p0 }
 0xc7d   :  { %6153 = vmatprep.subr.mxu1 %v6340_v22 }
 0xc7e   :  { %v5509_v45 = vadd.f32 %v5502_v30, %v5483_v37 }
 0xc80   :  { %6154 = vmatpush3.xpose.msk.msra.mxu1 %vm9522_vm13, %v5511_v6 }
 0xc81   :  { %6155 = vmatprep.subr.mxu1 %v6340_v22 }
 0xc84   :  { %6156 = vmatpush3.xpose.msk.msra.mxu1 %vm9523_vm2, %v5510_v55 }
 0xc85   :  { %6157 = vmatprep.subr.mxu1 %v6340_v22 }
 0xc88   :  { %6158 = vmatpush3.xpose.msk.msra.mxu1 %vm9524_vm1, %v5509_v45 }
 0xc8b   :  { %6160 = vmatmul.mubr.msk.f32.vlgmr.msra.gmra.mxu1 %vm9525_vm6, %v5516_v38 }
 0xd4b   :  { %v5614_v21 = vpop.f32.mrf.mxu1 }
 0xd4c   :  { %v5615_v23 = vadd.f32 %v6050_v19, %v5614_v21 }
 0xd4d   :  { %v6161_v49 = vpop.f32.mrf.mxu1 }
 0xd4e   :  { %v5618_v59 = vmax.f32 %v5615_v23, 0.0 }
 0xd50   :  { %6177 = vmatmul.mubr.msk.f32.vlgmr.msra.gmra.mxu0 %vm5633_vm0, %v5618_v59 }
 0xe10   :  { %v5707_v26 = vpop.f32.mrf.mxu0 }
 0xe11   :  { %v5708_v58 = vadd.f32 %v6059_v28, %v5707_v26 }
 0xe12   :  { %v6178_v36 = vpop.f32.mrf.mxu0 }
 0xe13   :  { %v5712_v2 = vsel %vm5711_vm14, %v5708_v58, -inf }
 0xe14   :  { %5713 = vmax.xlane.f32.xlu1 %v5712_v2 }
 0xe9d   :  { %v5714_v33 = vpop.xlane.xlu1 %5713 }
 0xe9e   :  { %v5715_v50 = vsub.f32 %v5708_v58, %v5714_v33 }
 0xea0   :  { %v5716_v3 = vmul.f32 1.442695, %v5715_v50 }
 0xea2   :  { %6332 = vpow2.f32 %v5716_v3 }
 0xeaf   :  { %v6333_v5 = vpop.eup %6332 }
 0xeb0   :  { %v5718_v11 = vsel %vm5711_vm14, %v6333_v5, 0.0 }
 0xeb1   :  { %5719 = vadd.xlane.f32.xlu0 %v5718_v11 }
 0xf3a   :  { %v5720_v18 = vpop.xlane.xlu0 %5719 }
 0xf3b   :  { %6334 = vlog2.f32 %v5720_v18 }
 0xf48   :  { %v6335_v41 = vpop.eup %6334 }
 0xf49   :  { %v5722_v48 = vmul.f32 0.6931472, %v6335_v41 }
 0xf4b   :  { %v5723_v12 = vsub.f32 %v5715_v50, %v5722_v48 }
 0xf4d   :  { %5724 = vst.msk [vmem:[#allocation5] sm:$0x3] %vm5711_vm14, %v5723_v12 }
 0xf4e   :  { %6352 = shalt.err (!%p6349_p4)
}
 0xf4f   :  { %5734 = dma.vmem_to_hbm [thread:$0]  %s5732_s20, 32, %s6583_s12, [#allocation6]  }
 0xf50   :  { %6361 = dma.done.wait [#allocation6], 32  }
 0xf51   :  { %6362 = vsyncadd [#allocation6], 4294967264 }
 0xf52   :  { %5738 = vsyncpa [#allocation6], 1 }

</bundles_post_ra>
